<compile_context>
chip_gen: v7x
topology: tpu7x:2x2x1
jax: 0.10.0
libtpu: 0.0.40
codegen_flags: <defaults>
</compile_context>

<pallas_src>
import functools

import jax
import jax.numpy as jnp
from jax.experimental import pallas as pl
from jax.experimental.pallas import tpu as pltpu

LANE = 128      # f32 vreg lane width
SUBLANE = 8     # f32 vreg sublane count


def _round_up(x, m):
    return (x + m - 1) // m * m


# ----------------------------------------------------------------------------
# Fused Pallas kernel: 4-layer BiLSTM stack + Linear + LogSoftmax head
# ----------------------------------------------------------------------------
def _lstm_stack_kernel(*refs, hidden, seq_len, batch, n_layers, gate_pad, n_class):
    """refs layout (all whole-array VMEM):
       inputs : x (T*B, Ep),
                per layer l: w_ih (in_dim, 2G), w_hh_f (H, G), w_hh_b (H, G), b (1, 2G),
                gen_w (2H, C), gen_b (1, C)
       outputs: out (B, C)
       scratch: act (T*B, 2H), xproj (T*B, 2G)
    Row s*B + b of x / act / xproj is timestep s, batch row b.
    Gate columns are packed densely i|f|g|o (PyTorch order) per direction:
    fwd gates at [0:4H] of block [0:G], bwd gates at [0:4H] of block [G:2G].
    """
    H, T, B, G = hidden, seq_len, batch, gate_pad
    n_in = 1 + 4 * n_layers + 2

    x_ref = refs[0]
    layer_refs = [refs[1 + 4 * l: 5 + 4 * l] for l in range(n_layers)]
    gen_w_ref = refs[n_in - 2]
    gen_b_ref = refs[n_in - 1]
    out_ref = refs[n_in]
    act_ref = refs[n_in + 1]
    xproj_ref = refs[n_in + 2]

    def cell(gates, c):
        # gates: (B, G) dense i|f|g|o.  Full-vreg transcendentals, then lane slices.
        sg = jax.nn.sigmoid(gates)
        tg = jnp.tanh(gates)
        i = sg[:, 0 * H:1 * H]
        f = sg[:, 1 * H:2 * H]
        g = tg[:, 2 * H:3 * H]
        o = sg[:, 3 * H:4 * H]
        c_new = f * c + i * g
        h_new = o * jnp.tanh(c_new)
        return h_new, c_new

    # ---- hidden layers 0 .. n_layers-2: full bidirectional sequence output ----
    for l in range(n_layers - 1):
        w_ih, w_hh_f, w_hh_b, b = layer_refs[l]
        src = x_ref[...] if l == 0 else act_ref[...]
        # Hoisted input projection for BOTH directions, bias folded in.  Stored to
        # VMEM scratch so it never lives in vregs across the unrolled time loop.
        xproj_ref[...] = (jnp.dot(src, w_ih[...], preferred_element_type=jnp.float32)
                          + b[...])
        whf = w_hh_f[...]
        whb = w_hh_b[...]
        h_f = jnp.zeros((B, H), jnp.float32)
        h_b = jnp.zeros((B, H), jnp.float32)
        c_f = jnp.zeros((B, H), jnp.float32)
        c_b = jnp.zeros((B, H), jnp.float32)
        # TODO(synk): for long sequences switch to lax.fori_loop(unroll=2-4) with
        # pl.multiple_of(s * B, B) row offsets instead of full Python unrolling.
        for s in range(T):
            rf = s * B                 # forward step s
            rb = (T - 1 - s) * B       # backward step for original timestep T-1-s
            gates_f = xproj_ref[rf:rf + B, 0:G] + jnp.dot(
                h_f, whf, preferred_element_type=jnp.float32)
            gates_b = xproj_ref[rb:rb + B, G:2 * G] + jnp.dot(
                h_b, whb, preferred_element_type=jnp.float32)
            h_f, c_f = cell(gates_f, c_f)
            h_b, c_b = cell(gates_b, c_b)
            act_ref[rf:rf + B, 0:H] = h_f
            act_ref[rb:rb + B, H:2 * H] = h_b
        # TODO(synk): PyTorch applies inter-layer dropout (p=0.3) in train mode only;
        # this is the deterministic eval-mode forward.

    # ---- last layer: compute only what the classifier consumes ----
    w_ih, w_hh_f, w_hh_b, b = layer_refs[n_layers - 1]
    src = act_ref[...] if n_layers > 1 else x_ref[...]

    # Forward gates for all timesteps (recurrence needs them all).
    xproj_ref[:, 0:G] = (jnp.dot(src, w_ih[:, 0:G], preferred_element_type=jnp.float32)
                         + b[:, 0:G])
    whf = w_hh_f[...]
    h_f = jnp.zeros((B, H), jnp.float32)
    c_f = jnp.zeros((B, H), jnp.float32)
    for s in range(T):
        rf = s * B
        gates_f = xproj_ref[rf:rf + B, 0:G] + jnp.dot(
            h_f, whf, preferred_element_type=jnp.float32)
        h_f, c_f = cell(gates_f, c_f)

    # Backward gates only for original timestep T-1: it is the backward direction's
    # FIRST step from a zero state, so the recurrent term is exactly zero.
    last = (T - 1) * B
    gates_b = (jnp.dot(src[last:last + B, :], w_ih[:, G:2 * G],
                       preferred_element_type=jnp.float32) + b[:, G:2 * G])
    h_b, _ = cell(gates_b, jnp.zeros((B, H), jnp.float32))

    # ---- fused Linear + LogSoftmax head (two small dots, no concat) ----
    logits = (jnp.dot(h_f, gen_w_ref[0:H, :], preferred_element_type=jnp.float32)
              + jnp.dot(h_b, gen_w_ref[H:2 * H, :], preferred_element_type=jnp.float32)
              + gen_b_ref[...])                                  # (B, C)
    m = jnp.max(logits, axis=-1, keepdims=True)
    z = logits - m
    out_ref[...] = z - jnp.log(jnp.sum(jnp.exp(z), axis=-1, keepdims=True))


_VMEM = pl.BlockSpec(memory_space=pltpu.MemorySpace.VMEM)


# ----------------------------------------------------------------------------
# Parameters: logical init + dense packing into the kernel layout
# ----------------------------------------------------------------------------
def init_params(key, input_size, word_vec_size, hidden_size, n_class, n_layers):
    """Logical (unpadded) parameters.  LSTM weights are stored pre-transposed:
    w_ih (in_dim, 4H), w_hh (H, 4H), bias (1, 4H) = b_ih + b_hh, gate order i,f,g,o."""
    H = hidden_size
    k_emb, k_gen_w, k_gen_b, k_lstm = jax.random.split(key, 4)
    params = {
        "emb": jax.random.normal(k_emb, (input_size, word_vec_size), jnp.float32),
        "gen_w": jax.random.uniform(k_gen_w, (2 * H, n_class), jnp.float32, -0.1, 0.1),
        "gen_b": jax.random.uniform(k_gen_b, (1, n_class), jnp.float32, -0.1, 0.1),
        "lstm": [],
    }
    scale = 1.0 / jnp.sqrt(jnp.float32(H))
    layer_keys = jax.random.split(k_lstm, n_layers * 2)
    for layer in range(n_layers):
        in_dim = word_vec_size if layer == 0 else 2 * H
        layer_params = {}
        for d, name in enumerate(("fwd", "bwd")):
            kk = jax.random.split(layer_keys[layer * 2 + d], 4)
            w_ih = jax.random.uniform(kk[0], (in_dim, 4 * H), jnp.float32, -1, 1) * scale
            w_hh = jax.random.uniform(kk[1], (H, 4 * H), jnp.float32, -1, 1) * scale
            b_ih = jax.random.uniform(kk[2], (1, 4 * H), jnp.float32, -1, 1) * scale
            b_hh = jax.random.uniform(kk[3], (1, 4 * H), jnp.float32, -1, 1) * scale
            layer_params[name] = (w_ih, w_hh, b_ih + b_hh)   # combined bias
        params["lstm"].append(layer_params)
    return params


def prepare_params(params, *, word_vec_size, hidden_size, n_layers):
    """Pack weights densely for the fused kernel.

    Gates stay in their natural dense i|f|g|o layout (4H columns), padded only up to
    the next 128-lane multiple G (a no-op at H=32).  fwd|bwd hidden channels are packed
    densely (2H wide) between layers, so the layer>=1 input weights need no row
    rearrangement.  Padded rows/columns carry zero weights, so they never leak into
    real outputs.
    """
    H = hidden_size
    G = _round_up(4 * H, LANE)
    Ep = _round_up(word_vec_size, LANE)

    prep = {
        "emb": jnp.pad(params["emb"], ((0, 0), (0, Ep - word_vec_size))),
        "gen_w": params["gen_w"],        # (2H, C): rows 0:H fwd, H:2H bwd (dense)
        "gen_b": params["gen_b"],        # (1, C)
        "layers": [],
    }

    for layer in range(n_layers):
        in_dim = word_vec_size if layer == 0 else 2 * H
        in_dim_p = Ep if layer == 0 else 2 * H
        w_ih_parts, b_parts = [], []
        for name in ("fwd", "bwd"):
            w_ih, _, bias = params["lstm"][layer][name]
            w_ih_parts.append(jnp.pad(w_ih, ((0, in_dim_p - in_dim), (0, G - 4 * H))))
            b_parts.append(jnp.pad(bias, ((0, 0), (0, G - 4 * H))))
        w_ih_c = jnp.concatenate(w_ih_parts, axis=1)          # (in_dim_p, 2G)
        b_c = jnp.concatenate(b_parts, axis=1)                # (1, 2G)
        w_hh_f = jnp.pad(params["lstm"][layer]["fwd"][1], ((0, 0), (0, G - 4 * H)))
        w_hh_b = jnp.pad(params["lstm"][layer]["bwd"][1], ((0, 0), (0, G - 4 * H)))
        prep["layers"].append((w_ih_c, w_hh_f, w_hh_b, b_c))
    return prep, G


# ----------------------------------------------------------------------------
# Forward pass (single fused pallas_call)
# ----------------------------------------------------------------------------
def rnn_classifier_forward(prep, tokens, *, hidden_size, gate_pad, n_layers, n_class):
    H, G = hidden_size, gate_pad
    B, T = tokens.shape
    Bp = _round_up(max(B, SUBLANE), SUBLANE)     # sublane-dense batch

    # Embedding gather straight into flattened time-major rows (row s*Bp + b).
    # TODO(synk): could be fused into the kernel via scalar-prefetched token ids.
    tok_p = jnp.pad(tokens, ((0, Bp - B), (0, 0)))
    x = prep["emb"][tok_p.T.reshape(-1)]         # (T*Bp, Ep)

    inputs = [x]
    for layer in range(n_layers):
        inputs.extend(prep["layers"][layer])     # w_ih, w_hh_f, w_hh_b, b
    inputs += [prep["gen_w"], prep["gen_b"]]

    kernel = functools.partial(
        _lstm_stack_kernel, hidden=H, seq_len=T, batch=Bp,
        n_layers=n_layers, gate_pad=G, n_class=n_class)

    # TODO(synk): for large hidden_size / seq_len, tile the gate-column dimension with
    # a grid and bf16 weights instead of whole-array VMEM specs (v7x VMEM is 64 MiB);
    # on v7x the two directions could also be split across the TensorCores.
    y = pl.pallas_call(
        kernel,
        out_shape=jax.ShapeDtypeStruct((Bp, n_class), jnp.float32),
        in_specs=[_VMEM] * len(inputs),
        out_specs=_VMEM,
        scratch_shapes=[
            pltpu.VMEM((T * Bp, 2 * H), jnp.float32),   # inter-layer activation slab
            pltpu.VMEM((T * Bp, 2 * G), jnp.float32),   # per-layer gate projections
        ],
    )(*inputs)
    return y[:B]


# ----------------------------------------------------------------------------
# Pure-JAX reference (unpadded, un-fused) for a correctness check
# ----------------------------------------------------------------------------
def _lstm_cell_ref(gates, c, H):
    i = jax.nn.sigmoid(gates[:, 0 * H:1 * H])
    f = jax.nn.sigmoid(gates[:, 1 * H:2 * H])
    g = jnp.tanh(gates[:, 2 * H:3 * H])
    o = jax.nn.sigmoid(gates[:, 3 * H:4 * H])
    c_new = f * c + i * g
    return o * jnp.tanh(c_new), c_new


def reference_forward(params, tokens, *, hidden_size, n_layers):
    H = hidden_size
    x = jnp.transpose(params["emb"][tokens], (1, 0, 2))      # (T, B, E)

    def run_dir(seq, w_ih, w_hh, b):
        B = seq.shape[1]

        def step(carry, x_t):
            h, c = carry
            gates = x_t @ w_ih + h @ w_hh + b
            h, c = _lstm_cell_ref(gates, c, H)
            return (h, c), h

        _, hs = jax.lax.scan(step, (jnp.zeros((B, H)), jnp.zeros((B, H))), seq)
        return hs

    for layer in range(n_layers):
        lp = params["lstm"][layer]
        hf = run_dir(x, *lp["fwd"])
        hb = run_dir(x[::-1], *lp["bwd"])[::-1]
        x = jnp.concatenate([hf, hb], axis=-1)
    logits = x[-1] @ params["gen_w"] + params["gen_b"]
    return jax.nn.log_softmax(logits, axis=-1)


# ----------------------------------------------------------------------------
# Demo
# ----------------------------------------------------------------------------
if __name__ == "__main__":
    input_size = 32       # vocab size
    word_vec_size = 16
    hidden_size = 32
    n_class = 4
    n_layers = 4
    batch, seq = 2, 8

    key = jax.random.PRNGKey(0)
    pkey, xkey = jax.random.split(key)
    params = init_params(pkey, input_size, word_vec_size, hidden_size, n_class, n_layers)
    tokens = jax.random.randint(xkey, (batch, seq), 0, input_size, dtype=jnp.int32)

    prep, gate_pad = prepare_params(
        params, word_vec_size=word_vec_size, hidden_size=hidden_size, n_layers=n_layers)

    fwd = jax.jit(functools.partial(
        rnn_classifier_forward, hidden_size=hidden_size, gate_pad=gate_pad,
        n_layers=n_layers, n_class=n_class))
    y = fwd(prep, tokens)
    jax.block_until_ready(y)

    assert y.shape == (batch, n_class), y.shape
    assert bool(jnp.all(jnp.isfinite(y)))
    # log_softmax rows should exp-sum to 1
    assert bool(jnp.allclose(jnp.sum(jnp.exp(y), axis=-1), 1.0, atol=1e-5))

    # Cross-check the fused/dense Pallas path against a plain-JAX reference.
    with jax.default_matmul_precision("float32"):
        y_ref = reference_forward(params, tokens,
                                  hidden_size=hidden_size, n_layers=n_layers)
    assert bool(jnp.allclose(y, y_ref, atol=2e-3, rtol=2e-3)), (y, y_ref)

    print("KERNEL_OK")
</pallas_src>

<mosaic_0001>
module attributes {stable_mosaic.version = 11 : i64} {
  func.func @_lstm_stack_kernel(%arg0: memref<64x128xf32, #tpu.memory_space<vmem>>, %arg1: memref<128x256xf32, #tpu.memory_space<vmem>>, %arg2: memref<32x128xf32, #tpu.memory_space<vmem>>, %arg3: memref<32x128xf32, #tpu.memory_space<vmem>>, %arg4: memref<1x256xf32, #tpu.memory_space<vmem>>, %arg5: memref<64x256xf32, #tpu.memory_space<vmem>>, %arg6: memref<32x128xf32, #tpu.memory_space<vmem>>, %arg7: memref<32x128xf32, #tpu.memory_space<vmem>>, %arg8: memref<1x256xf32, #tpu.memory_space<vmem>>, %arg9: memref<64x256xf32, #tpu.memory_space<vmem>>, %arg10: memref<32x128xf32, #tpu.memory_space<vmem>>, %arg11: memref<32x128xf32, #tpu.memory_space<vmem>>, %arg12: memref<1x256xf32, #tpu.memory_space<vmem>>, %arg13: memref<64x256xf32, #tpu.memory_space<vmem>>, %arg14: memref<32x128xf32, #tpu.memory_space<vmem>>, %arg15: memref<32x128xf32, #tpu.memory_space<vmem>>, %arg16: memref<1x256xf32, #tpu.memory_space<vmem>>, %arg17: memref<64x4xf32, #tpu.memory_space<vmem>>, %arg18: memref<1x4xf32, #tpu.memory_space<vmem>>, %arg19: memref<8x4xf32, #tpu.memory_space<vmem>>, %arg20: memref<64x64xf32, #tpu.memory_space<vmem>>, %arg21: memref<64x256xf32, #tpu.memory_space<vmem>>) attributes {dimension_semantics = [], scalar_prefetch = 0 : i64, scratch_operands = 2 : i64, tpu.core_type = #tpu.core_type<tc>} {
    %c0 = arith.constant 0 : index
    %c0_0 = arith.constant 0 : index
    %0 = vector.load %arg0[%c0, %c0_0] : memref<64x128xf32, #tpu.memory_space<vmem>>, vector<64x128xf32>
    %c0_1 = arith.constant 0 : index
    %c0_2 = arith.constant 0 : index
    %1 = vector.load %arg1[%c0_1, %c0_2] : memref<128x256xf32, #tpu.memory_space<vmem>>, vector<128x256xf32>
    %cst = arith.constant dense<0.000000e+00> : vector<64x256xf32>
    %2 = tpu.matmul %0, %1, %cst {dimension_numbers = #tpu.dot_dimension_numbers<[1], [0], [0], [1], [0, 0, 1, 1], [], []>} : vector<64x128xf32>, vector<128x256xf32>, vector<64x256xf32> -> vector<64x256xf32>
    %c0_3 = arith.constant 0 : index
    %c0_4 = arith.constant 0 : index
    %3 = vector.load %arg4[%c0_3, %c0_4] : memref<1x256xf32, #tpu.memory_space<vmem>>, vector<1x256xf32>
    %4 = vector.broadcast %3 : vector<1x256xf32> to vector<64x256xf32>
    %5 = arith.addf %2, %4 : vector<64x256xf32>
    %c0_5 = arith.constant 0 : index
    %c0_6 = arith.constant 0 : index
    %6 = vector.load %arg21[%c0_5, %c0_6] : memref<64x256xf32, #tpu.memory_space<vmem>>, vector<64x256xf32>
    tpu.vector_store %arg21[%c0_5, %c0_6], %5 {strides = array<i32>} : memref<64x256xf32, #tpu.memory_space<vmem>>, vector<64x256xf32>,
    %c0_7 = arith.constant 0 : index
    %c0_8 = arith.constant 0 : index
    %7 = vector.load %arg2[%c0_7, %c0_8] : memref<32x128xf32, #tpu.memory_space<vmem>>, vector<32x128xf32>
    %c0_9 = arith.constant 0 : index
    %c0_10 = arith.constant 0 : index
    %8 = vector.load %arg3[%c0_9, %c0_10] : memref<32x128xf32, #tpu.memory_space<vmem>>, vector<32x128xf32>
    %cst_11 = arith.constant 0.000000e+00 : f32
    %9 = vector.broadcast %cst_11 : f32 to vector<8x32xf32>
    %cst_12 = arith.constant 0.000000e+00 : f32
    %10 = vector.broadcast %cst_12 : f32 to vector<8x32xf32>
    %cst_13 = arith.constant 0.000000e+00 : f32
    %11 = vector.broadcast %cst_13 : f32 to vector<8x32xf32>
    %cst_14 = arith.constant 0.000000e+00 : f32
    %12 = vector.broadcast %cst_14 : f32 to vector<8x32xf32>
    %c0_15 = arith.constant 0 : index
    %c0_16 = arith.constant 0 : index
    %13 = vector.load %arg21[%c0_15, %c0_16] : memref<64x256xf32, #tpu.memory_space<vmem>>, vector<8x128xf32>
    %cst_17 = arith.constant dense<0.000000e+00> : vector<8x128xf32>
    %14 = tpu.matmul %9, %7, %cst_17 {dimension_numbers = #tpu.dot_dimension_numbers<[1], [0], [0], [1], [0, 0, 1, 1], [], []>} : vector<8x32xf32>, vector<32x128xf32>, vector<8x128xf32> -> vector<8x128xf32>
    %15 = arith.addf %13, %14 : vector<8x128xf32>
    %c56 = arith.constant 56 : index
    %c128 = arith.constant 128 : index
    %16 = vector.load %arg21[%c56, %c128] : memref<64x256xf32, #tpu.memory_space<vmem>>, vector<8x128xf32>
    %cst_18 = arith.constant dense<0.000000e+00> : vector<8x128xf32>
    %17 = tpu.matmul %10, %8, %cst_18 {dimension_numbers = #tpu.dot_dimension_numbers<[1], [0], [0], [1], [0, 0, 1, 1], [], []>} : vector<8x32xf32>, vector<32x128xf32>, vector<8x128xf32> -> vector<8x128xf32>
    %18 = arith.addf %16, %17 : vector<8x128xf32>
    %19 = arith.negf %15 : vector<8x128xf32>
    %20 = math.exp %19 : vector<8x128xf32>
    %cst_19 = arith.constant 1.000000e+00 : f32
    %21 = vector.broadcast %cst_19 : f32 to vector<8x128xf32>
    %22 = arith.addf %21, %20 : vector<8x128xf32>
    %23 = arith.divf %21, %22 : vector<8x128xf32>
    %24 = math.tanh %15 : vector<8x128xf32>
    %25 = vector.extract_strided_slice %23 {offsets = [0, 0], sizes = [8, 32], strides = [1, 1]} : vector<8x128xf32> to vector<8x32xf32>
    %26 = vector.extract_strided_slice %23 {offsets = [0, 32], sizes = [8, 32], strides = [1, 1]} : vector<8x128xf32> to vector<8x32xf32>
    %27 = vector.extract_strided_slice %24 {offsets = [0, 64], sizes = [8, 32], strides = [1, 1]} : vector<8x128xf32> to vector<8x32xf32>
    %28 = vector.extract_strided_slice %23 {offsets = [0, 96], sizes = [8, 32], strides = [1, 1]} : vector<8x128xf32> to vector<8x32xf32>
    %29 = arith.mulf %26, %11 : vector<8x32xf32>
    %30 = arith.mulf %25, %27 : vector<8x32xf32>
    %31 = arith.addf %29, %30 : vector<8x32xf32>
    %32 = math.tanh %31 : vector<8x32xf32>
    %33 = arith.mulf %28, %32 : vector<8x32xf32>
    %34 = arith.negf %18 : vector<8x128xf32>
    %35 = math.exp %34 : vector<8x128xf32>
    %cst_20 = arith.constant 1.000000e+00 : f32
    %36 = vector.broadcast %cst_20 : f32 to vector<8x128xf32>
    %37 = arith.addf %36, %35 : vector<8x128xf32>
    %38 = arith.divf %36, %37 : vector<8x128xf32>
    %39 = math.tanh %18 : vector<8x128xf32>
    %40 = vector.extract_strided_slice %38 {offsets = [0, 0], sizes = [8, 32], strides = [1, 1]} : vector<8x128xf32> to vector<8x32xf32>
    %41 = vector.extract_strided_slice %38 {offsets = [0, 32], sizes = [8, 32], strides = [1, 1]} : vector<8x128xf32> to vector<8x32xf32>
    %42 = vector.extract_strided_slice %39 {offsets = [0, 64], sizes = [8, 32], strides = [1, 1]} : vector<8x128xf32> to vector<8x32xf32>
    %43 = vector.extract_strided_slice %38 {offsets = [0, 96], sizes = [8, 32], strides = [1, 1]} : vector<8x128xf32> to vector<8x32xf32>
    %44 = arith.mulf %41, %12 : vector<8x32xf32>
    %45 = arith.mulf %40, %42 : vector<8x32xf32>
    %46 = arith.addf %44, %45 : vector<8x32xf32>
    %47 = math.tanh %46 : vector<8x32xf32>
    %48 = arith.mulf %43, %47 : vector<8x32xf32>
    %c0_21 = arith.constant 0 : index
    %c0_22 = arith.constant 0 : index
    %49 = vector.load %arg20[%c0_21, %c0_22] : memref<64x64xf32, #tpu.memory_space<vmem>>, vector<8x32xf32>
    tpu.vector_store %arg20[%c0_21, %c0_22], %33 {strides = array<i32>} : memref<64x64xf32, #tpu.memory_space<vmem>>, vector<8x32xf32>,
    %c56_23 = arith.constant 56 : index
    %c32 = arith.constant 32 : index
    %50 = vector.load %arg20[%c56_23, %c32] : memref<64x64xf32, #tpu.memory_space<vmem>>, vector<8x32xf32>
    tpu.vector_store %arg20[%c56_23, %c32], %48 {strides = array<i32>} : memref<64x64xf32, #tpu.memory_space<vmem>>, vector<8x32xf32>,
    %c8 = arith.constant 8 : index
    %c0_24 = arith.constant 0 : index
    %51 = vector.load %arg21[%c8, %c0_24] : memref<64x256xf32, #tpu.memory_space<vmem>>, vector<8x128xf32>
    %cst_25 = arith.constant dense<0.000000e+00> : vector<8x128xf32>
    %52 = tpu.matmul %33, %7, %cst_25 {dimension_numbers = #tpu.dot_dimension_numbers<[1], [0], [0], [1], [0, 0, 1, 1], [], []>} : vector<8x32xf32>, vector<32x128xf32>, vector<8x128xf32> -> vector<8x128xf32>
    %53 = arith.addf %51, %52 : vector<8x128xf32>
    %c48 = arith.constant 48 : index
    %c128_26 = arith.constant 128 : index
    %54 = vector.load %arg21[%c48, %c128_26] : memref<64x256xf32, #tpu.memory_space<vmem>>, vector<8x128xf32>
    %cst_27 = arith.constant dense<0.000000e+00> : vector<8x128xf32>
    %55 = tpu.matmul %48, %8, %cst_27 {dimension_numbers = #tpu.dot_dimension_numbers<[1], [0], [0], [1], [0, 0, 1, 1], [], []>} : vector<8x32xf32>, vector<32x128xf32>, vector<8x128xf32> -> vector<8x128xf32>
    %56 = arith.addf %54, %55 : vector<8x128xf32>
    %57 = arith.negf %53 : vector<8x128xf32>
    %58 = math.exp %57 : vector<8x128xf32>
    %cst_28 = arith.constant 1.000000e+00 : f32
    %59 = vector.broadcast %cst_28 : f32 to vector<8x128xf32>
    %60 = arith.addf %59, %58 : vector<8x128xf32>
    %61 = arith.divf %59, %60 : vector<8x128xf32>
    %62 = math.tanh %53 : vector<8x128xf32>
    %63 = vector.extract_strided_slice %61 {offsets = [0, 0], sizes = [8, 32], strides = [1, 1]} : vector<8x128xf32> to vector<8x32xf32>
    %64 = vector.extract_strided_slice %61 {offsets = [0, 32], sizes = [8, 32], strides = [1, 1]} : vector<8x128xf32> to vector<8x32xf32>
    %65 = vector.extract_strided_slice %62 {offsets = [0, 64], sizes = [8, 32], strides = [1, 1]} : vector<8x128xf32> to vector<8x32xf32>
    %66 = vector.extract_strided_slice %61 {offsets = [0, 96], sizes = [8, 32], strides = [1, 1]} : vector<8x128xf32> to vector<8x32xf32>
    %67 = arith.mulf %64, %31 : vector<8x32xf32>
    %68 = arith.mulf %63, %65 : vector<8x32xf32>
    %69 = arith.addf %67, %68 : vector<8x32xf32>
    %70 = math.tanh %69 : vector<8x32xf32>
    %71 = arith.mulf %66, %70 : vector<8x32xf32>
    %72 = arith.negf %56 : vector<8x128xf32>
    %73 = math.exp %72 : vector<8x128xf32>
    %cst_29 = arith.constant 1.000000e+00 : f32
    %74 = vector.broadcast %cst_29 : f32 to vector<8x128xf32>
    %75 = arith.addf %74, %73 : vector<8x128xf32>
    %76 = arith.divf %74, %75 : vector<8x128xf32>
    %77 = math.tanh %56 : vector<8x128xf32>
    %78 = vector.extract_strided_slice %76 {offsets = [0, 0], sizes = [8, 32], strides = [1, 1]} : vector<8x128xf32> to vector<8x32xf32>
    %79 = vector.extract_strided_slice %76 {offsets = [0, 32], sizes = [8, 32], strides = [1, 1]} : vector<8x128xf32> to vector<8x32xf32>
    %80 = vector.extract_strided_slice %77 {offsets = [0, 64], sizes = [8, 32], strides = [1, 1]} : vector<8x128xf32> to vector<8x32xf32>
    %81 = vector.extract_strided_slice %76 {offsets = [0, 96], sizes = [8, 32], strides = [1, 1]} : vector<8x128xf32> to vector<8x32xf32>
    %82 = arith.mulf %79, %46 : vector<8x32xf32>
    %83 = arith.mulf %78, %80 : vector<8x32xf32>
    %84 = arith.addf %82, %83 : vector<8x32xf32>
    %85 = math.tanh %84 : vector<8x32xf32>
    %86 = arith.mulf %81, %85 : vector<8x32xf32>
    %c8_30 = arith.constant 8 : index
    %c0_31 = arith.constant 0 : index
    %87 = vector.load %arg20[%c8_30, %c0_31] : memref<64x64xf32, #tpu.memory_space<vmem>>, vector<8x32xf32>
    tpu.vector_store %arg20[%c8_30, %c0_31], %71 {strides = array<i32>} : memref<64x64xf32, #tpu.memory_space<vmem>>, vector<8x32xf32>,
    %c48_32 = arith.constant 48 : index
    %c32_33 = arith.constant 32 : index
    %88 = vector.load %arg20[%c48_32, %c32_33] : memref<64x64xf32, #tpu.memory_space<vmem>>, vector<8x32xf32>
    tpu.vector_store %arg20[%c48_32, %c32_33], %86 {strides = array<i32>} : memref<64x64xf32, #tpu.memory_space<vmem>>, vector<8x32xf32>,
    %c16 = arith.constant 16 : index
    %c0_34 = arith.constant 0 : index
    %89 = vector.load %arg21[%c16, %c0_34] : memref<64x256xf32, #tpu.memory_space<vmem>>, vector<8x128xf32>
    %cst_35 = arith.constant dense<0.000000e+00> : vector<8x128xf32>
    %90 = tpu.matmul %71, %7, %cst_35 {dimension_numbers = #tpu.dot_dimension_numbers<[1], [0], [0], [1], [0, 0, 1, 1], [], []>} : vector<8x32xf32>, vector<32x128xf32>, vector<8x128xf32> -> vector<8x128xf32>
    %91 = arith.addf %89, %90 : vector<8x128xf32>
    %c40 = arith.constant 40 : index
    %c128_36 = arith.constant 128 : index
    %92 = vector.load %arg21[%c40, %c128_36] : memref<64x256xf32, #tpu.memory_space<vmem>>, vector<8x128xf32>
    %cst_37 = arith.constant dense<0.000000e+00> : vector<8x128xf32>
    %93 = tpu.matmul %86, %8, %cst_37 {dimension_numbers = #tpu.dot_dimension_numbers<[1], [0], [0], [1], [0, 0, 1, 1], [], []>} : vector<8x32xf32>, vector<32x128xf32>, vector<8x128xf32> -> vector<8x128xf32>
    %94 = arith.addf %92, %93 : vector<8x128xf32>
    %95 = arith.negf %91 : vector<8x128xf32>
    %96 = math.exp %95 : vector<8x128xf32>
    %cst_38 = arith.constant 1.000000e+00 : f32
    %97 = vector.broadcast %cst_38 : f32 to vector<8x128xf32>
    %98 = arith.addf %97, %96 : vector<8x128xf32>
    %99 = arith.divf %97, %98 : vector<8x128xf32>
    %100 = math.tanh %91 : vector<8x128xf32>
    %101 = vector.extract_strided_slice %99 {offsets = [0, 0], sizes = [8, 32], strides = [1, 1]} : vector<8x128xf32> to vector<8x32xf32>
    %102 = vector.extract_strided_slice %99 {offsets = [0, 32], sizes = [8, 32], strides = [1, 1]} : vector<8x128xf32> to vector<8x32xf32>
    %103 = vector.extract_strided_slice %100 {offsets = [0, 64], sizes = [8, 32], strides = [1, 1]} : vector<8x128xf32> to vector<8x32xf32>
    %104 = vector.extract_strided_slice %99 {offsets = [0, 96], sizes = [8, 32], strides = [1, 1]} : vector<8x128xf32> to vector<8x32xf32>
    %105 = arith.mulf %102, %69 : vector<8x32xf32>
    %106 = arith.mulf %101, %103 : vector<8x32xf32>
    %107 = arith.addf %105, %106 : vector<8x32xf32>
    %108 = math.tanh %107 : vector<8x32xf32>
    %109 = arith.mulf %104, %108 : vector<8x32xf32>
    %110 = arith.negf %94 : vector<8x128xf32>
    %111 = math.exp %110 : vector<8x128xf32>
    %cst_39 = arith.constant 1.000000e+00 : f32
    %112 = vector.broadcast %cst_39 : f32 to vector<8x128xf32>
    %113 = arith.addf %112, %111 : vector<8x128xf32>
    %114 = arith.divf %112, %113 : vector<8x128xf32>
    %115 = math.tanh %94 : vector<8x128xf32>
    %116 = vector.extract_strided_slice %114 {offsets = [0, 0], sizes = [8, 32], strides = [1, 1]} : vector<8x128xf32> to vector<8x32xf32>
    %117 = vector.extract_strided_slice %114 {offsets = [0, 32], sizes = [8, 32], strides = [1, 1]} : vector<8x128xf32> to vector<8x32xf32>
    %118 = vector.extract_strided_slice %115 {offsets = [0, 64], sizes = [8, 32], strides = [1, 1]} : vector<8x128xf32> to vector<8x32xf32>
    %119 = vector.extract_strided_slice %114 {offsets = [0, 96], sizes = [8, 32], strides = [1, 1]} : vector<8x128xf32> to vector<8x32xf32>
    %120 = arith.mulf %117, %84 : vector<8x32xf32>
    %121 = arith.mulf %116, %118 : vector<8x32xf32>
    %122 = arith.addf %120, %121 : vector<8x32xf32>
    %123 = math.tanh %122 : vector<8x32xf32>
    %124 = arith.mulf %119, %123 : vector<8x32xf32>
    %c16_40 = arith.constant 16 : index
    %c0_41 = arith.constant 0 : index
    %125 = vector.load %arg20[%c16_40, %c0_41] : memref<64x64xf32, #tpu.memory_space<vmem>>, vector<8x32xf32>
    tpu.vector_store %arg20[%c16_40, %c0_41], %109 {strides = array<i32>} : memref<64x64xf32, #tpu.memory_space<vmem>>, vector<8x32xf32>,
    %c40_42 = arith.constant 40 : index
    %c32_43 = arith.constant 32 : index
    %126 = vector.load %arg20[%c40_42, %c32_43] : memref<64x64xf32, #tpu.memory_space<vmem>>, vector<8x32xf32>
    tpu.vector_store %arg20[%c40_42, %c32_43], %124 {strides = array<i32>} : memref<64x64xf32, #tpu.memory_space<vmem>>, vector<8x32xf32>,
    %c24 = arith.constant 24 : index
    %c0_44 = arith.constant 0 : index
    %127 = vector.load %arg21[%c24, %c0_44] : memref<64x256xf32, #tpu.memory_space<vmem>>, vector<8x128xf32>
    %cst_45 = arith.constant dense<0.000000e+00> : vector<8x128xf32>
    %128 = tpu.matmul %109, %7, %cst_45 {dimension_numbers = #tpu.dot_dimension_numbers<[1], [0], [0], [1], [0, 0, 1, 1], [], []>} : vector<8x32xf32>, vector<32x128xf32>, vector<8x128xf32> -> vector<8x128xf32>
    %129 = arith.addf %127, %128 : vector<8x128xf32>
    %c32_46 = arith.constant 32 : index
    %c128_47 = arith.constant 128 : index
    %130 = vector.load %arg21[%c32_46, %c128_47] : memref<64x256xf32, #tpu.memory_space<vmem>>, vector<8x128xf32>
    %cst_48 = arith.constant dense<0.000000e+00> : vector<8x128xf32>
    %131 = tpu.matmul %124, %8, %cst_48 {dimension_numbers = #tpu.dot_dimension_numbers<[1], [0], [0], [1], [0, 0, 1, 1], [], []>} : vector<8x32xf32>, vector<32x128xf32>, vector<8x128xf32> -> vector<8x128xf32>
    %132 = arith.addf %130, %131 : vector<8x128xf32>
    %133 = arith.negf %129 : vector<8x128xf32>
    %134 = math.exp %133 : vector<8x128xf32>
    %cst_49 = arith.constant 1.000000e+00 : f32
    %135 = vector.broadcast %cst_49 : f32 to vector<8x128xf32>
    %136 = arith.addf %135, %134 : vector<8x128xf32>
    %137 = arith.divf %135, %136 : vector<8x128xf32>
    %138 = math.tanh %129 : vector<8x128xf32>
    %139 = vector.extract_strided_slice %137 {offsets = [0, 0], sizes = [8, 32], strides = [1, 1]} : vector<8x128xf32> to vector<8x32xf32>
    %140 = vector.extract_strided_slice %137 {offsets = [0, 32], sizes = [8, 32], strides = [1, 1]} : vector<8x128xf32> to vector<8x32xf32>
    %141 = vector.extract_strided_slice %138 {offsets = [0, 64], sizes = [8, 32], strides = [1, 1]} : vector<8x128xf32> to vector<8x32xf32>
    %142 = vector.extract_strided_slice %137 {offsets = [0, 96], sizes = [8, 32], strides = [1, 1]} : vector<8x128xf32> to vector<8x32xf32>
    %143 = arith.mulf %140, %107 : vector<8x32xf32>
    %144 = arith.mulf %139, %141 : vector<8x32xf32>
    %145 = arith.addf %143, %144 : vector<8x32xf32>
    %146 = math.tanh %145 : vector<8x32xf32>
    %147 = arith.mulf %142, %146 : vector<8x32xf32>
    %148 = arith.negf %132 : vector<8x128xf32>
    %149 = math.exp %148 : vector<8x128xf32>
    %cst_50 = arith.constant 1.000000e+00 : f32
    %150 = vector.broadcast %cst_50 : f32 to vector<8x128xf32>
    %151 = arith.addf %150, %149 : vector<8x128xf32>
    %152 = arith.divf %150, %151 : vector<8x128xf32>
    %153 = math.tanh %132 : vector<8x128xf32>
    %154 = vector.extract_strided_slice %152 {offsets = [0, 0], sizes = [8, 32], strides = [1, 1]} : vector<8x128xf32> to vector<8x32xf32>
    %155 = vector.extract_strided_slice %152 {offsets = [0, 32], sizes = [8, 32], strides = [1, 1]} : vector<8x128xf32> to vector<8x32xf32>
    %156 = vector.extract_strided_slice %153 {offsets = [0, 64], sizes = [8, 32], strides = [1, 1]} : vector<8x128xf32> to vector<8x32xf32>
    %157 = vector.extract_strided_slice %152 {offsets = [0, 96], sizes = [8, 32], strides = [1, 1]} : vector<8x128xf32> to vector<8x32xf32>
    %158 = arith.mulf %155, %122 : vector<8x32xf32>
    %159 = arith.mulf %154, %156 : vector<8x32xf32>
    %160 = arith.addf %158, %159 : vector<8x32xf32>
    %161 = math.tanh %160 : vector<8x32xf32>
    %162 = arith.mulf %157, %161 : vector<8x32xf32>
    %c24_51 = arith.constant 24 : index
    %c0_52 = arith.constant 0 : index
    %163 = vector.load %arg20[%c24_51, %c0_52] : memref<64x64xf32, #tpu.memory_space<vmem>>, vector<8x32xf32>
    tpu.vector_store %arg20[%c24_51, %c0_52], %147 {strides = array<i32>} : memref<64x64xf32, #tpu.memory_space<vmem>>, vector<8x32xf32>,
    %c32_53 = arith.constant 32 : index
    %c32_54 = arith.constant 32 : index
    %164 = vector.load %arg20[%c32_53, %c32_54] : memref<64x64xf32, #tpu.memory_space<vmem>>, vector<8x32xf32>
    tpu.vector_store %arg20[%c32_53, %c32_54], %162 {strides = array<i32>} : memref<64x64xf32, #tpu.memory_space<vmem>>, vector<8x32xf32>,
    %c32_55 = arith.constant 32 : index
    %c0_56 = arith.constant 0 : index
    %165 = vector.load %arg21[%c32_55, %c0_56] : memref<64x256xf32, #tpu.memory_space<vmem>>, vector<8x128xf32>
    %cst_57 = arith.constant dense<0.000000e+00> : vector<8x128xf32>
    %166 = tpu.matmul %147, %7, %cst_57 {dimension_numbers = #tpu.dot_dimension_numbers<[1], [0], [0], [1], [0, 0, 1, 1], [], []>} : vector<8x32xf32>, vector<32x128xf32>, vector<8x128xf32> -> vector<8x128xf32>
    %167 = arith.addf %165, %166 : vector<8x128xf32>
    %c24_58 = arith.constant 24 : index
    %c128_59 = arith.constant 128 : index
    %168 = vector.load %arg21[%c24_58, %c128_59] : memref<64x256xf32, #tpu.memory_space<vmem>>, vector<8x128xf32>
    %cst_60 = arith.constant dense<0.000000e+00> : vector<8x128xf32>
    %169 = tpu.matmul %162, %8, %cst_60 {dimension_numbers = #tpu.dot_dimension_numbers<[1], [0], [0], [1], [0, 0, 1, 1], [], []>} : vector<8x32xf32>, vector<32x128xf32>, vector<8x128xf32> -> vector<8x128xf32>
    %170 = arith.addf %168, %169 : vector<8x128xf32>
    %171 = arith.negf %167 : vector<8x128xf32>
    %172 = math.exp %171 : vector<8x128xf32>
    %cst_61 = arith.constant 1.000000e+00 : f32
    %173 = vector.broadcast %cst_61 : f32 to vector<8x128xf32>
    %174 = arith.addf %173, %172 : vector<8x128xf32>
    %175 = arith.divf %173, %174 : vector<8x128xf32>
    %176 = math.tanh %167 : vector<8x128xf32>
    %177 = vector.extract_strided_slice %175 {offsets = [0, 0], sizes = [8, 32], strides = [1, 1]} : vector<8x128xf32> to vector<8x32xf32>
    %178 = vector.extract_strided_slice %175 {offsets = [0, 32], sizes = [8, 32], strides = [1, 1]} : vector<8x128xf32> to vector<8x32xf32>
    %179 = vector.extract_strided_slice %176 {offsets = [0, 64], sizes = [8, 32], strides = [1, 1]} : vector<8x128xf32> to vector<8x32xf32>
    %180 = vector.extract_strided_slice %175 {offsets = [0, 96], sizes = [8, 32], strides = [1, 1]} : vector<8x128xf32> to vector<8x32xf32>
    %181 = arith.mulf %178, %145 : vector<8x32xf32>
    %182 = arith.mulf %177, %179 : vector<8x32xf32>
    %183 = arith.addf %181, %182 : vector<8x32xf32>
    %184 = math.tanh %183 : vector<8x32xf32>
    %185 = arith.mulf %180, %184 : vector<8x32xf32>
    %186 = arith.negf %170 : vector<8x128xf32>
    %187 = math.exp %186 : vector<8x128xf32>
    %cst_62 = arith.constant 1.000000e+00 : f32
    %188 = vector.broadcast %cst_62 : f32 to vector<8x128xf32>
    %189 = arith.addf %188, %187 : vector<8x128xf32>
    %190 = arith.divf %188, %189 : vector<8x128xf32>
    %191 = math.tanh %170 : vector<8x128xf32>
    %192 = vector.extract_strided_slice %190 {offsets = [0, 0], sizes = [8, 32], strides = [1, 1]} : vector<8x128xf32> to vector<8x32xf32>
    %193 = vector.extract_strided_slice %190 {offsets = [0, 32], sizes = [8, 32], strides = [1, 1]} : vector<8x128xf32> to vector<8x32xf32>
    %194 = vector.extract_strided_slice %191 {offsets = [0, 64], sizes = [8, 32], strides = [1, 1]} : vector<8x128xf32> to vector<8x32xf32>
    %195 = vector.extract_strided_slice %190 {offsets = [0, 96], sizes = [8, 32], strides = [1, 1]} : vector<8x128xf32> to vector<8x32xf32>
    %196 = arith.mulf %193, %160 : vector<8x32xf32>
    %197 = arith.mulf %192, %194 : vector<8x32xf32>
    %198 = arith.addf %196, %197 : vector<8x32xf32>
    %199 = math.tanh %198 : vector<8x32xf32>
    %200 = arith.mulf %195, %199 : vector<8x32xf32>
    %c32_63 = arith.constant 32 : index
    %c0_64 = arith.constant 0 : index
    %201 = vector.load %arg20[%c32_63, %c0_64] : memref<64x64xf32, #tpu.memory_space<vmem>>, vector<8x32xf32>
    tpu.vector_store %arg20[%c32_63, %c0_64], %185 {strides = array<i32>} : memref<64x64xf32, #tpu.memory_space<vmem>>, vector<8x32xf32>,
    %c24_65 = arith.constant 24 : index
    %c32_66 = arith.constant 32 : index
    %202 = vector.load %arg20[%c24_65, %c32_66] : memref<64x64xf32, #tpu.memory_space<vmem>>, vector<8x32xf32>
    tpu.vector_store %arg20[%c24_65, %c32_66], %200 {strides = array<i32>} : memref<64x64xf32, #tpu.memory_space<vmem>>, vector<8x32xf32>,
    %c40_67 = arith.constant 40 : index
    %c0_68 = arith.constant 0 : index
    %203 = vector.load %arg21[%c40_67, %c0_68] : memref<64x256xf32, #tpu.memory_space<vmem>>, vector<8x128xf32>
    %cst_69 = arith.constant dense<0.000000e+00> : vector<8x128xf32>
    %204 = tpu.matmul %185, %7, %cst_69 {dimension_numbers = #tpu.dot_dimension_numbers<[1], [0], [0], [1], [0, 0, 1, 1], [], []>} : vector<8x32xf32>, vector<32x128xf32>, vector<8x128xf32> -> vector<8x128xf32>
    %205 = arith.addf %203, %204 : vector<8x128xf32>
    %c16_70 = arith.constant 16 : index
    %c128_71 = arith.constant 128 : index
    %206 = vector.load %arg21[%c16_70, %c128_71] : memref<64x256xf32, #tpu.memory_space<vmem>>, vector<8x128xf32>
    %cst_72 = arith.constant dense<0.000000e+00> : vector<8x128xf32>
    %207 = tpu.matmul %200, %8, %cst_72 {dimension_numbers = #tpu.dot_dimension_numbers<[1], [0], [0], [1], [0, 0, 1, 1], [], []>} : vector<8x32xf32>, vector<32x128xf32>, vector<8x128xf32> -> vector<8x128xf32>
    %208 = arith.addf %206, %207 : vector<8x128xf32>
    %209 = arith.negf %205 : vector<8x128xf32>
    %210 = math.exp %209 : vector<8x128xf32>
    %cst_73 = arith.constant 1.000000e+00 : f32
    %211 = vector.broadcast %cst_73 : f32 to vector<8x128xf32>
    %212 = arith.addf %211, %210 : vector<8x128xf32>
    %213 = arith.divf %211, %212 : vector<8x128xf32>
    %214 = math.tanh %205 : vector<8x128xf32>
    %215 = vector.extract_strided_slice %213 {offsets = [0, 0], sizes = [8, 32], strides = [1, 1]} : vector<8x128xf32> to vector<8x32xf32>
    %216 = vector.extract_strided_slice %213 {offsets = [0, 32], sizes = [8, 32], strides = [1, 1]} : vector<8x128xf32> to vector<8x32xf32>
    %217 = vector.extract_strided_slice %214 {offsets = [0, 64], sizes = [8, 32], strides = [1, 1]} : vector<8x128xf32> to vector<8x32xf32>
    %218 = vector.extract_strided_slice %213 {offsets = [0, 96], sizes = [8, 32], strides = [1, 1]} : vector<8x128xf32> to vector<8x32xf32>
    %219 = arith.mulf %216, %183 : vector<8x32xf32>
    %220 = arith.mulf %215, %217 : vector<8x32xf32>
    %221 = arith.addf %219, %220 : vector<8x32xf32>
    %222 = math.tanh %221 : vector<8x32xf32>
    %223 = arith.mulf %218, %222 : vector<8x32xf32>
    %224 = arith.negf %208 : vector<8x128xf32>
    %225 = math.exp %224 : vector<8x128xf32>
    %cst_74 = arith.constant 1.000000e+00 : f32
    %226 = vector.broadcast %cst_74 : f32 to vector<8x128xf32>
    %227 = arith.addf %226, %225 : vector<8x128xf32>
    %228 = arith.divf %226, %227 : vector<8x128xf32>
    %229 = math.tanh %208 : vector<8x128xf32>
    %230 = vector.extract_strided_slice %228 {offsets = [0, 0], sizes = [8, 32], strides = [1, 1]} : vector<8x128xf32> to vector<8x32xf32>
    %231 = vector.extract_strided_slice %228 {offsets = [0, 32], sizes = [8, 32], strides = [1, 1]} : vector<8x128xf32> to vector<8x32xf32>
    %232 = vector.extract_strided_slice %229 {offsets = [0, 64], sizes = [8, 32], strides = [1, 1]} : vector<8x128xf32> to vector<8x32xf32>
    %233 = vector.extract_strided_slice %228 {offsets = [0, 96], sizes = [8, 32], strides = [1, 1]} : vector<8x128xf32> to vector<8x32xf32>
    %234 = arith.mulf %231, %198 : vector<8x32xf32>
    %235 = arith.mulf %230, %232 : vector<8x32xf32>
    %236 = arith.addf %234, %235 : vector<8x32xf32>
    %237 = math.tanh %236 : vector<8x32xf32>
    %238 = arith.mulf %233, %237 : vector<8x32xf32>
    %c40_75 = arith.constant 40 : index
    %c0_76 = arith.constant 0 : index
    %239 = vector.load %arg20[%c40_75, %c0_76] : memref<64x64xf32, #tpu.memory_space<vmem>>, vector<8x32xf32>
    tpu.vector_store %arg20[%c40_75, %c0_76], %223 {strides = array<i32>} : memref<64x64xf32, #tpu.memory_space<vmem>>, vector<8x32xf32>,
    %c16_77 = arith.constant 16 : index
    %c32_78 = arith.constant 32 : index
    %240 = vector.load %arg20[%c16_77, %c32_78] : memref<64x64xf32, #tpu.memory_space<vmem>>, vector<8x32xf32>
    tpu.vector_store %arg20[%c16_77, %c32_78], %238 {strides = array<i32>} : memref<64x64xf32, #tpu.memory_space<vmem>>, vector<8x32xf32>,
    %c48_79 = arith.constant 48 : index
    %c0_80 = arith.constant 0 : index
    %241 = vector.load %arg21[%c48_79, %c0_80] : memref<64x256xf32, #tpu.memory_space<vmem>>, vector<8x128xf32>
    %cst_81 = arith.constant dense<0.000000e+00> : vector<8x128xf32>
    %242 = tpu.matmul %223, %7, %cst_81 {dimension_numbers = #tpu.dot_dimension_numbers<[1], [0], [0], [1], [0, 0, 1, 1], [], []>} : vector<8x32xf32>, vector<32x128xf32>, vector<8x128xf32> -> vector<8x128xf32>
    %243 = arith.addf %241, %242 : vector<8x128xf32>
    %c8_82 = arith.constant 8 : index
    %c128_83 = arith.constant 128 : index
    %244 = vector.load %arg21[%c8_82, %c128_83] : memref<64x256xf32, #tpu.memory_space<vmem>>, vector<8x128xf32>
    %cst_84 = arith.constant dense<0.000000e+00> : vector<8x128xf32>
    %245 = tpu.matmul %238, %8, %cst_84 {dimension_numbers = #tpu.dot_dimension_numbers<[1], [0], [0], [1], [0, 0, 1, 1], [], []>} : vector<8x32xf32>, vector<32x128xf32>, vector<8x128xf32> -> vector<8x128xf32>
    %246 = arith.addf %244, %245 : vector<8x128xf32>
    %247 = arith.negf %243 : vector<8x128xf32>
    %248 = math.exp %247 : vector<8x128xf32>
    %cst_85 = arith.constant 1.000000e+00 : f32
    %249 = vector.broadcast %cst_85 : f32 to vector<8x128xf32>
    %250 = arith.addf %249, %248 : vector<8x128xf32>
    %251 = arith.divf %249, %250 : vector<8x128xf32>
    %252 = math.tanh %243 : vector<8x128xf32>
    %253 = vector.extract_strided_slice %251 {offsets = [0, 0], sizes = [8, 32], strides = [1, 1]} : vector<8x128xf32> to vector<8x32xf32>
    %254 = vector.extract_strided_slice %251 {offsets = [0, 32], sizes = [8, 32], strides = [1, 1]} : vector<8x128xf32> to vector<8x32xf32>
    %255 = vector.extract_strided_slice %252 {offsets = [0, 64], sizes = [8, 32], strides = [1, 1]} : vector<8x128xf32> to vector<8x32xf32>
    %256 = vector.extract_strided_slice %251 {offsets = [0, 96], sizes = [8, 32], strides = [1, 1]} : vector<8x128xf32> to vector<8x32xf32>
    %257 = arith.mulf %254, %221 : vector<8x32xf32>
    %258 = arith.mulf %253, %255 : vector<8x32xf32>
    %259 = arith.addf %257, %258 : vector<8x32xf32>
    %260 = math.tanh %259 : vector<8x32xf32>
    %261 = arith.mulf %256, %260 : vector<8x32xf32>
    %262 = arith.negf %246 : vector<8x128xf32>
    %263 = math.exp %262 : vector<8x128xf32>
    %cst_86 = arith.constant 1.000000e+00 : f32
    %264 = vector.broadcast %cst_86 : f32 to vector<8x128xf32>
    %265 = arith.addf %264, %263 : vector<8x128xf32>
    %266 = arith.divf %264, %265 : vector<8x128xf32>
    %267 = math.tanh %246 : vector<8x128xf32>
    %268 = vector.extract_strided_slice %266 {offsets = [0, 0], sizes = [8, 32], strides = [1, 1]} : vector<8x128xf32> to vector<8x32xf32>
    %269 = vector.extract_strided_slice %266 {offsets = [0, 32], sizes = [8, 32], strides = [1, 1]} : vector<8x128xf32> to vector<8x32xf32>
    %270 = vector.extract_strided_slice %267 {offsets = [0, 64], sizes = [8, 32], strides = [1, 1]} : vector<8x128xf32> to vector<8x32xf32>
    %271 = vector.extract_strided_slice %266 {offsets = [0, 96], sizes = [8, 32], strides = [1, 1]} : vector<8x128xf32> to vector<8x32xf32>
    %272 = arith.mulf %269, %236 : vector<8x32xf32>
    %273 = arith.mulf %268, %270 : vector<8x32xf32>
    %274 = arith.addf %272, %273 : vector<8x32xf32>
    %275 = math.tanh %274 : vector<8x32xf32>
    %276 = arith.mulf %271, %275 : vector<8x32xf32>
    %c48_87 = arith.constant 48 : index
    %c0_88 = arith.constant 0 : index
    %277 = vector.load %arg20[%c48_87, %c0_88] : memref<64x64xf32, #tpu.memory_space<vmem>>, vector<8x32xf32>
    tpu.vector_store %arg20[%c48_87, %c0_88], %261 {strides = array<i32>} : memref<64x64xf32, #tpu.memory_space<vmem>>, vector<8x32xf32>,
    %c8_89 = arith.constant 8 : index
    %c32_90 = arith.constant 32 : index
    %278 = vector.load %arg20[%c8_89, %c32_90] : memref<64x64xf32, #tpu.memory_space<vmem>>, vector<8x32xf32>
    tpu.vector_store %arg20[%c8_89, %c32_90], %276 {strides = array<i32>} : memref<64x64xf32, #tpu.memory_space<vmem>>, vector<8x32xf32>,
    %c56_91 = arith.constant 56 : index
    %c0_92 = arith.constant 0 : index
    %279 = vector.load %arg21[%c56_91, %c0_92] : memref<64x256xf32, #tpu.memory_space<vmem>>, vector<8x128xf32>
    %cst_93 = arith.constant dense<0.000000e+00> : vector<8x128xf32>
    %280 = tpu.matmul %261, %7, %cst_93 {dimension_numbers = #tpu.dot_dimension_numbers<[1], [0], [0], [1], [0, 0, 1, 1], [], []>} : vector<8x32xf32>, vector<32x128xf32>, vector<8x128xf32> -> vector<8x128xf32>
    %281 = arith.addf %279, %280 : vector<8x128xf32>
    %c0_94 = arith.constant 0 : index
    %c128_95 = arith.constant 128 : index
    %282 = vector.load %arg21[%c0_94, %c128_95] : memref<64x256xf32, #tpu.memory_space<vmem>>, vector<8x128xf32>
    %cst_96 = arith.constant dense<0.000000e+00> : vector<8x128xf32>
    %283 = tpu.matmul %276, %8, %cst_96 {dimension_numbers = #tpu.dot_dimension_numbers<[1], [0], [0], [1], [0, 0, 1, 1], [], []>} : vector<8x32xf32>, vector<32x128xf32>, vector<8x128xf32> -> vector<8x128xf32>
    %284 = arith.addf %282, %283 : vector<8x128xf32>
    %285 = arith.negf %281 : vector<8x128xf32>
    %286 = math.exp %285 : vector<8x128xf32>
    %cst_97 = arith.constant 1.000000e+00 : f32
    %287 = vector.broadcast %cst_97 : f32 to vector<8x128xf32>
    %288 = arith.addf %287, %286 : vector<8x128xf32>
    %289 = arith.divf %287, %288 : vector<8x128xf32>
    %290 = math.tanh %281 : vector<8x128xf32>
    %291 = vector.extract_strided_slice %289 {offsets = [0, 0], sizes = [8, 32], strides = [1, 1]} : vector<8x128xf32> to vector<8x32xf32>
    %292 = vector.extract_strided_slice %289 {offsets = [0, 32], sizes = [8, 32], strides = [1, 1]} : vector<8x128xf32> to vector<8x32xf32>
    %293 = vector.extract_strided_slice %290 {offsets = [0, 64], sizes = [8, 32], strides = [1, 1]} : vector<8x128xf32> to vector<8x32xf32>
    %294 = vector.extract_strided_slice %289 {offsets = [0, 96], sizes = [8, 32], strides = [1, 1]} : vector<8x128xf32> to vector<8x32xf32>
    %295 = arith.mulf %292, %259 : vector<8x32xf32>
    %296 = arith.mulf %291, %293 : vector<8x32xf32>
    %297 = arith.addf %295, %296 : vector<8x32xf32>
    %298 = math.tanh %297 : vector<8x32xf32>
    %299 = arith.mulf %294, %298 : vector<8x32xf32>
    %300 = arith.negf %284 : vector<8x128xf32>
    %301 = math.exp %300 : vector<8x128xf32>
    %cst_98 = arith.constant 1.000000e+00 : f32
    %302 = vector.broadcast %cst_98 : f32 to vector<8x128xf32>
    %303 = arith.addf %302, %301 : vector<8x128xf32>
    %304 = arith.divf %302, %303 : vector<8x128xf32>
    %305 = math.tanh %284 : vector<8x128xf32>
    %306 = vector.extract_strided_slice %304 {offsets = [0, 0], sizes = [8, 32], strides = [1, 1]} : vector<8x128xf32> to vector<8x32xf32>
    %307 = vector.extract_strided_slice %304 {offsets = [0, 32], sizes = [8, 32], strides = [1, 1]} : vector<8x128xf32> to vector<8x32xf32>
    %308 = vector.extract_strided_slice %305 {offsets = [0, 64], sizes = [8, 32], strides = [1, 1]} : vector<8x128xf32> to vector<8x32xf32>
    %309 = vector.extract_strided_slice %304 {offsets = [0, 96], sizes = [8, 32], strides = [1, 1]} : vector<8x128xf32> to vector<8x32xf32>
    %310 = arith.mulf %307, %274 : vector<8x32xf32>
    %311 = arith.mulf %306, %308 : vector<8x32xf32>
    %312 = arith.addf %310, %311 : vector<8x32xf32>
    %313 = math.tanh %312 : vector<8x32xf32>
    %314 = arith.mulf %309, %313 : vector<8x32xf32>
    %c56_99 = arith.constant 56 : index
    %c0_100 = arith.constant 0 : index
    %315 = vector.load %arg20[%c56_99, %c0_100] : memref<64x64xf32, #tpu.memory_space<vmem>>, vector<8x32xf32>
    tpu.vector_store %arg20[%c56_99, %c0_100], %299 {strides = array<i32>} : memref<64x64xf32, #tpu.memory_space<vmem>>, vector<8x32xf32>,
    %c0_101 = arith.constant 0 : index
    %c32_102 = arith.constant 32 : index
    %316 = vector.load %arg20[%c0_101, %c32_102] : memref<64x64xf32, #tpu.memory_space<vmem>>, vector<8x32xf32>
    tpu.vector_store %arg20[%c0_101, %c32_102], %314 {strides = array<i32>} : memref<64x64xf32, #tpu.memory_space<vmem>>, vector<8x32xf32>,
    %c0_103 = arith.constant 0 : index
    %c0_104 = arith.constant 0 : index
    %317 = vector.load %arg20[%c0_103, %c0_104] : memref<64x64xf32, #tpu.memory_space<vmem>>, vector<64x64xf32>
    %c0_105 = arith.constant 0 : index
    %c0_106 = arith.constant 0 : index
    %318 = vector.load %arg5[%c0_105, %c0_106] : memref<64x256xf32, #tpu.memory_space<vmem>>, vector<64x256xf32>
    %cst_107 = arith.constant dense<0.000000e+00> : vector<64x256xf32>
    %319 = tpu.matmul %317, %318, %cst_107 {dimension_numbers = #tpu.dot_dimension_numbers<[1], [0], [0], [1], [0, 0, 1, 1], [], []>} : vector<64x64xf32>, vector<64x256xf32>, vector<64x256xf32> -> vector<64x256xf32>
    %c0_108 = arith.constant 0 : index
    %c0_109 = arith.constant 0 : index
    %320 = vector.load %arg8[%c0_108, %c0_109] : memref<1x256xf32, #tpu.memory_space<vmem>>, vector<1x256xf32>
    %321 = vector.broadcast %320 : vector<1x256xf32> to vector<64x256xf32>
    %322 = arith.addf %319, %321 : vector<64x256xf32>
    %c0_110 = arith.constant 0 : index
    %c0_111 = arith.constant 0 : index
    %323 = vector.load %arg21[%c0_110, %c0_111] : memref<64x256xf32, #tpu.memory_space<vmem>>, vector<64x256xf32>
    tpu.vector_store %arg21[%c0_110, %c0_111], %322 {strides = array<i32>} : memref<64x256xf32, #tpu.memory_space<vmem>>, vector<64x256xf32>,
    %c0_112 = arith.constant 0 : index
    %c0_113 = arith.constant 0 : index
    %324 = vector.load %arg6[%c0_112, %c0_113] : memref<32x128xf32, #tpu.memory_space<vmem>>, vector<32x128xf32>
    %c0_114 = arith.constant 0 : index
    %c0_115 = arith.constant 0 : index
    %325 = vector.load %arg7[%c0_114, %c0_115] : memref<32x128xf32, #tpu.memory_space<vmem>>, vector<32x128xf32>
    %cst_116 = arith.constant 0.000000e+00 : f32
    %326 = vector.broadcast %cst_116 : f32 to vector<8x32xf32>
    %cst_117 = arith.constant 0.000000e+00 : f32
    %327 = vector.broadcast %cst_117 : f32 to vector<8x32xf32>
    %cst_118 = arith.constant 0.000000e+00 : f32
    %328 = vector.broadcast %cst_118 : f32 to vector<8x32xf32>
    %cst_119 = arith.constant 0.000000e+00 : f32
    %329 = vector.broadcast %cst_119 : f32 to vector<8x32xf32>
    %c0_120 = arith.constant 0 : index
    %c0_121 = arith.constant 0 : index
    %330 = vector.load %arg21[%c0_120, %c0_121] : memref<64x256xf32, #tpu.memory_space<vmem>>, vector<8x128xf32>
    %cst_122 = arith.constant dense<0.000000e+00> : vector<8x128xf32>
    %331 = tpu.matmul %326, %324, %cst_122 {dimension_numbers = #tpu.dot_dimension_numbers<[1], [0], [0], [1], [0, 0, 1, 1], [], []>} : vector<8x32xf32>, vector<32x128xf32>, vector<8x128xf32> -> vector<8x128xf32>
    %332 = arith.addf %330, %331 : vector<8x128xf32>
    %c56_123 = arith.constant 56 : index
    %c128_124 = arith.constant 128 : index
    %333 = vector.load %arg21[%c56_123, %c128_124] : memref<64x256xf32, #tpu.memory_space<vmem>>, vector<8x128xf32>
    %cst_125 = arith.constant dense<0.000000e+00> : vector<8x128xf32>
    %334 = tpu.matmul %327, %325, %cst_125 {dimension_numbers = #tpu.dot_dimension_numbers<[1], [0], [0], [1], [0, 0, 1, 1], [], []>} : vector<8x32xf32>, vector<32x128xf32>, vector<8x128xf32> -> vector<8x128xf32>
    %335 = arith.addf %333, %334 : vector<8x128xf32>
    %336 = arith.negf %332 : vector<8x128xf32>
    %337 = math.exp %336 : vector<8x128xf32>
    %cst_126 = arith.constant 1.000000e+00 : f32
    %338 = vector.broadcast %cst_126 : f32 to vector<8x128xf32>
    %339 = arith.addf %338, %337 : vector<8x128xf32>
    %340 = arith.divf %338, %339 : vector<8x128xf32>
    %341 = math.tanh %332 : vector<8x128xf32>
    %342 = vector.extract_strided_slice %340 {offsets = [0, 0], sizes = [8, 32], strides = [1, 1]} : vector<8x128xf32> to vector<8x32xf32>
    %343 = vector.extract_strided_slice %340 {offsets = [0, 32], sizes = [8, 32], strides = [1, 1]} : vector<8x128xf32> to vector<8x32xf32>
    %344 = vector.extract_strided_slice %341 {offsets = [0, 64], sizes = [8, 32], strides = [1, 1]} : vector<8x128xf32> to vector<8x32xf32>
    %345 = vector.extract_strided_slice %340 {offsets = [0, 96], sizes = [8, 32], strides = [1, 1]} : vector<8x128xf32> to vector<8x32xf32>
    %346 = arith.mulf %343, %328 : vector<8x32xf32>
    %347 = arith.mulf %342, %344 : vector<8x32xf32>
    %348 = arith.addf %346, %347 : vector<8x32xf32>
    %349 = math.tanh %348 : vector<8x32xf32>
    %350 = arith.mulf %345, %349 : vector<8x32xf32>
    %351 = arith.negf %335 : vector<8x128xf32>
    %352 = math.exp %351 : vector<8x128xf32>
    %cst_127 = arith.constant 1.000000e+00 : f32
    %353 = vector.broadcast %cst_127 : f32 to vector<8x128xf32>
    %354 = arith.addf %353, %352 : vector<8x128xf32>
    %355 = arith.divf %353, %354 : vector<8x128xf32>
    %356 = math.tanh %335 : vector<8x128xf32>
    %357 = vector.extract_strided_slice %355 {offsets = [0, 0], sizes = [8, 32], strides = [1, 1]} : vector<8x128xf32> to vector<8x32xf32>
    %358 = vector.extract_strided_slice %355 {offsets = [0, 32], sizes = [8, 32], strides = [1, 1]} : vector<8x128xf32> to vector<8x32xf32>
    %359 = vector.extract_strided_slice %356 {offsets = [0, 64], sizes = [8, 32], strides = [1, 1]} : vector<8x128xf32> to vector<8x32xf32>
    %360 = vector.extract_strided_slice %355 {offsets = [0, 96], sizes = [8, 32], strides = [1, 1]} : vector<8x128xf32> to vector<8x32xf32>
    %361 = arith.mulf %358, %329 : vector<8x32xf32>
    %362 = arith.mulf %357, %359 : vector<8x32xf32>
    %363 = arith.addf %361, %362 : vector<8x32xf32>
    %364 = math.tanh %363 : vector<8x32xf32>
    %365 = arith.mulf %360, %364 : vector<8x32xf32>
    %c0_128 = arith.constant 0 : index
    %c0_129 = arith.constant 0 : index
    %366 = vector.load %arg20[%c0_128, %c0_129] : memref<64x64xf32, #tpu.memory_space<vmem>>, vector<8x32xf32>
    tpu.vector_store %arg20[%c0_128, %c0_129], %350 {strides = array<i32>} : memref<64x64xf32, #tpu.memory_space<vmem>>, vector<8x32xf32>,
    %c56_130 = arith.constant 56 : index
    %c32_131 = arith.constant 32 : index
    %367 = vector.load %arg20[%c56_130, %c32_131] : memref<64x64xf32, #tpu.memory_space<vmem>>, vector<8x32xf32>
    tpu.vector_store %arg20[%c56_130, %c32_131], %365 {strides = array<i32>} : memref<64x64xf32, #tpu.memory_space<vmem>>, vector<8x32xf32>,
    %c8_132 = arith.constant 8 : index
    %c0_133 = arith.constant 0 : index
    %368 = vector.load %arg21[%c8_132, %c0_133] : memref<64x256xf32, #tpu.memory_space<vmem>>, vector<8x128xf32>
    %cst_134 = arith.constant dense<0.000000e+00> : vector<8x128xf32>
    %369 = tpu.matmul %350, %324, %cst_134 {dimension_numbers = #tpu.dot_dimension_numbers<[1], [0], [0], [1], [0, 0, 1, 1], [], []>} : vector<8x32xf32>, vector<32x128xf32>, vector<8x128xf32> -> vector<8x128xf32>
    %370 = arith.addf %368, %369 : vector<8x128xf32>
    %c48_135 = arith.constant 48 : index
    %c128_136 = arith.constant 128 : index
    %371 = vector.load %arg21[%c48_135, %c128_136] : memref<64x256xf32, #tpu.memory_space<vmem>>, vector<8x128xf32>
    %cst_137 = arith.constant dense<0.000000e+00> : vector<8x128xf32>
    %372 = tpu.matmul %365, %325, %cst_137 {dimension_numbers = #tpu.dot_dimension_numbers<[1], [0], [0], [1], [0, 0, 1, 1], [], []>} : vector<8x32xf32>, vector<32x128xf32>, vector<8x128xf32> -> vector<8x128xf32>
    %373 = arith.addf %371, %372 : vector<8x128xf32>
    %374 = arith.negf %370 : vector<8x128xf32>
    %375 = math.exp %374 : vector<8x128xf32>
    %cst_138 = arith.constant 1.000000e+00 : f32
    %376 = vector.broadcast %cst_138 : f32 to vector<8x128xf32>
    %377 = arith.addf %376, %375 : vector<8x128xf32>
    %378 = arith.divf %376, %377 : vector<8x128xf32>
    %379 = math.tanh %370 : vector<8x128xf32>
    %380 = vector.extract_strided_slice %378 {offsets = [0, 0], sizes = [8, 32], strides = [1, 1]} : vector<8x128xf32> to vector<8x32xf32>
    %381 = vector.extract_strided_slice %378 {offsets = [0, 32], sizes = [8, 32], strides = [1, 1]} : vector<8x128xf32> to vector<8x32xf32>
    %382 = vector.extract_strided_slice %379 {offsets = [0, 64], sizes = [8, 32], strides = [1, 1]} : vector<8x128xf32> to vector<8x32xf32>
    %383 = vector.extract_strided_slice %378 {offsets = [0, 96], sizes = [8, 32], strides = [1, 1]} : vector<8x128xf32> to vector<8x32xf32>
    %384 = arith.mulf %381, %348 : vector<8x32xf32>
    %385 = arith.mulf %380, %382 : vector<8x32xf32>
    %386 = arith.addf %384, %385 : vector<8x32xf32>
    %387 = math.tanh %386 : vector<8x32xf32>
    %388 = arith.mulf %383, %387 : vector<8x32xf32>
    %389 = arith.negf %373 : vector<8x128xf32>
    %390 = math.exp %389 : vector<8x128xf32>
    %cst_139 = arith.constant 1.000000e+00 : f32
    %391 = vector.broadcast %cst_139 : f32 to vector<8x128xf32>
    %392 = arith.addf %391, %390 : vector<8x128xf32>
    %393 = arith.divf %391, %392 : vector<8x128xf32>
    %394 = math.tanh %373 : vector<8x128xf32>
    %395 = vector.extract_strided_slice %393 {offsets = [0, 0], sizes = [8, 32], strides = [1, 1]} : vector<8x128xf32> to vector<8x32xf32>
    %396 = vector.extract_strided_slice %393 {offsets = [0, 32], sizes = [8, 32], strides = [1, 1]} : vector<8x128xf32> to vector<8x32xf32>
    %397 = vector.extract_strided_slice %394 {offsets = [0, 64], sizes = [8, 32], strides = [1, 1]} : vector<8x128xf32> to vector<8x32xf32>
    %398 = vector.extract_strided_slice %393 {offsets = [0, 96], sizes = [8, 32], strides = [1, 1]} : vector<8x128xf32> to vector<8x32xf32>
    %399 = arith.mulf %396, %363 : vector<8x32xf32>
    %400 = arith.mulf %395, %397 : vector<8x32xf32>
    %401 = arith.addf %399, %400 : vector<8x32xf32>
    %402 = math.tanh %401 : vector<8x32xf32>
    %403 = arith.mulf %398, %402 : vector<8x32xf32>
    %c8_140 = arith.constant 8 : index
    %c0_141 = arith.constant 0 : index
    %404 = vector.load %arg20[%c8_140, %c0_141] : memref<64x64xf32, #tpu.memory_space<vmem>>, vector<8x32xf32>
    tpu.vector_store %arg20[%c8_140, %c0_141], %388 {strides = array<i32>} : memref<64x64xf32, #tpu.memory_space<vmem>>, vector<8x32xf32>,
    %c48_142 = arith.constant 48 : index
    %c32_143 = arith.constant 32 : index
    %405 = vector.load %arg20[%c48_142, %c32_143] : memref<64x64xf32, #tpu.memory_space<vmem>>, vector<8x32xf32>
    tpu.vector_store %arg20[%c48_142, %c32_143], %403 {strides = array<i32>} : memref<64x64xf32, #tpu.memory_space<vmem>>, vector<8x32xf32>,
    %c16_144 = arith.constant 16 : index
    %c0_145 = arith.constant 0 : index
    %406 = vector.load %arg21[%c16_144, %c0_145] : memref<64x256xf32, #tpu.memory_space<vmem>>, vector<8x128xf32>
    %cst_146 = arith.constant dense<0.000000e+00> : vector<8x128xf32>
    %407 = tpu.matmul %388, %324, %cst_146 {dimension_numbers = #tpu.dot_dimension_numbers<[1], [0], [0], [1], [0, 0, 1, 1], [], []>} : vector<8x32xf32>, vector<32x128xf32>, vector<8x128xf32> -> vector<8x128xf32>
    %408 = arith.addf %406, %407 : vector<8x128xf32>
    %c40_147 = arith.constant 40 : index
    %c128_148 = arith.constant 128 : index
    %409 = vector.load %arg21[%c40_147, %c128_148] : memref<64x256xf32, #tpu.memory_space<vmem>>, vector<8x128xf32>
    %cst_149 = arith.constant dense<0.000000e+00> : vector<8x128xf32>
    %410 = tpu.matmul %403, %325, %cst_149 {dimension_numbers = #tpu.dot_dimension_numbers<[1], [0], [0], [1], [0, 0, 1, 1], [], []>} : vector<8x32xf32>, vector<32x128xf32>, vector<8x128xf32> -> vector<8x128xf32>
    %411 = arith.addf %409, %410 : vector<8x128xf32>
    %412 = arith.negf %408 : vector<8x128xf32>
    %413 = math.exp %412 : vector<8x128xf32>
    %cst_150 = arith.constant 1.000000e+00 : f32
    %414 = vector.broadcast %cst_150 : f32 to vector<8x128xf32>
    %415 = arith.addf %414, %413 : vector<8x128xf32>
    %416 = arith.divf %414, %415 : vector<8x128xf32>
    %417 = math.tanh %408 : vector<8x128xf32>
    %418 = vector.extract_strided_slice %416 {offsets = [0, 0], sizes = [8, 32], strides = [1, 1]} : vector<8x128xf32> to vector<8x32xf32>
    %419 = vector.extract_strided_slice %416 {offsets = [0, 32], sizes = [8, 32], strides = [1, 1]} : vector<8x128xf32> to vector<8x32xf32>
    %420 = vector.extract_strided_slice %417 {offsets = [0, 64], sizes = [8, 32], strides = [1, 1]} : vector<8x128xf32> to vector<8x32xf32>
    %421 = vector.extract_strided_slice %416 {offsets = [0, 96], sizes = [8, 32], strides = [1, 1]} : vector<8x128xf32> to vector<8x32xf32>
    %422 = arith.mulf %419, %386 : vector<8x32xf32>
    %423 = arith.mulf %418, %420 : vector<8x32xf32>
    %424 = arith.addf %422, %423 : vector<8x32xf32>
    %425 = math.tanh %424 : vector<8x32xf32>
    %426 = arith.mulf %421, %425 : vector<8x32xf32>
    %427 = arith.negf %411 : vector<8x128xf32>
    %428 = math.exp %427 : vector<8x128xf32>
    %cst_151 = arith.constant 1.000000e+00 : f32
    %429 = vector.broadcast %cst_151 : f32 to vector<8x128xf32>
    %430 = arith.addf %429, %428 : vector<8x128xf32>
    %431 = arith.divf %429, %430 : vector<8x128xf32>
    %432 = math.tanh %411 : vector<8x128xf32>
    %433 = vector.extract_strided_slice %431 {offsets = [0, 0], sizes = [8, 32], strides = [1, 1]} : vector<8x128xf32> to vector<8x32xf32>
    %434 = vector.extract_strided_slice %431 {offsets = [0, 32], sizes = [8, 32], strides = [1, 1]} : vector<8x128xf32> to vector<8x32xf32>
    %435 = vector.extract_strided_slice %432 {offsets = [0, 64], sizes = [8, 32], strides = [1, 1]} : vector<8x128xf32> to vector<8x32xf32>
    %436 = vector.extract_strided_slice %431 {offsets = [0, 96], sizes = [8, 32], strides = [1, 1]} : vector<8x128xf32> to vector<8x32xf32>
    %437 = arith.mulf %434, %401 : vector<8x32xf32>
    %438 = arith.mulf %433, %435 : vector<8x32xf32>
    %439 = arith.addf %437, %438 : vector<8x32xf32>
    %440 = math.tanh %439 : vector<8x32xf32>
    %441 = arith.mulf %436, %440 : vector<8x32xf32>
    %c16_152 = arith.constant 16 : index
    %c0_153 = arith.constant 0 : index
    %442 = vector.load %arg20[%c16_152, %c0_153] : memref<64x64xf32, #tpu.memory_space<vmem>>, vector<8x32xf32>
    tpu.vector_store %arg20[%c16_152, %c0_153], %426 {strides = array<i32>} : memref<64x64xf32, #tpu.memory_space<vmem>>, vector<8x32xf32>,
    %c40_154 = arith.constant 40 : index
    %c32_155 = arith.constant 32 : index
    %443 = vector.load %arg20[%c40_154, %c32_155] : memref<64x64xf32, #tpu.memory_space<vmem>>, vector<8x32xf32>
    tpu.vector_store %arg20[%c40_154, %c32_155], %441 {strides = array<i32>} : memref<64x64xf32, #tpu.memory_space<vmem>>, vector<8x32xf32>,
    %c24_156 = arith.constant 24 : index
    %c0_157 = arith.constant 0 : index
    %444 = vector.load %arg21[%c24_156, %c0_157] : memref<64x256xf32, #tpu.memory_space<vmem>>, vector<8x128xf32>
    %cst_158 = arith.constant dense<0.000000e+00> : vector<8x128xf32>
    %445 = tpu.matmul %426, %324, %cst_158 {dimension_numbers = #tpu.dot_dimension_numbers<[1], [0], [0], [1], [0, 0, 1, 1], [], []>} : vector<8x32xf32>, vector<32x128xf32>, vector<8x128xf32> -> vector<8x128xf32>
    %446 = arith.addf %444, %445 : vector<8x128xf32>
    %c32_159 = arith.constant 32 : index
    %c128_160 = arith.constant 128 : index
    %447 = vector.load %arg21[%c32_159, %c128_160] : memref<64x256xf32, #tpu.memory_space<vmem>>, vector<8x128xf32>
    %cst_161 = arith.constant dense<0.000000e+00> : vector<8x128xf32>
    %448 = tpu.matmul %441, %325, %cst_161 {dimension_numbers = #tpu.dot_dimension_numbers<[1], [0], [0], [1], [0, 0, 1, 1], [], []>} : vector<8x32xf32>, vector<32x128xf32>, vector<8x128xf32> -> vector<8x128xf32>
    %449 = arith.addf %447, %448 : vector<8x128xf32>
    %450 = arith.negf %446 : vector<8x128xf32>
    %451 = math.exp %450 : vector<8x128xf32>
    %cst_162 = arith.constant 1.000000e+00 : f32
    %452 = vector.broadcast %cst_162 : f32 to vector<8x128xf32>
    %453 = arith.addf %452, %451 : vector<8x128xf32>
    %454 = arith.divf %452, %453 : vector<8x128xf32>
    %455 = math.tanh %446 : vector<8x128xf32>
    %456 = vector.extract_strided_slice %454 {offsets = [0, 0], sizes = [8, 32], strides = [1, 1]} : vector<8x128xf32> to vector<8x32xf32>
    %457 = vector.extract_strided_slice %454 {offsets = [0, 32], sizes = [8, 32], strides = [1, 1]} : vector<8x128xf32> to vector<8x32xf32>
    %458 = vector.extract_strided_slice %455 {offsets = [0, 64], sizes = [8, 32], strides = [1, 1]} : vector<8x128xf32> to vector<8x32xf32>
    %459 = vector.extract_strided_slice %454 {offsets = [0, 96], sizes = [8, 32], strides = [1, 1]} : vector<8x128xf32> to vector<8x32xf32>
    %460 = arith.mulf %457, %424 : vector<8x32xf32>
    %461 = arith.mulf %456, %458 : vector<8x32xf32>
    %462 = arith.addf %460, %461 : vector<8x32xf32>
    %463 = math.tanh %462 : vector<8x32xf32>
    %464 = arith.mulf %459, %463 : vector<8x32xf32>
    %465 = arith.negf %449 : vector<8x128xf32>
    %466 = math.exp %465 : vector<8x128xf32>
    %cst_163 = arith.constant 1.000000e+00 : f32
    %467 = vector.broadcast %cst_163 : f32 to vector<8x128xf32>
    %468 = arith.addf %467, %466 : vector<8x128xf32>
    %469 = arith.divf %467, %468 : vector<8x128xf32>
    %470 = math.tanh %449 : vector<8x128xf32>
    %471 = vector.extract_strided_slice %469 {offsets = [0, 0], sizes = [8, 32], strides = [1, 1]} : vector<8x128xf32> to vector<8x32xf32>
    %472 = vector.extract_strided_slice %469 {offsets = [0, 32], sizes = [8, 32], strides = [1, 1]} : vector<8x128xf32> to vector<8x32xf32>
    %473 = vector.extract_strided_slice %470 {offsets = [0, 64], sizes = [8, 32], strides = [1, 1]} : vector<8x128xf32> to vector<8x32xf32>
    %474 = vector.extract_strided_slice %469 {offsets = [0, 96], sizes = [8, 32], strides = [1, 1]} : vector<8x128xf32> to vector<8x32xf32>
    %475 = arith.mulf %472, %439 : vector<8x32xf32>
    %476 = arith.mulf %471, %473 : vector<8x32xf32>
    %477 = arith.addf %475, %476 : vector<8x32xf32>
    %478 = math.tanh %477 : vector<8x32xf32>
    %479 = arith.mulf %474, %478 : vector<8x32xf32>
    %c24_164 = arith.constant 24 : index
    %c0_165 = arith.constant 0 : index
    %480 = vector.load %arg20[%c24_164, %c0_165] : memref<64x64xf32, #tpu.memory_space<vmem>>, vector<8x32xf32>
    tpu.vector_store %arg20[%c24_164, %c0_165], %464 {strides = array<i32>} : memref<64x64xf32, #tpu.memory_space<vmem>>, vector<8x32xf32>,
    %c32_166 = arith.constant 32 : index
    %c32_167 = arith.constant 32 : index
    %481 = vector.load %arg20[%c32_166, %c32_167] : memref<64x64xf32, #tpu.memory_space<vmem>>, vector<8x32xf32>
    tpu.vector_store %arg20[%c32_166, %c32_167], %479 {strides = array<i32>} : memref<64x64xf32, #tpu.memory_space<vmem>>, vector<8x32xf32>,
    %c32_168 = arith.constant 32 : index
    %c0_169 = arith.constant 0 : index
    %482 = vector.load %arg21[%c32_168, %c0_169] : memref<64x256xf32, #tpu.memory_space<vmem>>, vector<8x128xf32>
    %cst_170 = arith.constant dense<0.000000e+00> : vector<8x128xf32>
    %483 = tpu.matmul %464, %324, %cst_170 {dimension_numbers = #tpu.dot_dimension_numbers<[1], [0], [0], [1], [0, 0, 1, 1], [], []>} : vector<8x32xf32>, vector<32x128xf32>, vector<8x128xf32> -> vector<8x128xf32>
    %484 = arith.addf %482, %483 : vector<8x128xf32>
    %c24_171 = arith.constant 24 : index
    %c128_172 = arith.constant 128 : index
    %485 = vector.load %arg21[%c24_171, %c128_172] : memref<64x256xf32, #tpu.memory_space<vmem>>, vector<8x128xf32>
    %cst_173 = arith.constant dense<0.000000e+00> : vector<8x128xf32>
    %486 = tpu.matmul %479, %325, %cst_173 {dimension_numbers = #tpu.dot_dimension_numbers<[1], [0], [0], [1], [0, 0, 1, 1], [], []>} : vector<8x32xf32>, vector<32x128xf32>, vector<8x128xf32> -> vector<8x128xf32>
    %487 = arith.addf %485, %486 : vector<8x128xf32>
    %488 = arith.negf %484 : vector<8x128xf32>
    %489 = math.exp %488 : vector<8x128xf32>
    %cst_174 = arith.constant 1.000000e+00 : f32
    %490 = vector.broadcast %cst_174 : f32 to vector<8x128xf32>
    %491 = arith.addf %490, %489 : vector<8x128xf32>
    %492 = arith.divf %490, %491 : vector<8x128xf32>
    %493 = math.tanh %484 : vector<8x128xf32>
    %494 = vector.extract_strided_slice %492 {offsets = [0, 0], sizes = [8, 32], strides = [1, 1]} : vector<8x128xf32> to vector<8x32xf32>
    %495 = vector.extract_strided_slice %492 {offsets = [0, 32], sizes = [8, 32], strides = [1, 1]} : vector<8x128xf32> to vector<8x32xf32>
    %496 = vector.extract_strided_slice %493 {offsets = [0, 64], sizes = [8, 32], strides = [1, 1]} : vector<8x128xf32> to vector<8x32xf32>
    %497 = vector.extract_strided_slice %492 {offsets = [0, 96], sizes = [8, 32], strides = [1, 1]} : vector<8x128xf32> to vector<8x32xf32>
    %498 = arith.mulf %495, %462 : vector<8x32xf32>
    %499 = arith.mulf %494, %496 : vector<8x32xf32>
    %500 = arith.addf %498, %499 : vector<8x32xf32>
    %501 = math.tanh %500 : vector<8x32xf32>
    %502 = arith.mulf %497, %501 : vector<8x32xf32>
    %503 = arith.negf %487 : vector<8x128xf32>
    %504 = math.exp %503 : vector<8x128xf32>
    %cst_175 = arith.constant 1.000000e+00 : f32
    %505 = vector.broadcast %cst_175 : f32 to vector<8x128xf32>
    %506 = arith.addf %505, %504 : vector<8x128xf32>
    %507 = arith.divf %505, %506 : vector<8x128xf32>
    %508 = math.tanh %487 : vector<8x128xf32>
    %509 = vector.extract_strided_slice %507 {offsets = [0, 0], sizes = [8, 32], strides = [1, 1]} : vector<8x128xf32> to vector<8x32xf32>
    %510 = vector.extract_strided_slice %507 {offsets = [0, 32], sizes = [8, 32], strides = [1, 1]} : vector<8x128xf32> to vector<8x32xf32>
    %511 = vector.extract_strided_slice %508 {offsets = [0, 64], sizes = [8, 32], strides = [1, 1]} : vector<8x128xf32> to vector<8x32xf32>
    %512 = vector.extract_strided_slice %507 {offsets = [0, 96], sizes = [8, 32], strides = [1, 1]} : vector<8x128xf32> to vector<8x32xf32>
    %513 = arith.mulf %510, %477 : vector<8x32xf32>
    %514 = arith.mulf %509, %511 : vector<8x32xf32>
    %515 = arith.addf %513, %514 : vector<8x32xf32>
    %516 = math.tanh %515 : vector<8x32xf32>
    %517 = arith.mulf %512, %516 : vector<8x32xf32>
    %c32_176 = arith.constant 32 : index
    %c0_177 = arith.constant 0 : index
    %518 = vector.load %arg20[%c32_176, %c0_177] : memref<64x64xf32, #tpu.memory_space<vmem>>, vector<8x32xf32>
    tpu.vector_store %arg20[%c32_176, %c0_177], %502 {strides = array<i32>} : memref<64x64xf32, #tpu.memory_space<vmem>>, vector<8x32xf32>,
    %c24_178 = arith.constant 24 : index
    %c32_179 = arith.constant 32 : index
    %519 = vector.load %arg20[%c24_178, %c32_179] : memref<64x64xf32, #tpu.memory_space<vmem>>, vector<8x32xf32>
    tpu.vector_store %arg20[%c24_178, %c32_179], %517 {strides = array<i32>} : memref<64x64xf32, #tpu.memory_space<vmem>>, vector<8x32xf32>,
    %c40_180 = arith.constant 40 : index
    %c0_181 = arith.constant 0 : index
    %520 = vector.load %arg21[%c40_180, %c0_181] : memref<64x256xf32, #tpu.memory_space<vmem>>, vector<8x128xf32>
    %cst_182 = arith.constant dense<0.000000e+00> : vector<8x128xf32>
    %521 = tpu.matmul %502, %324, %cst_182 {dimension_numbers = #tpu.dot_dimension_numbers<[1], [0], [0], [1], [0, 0, 1, 1], [], []>} : vector<8x32xf32>, vector<32x128xf32>, vector<8x128xf32> -> vector<8x128xf32>
    %522 = arith.addf %520, %521 : vector<8x128xf32>
    %c16_183 = arith.constant 16 : index
    %c128_184 = arith.constant 128 : index
    %523 = vector.load %arg21[%c16_183, %c128_184] : memref<64x256xf32, #tpu.memory_space<vmem>>, vector<8x128xf32>
    %cst_185 = arith.constant dense<0.000000e+00> : vector<8x128xf32>
    %524 = tpu.matmul %517, %325, %cst_185 {dimension_numbers = #tpu.dot_dimension_numbers<[1], [0], [0], [1], [0, 0, 1, 1], [], []>} : vector<8x32xf32>, vector<32x128xf32>, vector<8x128xf32> -> vector<8x128xf32>
    %525 = arith.addf %523, %524 : vector<8x128xf32>
    %526 = arith.negf %522 : vector<8x128xf32>
    %527 = math.exp %526 : vector<8x128xf32>
    %cst_186 = arith.constant 1.000000e+00 : f32
    %528 = vector.broadcast %cst_186 : f32 to vector<8x128xf32>
    %529 = arith.addf %528, %527 : vector<8x128xf32>
    %530 = arith.divf %528, %529 : vector<8x128xf32>
    %531 = math.tanh %522 : vector<8x128xf32>
    %532 = vector.extract_strided_slice %530 {offsets = [0, 0], sizes = [8, 32], strides = [1, 1]} : vector<8x128xf32> to vector<8x32xf32>
    %533 = vector.extract_strided_slice %530 {offsets = [0, 32], sizes = [8, 32], strides = [1, 1]} : vector<8x128xf32> to vector<8x32xf32>
    %534 = vector.extract_strided_slice %531 {offsets = [0, 64], sizes = [8, 32], strides = [1, 1]} : vector<8x128xf32> to vector<8x32xf32>
    %535 = vector.extract_strided_slice %530 {offsets = [0, 96], sizes = [8, 32], strides = [1, 1]} : vector<8x128xf32> to vector<8x32xf32>
    %536 = arith.mulf %533, %500 : vector<8x32xf32>
    %537 = arith.mulf %532, %534 : vector<8x32xf32>
    %538 = arith.addf %536, %537 : vector<8x32xf32>
    %539 = math.tanh %538 : vector<8x32xf32>
    %540 = arith.mulf %535, %539 : vector<8x32xf32>
    %541 = arith.negf %525 : vector<8x128xf32>
    %542 = math.exp %541 : vector<8x128xf32>
    %cst_187 = arith.constant 1.000000e+00 : f32
    %543 = vector.broadcast %cst_187 : f32 to vector<8x128xf32>
    %544 = arith.addf %543, %542 : vector<8x128xf32>
    %545 = arith.divf %543, %544 : vector<8x128xf32>
    %546 = math.tanh %525 : vector<8x128xf32>
    %547 = vector.extract_strided_slice %545 {offsets = [0, 0], sizes = [8, 32], strides = [1, 1]} : vector<8x128xf32> to vector<8x32xf32>
    %548 = vector.extract_strided_slice %545 {offsets = [0, 32], sizes = [8, 32], strides = [1, 1]} : vector<8x128xf32> to vector<8x32xf32>
    %549 = vector.extract_strided_slice %546 {offsets = [0, 64], sizes = [8, 32], strides = [1, 1]} : vector<8x128xf32> to vector<8x32xf32>
    %550 = vector.extract_strided_slice %545 {offsets = [0, 96], sizes = [8, 32], strides = [1, 1]} : vector<8x128xf32> to vector<8x32xf32>
    %551 = arith.mulf %548, %515 : vector<8x32xf32>
    %552 = arith.mulf %547, %549 : vector<8x32xf32>
    %553 = arith.addf %551, %552 : vector<8x32xf32>
    %554 = math.tanh %553 : vector<8x32xf32>
    %555 = arith.mulf %550, %554 : vector<8x32xf32>
    %c40_188 = arith.constant 40 : index
    %c0_189 = arith.constant 0 : index
    %556 = vector.load %arg20[%c40_188, %c0_189] : memref<64x64xf32, #tpu.memory_space<vmem>>, vector<8x32xf32>
    tpu.vector_store %arg20[%c40_188, %c0_189], %540 {strides = array<i32>} : memref<64x64xf32, #tpu.memory_space<vmem>>, vector<8x32xf32>,
    %c16_190 = arith.constant 16 : index
    %c32_191 = arith.constant 32 : index
    %557 = vector.load %arg20[%c16_190, %c32_191] : memref<64x64xf32, #tpu.memory_space<vmem>>, vector<8x32xf32>
    tpu.vector_store %arg20[%c16_190, %c32_191], %555 {strides = array<i32>} : memref<64x64xf32, #tpu.memory_space<vmem>>, vector<8x32xf32>,
    %c48_192 = arith.constant 48 : index
    %c0_193 = arith.constant 0 : index
    %558 = vector.load %arg21[%c48_192, %c0_193] : memref<64x256xf32, #tpu.memory_space<vmem>>, vector<8x128xf32>
    %cst_194 = arith.constant dense<0.000000e+00> : vector<8x128xf32>
    %559 = tpu.matmul %540, %324, %cst_194 {dimension_numbers = #tpu.dot_dimension_numbers<[1], [0], [0], [1], [0, 0, 1, 1], [], []>} : vector<8x32xf32>, vector<32x128xf32>, vector<8x128xf32> -> vector<8x128xf32>
    %560 = arith.addf %558, %559 : vector<8x128xf32>
    %c8_195 = arith.constant 8 : index
    %c128_196 = arith.constant 128 : index
    %561 = vector.load %arg21[%c8_195, %c128_196] : memref<64x256xf32, #tpu.memory_space<vmem>>, vector<8x128xf32>
    %cst_197 = arith.constant dense<0.000000e+00> : vector<8x128xf32>
    %562 = tpu.matmul %555, %325, %cst_197 {dimension_numbers = #tpu.dot_dimension_numbers<[1], [0], [0], [1], [0, 0, 1, 1], [], []>} : vector<8x32xf32>, vector<32x128xf32>, vector<8x128xf32> -> vector<8x128xf32>
    %563 = arith.addf %561, %562 : vector<8x128xf32>
    %564 = arith.negf %560 : vector<8x128xf32>
    %565 = math.exp %564 : vector<8x128xf32>
    %cst_198 = arith.constant 1.000000e+00 : f32
    %566 = vector.broadcast %cst_198 : f32 to vector<8x128xf32>
    %567 = arith.addf %566, %565 : vector<8x128xf32>
    %568 = arith.divf %566, %567 : vector<8x128xf32>
    %569 = math.tanh %560 : vector<8x128xf32>
    %570 = vector.extract_strided_slice %568 {offsets = [0, 0], sizes = [8, 32], strides = [1, 1]} : vector<8x128xf32> to vector<8x32xf32>
    %571 = vector.extract_strided_slice %568 {offsets = [0, 32], sizes = [8, 32], strides = [1, 1]} : vector<8x128xf32> to vector<8x32xf32>
    %572 = vector.extract_strided_slice %569 {offsets = [0, 64], sizes = [8, 32], strides = [1, 1]} : vector<8x128xf32> to vector<8x32xf32>
    %573 = vector.extract_strided_slice %568 {offsets = [0, 96], sizes = [8, 32], strides = [1, 1]} : vector<8x128xf32> to vector<8x32xf32>
    %574 = arith.mulf %571, %538 : vector<8x32xf32>
    %575 = arith.mulf %570, %572 : vector<8x32xf32>
    %576 = arith.addf %574, %575 : vector<8x32xf32>
    %577 = math.tanh %576 : vector<8x32xf32>
    %578 = arith.mulf %573, %577 : vector<8x32xf32>
    %579 = arith.negf %563 : vector<8x128xf32>
    %580 = math.exp %579 : vector<8x128xf32>
    %cst_199 = arith.constant 1.000000e+00 : f32
    %581 = vector.broadcast %cst_199 : f32 to vector<8x128xf32>
    %582 = arith.addf %581, %580 : vector<8x128xf32>
    %583 = arith.divf %581, %582 : vector<8x128xf32>
    %584 = math.tanh %563 : vector<8x128xf32>
    %585 = vector.extract_strided_slice %583 {offsets = [0, 0], sizes = [8, 32], strides = [1, 1]} : vector<8x128xf32> to vector<8x32xf32>
    %586 = vector.extract_strided_slice %583 {offsets = [0, 32], sizes = [8, 32], strides = [1, 1]} : vector<8x128xf32> to vector<8x32xf32>
    %587 = vector.extract_strided_slice %584 {offsets = [0, 64], sizes = [8, 32], strides = [1, 1]} : vector<8x128xf32> to vector<8x32xf32>
    %588 = vector.extract_strided_slice %583 {offsets = [0, 96], sizes = [8, 32], strides = [1, 1]} : vector<8x128xf32> to vector<8x32xf32>
    %589 = arith.mulf %586, %553 : vector<8x32xf32>
    %590 = arith.mulf %585, %587 : vector<8x32xf32>
    %591 = arith.addf %589, %590 : vector<8x32xf32>
    %592 = math.tanh %591 : vector<8x32xf32>
    %593 = arith.mulf %588, %592 : vector<8x32xf32>
    %c48_200 = arith.constant 48 : index
    %c0_201 = arith.constant 0 : index
    %594 = vector.load %arg20[%c48_200, %c0_201] : memref<64x64xf32, #tpu.memory_space<vmem>>, vector<8x32xf32>
    tpu.vector_store %arg20[%c48_200, %c0_201], %578 {strides = array<i32>} : memref<64x64xf32, #tpu.memory_space<vmem>>, vector<8x32xf32>,
    %c8_202 = arith.constant 8 : index
    %c32_203 = arith.constant 32 : index
    %595 = vector.load %arg20[%c8_202, %c32_203] : memref<64x64xf32, #tpu.memory_space<vmem>>, vector<8x32xf32>
    tpu.vector_store %arg20[%c8_202, %c32_203], %593 {strides = array<i32>} : memref<64x64xf32, #tpu.memory_space<vmem>>, vector<8x32xf32>,
    %c56_204 = arith.constant 56 : index
    %c0_205 = arith.constant 0 : index
    %596 = vector.load %arg21[%c56_204, %c0_205] : memref<64x256xf32, #tpu.memory_space<vmem>>, vector<8x128xf32>
    %cst_206 = arith.constant dense<0.000000e+00> : vector<8x128xf32>
    %597 = tpu.matmul %578, %324, %cst_206 {dimension_numbers = #tpu.dot_dimension_numbers<[1], [0], [0], [1], [0, 0, 1, 1], [], []>} : vector<8x32xf32>, vector<32x128xf32>, vector<8x128xf32> -> vector<8x128xf32>
    %598 = arith.addf %596, %597 : vector<8x128xf32>
    %c0_207 = arith.constant 0 : index
    %c128_208 = arith.constant 128 : index
    %599 = vector.load %arg21[%c0_207, %c128_208] : memref<64x256xf32, #tpu.memory_space<vmem>>, vector<8x128xf32>
    %cst_209 = arith.constant dense<0.000000e+00> : vector<8x128xf32>
    %600 = tpu.matmul %593, %325, %cst_209 {dimension_numbers = #tpu.dot_dimension_numbers<[1], [0], [0], [1], [0, 0, 1, 1], [], []>} : vector<8x32xf32>, vector<32x128xf32>, vector<8x128xf32> -> vector<8x128xf32>
    %601 = arith.addf %599, %600 : vector<8x128xf32>
    %602 = arith.negf %598 : vector<8x128xf32>
    %603 = math.exp %602 : vector<8x128xf32>
    %cst_210 = arith.constant 1.000000e+00 : f32
    %604 = vector.broadcast %cst_210 : f32 to vector<8x128xf32>
    %605 = arith.addf %604, %603 : vector<8x128xf32>
    %606 = arith.divf %604, %605 : vector<8x128xf32>
    %607 = math.tanh %598 : vector<8x128xf32>
    %608 = vector.extract_strided_slice %606 {offsets = [0, 0], sizes = [8, 32], strides = [1, 1]} : vector<8x128xf32> to vector<8x32xf32>
    %609 = vector.extract_strided_slice %606 {offsets = [0, 32], sizes = [8, 32], strides = [1, 1]} : vector<8x128xf32> to vector<8x32xf32>
    %610 = vector.extract_strided_slice %607 {offsets = [0, 64], sizes = [8, 32], strides = [1, 1]} : vector<8x128xf32> to vector<8x32xf32>
    %611 = vector.extract_strided_slice %606 {offsets = [0, 96], sizes = [8, 32], strides = [1, 1]} : vector<8x128xf32> to vector<8x32xf32>
    %612 = arith.mulf %609, %576 : vector<8x32xf32>
    %613 = arith.mulf %608, %610 : vector<8x32xf32>
    %614 = arith.addf %612, %613 : vector<8x32xf32>
    %615 = math.tanh %614 : vector<8x32xf32>
    %616 = arith.mulf %611, %615 : vector<8x32xf32>
    %617 = arith.negf %601 : vector<8x128xf32>
    %618 = math.exp %617 : vector<8x128xf32>
    %cst_211 = arith.constant 1.000000e+00 : f32
    %619 = vector.broadcast %cst_211 : f32 to vector<8x128xf32>
    %620 = arith.addf %619, %618 : vector<8x128xf32>
    %621 = arith.divf %619, %620 : vector<8x128xf32>
    %622 = math.tanh %601 : vector<8x128xf32>
    %623 = vector.extract_strided_slice %621 {offsets = [0, 0], sizes = [8, 32], strides = [1, 1]} : vector<8x128xf32> to vector<8x32xf32>
    %624 = vector.extract_strided_slice %621 {offsets = [0, 32], sizes = [8, 32], strides = [1, 1]} : vector<8x128xf32> to vector<8x32xf32>
    %625 = vector.extract_strided_slice %622 {offsets = [0, 64], sizes = [8, 32], strides = [1, 1]} : vector<8x128xf32> to vector<8x32xf32>
    %626 = vector.extract_strided_slice %621 {offsets = [0, 96], sizes = [8, 32], strides = [1, 1]} : vector<8x128xf32> to vector<8x32xf32>
    %627 = arith.mulf %624, %591 : vector<8x32xf32>
    %628 = arith.mulf %623, %625 : vector<8x32xf32>
    %629 = arith.addf %627, %628 : vector<8x32xf32>
    %630 = math.tanh %629 : vector<8x32xf32>
    %631 = arith.mulf %626, %630 : vector<8x32xf32>
    %c56_212 = arith.constant 56 : index
    %c0_213 = arith.constant 0 : index
    %632 = vector.load %arg20[%c56_212, %c0_213] : memref<64x64xf32, #tpu.memory_space<vmem>>, vector<8x32xf32>
    tpu.vector_store %arg20[%c56_212, %c0_213], %616 {strides = array<i32>} : memref<64x64xf32, #tpu.memory_space<vmem>>, vector<8x32xf32>,
    %c0_214 = arith.constant 0 : index
    %c32_215 = arith.constant 32 : index
    %633 = vector.load %arg20[%c0_214, %c32_215] : memref<64x64xf32, #tpu.memory_space<vmem>>, vector<8x32xf32>
    tpu.vector_store %arg20[%c0_214, %c32_215], %631 {strides = array<i32>} : memref<64x64xf32, #tpu.memory_space<vmem>>, vector<8x32xf32>,
    %c0_216 = arith.constant 0 : index
    %c0_217 = arith.constant 0 : index
    %634 = vector.load %arg20[%c0_216, %c0_217] : memref<64x64xf32, #tpu.memory_space<vmem>>, vector<64x64xf32>
    %c0_218 = arith.constant 0 : index
    %c0_219 = arith.constant 0 : index
    %635 = vector.load %arg9[%c0_218, %c0_219] : memref<64x256xf32, #tpu.memory_space<vmem>>, vector<64x256xf32>
    %cst_220 = arith.constant dense<0.000000e+00> : vector<64x256xf32>
    %636 = tpu.matmul %634, %635, %cst_220 {dimension_numbers = #tpu.dot_dimension_numbers<[1], [0], [0], [1], [0, 0, 1, 1], [], []>} : vector<64x64xf32>, vector<64x256xf32>, vector<64x256xf32> -> vector<64x256xf32>
    %c0_221 = arith.constant 0 : index
    %c0_222 = arith.constant 0 : index
    %637 = vector.load %arg12[%c0_221, %c0_222] : memref<1x256xf32, #tpu.memory_space<vmem>>, vector<1x256xf32>
    %638 = vector.broadcast %637 : vector<1x256xf32> to vector<64x256xf32>
    %639 = arith.addf %636, %638 : vector<64x256xf32>
    %c0_223 = arith.constant 0 : index
    %c0_224 = arith.constant 0 : index
    %640 = vector.load %arg21[%c0_223, %c0_224] : memref<64x256xf32, #tpu.memory_space<vmem>>, vector<64x256xf32>
    tpu.vector_store %arg21[%c0_223, %c0_224], %639 {strides = array<i32>} : memref<64x256xf32, #tpu.memory_space<vmem>>, vector<64x256xf32>,
    %c0_225 = arith.constant 0 : index
    %c0_226 = arith.constant 0 : index
    %641 = vector.load %arg10[%c0_225, %c0_226] : memref<32x128xf32, #tpu.memory_space<vmem>>, vector<32x128xf32>
    %c0_227 = arith.constant 0 : index
    %c0_228 = arith.constant 0 : index
    %642 = vector.load %arg11[%c0_227, %c0_228] : memref<32x128xf32, #tpu.memory_space<vmem>>, vector<32x128xf32>
    %cst_229 = arith.constant 0.000000e+00 : f32
    %643 = vector.broadcast %cst_229 : f32 to vector<8x32xf32>
    %cst_230 = arith.constant 0.000000e+00 : f32
    %644 = vector.broadcast %cst_230 : f32 to vector<8x32xf32>
    %cst_231 = arith.constant 0.000000e+00 : f32
    %645 = vector.broadcast %cst_231 : f32 to vector<8x32xf32>
    %cst_232 = arith.constant 0.000000e+00 : f32
    %646 = vector.broadcast %cst_232 : f32 to vector<8x32xf32>
    %c0_233 = arith.constant 0 : index
    %c0_234 = arith.constant 0 : index
    %647 = vector.load %arg21[%c0_233, %c0_234] : memref<64x256xf32, #tpu.memory_space<vmem>>, vector<8x128xf32>
    %cst_235 = arith.constant dense<0.000000e+00> : vector<8x128xf32>
    %648 = tpu.matmul %643, %641, %cst_235 {dimension_numbers = #tpu.dot_dimension_numbers<[1], [0], [0], [1], [0, 0, 1, 1], [], []>} : vector<8x32xf32>, vector<32x128xf32>, vector<8x128xf32> -> vector<8x128xf32>
    %649 = arith.addf %647, %648 : vector<8x128xf32>
    %c56_236 = arith.constant 56 : index
    %c128_237 = arith.constant 128 : index
    %650 = vector.load %arg21[%c56_236, %c128_237] : memref<64x256xf32, #tpu.memory_space<vmem>>, vector<8x128xf32>
    %cst_238 = arith.constant dense<0.000000e+00> : vector<8x128xf32>
    %651 = tpu.matmul %644, %642, %cst_238 {dimension_numbers = #tpu.dot_dimension_numbers<[1], [0], [0], [1], [0, 0, 1, 1], [], []>} : vector<8x32xf32>, vector<32x128xf32>, vector<8x128xf32> -> vector<8x128xf32>
    %652 = arith.addf %650, %651 : vector<8x128xf32>
    %653 = arith.negf %649 : vector<8x128xf32>
    %654 = math.exp %653 : vector<8x128xf32>
    %cst_239 = arith.constant 1.000000e+00 : f32
    %655 = vector.broadcast %cst_239 : f32 to vector<8x128xf32>
    %656 = arith.addf %655, %654 : vector<8x128xf32>
    %657 = arith.divf %655, %656 : vector<8x128xf32>
    %658 = math.tanh %649 : vector<8x128xf32>
    %659 = vector.extract_strided_slice %657 {offsets = [0, 0], sizes = [8, 32], strides = [1, 1]} : vector<8x128xf32> to vector<8x32xf32>
    %660 = vector.extract_strided_slice %657 {offsets = [0, 32], sizes = [8, 32], strides = [1, 1]} : vector<8x128xf32> to vector<8x32xf32>
    %661 = vector.extract_strided_slice %658 {offsets = [0, 64], sizes = [8, 32], strides = [1, 1]} : vector<8x128xf32> to vector<8x32xf32>
    %662 = vector.extract_strided_slice %657 {offsets = [0, 96], sizes = [8, 32], strides = [1, 1]} : vector<8x128xf32> to vector<8x32xf32>
    %663 = arith.mulf %660, %645 : vector<8x32xf32>
    %664 = arith.mulf %659, %661 : vector<8x32xf32>
    %665 = arith.addf %663, %664 : vector<8x32xf32>
    %666 = math.tanh %665 : vector<8x32xf32>
    %667 = arith.mulf %662, %666 : vector<8x32xf32>
    %668 = arith.negf %652 : vector<8x128xf32>
    %669 = math.exp %668 : vector<8x128xf32>
    %cst_240 = arith.constant 1.000000e+00 : f32
    %670 = vector.broadcast %cst_240 : f32 to vector<8x128xf32>
    %671 = arith.addf %670, %669 : vector<8x128xf32>
    %672 = arith.divf %670, %671 : vector<8x128xf32>
    %673 = math.tanh %652 : vector<8x128xf32>
    %674 = vector.extract_strided_slice %672 {offsets = [0, 0], sizes = [8, 32], strides = [1, 1]} : vector<8x128xf32> to vector<8x32xf32>
    %675 = vector.extract_strided_slice %672 {offsets = [0, 32], sizes = [8, 32], strides = [1, 1]} : vector<8x128xf32> to vector<8x32xf32>
    %676 = vector.extract_strided_slice %673 {offsets = [0, 64], sizes = [8, 32], strides = [1, 1]} : vector<8x128xf32> to vector<8x32xf32>
    %677 = vector.extract_strided_slice %672 {offsets = [0, 96], sizes = [8, 32], strides = [1, 1]} : vector<8x128xf32> to vector<8x32xf32>
    %678 = arith.mulf %675, %646 : vector<8x32xf32>
    %679 = arith.mulf %674, %676 : vector<8x32xf32>
    %680 = arith.addf %678, %679 : vector<8x32xf32>
    %681 = math.tanh %680 : vector<8x32xf32>
    %682 = arith.mulf %677, %681 : vector<8x32xf32>
    %c0_241 = arith.constant 0 : index
    %c0_242 = arith.constant 0 : index
    %683 = vector.load %arg20[%c0_241, %c0_242] : memref<64x64xf32, #tpu.memory_space<vmem>>, vector<8x32xf32>
    tpu.vector_store %arg20[%c0_241, %c0_242], %667 {strides = array<i32>} : memref<64x64xf32, #tpu.memory_space<vmem>>, vector<8x32xf32>,
    %c56_243 = arith.constant 56 : index
    %c32_244 = arith.constant 32 : index
    %684 = vector.load %arg20[%c56_243, %c32_244] : memref<64x64xf32, #tpu.memory_space<vmem>>, vector<8x32xf32>
    tpu.vector_store %arg20[%c56_243, %c32_244], %682 {strides = array<i32>} : memref<64x64xf32, #tpu.memory_space<vmem>>, vector<8x32xf32>,
    %c8_245 = arith.constant 8 : index
    %c0_246 = arith.constant 0 : index
    %685 = vector.load %arg21[%c8_245, %c0_246] : memref<64x256xf32, #tpu.memory_space<vmem>>, vector<8x128xf32>
    %cst_247 = arith.constant dense<0.000000e+00> : vector<8x128xf32>
    %686 = tpu.matmul %667, %641, %cst_247 {dimension_numbers = #tpu.dot_dimension_numbers<[1], [0], [0], [1], [0, 0, 1, 1], [], []>} : vector<8x32xf32>, vector<32x128xf32>, vector<8x128xf32> -> vector<8x128xf32>
    %687 = arith.addf %685, %686 : vector<8x128xf32>
    %c48_248 = arith.constant 48 : index
    %c128_249 = arith.constant 128 : index
    %688 = vector.load %arg21[%c48_248, %c128_249] : memref<64x256xf32, #tpu.memory_space<vmem>>, vector<8x128xf32>
    %cst_250 = arith.constant dense<0.000000e+00> : vector<8x128xf32>
    %689 = tpu.matmul %682, %642, %cst_250 {dimension_numbers = #tpu.dot_dimension_numbers<[1], [0], [0], [1], [0, 0, 1, 1], [], []>} : vector<8x32xf32>, vector<32x128xf32>, vector<8x128xf32> -> vector<8x128xf32>
    %690 = arith.addf %688, %689 : vector<8x128xf32>
    %691 = arith.negf %687 : vector<8x128xf32>
    %692 = math.exp %691 : vector<8x128xf32>
    %cst_251 = arith.constant 1.000000e+00 : f32
    %693 = vector.broadcast %cst_251 : f32 to vector<8x128xf32>
    %694 = arith.addf %693, %692 : vector<8x128xf32>
    %695 = arith.divf %693, %694 : vector<8x128xf32>
    %696 = math.tanh %687 : vector<8x128xf32>
    %697 = vector.extract_strided_slice %695 {offsets = [0, 0], sizes = [8, 32], strides = [1, 1]} : vector<8x128xf32> to vector<8x32xf32>
    %698 = vector.extract_strided_slice %695 {offsets = [0, 32], sizes = [8, 32], strides = [1, 1]} : vector<8x128xf32> to vector<8x32xf32>
    %699 = vector.extract_strided_slice %696 {offsets = [0, 64], sizes = [8, 32], strides = [1, 1]} : vector<8x128xf32> to vector<8x32xf32>
    %700 = vector.extract_strided_slice %695 {offsets = [0, 96], sizes = [8, 32], strides = [1, 1]} : vector<8x128xf32> to vector<8x32xf32>
    %701 = arith.mulf %698, %665 : vector<8x32xf32>
    %702 = arith.mulf %697, %699 : vector<8x32xf32>
    %703 = arith.addf %701, %702 : vector<8x32xf32>
    %704 = math.tanh %703 : vector<8x32xf32>
    %705 = arith.mulf %700, %704 : vector<8x32xf32>
    %706 = arith.negf %690 : vector<8x128xf32>
    %707 = math.exp %706 : vector<8x128xf32>
    %cst_252 = arith.constant 1.000000e+00 : f32
    %708 = vector.broadcast %cst_252 : f32 to vector<8x128xf32>
    %709 = arith.addf %708, %707 : vector<8x128xf32>
    %710 = arith.divf %708, %709 : vector<8x128xf32>
    %711 = math.tanh %690 : vector<8x128xf32>
    %712 = vector.extract_strided_slice %710 {offsets = [0, 0], sizes = [8, 32], strides = [1, 1]} : vector<8x128xf32> to vector<8x32xf32>
    %713 = vector.extract_strided_slice %710 {offsets = [0, 32], sizes = [8, 32], strides = [1, 1]} : vector<8x128xf32> to vector<8x32xf32>
    %714 = vector.extract_strided_slice %711 {offsets = [0, 64], sizes = [8, 32], strides = [1, 1]} : vector<8x128xf32> to vector<8x32xf32>
    %715 = vector.extract_strided_slice %710 {offsets = [0, 96], sizes = [8, 32], strides = [1, 1]} : vector<8x128xf32> to vector<8x32xf32>
    %716 = arith.mulf %713, %680 : vector<8x32xf32>
    %717 = arith.mulf %712, %714 : vector<8x32xf32>
    %718 = arith.addf %716, %717 : vector<8x32xf32>
    %719 = math.tanh %718 : vector<8x32xf32>
    %720 = arith.mulf %715, %719 : vector<8x32xf32>
    %c8_253 = arith.constant 8 : index
    %c0_254 = arith.constant 0 : index
    %721 = vector.load %arg20[%c8_253, %c0_254] : memref<64x64xf32, #tpu.memory_space<vmem>>, vector<8x32xf32>
    tpu.vector_store %arg20[%c8_253, %c0_254], %705 {strides = array<i32>} : memref<64x64xf32, #tpu.memory_space<vmem>>, vector<8x32xf32>,
    %c48_255 = arith.constant 48 : index
    %c32_256 = arith.constant 32 : index
    %722 = vector.load %arg20[%c48_255, %c32_256] : memref<64x64xf32, #tpu.memory_space<vmem>>, vector<8x32xf32>
    tpu.vector_store %arg20[%c48_255, %c32_256], %720 {strides = array<i32>} : memref<64x64xf32, #tpu.memory_space<vmem>>, vector<8x32xf32>,
    %c16_257 = arith.constant 16 : index
    %c0_258 = arith.constant 0 : index
    %723 = vector.load %arg21[%c16_257, %c0_258] : memref<64x256xf32, #tpu.memory_space<vmem>>, vector<8x128xf32>
    %cst_259 = arith.constant dense<0.000000e+00> : vector<8x128xf32>
    %724 = tpu.matmul %705, %641, %cst_259 {dimension_numbers = #tpu.dot_dimension_numbers<[1], [0], [0], [1], [0, 0, 1, 1], [], []>} : vector<8x32xf32>, vector<32x128xf32>, vector<8x128xf32> -> vector<8x128xf32>
    %725 = arith.addf %723, %724 : vector<8x128xf32>
    %c40_260 = arith.constant 40 : index
    %c128_261 = arith.constant 128 : index
    %726 = vector.load %arg21[%c40_260, %c128_261] : memref<64x256xf32, #tpu.memory_space<vmem>>, vector<8x128xf32>
    %cst_262 = arith.constant dense<0.000000e+00> : vector<8x128xf32>
    %727 = tpu.matmul %720, %642, %cst_262 {dimension_numbers = #tpu.dot_dimension_numbers<[1], [0], [0], [1], [0, 0, 1, 1], [], []>} : vector<8x32xf32>, vector<32x128xf32>, vector<8x128xf32> -> vector<8x128xf32>
    %728 = arith.addf %726, %727 : vector<8x128xf32>
    %729 = arith.negf %725 : vector<8x128xf32>
    %730 = math.exp %729 : vector<8x128xf32>
    %cst_263 = arith.constant 1.000000e+00 : f32
    %731 = vector.broadcast %cst_263 : f32 to vector<8x128xf32>
    %732 = arith.addf %731, %730 : vector<8x128xf32>
    %733 = arith.divf %731, %732 : vector<8x128xf32>
    %734 = math.tanh %725 : vector<8x128xf32>
    %735 = vector.extract_strided_slice %733 {offsets = [0, 0], sizes = [8, 32], strides = [1, 1]} : vector<8x128xf32> to vector<8x32xf32>
    %736 = vector.extract_strided_slice %733 {offsets = [0, 32], sizes = [8, 32], strides = [1, 1]} : vector<8x128xf32> to vector<8x32xf32>
    %737 = vector.extract_strided_slice %734 {offsets = [0, 64], sizes = [8, 32], strides = [1, 1]} : vector<8x128xf32> to vector<8x32xf32>
    %738 = vector.extract_strided_slice %733 {offsets = [0, 96], sizes = [8, 32], strides = [1, 1]} : vector<8x128xf32> to vector<8x32xf32>
    %739 = arith.mulf %736, %703 : vector<8x32xf32>
    %740 = arith.mulf %735, %737 : vector<8x32xf32>
    %741 = arith.addf %739, %740 : vector<8x32xf32>
    %742 = math.tanh %741 : vector<8x32xf32>
    %743 = arith.mulf %738, %742 : vector<8x32xf32>
    %744 = arith.negf %728 : vector<8x128xf32>
    %745 = math.exp %744 : vector<8x128xf32>
    %cst_264 = arith.constant 1.000000e+00 : f32
    %746 = vector.broadcast %cst_264 : f32 to vector<8x128xf32>
    %747 = arith.addf %746, %745 : vector<8x128xf32>
    %748 = arith.divf %746, %747 : vector<8x128xf32>
    %749 = math.tanh %728 : vector<8x128xf32>
    %750 = vector.extract_strided_slice %748 {offsets = [0, 0], sizes = [8, 32], strides = [1, 1]} : vector<8x128xf32> to vector<8x32xf32>
    %751 = vector.extract_strided_slice %748 {offsets = [0, 32], sizes = [8, 32], strides = [1, 1]} : vector<8x128xf32> to vector<8x32xf32>
    %752 = vector.extract_strided_slice %749 {offsets = [0, 64], sizes = [8, 32], strides = [1, 1]} : vector<8x128xf32> to vector<8x32xf32>
    %753 = vector.extract_strided_slice %748 {offsets = [0, 96], sizes = [8, 32], strides = [1, 1]} : vector<8x128xf32> to vector<8x32xf32>
    %754 = arith.mulf %751, %718 : vector<8x32xf32>
    %755 = arith.mulf %750, %752 : vector<8x32xf32>
    %756 = arith.addf %754, %755 : vector<8x32xf32>
    %757 = math.tanh %756 : vector<8x32xf32>
    %758 = arith.mulf %753, %757 : vector<8x32xf32>
    %c16_265 = arith.constant 16 : index
    %c0_266 = arith.constant 0 : index
    %759 = vector.load %arg20[%c16_265, %c0_266] : memref<64x64xf32, #tpu.memory_space<vmem>>, vector<8x32xf32>
    tpu.vector_store %arg20[%c16_265, %c0_266], %743 {strides = array<i32>} : memref<64x64xf32, #tpu.memory_space<vmem>>, vector<8x32xf32>,
    %c40_267 = arith.constant 40 : index
    %c32_268 = arith.constant 32 : index
    %760 = vector.load %arg20[%c40_267, %c32_268] : memref<64x64xf32, #tpu.memory_space<vmem>>, vector<8x32xf32>
    tpu.vector_store %arg20[%c40_267, %c32_268], %758 {strides = array<i32>} : memref<64x64xf32, #tpu.memory_space<vmem>>, vector<8x32xf32>,
    %c24_269 = arith.constant 24 : index
    %c0_270 = arith.constant 0 : index
    %761 = vector.load %arg21[%c24_269, %c0_270] : memref<64x256xf32, #tpu.memory_space<vmem>>, vector<8x128xf32>
    %cst_271 = arith.constant dense<0.000000e+00> : vector<8x128xf32>
    %762 = tpu.matmul %743, %641, %cst_271 {dimension_numbers = #tpu.dot_dimension_numbers<[1], [0], [0], [1], [0, 0, 1, 1], [], []>} : vector<8x32xf32>, vector<32x128xf32>, vector<8x128xf32> -> vector<8x128xf32>
    %763 = arith.addf %761, %762 : vector<8x128xf32>
    %c32_272 = arith.constant 32 : index
    %c128_273 = arith.constant 128 : index
    %764 = vector.load %arg21[%c32_272, %c128_273] : memref<64x256xf32, #tpu.memory_space<vmem>>, vector<8x128xf32>
    %cst_274 = arith.constant dense<0.000000e+00> : vector<8x128xf32>
    %765 = tpu.matmul %758, %642, %cst_274 {dimension_numbers = #tpu.dot_dimension_numbers<[1], [0], [0], [1], [0, 0, 1, 1], [], []>} : vector<8x32xf32>, vector<32x128xf32>, vector<8x128xf32> -> vector<8x128xf32>
    %766 = arith.addf %764, %765 : vector<8x128xf32>
    %767 = arith.negf %763 : vector<8x128xf32>
    %768 = math.exp %767 : vector<8x128xf32>
    %cst_275 = arith.constant 1.000000e+00 : f32
    %769 = vector.broadcast %cst_275 : f32 to vector<8x128xf32>
    %770 = arith.addf %769, %768 : vector<8x128xf32>
    %771 = arith.divf %769, %770 : vector<8x128xf32>
    %772 = math.tanh %763 : vector<8x128xf32>
    %773 = vector.extract_strided_slice %771 {offsets = [0, 0], sizes = [8, 32], strides = [1, 1]} : vector<8x128xf32> to vector<8x32xf32>
    %774 = vector.extract_strided_slice %771 {offsets = [0, 32], sizes = [8, 32], strides = [1, 1]} : vector<8x128xf32> to vector<8x32xf32>
    %775 = vector.extract_strided_slice %772 {offsets = [0, 64], sizes = [8, 32], strides = [1, 1]} : vector<8x128xf32> to vector<8x32xf32>
    %776 = vector.extract_strided_slice %771 {offsets = [0, 96], sizes = [8, 32], strides = [1, 1]} : vector<8x128xf32> to vector<8x32xf32>
    %777 = arith.mulf %774, %741 : vector<8x32xf32>
    %778 = arith.mulf %773, %775 : vector<8x32xf32>
    %779 = arith.addf %777, %778 : vector<8x32xf32>
    %780 = math.tanh %779 : vector<8x32xf32>
    %781 = arith.mulf %776, %780 : vector<8x32xf32>
    %782 = arith.negf %766 : vector<8x128xf32>
    %783 = math.exp %782 : vector<8x128xf32>
    %cst_276 = arith.constant 1.000000e+00 : f32
    %784 = vector.broadcast %cst_276 : f32 to vector<8x128xf32>
    %785 = arith.addf %784, %783 : vector<8x128xf32>
    %786 = arith.divf %784, %785 : vector<8x128xf32>
    %787 = math.tanh %766 : vector<8x128xf32>
    %788 = vector.extract_strided_slice %786 {offsets = [0, 0], sizes = [8, 32], strides = [1, 1]} : vector<8x128xf32> to vector<8x32xf32>
    %789 = vector.extract_strided_slice %786 {offsets = [0, 32], sizes = [8, 32], strides = [1, 1]} : vector<8x128xf32> to vector<8x32xf32>
    %790 = vector.extract_strided_slice %787 {offsets = [0, 64], sizes = [8, 32], strides = [1, 1]} : vector<8x128xf32> to vector<8x32xf32>
    %791 = vector.extract_strided_slice %786 {offsets = [0, 96], sizes = [8, 32], strides = [1, 1]} : vector<8x128xf32> to vector<8x32xf32>
    %792 = arith.mulf %789, %756 : vector<8x32xf32>
    %793 = arith.mulf %788, %790 : vector<8x32xf32>
    %794 = arith.addf %792, %793 : vector<8x32xf32>
    %795 = math.tanh %794 : vector<8x32xf32>
    %796 = arith.mulf %791, %795 : vector<8x32xf32>
    %c24_277 = arith.constant 24 : index
    %c0_278 = arith.constant 0 : index
    %797 = vector.load %arg20[%c24_277, %c0_278] : memref<64x64xf32, #tpu.memory_space<vmem>>, vector<8x32xf32>
    tpu.vector_store %arg20[%c24_277, %c0_278], %781 {strides = array<i32>} : memref<64x64xf32, #tpu.memory_space<vmem>>, vector<8x32xf32>,
    %c32_279 = arith.constant 32 : index
    %c32_280 = arith.constant 32 : index
    %798 = vector.load %arg20[%c32_279, %c32_280] : memref<64x64xf32, #tpu.memory_space<vmem>>, vector<8x32xf32>
    tpu.vector_store %arg20[%c32_279, %c32_280], %796 {strides = array<i32>} : memref<64x64xf32, #tpu.memory_space<vmem>>, vector<8x32xf32>,
    %c32_281 = arith.constant 32 : index
    %c0_282 = arith.constant 0 : index
    %799 = vector.load %arg21[%c32_281, %c0_282] : memref<64x256xf32, #tpu.memory_space<vmem>>, vector<8x128xf32>
    %cst_283 = arith.constant dense<0.000000e+00> : vector<8x128xf32>
    %800 = tpu.matmul %781, %641, %cst_283 {dimension_numbers = #tpu.dot_dimension_numbers<[1], [0], [0], [1], [0, 0, 1, 1], [], []>} : vector<8x32xf32>, vector<32x128xf32>, vector<8x128xf32> -> vector<8x128xf32>
    %801 = arith.addf %799, %800 : vector<8x128xf32>
    %c24_284 = arith.constant 24 : index
    %c128_285 = arith.constant 128 : index
    %802 = vector.load %arg21[%c24_284, %c128_285] : memref<64x256xf32, #tpu.memory_space<vmem>>, vector<8x128xf32>
    %cst_286 = arith.constant dense<0.000000e+00> : vector<8x128xf32>
    %803 = tpu.matmul %796, %642, %cst_286 {dimension_numbers = #tpu.dot_dimension_numbers<[1], [0], [0], [1], [0, 0, 1, 1], [], []>} : vector<8x32xf32>, vector<32x128xf32>, vector<8x128xf32> -> vector<8x128xf32>
    %804 = arith.addf %802, %803 : vector<8x128xf32>
    %805 = arith.negf %801 : vector<8x128xf32>
    %806 = math.exp %805 : vector<8x128xf32>
    %cst_287 = arith.constant 1.000000e+00 : f32
    %807 = vector.broadcast %cst_287 : f32 to vector<8x128xf32>
    %808 = arith.addf %807, %806 : vector<8x128xf32>
    %809 = arith.divf %807, %808 : vector<8x128xf32>
    %810 = math.tanh %801 : vector<8x128xf32>
    %811 = vector.extract_strided_slice %809 {offsets = [0, 0], sizes = [8, 32], strides = [1, 1]} : vector<8x128xf32> to vector<8x32xf32>
    %812 = vector.extract_strided_slice %809 {offsets = [0, 32], sizes = [8, 32], strides = [1, 1]} : vector<8x128xf32> to vector<8x32xf32>
    %813 = vector.extract_strided_slice %810 {offsets = [0, 64], sizes = [8, 32], strides = [1, 1]} : vector<8x128xf32> to vector<8x32xf32>
    %814 = vector.extract_strided_slice %809 {offsets = [0, 96], sizes = [8, 32], strides = [1, 1]} : vector<8x128xf32> to vector<8x32xf32>
    %815 = arith.mulf %812, %779 : vector<8x32xf32>
    %816 = arith.mulf %811, %813 : vector<8x32xf32>
    %817 = arith.addf %815, %816 : vector<8x32xf32>
    %818 = math.tanh %817 : vector<8x32xf32>
    %819 = arith.mulf %814, %818 : vector<8x32xf32>
    %820 = arith.negf %804 : vector<8x128xf32>
    %821 = math.exp %820 : vector<8x128xf32>
    %cst_288 = arith.constant 1.000000e+00 : f32
    %822 = vector.broadcast %cst_288 : f32 to vector<8x128xf32>
    %823 = arith.addf %822, %821 : vector<8x128xf32>
    %824 = arith.divf %822, %823 : vector<8x128xf32>
    %825 = math.tanh %804 : vector<8x128xf32>
    %826 = vector.extract_strided_slice %824 {offsets = [0, 0], sizes = [8, 32], strides = [1, 1]} : vector<8x128xf32> to vector<8x32xf32>
    %827 = vector.extract_strided_slice %824 {offsets = [0, 32], sizes = [8, 32], strides = [1, 1]} : vector<8x128xf32> to vector<8x32xf32>
    %828 = vector.extract_strided_slice %825 {offsets = [0, 64], sizes = [8, 32], strides = [1, 1]} : vector<8x128xf32> to vector<8x32xf32>
    %829 = vector.extract_strided_slice %824 {offsets = [0, 96], sizes = [8, 32], strides = [1, 1]} : vector<8x128xf32> to vector<8x32xf32>
    %830 = arith.mulf %827, %794 : vector<8x32xf32>
    %831 = arith.mulf %826, %828 : vector<8x32xf32>
    %832 = arith.addf %830, %831 : vector<8x32xf32>
    %833 = math.tanh %832 : vector<8x32xf32>
    %834 = arith.mulf %829, %833 : vector<8x32xf32>
    %c32_289 = arith.constant 32 : index
    %c0_290 = arith.constant 0 : index
    %835 = vector.load %arg20[%c32_289, %c0_290] : memref<64x64xf32, #tpu.memory_space<vmem>>, vector<8x32xf32>
    tpu.vector_store %arg20[%c32_289, %c0_290], %819 {strides = array<i32>} : memref<64x64xf32, #tpu.memory_space<vmem>>, vector<8x32xf32>,
    %c24_291 = arith.constant 24 : index
    %c32_292 = arith.constant 32 : index
    %836 = vector.load %arg20[%c24_291, %c32_292] : memref<64x64xf32, #tpu.memory_space<vmem>>, vector<8x32xf32>
    tpu.vector_store %arg20[%c24_291, %c32_292], %834 {strides = array<i32>} : memref<64x64xf32, #tpu.memory_space<vmem>>, vector<8x32xf32>,
    %c40_293 = arith.constant 40 : index
    %c0_294 = arith.constant 0 : index
    %837 = vector.load %arg21[%c40_293, %c0_294] : memref<64x256xf32, #tpu.memory_space<vmem>>, vector<8x128xf32>
    %cst_295 = arith.constant dense<0.000000e+00> : vector<8x128xf32>
    %838 = tpu.matmul %819, %641, %cst_295 {dimension_numbers = #tpu.dot_dimension_numbers<[1], [0], [0], [1], [0, 0, 1, 1], [], []>} : vector<8x32xf32>, vector<32x128xf32>, vector<8x128xf32> -> vector<8x128xf32>
    %839 = arith.addf %837, %838 : vector<8x128xf32>
    %c16_296 = arith.constant 16 : index
    %c128_297 = arith.constant 128 : index
    %840 = vector.load %arg21[%c16_296, %c128_297] : memref<64x256xf32, #tpu.memory_space<vmem>>, vector<8x128xf32>
    %cst_298 = arith.constant dense<0.000000e+00> : vector<8x128xf32>
    %841 = tpu.matmul %834, %642, %cst_298 {dimension_numbers = #tpu.dot_dimension_numbers<[1], [0], [0], [1], [0, 0, 1, 1], [], []>} : vector<8x32xf32>, vector<32x128xf32>, vector<8x128xf32> -> vector<8x128xf32>
    %842 = arith.addf %840, %841 : vector<8x128xf32>
    %843 = arith.negf %839 : vector<8x128xf32>
    %844 = math.exp %843 : vector<8x128xf32>
    %cst_299 = arith.constant 1.000000e+00 : f32
    %845 = vector.broadcast %cst_299 : f32 to vector<8x128xf32>
    %846 = arith.addf %845, %844 : vector<8x128xf32>
    %847 = arith.divf %845, %846 : vector<8x128xf32>
    %848 = math.tanh %839 : vector<8x128xf32>
    %849 = vector.extract_strided_slice %847 {offsets = [0, 0], sizes = [8, 32], strides = [1, 1]} : vector<8x128xf32> to vector<8x32xf32>
    %850 = vector.extract_strided_slice %847 {offsets = [0, 32], sizes = [8, 32], strides = [1, 1]} : vector<8x128xf32> to vector<8x32xf32>
    %851 = vector.extract_strided_slice %848 {offsets = [0, 64], sizes = [8, 32], strides = [1, 1]} : vector<8x128xf32> to vector<8x32xf32>
    %852 = vector.extract_strided_slice %847 {offsets = [0, 96], sizes = [8, 32], strides = [1, 1]} : vector<8x128xf32> to vector<8x32xf32>
    %853 = arith.mulf %850, %817 : vector<8x32xf32>
    %854 = arith.mulf %849, %851 : vector<8x32xf32>
    %855 = arith.addf %853, %854 : vector<8x32xf32>
    %856 = math.tanh %855 : vector<8x32xf32>
    %857 = arith.mulf %852, %856 : vector<8x32xf32>
    %858 = arith.negf %842 : vector<8x128xf32>
    %859 = math.exp %858 : vector<8x128xf32>
    %cst_300 = arith.constant 1.000000e+00 : f32
    %860 = vector.broadcast %cst_300 : f32 to vector<8x128xf32>
    %861 = arith.addf %860, %859 : vector<8x128xf32>
    %862 = arith.divf %860, %861 : vector<8x128xf32>
    %863 = math.tanh %842 : vector<8x128xf32>
    %864 = vector.extract_strided_slice %862 {offsets = [0, 0], sizes = [8, 32], strides = [1, 1]} : vector<8x128xf32> to vector<8x32xf32>
    %865 = vector.extract_strided_slice %862 {offsets = [0, 32], sizes = [8, 32], strides = [1, 1]} : vector<8x128xf32> to vector<8x32xf32>
    %866 = vector.extract_strided_slice %863 {offsets = [0, 64], sizes = [8, 32], strides = [1, 1]} : vector<8x128xf32> to vector<8x32xf32>
    %867 = vector.extract_strided_slice %862 {offsets = [0, 96], sizes = [8, 32], strides = [1, 1]} : vector<8x128xf32> to vector<8x32xf32>
    %868 = arith.mulf %865, %832 : vector<8x32xf32>
    %869 = arith.mulf %864, %866 : vector<8x32xf32>
    %870 = arith.addf %868, %869 : vector<8x32xf32>
    %871 = math.tanh %870 : vector<8x32xf32>
    %872 = arith.mulf %867, %871 : vector<8x32xf32>
    %c40_301 = arith.constant 40 : index
    %c0_302 = arith.constant 0 : index
    %873 = vector.load %arg20[%c40_301, %c0_302] : memref<64x64xf32, #tpu.memory_space<vmem>>, vector<8x32xf32>
    tpu.vector_store %arg20[%c40_301, %c0_302], %857 {strides = array<i32>} : memref<64x64xf32, #tpu.memory_space<vmem>>, vector<8x32xf32>,
    %c16_303 = arith.constant 16 : index
    %c32_304 = arith.constant 32 : index
    %874 = vector.load %arg20[%c16_303, %c32_304] : memref<64x64xf32, #tpu.memory_space<vmem>>, vector<8x32xf32>
    tpu.vector_store %arg20[%c16_303, %c32_304], %872 {strides = array<i32>} : memref<64x64xf32, #tpu.memory_space<vmem>>, vector<8x32xf32>,
    %c48_305 = arith.constant 48 : index
    %c0_306 = arith.constant 0 : index
    %875 = vector.load %arg21[%c48_305, %c0_306] : memref<64x256xf32, #tpu.memory_space<vmem>>, vector<8x128xf32>
    %cst_307 = arith.constant dense<0.000000e+00> : vector<8x128xf32>
    %876 = tpu.matmul %857, %641, %cst_307 {dimension_numbers = #tpu.dot_dimension_numbers<[1], [0], [0], [1], [0, 0, 1, 1], [], []>} : vector<8x32xf32>, vector<32x128xf32>, vector<8x128xf32> -> vector<8x128xf32>
    %877 = arith.addf %875, %876 : vector<8x128xf32>
    %c8_308 = arith.constant 8 : index
    %c128_309 = arith.constant 128 : index
    %878 = vector.load %arg21[%c8_308, %c128_309] : memref<64x256xf32, #tpu.memory_space<vmem>>, vector<8x128xf32>
    %cst_310 = arith.constant dense<0.000000e+00> : vector<8x128xf32>
    %879 = tpu.matmul %872, %642, %cst_310 {dimension_numbers = #tpu.dot_dimension_numbers<[1], [0], [0], [1], [0, 0, 1, 1], [], []>} : vector<8x32xf32>, vector<32x128xf32>, vector<8x128xf32> -> vector<8x128xf32>
    %880 = arith.addf %878, %879 : vector<8x128xf32>
    %881 = arith.negf %877 : vector<8x128xf32>
    %882 = math.exp %881 : vector<8x128xf32>
    %cst_311 = arith.constant 1.000000e+00 : f32
    %883 = vector.broadcast %cst_311 : f32 to vector<8x128xf32>
    %884 = arith.addf %883, %882 : vector<8x128xf32>
    %885 = arith.divf %883, %884 : vector<8x128xf32>
    %886 = math.tanh %877 : vector<8x128xf32>
    %887 = vector.extract_strided_slice %885 {offsets = [0, 0], sizes = [8, 32], strides = [1, 1]} : vector<8x128xf32> to vector<8x32xf32>
    %888 = vector.extract_strided_slice %885 {offsets = [0, 32], sizes = [8, 32], strides = [1, 1]} : vector<8x128xf32> to vector<8x32xf32>
    %889 = vector.extract_strided_slice %886 {offsets = [0, 64], sizes = [8, 32], strides = [1, 1]} : vector<8x128xf32> to vector<8x32xf32>
    %890 = vector.extract_strided_slice %885 {offsets = [0, 96], sizes = [8, 32], strides = [1, 1]} : vector<8x128xf32> to vector<8x32xf32>
    %891 = arith.mulf %888, %855 : vector<8x32xf32>
    %892 = arith.mulf %887, %889 : vector<8x32xf32>
    %893 = arith.addf %891, %892 : vector<8x32xf32>
    %894 = math.tanh %893 : vector<8x32xf32>
    %895 = arith.mulf %890, %894 : vector<8x32xf32>
    %896 = arith.negf %880 : vector<8x128xf32>
    %897 = math.exp %896 : vector<8x128xf32>
    %cst_312 = arith.constant 1.000000e+00 : f32
    %898 = vector.broadcast %cst_312 : f32 to vector<8x128xf32>
    %899 = arith.addf %898, %897 : vector<8x128xf32>
    %900 = arith.divf %898, %899 : vector<8x128xf32>
    %901 = math.tanh %880 : vector<8x128xf32>
    %902 = vector.extract_strided_slice %900 {offsets = [0, 0], sizes = [8, 32], strides = [1, 1]} : vector<8x128xf32> to vector<8x32xf32>
    %903 = vector.extract_strided_slice %900 {offsets = [0, 32], sizes = [8, 32], strides = [1, 1]} : vector<8x128xf32> to vector<8x32xf32>
    %904 = vector.extract_strided_slice %901 {offsets = [0, 64], sizes = [8, 32], strides = [1, 1]} : vector<8x128xf32> to vector<8x32xf32>
    %905 = vector.extract_strided_slice %900 {offsets = [0, 96], sizes = [8, 32], strides = [1, 1]} : vector<8x128xf32> to vector<8x32xf32>
    %906 = arith.mulf %903, %870 : vector<8x32xf32>
    %907 = arith.mulf %902, %904 : vector<8x32xf32>
    %908 = arith.addf %906, %907 : vector<8x32xf32>
    %909 = math.tanh %908 : vector<8x32xf32>
    %910 = arith.mulf %905, %909 : vector<8x32xf32>
    %c48_313 = arith.constant 48 : index
    %c0_314 = arith.constant 0 : index
    %911 = vector.load %arg20[%c48_313, %c0_314] : memref<64x64xf32, #tpu.memory_space<vmem>>, vector<8x32xf32>
    tpu.vector_store %arg20[%c48_313, %c0_314], %895 {strides = array<i32>} : memref<64x64xf32, #tpu.memory_space<vmem>>, vector<8x32xf32>,
    %c8_315 = arith.constant 8 : index
    %c32_316 = arith.constant 32 : index
    %912 = vector.load %arg20[%c8_315, %c32_316] : memref<64x64xf32, #tpu.memory_space<vmem>>, vector<8x32xf32>
    tpu.vector_store %arg20[%c8_315, %c32_316], %910 {strides = array<i32>} : memref<64x64xf32, #tpu.memory_space<vmem>>, vector<8x32xf32>,
    %c56_317 = arith.constant 56 : index
    %c0_318 = arith.constant 0 : index
    %913 = vector.load %arg21[%c56_317, %c0_318] : memref<64x256xf32, #tpu.memory_space<vmem>>, vector<8x128xf32>
    %cst_319 = arith.constant dense<0.000000e+00> : vector<8x128xf32>
    %914 = tpu.matmul %895, %641, %cst_319 {dimension_numbers = #tpu.dot_dimension_numbers<[1], [0], [0], [1], [0, 0, 1, 1], [], []>} : vector<8x32xf32>, vector<32x128xf32>, vector<8x128xf32> -> vector<8x128xf32>
    %915 = arith.addf %913, %914 : vector<8x128xf32>
    %c0_320 = arith.constant 0 : index
    %c128_321 = arith.constant 128 : index
    %916 = vector.load %arg21[%c0_320, %c128_321] : memref<64x256xf32, #tpu.memory_space<vmem>>, vector<8x128xf32>
    %cst_322 = arith.constant dense<0.000000e+00> : vector<8x128xf32>
    %917 = tpu.matmul %910, %642, %cst_322 {dimension_numbers = #tpu.dot_dimension_numbers<[1], [0], [0], [1], [0, 0, 1, 1], [], []>} : vector<8x32xf32>, vector<32x128xf32>, vector<8x128xf32> -> vector<8x128xf32>
    %918 = arith.addf %916, %917 : vector<8x128xf32>
    %919 = arith.negf %915 : vector<8x128xf32>
    %920 = math.exp %919 : vector<8x128xf32>
    %cst_323 = arith.constant 1.000000e+00 : f32
    %921 = vector.broadcast %cst_323 : f32 to vector<8x128xf32>
    %922 = arith.addf %921, %920 : vector<8x128xf32>
    %923 = arith.divf %921, %922 : vector<8x128xf32>
    %924 = math.tanh %915 : vector<8x128xf32>
    %925 = vector.extract_strided_slice %923 {offsets = [0, 0], sizes = [8, 32], strides = [1, 1]} : vector<8x128xf32> to vector<8x32xf32>
    %926 = vector.extract_strided_slice %923 {offsets = [0, 32], sizes = [8, 32], strides = [1, 1]} : vector<8x128xf32> to vector<8x32xf32>
    %927 = vector.extract_strided_slice %924 {offsets = [0, 64], sizes = [8, 32], strides = [1, 1]} : vector<8x128xf32> to vector<8x32xf32>
    %928 = vector.extract_strided_slice %923 {offsets = [0, 96], sizes = [8, 32], strides = [1, 1]} : vector<8x128xf32> to vector<8x32xf32>
    %929 = arith.mulf %926, %893 : vector<8x32xf32>
    %930 = arith.mulf %925, %927 : vector<8x32xf32>
    %931 = arith.addf %929, %930 : vector<8x32xf32>
    %932 = math.tanh %931 : vector<8x32xf32>
    %933 = arith.mulf %928, %932 : vector<8x32xf32>
    %934 = arith.negf %918 : vector<8x128xf32>
    %935 = math.exp %934 : vector<8x128xf32>
    %cst_324 = arith.constant 1.000000e+00 : f32
    %936 = vector.broadcast %cst_324 : f32 to vector<8x128xf32>
    %937 = arith.addf %936, %935 : vector<8x128xf32>
    %938 = arith.divf %936, %937 : vector<8x128xf32>
    %939 = math.tanh %918 : vector<8x128xf32>
    %940 = vector.extract_strided_slice %938 {offsets = [0, 0], sizes = [8, 32], strides = [1, 1]} : vector<8x128xf32> to vector<8x32xf32>
    %941 = vector.extract_strided_slice %938 {offsets = [0, 32], sizes = [8, 32], strides = [1, 1]} : vector<8x128xf32> to vector<8x32xf32>
    %942 = vector.extract_strided_slice %939 {offsets = [0, 64], sizes = [8, 32], strides = [1, 1]} : vector<8x128xf32> to vector<8x32xf32>
    %943 = vector.extract_strided_slice %938 {offsets = [0, 96], sizes = [8, 32], strides = [1, 1]} : vector<8x128xf32> to vector<8x32xf32>
    %944 = arith.mulf %941, %908 : vector<8x32xf32>
    %945 = arith.mulf %940, %942 : vector<8x32xf32>
    %946 = arith.addf %944, %945 : vector<8x32xf32>
    %947 = math.tanh %946 : vector<8x32xf32>
    %948 = arith.mulf %943, %947 : vector<8x32xf32>
    %c56_325 = arith.constant 56 : index
    %c0_326 = arith.constant 0 : index
    %949 = vector.load %arg20[%c56_325, %c0_326] : memref<64x64xf32, #tpu.memory_space<vmem>>, vector<8x32xf32>
    tpu.vector_store %arg20[%c56_325, %c0_326], %933 {strides = array<i32>} : memref<64x64xf32, #tpu.memory_space<vmem>>, vector<8x32xf32>,
    %c0_327 = arith.constant 0 : index
    %c32_328 = arith.constant 32 : index
    %950 = vector.load %arg20[%c0_327, %c32_328] : memref<64x64xf32, #tpu.memory_space<vmem>>, vector<8x32xf32>
    tpu.vector_store %arg20[%c0_327, %c32_328], %948 {strides = array<i32>} : memref<64x64xf32, #tpu.memory_space<vmem>>, vector<8x32xf32>,
    %c0_329 = arith.constant 0 : index
    %c0_330 = arith.constant 0 : index
    %951 = vector.load %arg20[%c0_329, %c0_330] : memref<64x64xf32, #tpu.memory_space<vmem>>, vector<64x64xf32>
    %c0_331 = arith.constant 0 : index
    %c0_332 = arith.constant 0 : index
    %952 = vector.load %arg13[%c0_331, %c0_332] : memref<64x256xf32, #tpu.memory_space<vmem>>, vector<64x128xf32>
    %cst_333 = arith.constant dense<0.000000e+00> : vector<64x128xf32>
    %953 = tpu.matmul %951, %952, %cst_333 {dimension_numbers = #tpu.dot_dimension_numbers<[1], [0], [0], [1], [0, 0, 1, 1], [], []>} : vector<64x64xf32>, vector<64x128xf32>, vector<64x128xf32> -> vector<64x128xf32>
    %c0_334 = arith.constant 0 : index
    %c0_335 = arith.constant 0 : index
    %954 = vector.load %arg16[%c0_334, %c0_335] : memref<1x256xf32, #tpu.memory_space<vmem>>, vector<1x128xf32>
    %955 = vector.broadcast %954 : vector<1x128xf32> to vector<64x128xf32>
    %956 = arith.addf %953, %955 : vector<64x128xf32>
    %c0_336 = arith.constant 0 : index
    %c0_337 = arith.constant 0 : index
    %957 = vector.load %arg21[%c0_336, %c0_337] : memref<64x256xf32, #tpu.memory_space<vmem>>, vector<64x128xf32>
    tpu.vector_store %arg21[%c0_336, %c0_337], %956 {strides = array<i32>} : memref<64x256xf32, #tpu.memory_space<vmem>>, vector<64x128xf32>,
    %c0_338 = arith.constant 0 : index
    %c0_339 = arith.constant 0 : index
    %958 = vector.load %arg14[%c0_338, %c0_339] : memref<32x128xf32, #tpu.memory_space<vmem>>, vector<32x128xf32>
    %cst_340 = arith.constant 0.000000e+00 : f32
    %959 = vector.broadcast %cst_340 : f32 to vector<8x32xf32>
    %cst_341 = arith.constant 0.000000e+00 : f32
    %960 = vector.broadcast %cst_341 : f32 to vector<8x32xf32>
    %c0_342 = arith.constant 0 : index
    %c0_343 = arith.constant 0 : index
    %961 = vector.load %arg21[%c0_342, %c0_343] : memref<64x256xf32, #tpu.memory_space<vmem>>, vector<8x128xf32>
    %cst_344 = arith.constant dense<0.000000e+00> : vector<8x128xf32>
    %962 = tpu.matmul %959, %958, %cst_344 {dimension_numbers = #tpu.dot_dimension_numbers<[1], [0], [0], [1], [0, 0, 1, 1], [], []>} : vector<8x32xf32>, vector<32x128xf32>, vector<8x128xf32> -> vector<8x128xf32>
    %963 = arith.addf %961, %962 : vector<8x128xf32>
    %964 = arith.negf %963 : vector<8x128xf32>
    %965 = math.exp %964 : vector<8x128xf32>
    %cst_345 = arith.constant 1.000000e+00 : f32
    %966 = vector.broadcast %cst_345 : f32 to vector<8x128xf32>
    %967 = arith.addf %966, %965 : vector<8x128xf32>
    %968 = arith.divf %966, %967 : vector<8x128xf32>
    %969 = math.tanh %963 : vector<8x128xf32>
    %970 = vector.extract_strided_slice %968 {offsets = [0, 0], sizes = [8, 32], strides = [1, 1]} : vector<8x128xf32> to vector<8x32xf32>
    %971 = vector.extract_strided_slice %968 {offsets = [0, 32], sizes = [8, 32], strides = [1, 1]} : vector<8x128xf32> to vector<8x32xf32>
    %972 = vector.extract_strided_slice %969 {offsets = [0, 64], sizes = [8, 32], strides = [1, 1]} : vector<8x128xf32> to vector<8x32xf32>
    %973 = vector.extract_strided_slice %968 {offsets = [0, 96], sizes = [8, 32], strides = [1, 1]} : vector<8x128xf32> to vector<8x32xf32>
    %974 = arith.mulf %971, %960 : vector<8x32xf32>
    %975 = arith.mulf %970, %972 : vector<8x32xf32>
    %976 = arith.addf %974, %975 : vector<8x32xf32>
    %977 = math.tanh %976 : vector<8x32xf32>
    %978 = arith.mulf %973, %977 : vector<8x32xf32>
    %c8_346 = arith.constant 8 : index
    %c0_347 = arith.constant 0 : index
    %979 = vector.load %arg21[%c8_346, %c0_347] : memref<64x256xf32, #tpu.memory_space<vmem>>, vector<8x128xf32>
    %cst_348 = arith.constant dense<0.000000e+00> : vector<8x128xf32>
    %980 = tpu.matmul %978, %958, %cst_348 {dimension_numbers = #tpu.dot_dimension_numbers<[1], [0], [0], [1], [0, 0, 1, 1], [], []>} : vector<8x32xf32>, vector<32x128xf32>, vector<8x128xf32> -> vector<8x128xf32>
    %981 = arith.addf %979, %980 : vector<8x128xf32>
    %982 = arith.negf %981 : vector<8x128xf32>
    %983 = math.exp %982 : vector<8x128xf32>
    %cst_349 = arith.constant 1.000000e+00 : f32
    %984 = vector.broadcast %cst_349 : f32 to vector<8x128xf32>
    %985 = arith.addf %984, %983 : vector<8x128xf32>
    %986 = arith.divf %984, %985 : vector<8x128xf32>
    %987 = math.tanh %981 : vector<8x128xf32>
    %988 = vector.extract_strided_slice %986 {offsets = [0, 0], sizes = [8, 32], strides = [1, 1]} : vector<8x128xf32> to vector<8x32xf32>
    %989 = vector.extract_strided_slice %986 {offsets = [0, 32], sizes = [8, 32], strides = [1, 1]} : vector<8x128xf32> to vector<8x32xf32>
    %990 = vector.extract_strided_slice %987 {offsets = [0, 64], sizes = [8, 32], strides = [1, 1]} : vector<8x128xf32> to vector<8x32xf32>
    %991 = vector.extract_strided_slice %986 {offsets = [0, 96], sizes = [8, 32], strides = [1, 1]} : vector<8x128xf32> to vector<8x32xf32>
    %992 = arith.mulf %989, %976 : vector<8x32xf32>
    %993 = arith.mulf %988, %990 : vector<8x32xf32>
    %994 = arith.addf %992, %993 : vector<8x32xf32>
    %995 = math.tanh %994 : vector<8x32xf32>
    %996 = arith.mulf %991, %995 : vector<8x32xf32>
    %c16_350 = arith.constant 16 : index
    %c0_351 = arith.constant 0 : index
    %997 = vector.load %arg21[%c16_350, %c0_351] : memref<64x256xf32, #tpu.memory_space<vmem>>, vector<8x128xf32>
    %cst_352 = arith.constant dense<0.000000e+00> : vector<8x128xf32>
    %998 = tpu.matmul %996, %958, %cst_352 {dimension_numbers = #tpu.dot_dimension_numbers<[1], [0], [0], [1], [0, 0, 1, 1], [], []>} : vector<8x32xf32>, vector<32x128xf32>, vector<8x128xf32> -> vector<8x128xf32>
    %999 = arith.addf %997, %998 : vector<8x128xf32>
    %1000 = arith.negf %999 : vector<8x128xf32>
    %1001 = math.exp %1000 : vector<8x128xf32>
    %cst_353 = arith.constant 1.000000e+00 : f32
    %1002 = vector.broadcast %cst_353 : f32 to vector<8x128xf32>
    %1003 = arith.addf %1002, %1001 : vector<8x128xf32>
    %1004 = arith.divf %1002, %1003 : vector<8x128xf32>
    %1005 = math.tanh %999 : vector<8x128xf32>
    %1006 = vector.extract_strided_slice %1004 {offsets = [0, 0], sizes = [8, 32], strides = [1, 1]} : vector<8x128xf32> to vector<8x32xf32>
    %1007 = vector.extract_strided_slice %1004 {offsets = [0, 32], sizes = [8, 32], strides = [1, 1]} : vector<8x128xf32> to vector<8x32xf32>
    %1008 = vector.extract_strided_slice %1005 {offsets = [0, 64], sizes = [8, 32], strides = [1, 1]} : vector<8x128xf32> to vector<8x32xf32>
    %1009 = vector.extract_strided_slice %1004 {offsets = [0, 96], sizes = [8, 32], strides = [1, 1]} : vector<8x128xf32> to vector<8x32xf32>
    %1010 = arith.mulf %1007, %994 : vector<8x32xf32>
    %1011 = arith.mulf %1006, %1008 : vector<8x32xf32>
    %1012 = arith.addf %1010, %1011 : vector<8x32xf32>
    %1013 = math.tanh %1012 : vector<8x32xf32>
    %1014 = arith.mulf %1009, %1013 : vector<8x32xf32>
    %c24_354 = arith.constant 24 : index
    %c0_355 = arith.constant 0 : index
    %1015 = vector.load %arg21[%c24_354, %c0_355] : memref<64x256xf32, #tpu.memory_space<vmem>>, vector<8x128xf32>
    %cst_356 = arith.constant dense<0.000000e+00> : vector<8x128xf32>
    %1016 = tpu.matmul %1014, %958, %cst_356 {dimension_numbers = #tpu.dot_dimension_numbers<[1], [0], [0], [1], [0, 0, 1, 1], [], []>} : vector<8x32xf32>, vector<32x128xf32>, vector<8x128xf32> -> vector<8x128xf32>
    %1017 = arith.addf %1015, %1016 : vector<8x128xf32>
    %1018 = arith.negf %1017 : vector<8x128xf32>
    %1019 = math.exp %1018 : vector<8x128xf32>
    %cst_357 = arith.constant 1.000000e+00 : f32
    %1020 = vector.broadcast %cst_357 : f32 to vector<8x128xf32>
    %1021 = arith.addf %1020, %1019 : vector<8x128xf32>
    %1022 = arith.divf %1020, %1021 : vector<8x128xf32>
    %1023 = math.tanh %1017 : vector<8x128xf32>
    %1024 = vector.extract_strided_slice %1022 {offsets = [0, 0], sizes = [8, 32], strides = [1, 1]} : vector<8x128xf32> to vector<8x32xf32>
    %1025 = vector.extract_strided_slice %1022 {offsets = [0, 32], sizes = [8, 32], strides = [1, 1]} : vector<8x128xf32> to vector<8x32xf32>
    %1026 = vector.extract_strided_slice %1023 {offsets = [0, 64], sizes = [8, 32], strides = [1, 1]} : vector<8x128xf32> to vector<8x32xf32>
    %1027 = vector.extract_strided_slice %1022 {offsets = [0, 96], sizes = [8, 32], strides = [1, 1]} : vector<8x128xf32> to vector<8x32xf32>
    %1028 = arith.mulf %1025, %1012 : vector<8x32xf32>
    %1029 = arith.mulf %1024, %1026 : vector<8x32xf32>
    %1030 = arith.addf %1028, %1029 : vector<8x32xf32>
    %1031 = math.tanh %1030 : vector<8x32xf32>
    %1032 = arith.mulf %1027, %1031 : vector<8x32xf32>
    %c32_358 = arith.constant 32 : index
    %c0_359 = arith.constant 0 : index
    %1033 = vector.load %arg21[%c32_358, %c0_359] : memref<64x256xf32, #tpu.memory_space<vmem>>, vector<8x128xf32>
    %cst_360 = arith.constant dense<0.000000e+00> : vector<8x128xf32>
    %1034 = tpu.matmul %1032, %958, %cst_360 {dimension_numbers = #tpu.dot_dimension_numbers<[1], [0], [0], [1], [0, 0, 1, 1], [], []>} : vector<8x32xf32>, vector<32x128xf32>, vector<8x128xf32> -> vector<8x128xf32>
    %1035 = arith.addf %1033, %1034 : vector<8x128xf32>
    %1036 = arith.negf %1035 : vector<8x128xf32>
    %1037 = math.exp %1036 : vector<8x128xf32>
    %cst_361 = arith.constant 1.000000e+00 : f32
    %1038 = vector.broadcast %cst_361 : f32 to vector<8x128xf32>
    %1039 = arith.addf %1038, %1037 : vector<8x128xf32>
    %1040 = arith.divf %1038, %1039 : vector<8x128xf32>
    %1041 = math.tanh %1035 : vector<8x128xf32>
    %1042 = vector.extract_strided_slice %1040 {offsets = [0, 0], sizes = [8, 32], strides = [1, 1]} : vector<8x128xf32> to vector<8x32xf32>
    %1043 = vector.extract_strided_slice %1040 {offsets = [0, 32], sizes = [8, 32], strides = [1, 1]} : vector<8x128xf32> to vector<8x32xf32>
    %1044 = vector.extract_strided_slice %1041 {offsets = [0, 64], sizes = [8, 32], strides = [1, 1]} : vector<8x128xf32> to vector<8x32xf32>
    %1045 = vector.extract_strided_slice %1040 {offsets = [0, 96], sizes = [8, 32], strides = [1, 1]} : vector<8x128xf32> to vector<8x32xf32>
    %1046 = arith.mulf %1043, %1030 : vector<8x32xf32>
    %1047 = arith.mulf %1042, %1044 : vector<8x32xf32>
    %1048 = arith.addf %1046, %1047 : vector<8x32xf32>
    %1049 = math.tanh %1048 : vector<8x32xf32>
    %1050 = arith.mulf %1045, %1049 : vector<8x32xf32>
    %c40_362 = arith.constant 40 : index
    %c0_363 = arith.constant 0 : index
    %1051 = vector.load %arg21[%c40_362, %c0_363] : memref<64x256xf32, #tpu.memory_space<vmem>>, vector<8x128xf32>
    %cst_364 = arith.constant dense<0.000000e+00> : vector<8x128xf32>
    %1052 = tpu.matmul %1050, %958, %cst_364 {dimension_numbers = #tpu.dot_dimension_numbers<[1], [0], [0], [1], [0, 0, 1, 1], [], []>} : vector<8x32xf32>, vector<32x128xf32>, vector<8x128xf32> -> vector<8x128xf32>
    %1053 = arith.addf %1051, %1052 : vector<8x128xf32>
    %1054 = arith.negf %1053 : vector<8x128xf32>
    %1055 = math.exp %1054 : vector<8x128xf32>
    %cst_365 = arith.constant 1.000000e+00 : f32
    %1056 = vector.broadcast %cst_365 : f32 to vector<8x128xf32>
    %1057 = arith.addf %1056, %1055 : vector<8x128xf32>
    %1058 = arith.divf %1056, %1057 : vector<8x128xf32>
    %1059 = math.tanh %1053 : vector<8x128xf32>
    %1060 = vector.extract_strided_slice %1058 {offsets = [0, 0], sizes = [8, 32], strides = [1, 1]} : vector<8x128xf32> to vector<8x32xf32>
    %1061 = vector.extract_strided_slice %1058 {offsets = [0, 32], sizes = [8, 32], strides = [1, 1]} : vector<8x128xf32> to vector<8x32xf32>
    %1062 = vector.extract_strided_slice %1059 {offsets = [0, 64], sizes = [8, 32], strides = [1, 1]} : vector<8x128xf32> to vector<8x32xf32>
    %1063 = vector.extract_strided_slice %1058 {offsets = [0, 96], sizes = [8, 32], strides = [1, 1]} : vector<8x128xf32> to vector<8x32xf32>
    %1064 = arith.mulf %1061, %1048 : vector<8x32xf32>
    %1065 = arith.mulf %1060, %1062 : vector<8x32xf32>
    %1066 = arith.addf %1064, %1065 : vector<8x32xf32>
    %1067 = math.tanh %1066 : vector<8x32xf32>
    %1068 = arith.mulf %1063, %1067 : vector<8x32xf32>
    %c48_366 = arith.constant 48 : index
    %c0_367 = arith.constant 0 : index
    %1069 = vector.load %arg21[%c48_366, %c0_367] : memref<64x256xf32, #tpu.memory_space<vmem>>, vector<8x128xf32>
    %cst_368 = arith.constant dense<0.000000e+00> : vector<8x128xf32>
    %1070 = tpu.matmul %1068, %958, %cst_368 {dimension_numbers = #tpu.dot_dimension_numbers<[1], [0], [0], [1], [0, 0, 1, 1], [], []>} : vector<8x32xf32>, vector<32x128xf32>, vector<8x128xf32> -> vector<8x128xf32>
    %1071 = arith.addf %1069, %1070 : vector<8x128xf32>
    %1072 = arith.negf %1071 : vector<8x128xf32>
    %1073 = math.exp %1072 : vector<8x128xf32>
    %cst_369 = arith.constant 1.000000e+00 : f32
    %1074 = vector.broadcast %cst_369 : f32 to vector<8x128xf32>
    %1075 = arith.addf %1074, %1073 : vector<8x128xf32>
    %1076 = arith.divf %1074, %1075 : vector<8x128xf32>
    %1077 = math.tanh %1071 : vector<8x128xf32>
    %1078 = vector.extract_strided_slice %1076 {offsets = [0, 0], sizes = [8, 32], strides = [1, 1]} : vector<8x128xf32> to vector<8x32xf32>
    %1079 = vector.extract_strided_slice %1076 {offsets = [0, 32], sizes = [8, 32], strides = [1, 1]} : vector<8x128xf32> to vector<8x32xf32>
    %1080 = vector.extract_strided_slice %1077 {offsets = [0, 64], sizes = [8, 32], strides = [1, 1]} : vector<8x128xf32> to vector<8x32xf32>
    %1081 = vector.extract_strided_slice %1076 {offsets = [0, 96], sizes = [8, 32], strides = [1, 1]} : vector<8x128xf32> to vector<8x32xf32>
    %1082 = arith.mulf %1079, %1066 : vector<8x32xf32>
    %1083 = arith.mulf %1078, %1080 : vector<8x32xf32>
    %1084 = arith.addf %1082, %1083 : vector<8x32xf32>
    %1085 = math.tanh %1084 : vector<8x32xf32>
    %1086 = arith.mulf %1081, %1085 : vector<8x32xf32>
    %c56_370 = arith.constant 56 : index
    %c0_371 = arith.constant 0 : index
    %1087 = vector.load %arg21[%c56_370, %c0_371] : memref<64x256xf32, #tpu.memory_space<vmem>>, vector<8x128xf32>
    %cst_372 = arith.constant dense<0.000000e+00> : vector<8x128xf32>
    %1088 = tpu.matmul %1086, %958, %cst_372 {dimension_numbers = #tpu.dot_dimension_numbers<[1], [0], [0], [1], [0, 0, 1, 1], [], []>} : vector<8x32xf32>, vector<32x128xf32>, vector<8x128xf32> -> vector<8x128xf32>
    %1089 = arith.addf %1087, %1088 : vector<8x128xf32>
    %1090 = arith.negf %1089 : vector<8x128xf32>
    %1091 = math.exp %1090 : vector<8x128xf32>
    %cst_373 = arith.constant 1.000000e+00 : f32
    %1092 = vector.broadcast %cst_373 : f32 to vector<8x128xf32>
    %1093 = arith.addf %1092, %1091 : vector<8x128xf32>
    %1094 = arith.divf %1092, %1093 : vector<8x128xf32>
    %1095 = math.tanh %1089 : vector<8x128xf32>
    %1096 = vector.extract_strided_slice %1094 {offsets = [0, 0], sizes = [8, 32], strides = [1, 1]} : vector<8x128xf32> to vector<8x32xf32>
    %1097 = vector.extract_strided_slice %1094 {offsets = [0, 32], sizes = [8, 32], strides = [1, 1]} : vector<8x128xf32> to vector<8x32xf32>
    %1098 = vector.extract_strided_slice %1095 {offsets = [0, 64], sizes = [8, 32], strides = [1, 1]} : vector<8x128xf32> to vector<8x32xf32>
    %1099 = vector.extract_strided_slice %1094 {offsets = [0, 96], sizes = [8, 32], strides = [1, 1]} : vector<8x128xf32> to vector<8x32xf32>
    %1100 = arith.mulf %1097, %1084 : vector<8x32xf32>
    %1101 = arith.mulf %1096, %1098 : vector<8x32xf32>
    %1102 = arith.addf %1100, %1101 : vector<8x32xf32>
    %1103 = math.tanh %1102 : vector<8x32xf32>
    %1104 = arith.mulf %1099, %1103 : vector<8x32xf32>
    %1105 = vector.extract_strided_slice %951 {offsets = [56, 0], sizes = [8, 64], strides = [1, 1]} : vector<64x64xf32> to vector<8x64xf32>
    %c0_374 = arith.constant 0 : index
    %c128_375 = arith.constant 128 : index
    %1106 = vector.load %arg13[%c0_374, %c128_375] : memref<64x256xf32, #tpu.memory_space<vmem>>, vector<64x128xf32>
    %cst_376 = arith.constant dense<0.000000e+00> : vector<8x128xf32>
    %1107 = tpu.matmul %1105, %1106, %cst_376 {dimension_numbers = #tpu.dot_dimension_numbers<[1], [0], [0], [1], [0, 0, 1, 1], [], []>} : vector<8x64xf32>, vector<64x128xf32>, vector<8x128xf32> -> vector<8x128xf32>
    %c0_377 = arith.constant 0 : index
    %c128_378 = arith.constant 128 : index
    %1108 = vector.load %arg16[%c0_377, %c128_378] : memref<1x256xf32, #tpu.memory_space<vmem>>, vector<1x128xf32>
    %1109 = vector.broadcast %1108 : vector<1x128xf32> to vector<8x128xf32>
    %1110 = arith.addf %1107, %1109 : vector<8x128xf32>
    %cst_379 = arith.constant 0.000000e+00 : f32
    %1111 = vector.broadcast %cst_379 : f32 to vector<8x32xf32>
    %1112 = arith.negf %1110 : vector<8x128xf32>
    %1113 = math.exp %1112 : vector<8x128xf32>
    %cst_380 = arith.constant 1.000000e+00 : f32
    %1114 = vector.broadcast %cst_380 : f32 to vector<8x128xf32>
    %1115 = arith.addf %1114, %1113 : vector<8x128xf32>
    %1116 = arith.divf %1114, %1115 : vector<8x128xf32>
    %1117 = math.tanh %1110 : vector<8x128xf32>
    %1118 = vector.extract_strided_slice %1116 {offsets = [0, 0], sizes = [8, 32], strides = [1, 1]} : vector<8x128xf32> to vector<8x32xf32>
    %1119 = vector.extract_strided_slice %1116 {offsets = [0, 32], sizes = [8, 32], strides = [1, 1]} : vector<8x128xf32> to vector<8x32xf32>
    %1120 = vector.extract_strided_slice %1117 {offsets = [0, 64], sizes = [8, 32], strides = [1, 1]} : vector<8x128xf32> to vector<8x32xf32>
    %1121 = vector.extract_strided_slice %1116 {offsets = [0, 96], sizes = [8, 32], strides = [1, 1]} : vector<8x128xf32> to vector<8x32xf32>
    %1122 = arith.mulf %1119, %1111 : vector<8x32xf32>
    %1123 = arith.mulf %1118, %1120 : vector<8x32xf32>
    %1124 = arith.addf %1122, %1123 : vector<8x32xf32>
    %1125 = math.tanh %1124 : vector<8x32xf32>
    %1126 = arith.mulf %1121, %1125 : vector<8x32xf32>
    %c0_381 = arith.constant 0 : index
    %c0_382 = arith.constant 0 : index
    %1127 = vector.load %arg17[%c0_381, %c0_382] : memref<64x4xf32, #tpu.memory_space<vmem>>, vector<32x4xf32>
    %cst_383 = arith.constant dense<0.000000e+00> : vector<8x4xf32>
    %1128 = tpu.matmul %1104, %1127, %cst_383 {dimension_numbers = #tpu.dot_dimension_numbers<[1], [0], [0], [1], [0, 0, 1, 1], [], []>} : vector<8x32xf32>, vector<32x4xf32>, vector<8x4xf32> -> vector<8x4xf32>
    %c32_384 = arith.constant 32 : index
    %c0_385 = arith.constant 0 : index
    %1129 = vector.load %arg17[%c32_384, %c0_385] : memref<64x4xf32, #tpu.memory_space<vmem>>, vector<32x4xf32>
    %cst_386 = arith.constant dense<0.000000e+00> : vector<8x4xf32>
    %1130 = tpu.matmul %1126, %1129, %cst_386 {dimension_numbers = #tpu.dot_dimension_numbers<[1], [0], [0], [1], [0, 0, 1, 1], [], []>} : vector<8x32xf32>, vector<32x4xf32>, vector<8x4xf32> -> vector<8x4xf32>
    %1131 = arith.addf %1128, %1130 : vector<8x4xf32>
    %c0_387 = arith.constant 0 : index
    %c0_388 = arith.constant 0 : index
    %1132 = vector.load %arg18[%c0_387, %c0_388] : memref<1x4xf32, #tpu.memory_space<vmem>>, vector<1x4xf32>
    %1133 = vector.broadcast %1132 : vector<1x4xf32> to vector<8x4xf32>
    %1134 = arith.addf %1131, %1133 : vector<8x4xf32>
    %cst_389 = arith.constant dense<0xFF800000> : vector<8xf32>
    %1135 = vector.multi_reduction <maximumf>, %1134, %cst_389 [1] : vector<8x4xf32> to vector<8xf32>
    %1136 = vector.shape_cast %1135 : vector<8xf32> to vector<8x1xf32>
    %1137 = vector.broadcast %1136 : vector<8x1xf32> to vector<8x4xf32>
    %1138 = arith.subf %1134, %1137 : vector<8x4xf32>
    %1139 = math.exp %1138 : vector<8x4xf32>
    %cst_390 = arith.constant dense<0.000000e+00> : vector<8xf32>
    %1140 = vector.multi_reduction <add>, %1139, %cst_390 [1] : vector<8x4xf32> to vector<8xf32>
    %1141 = vector.shape_cast %1140 : vector<8xf32> to vector<8x1xf32>
    %1142 = math.log %1141 : vector<8x1xf32>
    %1143 = vector.broadcast %1142 : vector<8x1xf32> to vector<8x4xf32>
    %1144 = arith.subf %1138, %1143 : vector<8x4xf32>
    %c0_391 = arith.constant 0 : index
    %c0_392 = arith.constant 0 : index
    %1145 = vector.load %arg19[%c0_391, %c0_392] : memref<8x4xf32, #tpu.memory_space<vmem>>, vector<8x4xf32>
    tpu.vector_store %arg19[%c0_391, %c0_392], %1144 {strides = array<i32>} : memref<8x4xf32, #tpu.memory_space<vmem>>, vector<8x4xf32>,
    return
  }
}

</mosaic_0001>

<bundles_post_ra>
// kernel: rnn_classifier_forward.1
= control target key start
LH: loop header
LB: loop body
LE: loop exit
PB: predicated region body
PF: predicated region fallthrough
CT: control target
= control target key end

     0   :  { %s10856_s0 = inlined_call_operand.vmem [shape: f32[64,128], index: 0, kind: input, shape index: {}]   ;;  %s10857_s1 = inlined_call_operand.vmem [shape: f32[128,256], index: 1, kind: input, shape index: {}]   ;;  %s10858_s2 = inlined_call_operand.vmem [shape: f32[32,128], index: 2, kind: input, shape index: {}]   ;;  %s10859_s3 = inlined_call_operand.vmem [shape: f32[32,128], index: 3, kind: input, shape index: {}]   ;;  %s10860_s4 = inlined_call_operand.vmem [shape: f32[1,256], index: 4, kind: input, shape index: {}]   ;;  %s10861_s5 = inlined_call_operand.vmem [shape: f32[64,256], index: 5, kind: input, shape index: {}]   ;;  %s10862_s6 = inlined_call_operand.hbm [shape: f32[32,128], index: 6, kind: input, shape index: {}]   ;;  %s10863_s7 = inlined_call_operand.hbm [shape: f32[32,128], index: 7, kind: input, shape index: {}]   ;;  %s10864_s8 = inlined_call_operand.hbm [shape: f32[1,256], index: 8, kind: input, shape index: {}]   ;;  %s10865_s9 = inlined_call_operand.vmem [shape: f32[64,256], index: 9, kind: input, shape index: {}]   ;;  %s10866_s10 = inlined_call_operand.vmem [shape: f32[32,128], index: 10, kind: input, shape index: {}]   ;;  %s10867_s11 = inlined_call_operand.hbm [shape: f32[32,128], index: 11, kind: input, shape index: {}]   ;;  %s10868_s12 = inlined_call_operand.vmem [shape: f32[1,256], index: 12, kind: input, shape index: {}]   ;;  %s10869_s13 = inlined_call_operand.vmem [shape: f32[64,256], index: 13, kind: input, shape index: {}]   ;;  %s10870_s14 = inlined_call_operand.hbm [shape: f32[32,128], index: 14, kind: input, shape index: {}]   ;;  %s10871_s15 = inlined_call_operand.hbm [shape: f32[32,128], index: 15, kind: input, shape index: {}]   ;;  %s10872_s16 = inlined_call_operand.vmem [shape: f32[1,256], index: 16, kind: input, shape index: {}]   ;;  %s10873_s17 = inlined_call_operand.vmem [shape: f32[64,4], index: 17, kind: input, shape index: {}]   ;;  %s10874_s18 = inlined_call_operand.hbm [shape: f32[1,4], index: 18, kind: input, shape index: {}]   ;;  %s10875_s19 = inlined_call_operand.vmem [shape: f32[8,4], index: 19, kind: output, shape index: {}]  }
   0x1   :  { %10880 = sst [smem:[#allocation19_spill]] %s10856_s0 }
   0x2   :  { %10881 = sst [smem:[#allocation20_spill]] %s10857_s1 }
   0x3   :  { %10882 = sst [smem:[#allocation21_spill]] %s10858_s2 }
   0x4   :  { %10883 = sst [smem:[#allocation22_spill]] %s10859_s3 }
   0x5   :  { %24 = vsyncpa [#allocation5], 0 }
   0x6   :  { %25 = vsyncpa [#allocation7], 0 }
   0x7   :  { %26 = vsyncpa [#allocation10], 0 }
   0x8   :  { %27 = vsyncpa [#allocation13], 0  ;;  %s9192_s0 = smov [#allocation6]   ;;  %s9193_s20 = smov [#allocation9]  }
   0x9   :  { %s57_s30 = sshll.u32 %s9192_s0, 4  ;;  %s83_s21 = sshll.u32 %s9193_s20, 4  ;;  %s58_s30 = int_to_ptr.vmem [resolvable:$true] %s57_s30  ;;  %s9306_s21 = int_to_ptr.vmem [resolvable:$true] %s83_s21 }
   0xa   :  { %s9030_s2 = scalar_lea.hbm %s10863_s7, 512 }
   0xb   :  { %p9031_p0 = scmp.ne.s32.totalorder %s10863_s7, %s9030_s2  ;;  %p9034_p1 = scmp.lt.u32.totalorder %s9030_s2, %s10863_s7 }
   0xd   :  { %p9036_p2 = pnand %p9034_p1, %p9031_p0 }
   0xf   :  { %9039 = shalt.err (!%p9036_p2)
}
  0x10   :  { %s9040_s26 = scalar_lea.vmem %s58_s30, 512  ;;  %p9045_p4 = scmp.lt.s32.totalorder %s58_s30, %s58_s30 }
  0x11   :  { %p9041_p3 = scmp.ne.s32.totalorder %s58_s30, %s9040_s26  ;;  %p9046_p5 = scmp.lt.s32.totalorder %s9040_s26, %s9040_s26 }
  0x13   :  { %p9047_p6 = por %p9046_p5, %p9045_p4 }
  0x15   :  { %p9048_p7 = pnand %p9047_p6, %p9041_p3 }
  0x17   :  { %9051 = shalt.err (!%p9048_p7)
}
  0x18   :  { %s9194_s27 = smov 128   ;;  %s9195_s28 = smov 8  }
  0x19   :  { %63 = dma.hbm_to_vmem [thread:$0]  %s10863_s7, 512, %s58_s30, [#allocation7], %s9194_s27, %s9194_s27, %s9195_s28  }
  0x1a   :  { %s9052_s22 = scalar_lea.hbm %s10867_s11, 512 }
  0x1b   :  { %p9053_p8 = scmp.ne.s32.totalorder %s10867_s11, %s9052_s22  ;;  %p9056_p9 = scmp.lt.u32.totalorder %s9052_s22, %s10867_s11 }
  0x1d   :  { %p9058_p10 = pnand %p9056_p9, %p9053_p8 }
  0x1f   :  { %9061 = shalt.err (!%p9058_p10)
}
  0x20   :  { %s9062_s3 = scalar_lea.vmem %s9306_s21, 512  ;;  %p9067_p12 = scmp.lt.s32.totalorder %s9306_s21, %s9306_s21 }
  0x21   :  { %p9063_p11 = scmp.ne.s32.totalorder %s9306_s21, %s9062_s3  ;;  %p9068_p13 = scmp.lt.s32.totalorder %s9062_s3, %s9062_s3 }
  0x23   :  { %p9069_p0 = por %p9068_p13, %p9067_p12 }
  0x25   :  { %p9070_p1 = pnand %p9069_p0, %p9063_p11 }
  0x27   :  { %9073 = shalt.err (!%p9070_p1)
}
  0x28   :  { %89 = dma.hbm_to_vmem [thread:$0]  %s10867_s11, 512, %s9306_s21, [#allocation10], %s9194_s27, %s9194_s27, %s9195_s28  }
  0x29   :  { %s9196_s26 = smov [#allocation12]   ;;  %s9197_s0 = smov [#allocation4]  }
  0x2a   :  { %s111_s29 = sshll.u32 %s9196_s26, 4  ;;  %s45_s20 = sshll.u32 %s9197_s0, 4  ;;  %s112_s29 = int_to_ptr.vmem [resolvable:$true] %s111_s29  ;;  %s9343_s20 = int_to_ptr.vmem [resolvable:$true] %s45_s20 }
  0x2b   :  { %s9074_s2 = scalar_lea.hbm %s10871_s15, 512 }
  0x2c   :  { %p9075_p2 = scmp.ne.s32.totalorder %s10871_s15, %s9074_s2  ;;  %p9078_p3 = scmp.lt.u32.totalorder %s9074_s2, %s10871_s15 }
  0x2e   :  { %p9080_p4 = pnand %p9078_p3, %p9075_p2 }
  0x30   :  { %9083 = shalt.err (!%p9080_p4)
}
  0x31   :  { %s9084_s11 = scalar_lea.vmem %s112_s29, 512  ;;  %p9089_p6 = scmp.lt.s32.totalorder %s112_s29, %s112_s29 }
  0x32   :  { %p9085_p5 = scmp.ne.s32.totalorder %s112_s29, %s9084_s11  ;;  %p9090_p7 = scmp.lt.s32.totalorder %s9084_s11, %s9084_s11 }
  0x34   :  { %p9091_p8 = por %p9090_p7, %p9089_p6 }
  0x36   :  { %p9092_p9 = pnand %p9091_p8, %p9085_p5 }
  0x38   :  { %9095 = shalt.err (!%p9092_p9)
}
  0x39   :  { %117 = dma.hbm_to_vmem [thread:$0]  %s10871_s15, 512, %s112_s29, [#allocation13], %s9194_s27, %s9194_s27, %s9195_s28  }
  0x3a   :  { %s9096_s0 = scalar_lea.hbm %s10862_s6, 512 }
  0x3b   :  { %p9097_p10 = scmp.ne.s32.totalorder %s10862_s6, %s9096_s0  ;;  %p9100_p11 = scmp.lt.u32.totalorder %s9096_s0, %s10862_s6 }
  0x3d   :  { %p9102_p12 = pnand %p9100_p11, %p9097_p10 }
  0x3f   :  { %9105 = shalt.err (!%p9102_p12)
}
  0x40   :  { %s9106_s24 = scalar_lea.vmem %s9343_s20, 512  ;;  %p9111_p0 = scmp.lt.s32.totalorder %s9343_s20, %s9343_s20 }
  0x41   :  { %p9107_p13 = scmp.ne.s32.totalorder %s9343_s20, %s9106_s24  ;;  %p9112_p1 = scmp.lt.s32.totalorder %s9106_s24, %s9106_s24 }
  0x43   :  { %p9113_p2 = por %p9112_p1, %p9111_p0 }
  0x45   :  { %p9114_p3 = pnand %p9113_p2, %p9107_p13 }
  0x47   :  { %9117 = shalt.err (!%p9114_p3)
}
  0x48   :  { %51 = dma.hbm_to_vmem [thread:$0]  %s10862_s6, 512, %s9343_s20, [#allocation5], %s9194_s27, %s9194_s27, %s9195_s28  }
  0x49   :  { %s9198_s25 = smov [#allocation8]   ;;  %s9199_s11 = smov [#allocation11]  }
  0x4a   :  { %s70_s3 = sshll.u32 %s9198_s25, 4  ;;  %s99_s21 = sshll.u32 %s9199_s11, 4  ;;  %s71_s3 = int_to_ptr.vmem [resolvable:$true] %s70_s3  ;;  %s9380_s21 = int_to_ptr.vmem [resolvable:$true] %s99_s21 }
  0x4b   :  { %s9118_s26 = scalar_lea.hbm %s10864_s8, 32 }
  0x4c   :  { %p9119_p4 = scmp.ne.s32.totalorder %s10864_s8, %s9118_s26  ;;  %p9122_p5 = scmp.lt.u32.totalorder %s9118_s26, %s10864_s8 }
  0x4e   :  { %p9124_p6 = pnand %p9122_p5, %p9119_p4 }
  0x50   :  { %9127 = shalt.err (!%p9124_p6)
}
  0x51   :  { %s9128_s6 = scalar_lea.vmem %s71_s3, 32  ;;  %p9133_p8 = scmp.lt.s32.totalorder %s71_s3, %s71_s3 }
  0x52   :  { %p9129_p7 = scmp.ne.s32.totalorder %s71_s3, %s9128_s6  ;;  %p9134_p9 = scmp.lt.s32.totalorder %s9128_s6, %s9128_s6 }
  0x54   :  { %p9135_p10 = por %p9134_p9, %p9133_p8 }
  0x56   :  { %p9136_p11 = pnand %p9135_p10, %p9129_p7 }
  0x58   :  { %9139 = shalt.err (!%p9136_p11)
}
  0x59   :  { %73 = dma.hbm_to_vmem [thread:$0]  %s10864_s8, 32, %s71_s3, [#allocation7]  }
  0x5a   :  { %s9140_s29 = scalar_lea.hbm %s10870_s14, 512 }
  0x5b   :  { %p9141_p12 = scmp.ne.s32.totalorder %s10870_s14, %s9140_s29  ;;  %p9144_p13 = scmp.lt.u32.totalorder %s9140_s29, %s10870_s14 }
  0x5d   :  { %p9146_p0 = pnand %p9144_p13, %p9141_p12 }
  0x5f   :  { %9149 = shalt.err (!%p9146_p0)
}
  0x60   :  { %s9150_s26 = scalar_lea.vmem %s9380_s21, 512  ;;  %p9155_p2 = scmp.lt.s32.totalorder %s9380_s21, %s9380_s21 }
  0x61   :  { %p9151_p1 = scmp.ne.s32.totalorder %s9380_s21, %s9150_s26  ;;  %p9156_p3 = scmp.lt.s32.totalorder %s9150_s26, %s9150_s26 }
  0x63   :  { %p9157_p4 = por %p9156_p3, %p9155_p2 }
  0x65   :  { %p9158_p5 = pnand %p9157_p4, %p9151_p1 }
  0x67   :  { %9161 = shalt.err (!%p9158_p5)
}
  0x68   :  { %105 = dma.hbm_to_vmem [thread:$0]  %s10870_s14, 512, %s9380_s21, [#allocation10], %s9194_s27, %s9194_s27, %s9195_s28  }
  0x69   :  { %s9200_s0 = smov [#allocation14]   ;;  %s9162_s6 = scalar_lea.hbm %s10874_s18, 16 }
  0x6a   :  { %s128_s1 = sshll.u32 %s9200_s0, 4  ;;  %p9163_p6 = scmp.ne.s32.totalorder %s10874_s18, %s9162_s6  ;;  %s129_s1 = int_to_ptr.vmem [resolvable:$true] %s128_s1 }
  0x6b   :  { %p9166_p7 = scmp.lt.u32.totalorder %s9162_s6, %s10874_s18 }
  0x6d   :  { %p9168_p8 = pnand %p9166_p7, %p9163_p6 }
  0x6f   :  { %9171 = shalt.err (!%p9168_p8)
}
  0x70   :  { %s9172_s29 = scalar_lea.vmem %s129_s1, 16  ;;  %s9176_s14 = scalar_lea.vmem %s129_s1, 32 }
  0x71   :  { %p9173_p9 = scmp.ne.s32.totalorder %s129_s1, %s9172_s29  ;;  %p9177_p10 = scmp.lt.s32.totalorder %s129_s1, %s129_s1 }
  0x72   :  { %p9178_p11 = scmp.lt.s32.totalorder %s9176_s14, %s9172_s29 }
  0x74   :  { %p9179_p12 = por %p9178_p11, %p9177_p10 }
  0x76   :  { %p9180_p13 = pnand %p9179_p12, %p9173_p9 }
  0x78   :  { %9183 = shalt.err (!%p9180_p13)
}
  0x79   :  { %131 = dma.hbm_to_vmem [thread:$0]  %s10874_s18, 16, %s129_s1, [#allocation13]  }
  0x7a   :  { %9184 = dma.done.wait [#allocation5], 512  }
  0x7b   :  { %9185 = vsyncadd [#allocation5], 4294966784 }
  0x7c   :  { %9186 = dma.done.wait [#allocation7], 544  }
  0x7d   :  { %9187 = vsyncadd [#allocation7], 4294966752 }
  0x7e   :  { %9188 = dma.done.wait [#allocation10], 1024  }
  0x7f   :  { %9189 = vsyncadd [#allocation10], 4294966272 }
  0x80   :  { %9190 = dma.done.wait [#allocation13], 528  }
  0x81   :  { %9191 = vsyncadd [#allocation13], 4294966768  ;;  %v9201_v0 = vmov 0.0|0.0   ;;  %v9202_v1 = vmov 0.0   ;;  %vm9203_vm0 = vmmov 0   ;;  %s10884_s25 = sld [smem:[#allocation20_spill]] }
  0x82   :  { %8148 = vmatprep.subr.bf16.mxu1 %v9201_v0  ;;  %269 = vmatprep.mubr.f32.mxu0 %v9202_v1  ;;  %s10885_s20 = sld [smem:[#allocation21_spill]]  ;;  %s10887_s21 = sld [smem:[#allocation19_spill]]  ;;  %vm343_vm1 = vcmask 261120   ;;  %vm547_vm2 = vcmask 523520   ;;  %vm2041_vm3 = vcmask 523264   ;;  %vm6958_vm4 = vcmask 31744  }
  0x83   :  { %7439 = vmatprep.mubr.msk.f32.mxu1 %vm9203_vm0, %v9202_v1  ;;  %s9205_s15 = smov 32  }
  0x87   :  { %v162_v2 = vld [vmem:[%s10884_s25 + $0x8] sm:$0xff]  ;;  %v164_v3 = vld [vmem:[%s10884_s25 + $0x18] sm:$0xff]  ;;  %v161_v4 = vld [vmem:[%s10884_s25] sm:$0xff] }
  0x88   :  { %v8116_v5 = vpack.c.bf16 %v164_v3, %v162_v2  ;;  %v163_v6 = vld [vmem:[%s10884_s25 + $0x10] sm:$0xff]  ;;  %v166_v7 = vld [vmem:[%s10884_s25 + $0x28] sm:$0xff]  ;;  %v168_v8 = vld [vmem:[%s10884_s25 + $0x38] sm:$0xff] }
  0x89   :  { %v8118_v9 = vpack.c.bf16 %v163_v6, %v161_v4  ;;  %v8120_v10 = vpack.c.bf16 %v168_v8, %v166_v7  ;;  %v165_v11 = vld [vmem:[%s10884_s25 + $0x20] sm:$0xff]  ;;  %v167_v12 = vld [vmem:[%s10884_s25 + $0x30] sm:$0xff]  ;;  %v170_v13 = vld [vmem:[%s10884_s25 + $0x48] sm:$0xff] }
  0x8a   :  { %8117 = vmatprep.subr.bf16.mxu0 %v8116_v5  ;;  %v172_v14 = vld [vmem:[%s10884_s25 + $0x58] sm:$0xff]  ;;  %v8122_v15 = vpack.c.bf16 %v167_v12, %v165_v11  ;;  %v169_v17 = vld [vmem:[%s10884_s25 + $0x40] sm:$0xff]  ;;  %v171_v18 = vld [vmem:[%s10884_s25 + $0x50] sm:$0xff] }
  0x8b   :  { %8119 = vmatpush1.bf16.msra.mxu0 %v8118_v9  ;;  %v8124_v16 = vpack.c.bf16 %v172_v14, %v170_v13  ;;  %v174_v19 = vld [vmem:[%s10884_s25 + $0x68] sm:$0xff]  ;;  %v176_v20 = vld [vmem:[%s10884_s25 + $0x78] sm:$0xff]  ;;  %v8126_v21 = vpack.c.bf16 %v171_v18, %v169_v17  ;;  %v173_v22 = vld [vmem:[%s10884_s25 + $0x60] sm:$0xff]  ;;  %v195_v9 = vlaneseq }
  0x8c   :  { %8121 = vmatprep.subr.bf16.mxu0 %v8120_v10  ;;  %v8128_v23 = vpack.c.bf16 %v176_v20, %v174_v19  ;;  %v175_v24 = vld [vmem:[%s10884_s25 + $0x70] sm:$0xff]  ;;  %v334_v25 = vld [vmem:[%s10885_s20] sm:$0xff]  ;;  %v335_v26 = vld [vmem:[%s10885_s20 + $0x8] sm:$0xff] }
  0x8d   :  { %v178_v27 = vld [vmem:[%s10884_s25 + $0x88] sm:$0xff]  ;;  %v180_v28 = vld [vmem:[%s10884_s25 + $0x98] sm:$0xff]  ;;  %v9490_v29 = vpack.c.bf16 %v335_v26, %v334_v25  ;;  %v336_v30 = vld [vmem:[%s10885_s20 + $0x10] sm:$0xff]  ;;  %v8130_v32 = vpack.c.bf16 %v175_v24, %v173_v22  ;;  %v196_v11 = vshrl.u32 %v195_v9, 7 }
  0x8e   :  { %v337_v31 = vld [vmem:[%s10885_s20 + $0x18] sm:$0xff]  ;;  %v8132_v34 = vpack.c.bf16 %v180_v28, %v178_v27  ;;  %v177_v35 = vld [vmem:[%s10884_s25 + $0x80] sm:$0xff]  ;;  %v179_v36 = vld [vmem:[%s10884_s25 + $0x90] sm:$0xff]  ;;  %s10886_s20 = sld [smem:[#allocation22_spill]] }
  0x8f   :  { %8123 = vmatpush1.bf16.msra.mxu0 %v8122_v15  ;;  %8150 = vmatpush3.bf16.msra.mxu1 %v9490_v29  ;;  %v9499_v33 = vpack.c.bf16 %v337_v31, %v336_v30  ;;  %v182_v37 = vld [vmem:[%s10884_s25 + $0xa8] sm:$0xff]  ;;  %v184_v38 = vld [vmem:[%s10884_s25 + $0xb8] sm:$0xff]  ;;  %v8134_v41 = vpack.c.bf16 %v179_v36, %v177_v35  ;;  %v181_v42 = vld [vmem:[%s10884_s25 + $0xa0] sm:$0xff]  ;;  %v9614_v13 = vsub.s32 0, %v196_v11 }
  0x90   :  { %8125 = vmatprep.subr.bf16.mxu0 %v8124_v16  ;;  %8151 = vmatprep.subr.bf16.mxu1 %v9201_v0  ;;  %v8136_v44 = vpack.c.bf16 %v184_v38, %v182_v37  ;;  %v183_v45 = vld [vmem:[%s10884_s25 + $0xb0] sm:$0xff]  ;;  %v186_v48 = vld [vmem:[%s10884_s25 + $0xc8] sm:$0xff]  ;;  %v188_v49 = vld [vmem:[%s10884_s25 + $0xd8] sm:$0xff]  ;;  %v9619_v16 = vsub.s32 1, %v196_v11 }
  0x91   :  { %v8138_v50 = vpack.c.bf16 %v183_v45, %v181_v42  ;;  %v8140_v52 = vpack.c.bf16 %v188_v49, %v186_v48  ;;  %v185_v53 = vld [vmem:[%s10884_s25 + $0xc0] sm:$0xff]  ;;  %v187_v54 = vld [vmem:[%s10884_s25 + $0xd0] sm:$0xff]  ;;  %v190_v55 = vld [vmem:[%s10884_s25 + $0xe8] sm:$0xff] }
  0x92   :  { %v192_v56 = vld [vmem:[%s10884_s25 + $0xf8] sm:$0xff]  ;;  %v8142_v57 = vpack.c.bf16 %v187_v54, %v185_v53  ;;  %v189_v59 = vld [vmem:[%s10884_s25 + $0xe0] sm:$0xff]  ;;  %v191_v60 = vld [vmem:[%s10884_s25 + $0xf0] sm:$0xff] }
  0x93   :  { %8127 = vmatpush1.bf16.msra.mxu0 %v8126_v21  ;;  %8153 = vmatpush3.bf16.msra.mxu1 %v9499_v33  ;;  %v8144_v58 = vpack.c.bf16 %v192_v56, %v190_v55  ;;  %v8146_v61 = vpack.c.bf16 %v191_v60, %v189_v59  ;;  %v153_v62 = vld [vmem:[%s10887_s21] sm:$0xff]  ;;  %v154_v63 = vld [vmem:[%s10887_s21 + $0x8] sm:$0xff]  ;;  %v155_v2 = vld [vmem:[%s10887_s21 + $0x10] sm:$0xff] }
  0x94   :  { %8129 = vmatprep.subr.bf16.mxu0 %v8128_v23  ;;  %v338_v39 = vld [vmem:[%s10886_s20] sm:$0xff]  ;;  %v339_v40 = vld [vmem:[%s10886_s20 + $0x8] sm:$0xff]  ;;  %8154 = vmatprep.subr.bf16.mxu1 %v9201_v0  ;;  %v340_v46 = vld [vmem:[%s10886_s20 + $0x10] sm:$0xff] }
  0x95   :  { %v9524_v43 = vpack.c.bf16 %v339_v40, %v338_v39  ;;  %v341_v47 = vld [vmem:[%s10886_s20 + $0x18] sm:$0xff]  ;;  %v157_v4 = vld [vmem:[%s10887_s21 + $0x20] sm:$0xff]  ;;  %v158_v5 = vld [vmem:[%s10887_s21 + $0x28] sm:$0xff] }
  0x96   :  { %7440 = vmatmul.mubr.f32.vlgmr.msra.gmra.mrb[0].mxu1 %v9202_v1  ;;  %v9544_v51 = vpack.c.bf16 %v341_v47, %v340_v46  ;;  %v156_v3 = vld [vmem:[%s10887_s21 + $0x18] sm:$0xff]  ;;  %v159_v6 = vld [vmem:[%s10887_s21 + $0x30] sm:$0xff]  ;;  %v193_v15 = vld [vmem:[%s10860_s4] sm:$0x3]  ;;  %s9204_s4 = smov 64  }
  0x97   :  { %8131 = vmatpush1.bf16.msra.mxu0 %v8130_v32  ;;  %8156 = vmatpush3.bf16.msra.mxu1 %v9524_v43  ;;  %v160_v7 = vld [vmem:[%s10887_s21 + $0x38] sm:$0xff]  ;;  %v198_v17 = vrot.slane %v193_v15, %v9614_v13  ;;  %v202_v18 = vrot.slane %v193_v15, %v9619_v16 }
  0x98   :  { %8133 = vmatprep.subr.bf16.mxu0 %v8132_v34  ;;  %8157 = vmatprep.subr.bf16.mxu1 %v9201_v0 }
  0x99   :  { %7450 = vmatprep.mubr.msk.f32.mxu1 %vm9203_vm0, %v9202_v1 }
  0x9b   :  { %8135 = vmatpush1.bf16.msra.mxu0 %v8134_v41  ;;  %8159 = vmatpush3.bf16.msra.mxu1 %v9544_v51 }
  0x9c   :  { %8137 = vmatprep.subr.bf16.mxu0 %v8136_v44  ;;  %8160 = vmatprep.subr.bf16.mxu1 %v9201_v0 }
  0x9e   :  { %7451 = vmatmul.mubr.f32.vlgmr.msra.gmra.mrb[2].mxu1 %v9202_v1 }
  0x9f   :  { %8139 = vmatpush1.bf16.msra.mxu0 %v8138_v50  ;;  %8162 = vmatpush3.bf16.msra.mxu1 %v9490_v29 }
  0xa0   :  { %8141 = vmatprep.subr.bf16.mxu0 %v8140_v52  ;;  %8163 = vmatprep.subr.bf16.mxu1 %v9201_v0 }
  0xa1   :  { %7461 = vmatprep.mubr.msk.f32.mxu1 %vm9203_vm0, %v9202_v1 }
  0xa3   :  { %8143 = vmatpush1.bf16.msra.mxu0 %v8142_v57  ;;  %8165 = vmatpush3.bf16.msra.mxu1 %v9499_v33 }
  0xa4   :  { %8145 = vmatprep.subr.bf16.mxu0 %v8144_v58  ;;  %8166 = vmatprep.subr.bf16.mxu1 %v9201_v0 }
  0xa7   :  { %8147 = vmatpush1.bf16.msra.mxu0 %v8146_v61 }
  0xa8   :  { %8190 = vmatprep.subr.bf16.mxu0 %v9201_v0 }
  0xaa   :  { %270 = vmatmul.mubr.f32.vlgmr.msra.gmra.mrb[0].mxu0 %v153_v62 }
  0xab   :  { %275 = vmatprep.mubr.f32.mxu0 %v9202_v1  ;;  %8192 = vmatpush3.bf16.msra.mxu0 %v9524_v43 }
  0xac   :  { %8193 = vmatprep.subr.bf16.mxu0 %v9201_v0 }
  0xae   :  { %276 = vmatmul.mubr.f32.gmra.mrb[2].mxu0 %v154_v63 }
  0xaf   :  { %281 = vmatprep.mubr.f32.mxu0 %v9202_v1  ;;  %8195 = vmatpush3.bf16.msra.mxu0 %v9544_v51 }
  0xb0   :  { %8202 = vmatprep.subr.bf16.mxu0 %v9201_v0 }
  0xb2   :  { %282 = vmatmul.mubr.f32.gmra.mrb[4].mxu0 %v155_v2 }
  0xb3   :  { %287 = vmatprep.mubr.f32.mxu0 %v9202_v1 }
  0xb6   :  { %288 = vmatmul.mubr.f32.gmra.mrb[6].mxu0 %v156_v3 }
  0xb7   :  { %293 = vmatprep.mubr.f32.mxu0 %v9202_v1 }
  0xba   :  { %294 = vmatmul.mubr.f32.gmra.mrb[8].mxu0 %v157_v4 }
  0xbb   :  { %299 = vmatprep.mubr.f32.mxu0 %v9202_v1 }
  0xbe   :  { %300 = vmatmul.mubr.f32.gmra.mrb[10].mxu0 %v158_v5 }
  0xbf   :  { %305 = vmatprep.mubr.f32.mxu0 %v9202_v1 }
  0xc2   :  { %306 = vmatmul.mubr.f32.gmra.mrb[12].mxu0 %v159_v6 }
  0xc3   :  { %311 = vmatprep.mubr.f32.mxu0 %v9202_v1 }
  0xc6   :  { %312 = vmatmul.mubr.f32.gmra.mrb[14].mxu0 %v160_v7 }
  0xc7   :  { %7516 = vmatprep.mubr.msk.f32.mxu0 %vm9203_vm0, %v9202_v1 }
 0x169   :  { %v413_v8 = vpop.f32.mrb[0].mxu1 }
 0x16a   :  { %v7441_v10 = vpop.f32.mrb[1].mxu1 }
 0x171   :  { %v485_v12 = vpop.f32.mrb[2].mxu1 }
 0x172   :  { %v7452_v14 = vpop.f32.mrb[3].mxu1 }
 0x17d   :  { %v271_v19 = vpop.f32.mrb[0].mxu0 }
 0x17e   :  { %v272_v20 = vadd.f32 %v271_v19, %v198_v17  ;;  %v273_v21 = vpop.f32.mrb[1].mxu0 }
 0x17f   :  { %v9623_v22 = vadd.f32 %v273_v21, %v202_v18 }
 0x180   :  { %v417_v23 = vadd.f32 %v413_v8, %v272_v20 }
 0x181   :  { %v277_v24 = vpop.f32.mrb[2].mxu0 }
 0x182   :  { %8570 = vtanh.f32 %v417_v23  ;;  %v9625_v25 = vadd.f32 %v277_v24, %v198_v17  ;;  %v279_v26 = vpop.f32.mrb[3].mxu0  ;;  %v6980_v59 = vmul.f32 -1.442695, %v417_v23 }
 0x183   :  { %v9627_v27 = vadd.f32 %v279_v26, %v202_v18 }
 0x185   :  { %v283_v28 = vpop.f32.mrb[4].mxu0 }
 0x186   :  { %v9629_v30 = vadd.f32 %v283_v28, %v198_v17  ;;  %v285_v31 = vpop.f32.mrb[5].mxu0 }
 0x187   :  { %v9631_v32 = vadd.f32 %v285_v31, %v202_v18 }
 0x189   :  { %v289_v34 = vpop.f32.mrb[6].mxu0 }
 0x18a   :  { %v9633_v35 = vadd.f32 %v289_v34, %v198_v17  ;;  %v291_v36 = vpop.f32.mrb[7].mxu0 }
 0x18b   :  { %v9635_v37 = vadd.f32 %v291_v36, %v202_v18 }
 0x18c   :  { %v8571_v38 = vpop.eup %8570 }
 0x18d   :  { %v295_v39 = vpop.f32.mrb[8].mxu0  ;;  %499 = vrot.lane.b32.xlu0 %v8571_v38, %s9204_s4 }
 0x18e   :  { %v9638_v40 = vadd.f32 %v295_v39, %v198_v17  ;;  %v297_v41 = vpop.f32.mrb[9].mxu0 }
 0x18f   :  { %v9640_v42 = vadd.f32 %v297_v41, %v202_v18 }
 0x191   :  { %v301_v44 = vpop.f32.mrb[10].mxu0 }
 0x192   :  { %v9642_v45 = vadd.f32 %v301_v44, %v198_v17  ;;  %v303_v46 = vpop.f32.mrb[11].mxu0 }
 0x193   :  { %v9644_v47 = vadd.f32 %v303_v46, %v202_v18 }
 0x195   :  { %v307_v48 = vpop.f32.mrb[12].mxu0 }
 0x196   :  { %v9646_v49 = vadd.f32 %v307_v48, %v198_v17  ;;  %v309_v50 = vpop.f32.mrb[13].mxu0 }
 0x197   :  { %v9648_v52 = vadd.f32 %v309_v50, %v202_v18 }
 0x199   :  { %v313_v53 = vpop.f32.mrb[14].mxu0 }
 0x19a   :  { %v9650_v54 = vadd.f32 %v313_v53, %v198_v17  ;;  %v315_v55 = vpop.f32.mrb[15].mxu0 }
 0x19b   :  { %v316_v56 = vadd.f32 %v315_v55, %v202_v18 }
 0x19d   :  { %v489_v57 = vadd.f32 %v485_v12, %v316_v56 }
 0x19f   :  { %8572 = vtanh.f32 %v489_v57  ;;  %v6981_v62 = vmul.f32 -1.442695, %v489_v57 }
 0x1a0   :  { %8574 = vpow2.f32 %v6980_v59 }
 0x1a9   :  { %v8573_v58 = vpop.eup %8572 }
 0x1aa   :  { %523 = vrot.lane.b32.xlu0 %v8573_v58, %s9204_s4  ;;  %v8575_v60 = vpop.eup %8574 }
 0x1ab   :  { %v493_v61 = vadd.f32 1.0, %v8575_v60 }
 0x1ad   :  { %8576 = vrcp.f32 %v493_v61 }
 0x1ae   :  { %8578 = vpow2.f32 %v6981_v62 }
 0x1b7   :  { %v8577_v63 = vpop.eup %8576 }
 0x1b8   :  { %v8579_v4 = vpop.eup %8578  ;;  %v497_v9 = vmul.f32 0.0, %v8577_v63 }
 0x1b9   :  { %v517_v5 = vadd.f32 1.0, %v8579_v4 }
 0x1bb   :  { %8580 = vrcp.f32 %v517_v5 }
 0x1c5   :  { %v8581_v6 = vpop.eup %8580 }
 0x1c6   :  { %v521_v14 = vmul.f32 0.0, %v8581_v6 }
 0x1ff   :  { %v500_v2 = vpop.permute.xlu0 %499 }
 0x200   :  { %v502_v3 = vmul.f32 %v8577_v63, %v500_v2 }
 0x202   :  { %504 = vrot.lane.b32.xlu1 %v502_v3, %s9205_s15 }
 0x21c   :  { %v524_v7 = vpop.permute.xlu0 %523 }
 0x21d   :  { %v526_v8 = vmul.f32 %v8581_v6, %v524_v7 }
 0x21f   :  { %528 = vrot.lane.b32.xlu1 %v526_v8, %s9205_s15 }
 0x274   :  { %v505_v10 = vpop.permute.xlu1 %504 }
 0x275   :  { %v507_v11 = vadd.f32 %v505_v10, %v497_v9 }
 0x277   :  { %8582 = vtanh.f32 %v507_v11 }
 0x281   :  { %v8583_v12 = vpop.eup %8582 }
 0x282   :  { %510 = vrot.lane.b32.xlu0 %v8583_v12, %s9204_s4 }
 0x291   :  { %v529_v15 = vpop.permute.xlu1 %528 }
 0x292   :  { %v531_v17 = vadd.f32 %v529_v15, %v521_v14 }
 0x294   :  { %8584 = vtanh.f32 %v531_v17 }
 0x29e   :  { %v8585_v18 = vpop.eup %8584 }
 0x29f   :  { %534 = vrot.lane.b32.xlu1 %v8585_v18, %s9204_s4 }
 0x2f4   :  { %v511_v19 = vpop.permute.xlu0 %510 }
 0x2f5   :  { %v513_v20 = vmul.f32 %v8577_v63, %v511_v19 }
 0x2f7   :  { %539 = vrot.lane.b32.xlu0 %v513_v20, %s9205_s15 }
 0x311   :  { %v535_v21 = vpop.permute.xlu1 %534 }
 0x312   :  { %v9658_v23 = vmul.f32 %v8581_v6, %v535_v21 }
 0x314   :  { %624 = vrot.lane.b32.xlu1 %v9658_v23, %s9205_s15 }
 0x369   :  { %v540_v24 = vpop.permute.xlu0 %539 }
 0x36a   :  { %542 = vst.msk [vmem:[#allocation2] sm:$0xff] %vm343_vm1, %v540_v24  ;;  %7462 = vmatmul.mubr.msk.f32.vlgmr.msra.gmra.mrb[4].mxu1 %vm343_vm1, %v540_v24 }
 0x36b   :  { %8168 = vmatpush3.bf16.msra.mxu1 %v9524_v43  ;;  %7472 = vmatprep.mubr.msk.f32.mxu1 %vm9203_vm0, %v9202_v1 }
 0x36c   :  { %8169 = vmatprep.subr.bf16.mxu1 %v9201_v0 }
 0x36f   :  { %8171 = vmatpush3.bf16.msra.mxu1 %v9544_v51 }
 0x370   :  { %8172 = vmatprep.subr.bf16.mxu1 %v9201_v0 }
 0x386   :  { %v625_v26 = vpop.permute.xlu1 %624 }
 0x387   :  { %7473 = vmatmul.mubr.msk.f32.vlgmr.msra.gmra.mrb[6].mxu1 %vm343_vm1, %v625_v26 }
 0x388   :  { %8174 = vmatpush3.bf16.msra.mxu1 %v9490_v29  ;;  %7483 = vmatprep.mubr.msk.f32.mxu1 %vm9203_vm0, %v9202_v1 }
 0x389   :  { %8175 = vmatprep.subr.bf16.mxu1 %v9201_v0 }
 0x38c   :  { %8177 = vmatpush3.bf16.msra.mxu1 %v9499_v33 }
 0x38d   :  { %8178 = vmatprep.subr.bf16.mxu1 %v9201_v0 }
 0x43d   :  { %v618_v28 = vpop.f32.mrb[4].mxu1 }
 0x43e   :  { %v622_v31 = vadd.f32 %v618_v28, %v9625_v25  ;;  %v7463_v34 = vpop.f32.mrb[5].mxu1 }
 0x440   :  { %8586 = vtanh.f32 %v622_v31  ;;  %v6984_v46 = vmul.f32 -1.442695, %v622_v31 }
 0x44a   :  { %v8587_v36 = vpop.eup %8586 }
 0x44b   :  { %708 = vrot.lane.b32.xlu0 %v8587_v36, %s9204_s4 }
 0x45a   :  { %v694_v38 = vpop.f32.mrb[6].mxu1 }
 0x45b   :  { %v698_v39 = vadd.f32 %v694_v38, %v9648_v52  ;;  %v7474_v41 = vpop.f32.mrb[7].mxu1 }
 0x45d   :  { %8588 = vtanh.f32 %v698_v39  ;;  %v6985_v53 = vmul.f32 -1.442695, %v698_v39 }
 0x45e   :  { %8590 = vpow2.f32 %v6984_v46 }
 0x467   :  { %v8589_v44 = vpop.eup %8588 }
 0x468   :  { %732 = vrot.lane.b32.xlu1 %v8589_v44, %s9204_s4  ;;  %v8591_v48 = vpop.eup %8590 }
 0x469   :  { %v702_v50 = vadd.f32 1.0, %v8591_v48 }
 0x46b   :  { %8592 = vrcp.f32 %v702_v50 }
 0x46c   :  { %8594 = vpow2.f32 %v6985_v53 }
 0x475   :  { %v8593_v25 = vpop.eup %8592 }
 0x476   :  { %v8595_v57 = vpop.eup %8594  ;;  %v706_v61 = vmul.f32 %v8593_v25, %v507_v11 }
 0x477   :  { %v726_v58 = vadd.f32 1.0, %v8595_v57 }
 0x479   :  { %8596 = vrcp.f32 %v726_v58 }
 0x483   :  { %v8597_v52 = vpop.eup %8596 }
 0x484   :  { %v730_v3 = vmul.f32 %v8597_v52, %v531_v17 }
 0x4bd   :  { %v709_v55 = vpop.permute.xlu0 %708 }
 0x4be   :  { %v711_v56 = vmul.f32 %v8593_v25, %v709_v55 }
 0x4c0   :  { %713 = vrot.lane.b32.xlu0 %v711_v56, %s9205_s15 }
 0x4da   :  { %v733_v59 = vpop.permute.xlu1 %732 }
 0x4db   :  { %v735_v60 = vmul.f32 %v8597_v52, %v733_v59 }
 0x4dd   :  { %737 = vrot.lane.b32.xlu1 %v735_v60, %s9205_s15 }
 0x532   :  { %v714_v62 = vpop.permute.xlu0 %713 }
 0x533   :  { %v716_v63 = vadd.f32 %v714_v62, %v706_v61 }
 0x535   :  { %8598 = vtanh.f32 %v716_v63 }
 0x53f   :  { %v8599_v2 = vpop.eup %8598 }
 0x540   :  { %719 = vrot.lane.b32.xlu0 %v8599_v2, %s9204_s4 }
 0x54f   :  { %v738_v4 = vpop.permute.xlu1 %737 }
 0x550   :  { %v740_v5 = vadd.f32 %v738_v4, %v730_v3 }
 0x552   :  { %8600 = vtanh.f32 %v740_v5 }
 0x55c   :  { %v8601_v6 = vpop.eup %8600 }
 0x55d   :  { %743 = vrot.lane.b32.xlu1 %v8601_v6, %s9204_s4 }
 0x5b2   :  { %v720_v7 = vpop.permute.xlu0 %719 }
 0x5b3   :  { %v722_v8 = vmul.f32 %v8593_v25, %v720_v7 }
 0x5b5   :  { %748 = vrot.lane.b32.xlu0 %v722_v8, %s9205_s15 }
 0x5cf   :  { %v744_v9 = vpop.permute.xlu1 %743 }
 0x5d0   :  { %v9686_v10 = vmul.f32 %v8597_v52, %v744_v9 }
 0x5d2   :  { %832 = vrot.lane.b32.xlu1 %v9686_v10, %s9205_s15 }
 0x627   :  { %v749_v11 = vpop.permute.xlu0 %748 }
 0x628   :  { %751 = vst.msk [vmem:[#allocation2 + $0x8] sm:$0xff] %vm343_vm1, %v749_v11  ;;  %7484 = vmatmul.mubr.msk.f32.vlgmr.msra.gmra.mrb[8].mxu1 %vm343_vm1, %v749_v11 }
 0x629   :  { %8180 = vmatpush3.bf16.msra.mxu1 %v9524_v43  ;;  %7494 = vmatprep.mubr.msk.f32.mxu1 %vm9203_vm0, %v9202_v1 }
 0x62a   :  { %8181 = vmatprep.subr.bf16.mxu1 %v9201_v0 }
 0x62d   :  { %8183 = vmatpush3.bf16.msra.mxu1 %v9544_v51 }
 0x62e   :  { %8184 = vmatprep.subr.bf16.mxu1 %v9201_v0 }
 0x644   :  { %v833_v12 = vpop.permute.xlu1 %832 }
 0x645   :  { %7495 = vmatmul.mubr.msk.f32.vlgmr.msra.gmra.mrb[10].mxu1 %vm343_vm1, %v833_v12 }
 0x646   :  { %8186 = vmatpush3.bf16.msra.mxu1 %v9490_v29  ;;  %7505 = vmatprep.mubr.msk.f32.mxu1 %vm9203_vm0, %v9202_v1 }
 0x647   :  { %8187 = vmatprep.subr.bf16.mxu1 %v9201_v0 }
 0x64a   :  { %8189 = vmatpush3.bf16.msra.mxu1 %v9499_v33 }
 0x64b   :  { %8196 = vmatprep.subr.bf16.mxu1 %v9201_v0 }
 0x6fb   :  { %v826_v14 = vpop.f32.mrb[8].mxu1 }
 0x6fc   :  { %v830_v15 = vadd.f32 %v826_v14, %v9629_v30  ;;  %v7485_v17 = vpop.f32.mrb[9].mxu1 }
 0x6fe   :  { %8602 = vtanh.f32 %v830_v15  ;;  %v6988_v26 = vmul.f32 -1.442695, %v830_v15 }
 0x708   :  { %v8603_v18 = vpop.eup %8602 }
 0x709   :  { %916 = vrot.lane.b32.xlu1 %v8603_v18, %s9204_s4 }
 0x718   :  { %v902_v19 = vpop.f32.mrb[10].mxu1 }
 0x719   :  { %v906_v20 = vadd.f32 %v902_v19, %v9644_v47  ;;  %v7496_v21 = vpop.f32.mrb[11].mxu1 }
 0x71b   :  { %8604 = vtanh.f32 %v906_v20  ;;  %v6989_v34 = vmul.f32 -1.442695, %v906_v20 }
 0x71c   :  { %8606 = vpow2.f32 %v6988_v26 }
 0x725   :  { %v8605_v24 = vpop.eup %8604 }
 0x726   :  { %940 = vrot.lane.b32.xlu0 %v8605_v24, %s9204_s4  ;;  %v8607_v28 = vpop.eup %8606 }
 0x727   :  { %v910_v31 = vadd.f32 1.0, %v8607_v28 }
 0x729   :  { %8608 = vrcp.f32 %v910_v31 }
 0x72a   :  { %8610 = vpow2.f32 %v6989_v34 }
 0x733   :  { %v8609_v30 = vpop.eup %8608 }
 0x734   :  { %v8611_v39 = vpop.eup %8610  ;;  %v914_v48 = vmul.f32 %v8609_v30, %v716_v63 }
 0x735   :  { %v934_v41 = vadd.f32 1.0, %v8611_v39 }
 0x737   :  { %8612 = vrcp.f32 %v934_v41 }
 0x741   :  { %v8613_v47 = vpop.eup %8612 }
 0x742   :  { %v938_v55 = vmul.f32 %v8613_v47, %v740_v5 }
 0x77b   :  { %v917_v36 = vpop.permute.xlu1 %916 }
 0x77c   :  { %v919_v38 = vmul.f32 %v8609_v30, %v917_v36 }
 0x77e   :  { %921 = vrot.lane.b32.xlu1 %v919_v38, %s9205_s15 }
 0x798   :  { %v941_v44 = vpop.permute.xlu0 %940 }
 0x799   :  { %v943_v46 = vmul.f32 %v8613_v47, %v941_v44 }
 0x79b   :  { %945 = vrot.lane.b32.xlu0 %v943_v46, %s9205_s15 }
 0x7f0   :  { %v922_v50 = vpop.permute.xlu1 %921 }
 0x7f1   :  { %v924_v53 = vadd.f32 %v922_v50, %v914_v48 }
 0x7f3   :  { %8614 = vtanh.f32 %v924_v53 }
 0x7fd   :  { %v8615_v25 = vpop.eup %8614 }
 0x7fe   :  { %927 = vrot.lane.b32.xlu1 %v8615_v25, %s9204_s4 }
 0x80d   :  { %v946_v56 = vpop.permute.xlu0 %945 }
 0x80e   :  { %v948_v57 = vadd.f32 %v946_v56, %v938_v55 }
 0x810   :  { %8616 = vtanh.f32 %v948_v57 }
 0x81a   :  { %v8617_v58 = vpop.eup %8616 }
 0x81b   :  { %951 = vrot.lane.b32.xlu0 %v8617_v58, %s9204_s4 }
 0x870   :  { %v928_v52 = vpop.permute.xlu1 %927 }
 0x871   :  { %v930_v59 = vmul.f32 %v8609_v30, %v928_v52 }
 0x873   :  { %956 = vrot.lane.b32.xlu1 %v930_v59, %s9205_s15 }
 0x88d   :  { %v952_v60 = vpop.permute.xlu0 %951 }
 0x88e   :  { %v9714_v61 = vmul.f32 %v8613_v47, %v952_v60 }
 0x890   :  { %1040 = vrot.lane.b32.xlu0 %v9714_v61, %s9205_s15 }
 0x8e5   :  { %v957_v62 = vpop.permute.xlu1 %956 }
 0x8e6   :  { %959 = vst.msk [vmem:[#allocation2 + $0x10] sm:$0xff] %vm343_vm1, %v957_v62  ;;  %7506 = vmatmul.mubr.msk.f32.vlgmr.msra.gmra.mrb[12].mxu1 %vm343_vm1, %v957_v62 }
 0x8e7   :  { %8198 = vmatpush3.bf16.msra.mxu1 %v9490_v29  ;;  %7527 = vmatprep.mubr.msk.f32.mxu1 %vm9203_vm0, %v9202_v1 }
 0x8e8   :  { %8199 = vmatprep.subr.bf16.mxu1 %v9201_v0 }
 0x8eb   :  { %8201 = vmatpush3.bf16.msra.mxu1 %v9499_v33 }
 0x8ec   :  { %8208 = vmatprep.subr.bf16.mxu1 %v9201_v0 }
 0x902   :  { %v1041_v63 = vpop.permute.xlu0 %1040 }
 0x903   :  { %7517 = vmatmul.mubr.msk.f32.vlgmr.msra.gmra.mrb[16].mxu0 %vm343_vm1, %v1041_v63 }
 0x904   :  { %8204 = vmatpush3.bf16.msra.mxu0 %v9524_v43  ;;  %7538 = vmatprep.mubr.msk.f32.mxu0 %vm9203_vm0, %v9202_v1 }
 0x905   :  { %8205 = vmatprep.subr.bf16.mxu0 %v9201_v0 }
 0x908   :  { %8207 = vmatpush3.bf16.msra.mxu0 %v9544_v51 }
 0x909   :  { %8214 = vmatprep.subr.bf16.mxu0 %v9201_v0 }
 0x9b9   :  { %v1034_v2 = vpop.f32.mrb[12].mxu1 }
 0x9ba   :  { %v1038_v3 = vadd.f32 %v1034_v2, %v9633_v35  ;;  %v7507_v4 = vpop.f32.mrb[13].mxu1 }
 0x9bc   :  { %8618 = vtanh.f32 %v1038_v3  ;;  %v6992_v11 = vmul.f32 -1.442695, %v1038_v3 }
 0x9c6   :  { %v8619_v5 = vpop.eup %8618 }
 0x9c7   :  { %1124 = vrot.lane.b32.xlu1 %v8619_v5, %s9204_s4 }
 0x9d6   :  { %v1110_v6 = vpop.f32.mrb[16].mxu0 }
 0x9d7   :  { %v1114_v7 = vadd.f32 %v1110_v6, %v9640_v42  ;;  %v7518_v8 = vpop.f32.mrb[17].mxu0 }
 0x9d9   :  { %8620 = vtanh.f32 %v1114_v7  ;;  %v6993_v15 = vmul.f32 -1.442695, %v1114_v7 }
 0x9da   :  { %8622 = vpow2.f32 %v6992_v11 }
 0x9e3   :  { %v8621_v9 = vpop.eup %8620 }
 0x9e4   :  { %1148 = vrot.lane.b32.xlu0 %v8621_v9, %s9204_s4  ;;  %v8623_v12 = vpop.eup %8622 }
 0x9e5   :  { %v1118_v14 = vadd.f32 1.0, %v8623_v12 }
 0x9e7   :  { %8624 = vrcp.f32 %v1118_v14 }
 0x9e8   :  { %8626 = vpow2.f32 %v6993_v15 }
 0x9f1   :  { %v8625_v35 = vpop.eup %8624 }
 0x9f2   :  { %v8627_v19 = vpop.eup %8626  ;;  %v1122_v26 = vmul.f32 %v8625_v35, %v924_v53 }
 0x9f3   :  { %v1142_v20 = vadd.f32 1.0, %v8627_v19 }
 0x9f5   :  { %8628 = vrcp.f32 %v1142_v20 }
 0x9ff   :  { %v8629_v42 = vpop.eup %8628 }
 0xa00   :  { %v1146_v30 = vmul.f32 %v8629_v42, %v948_v57 }
 0xa39   :  { %v1125_v17 = vpop.permute.xlu1 %1124 }
 0xa3a   :  { %v1127_v18 = vmul.f32 %v8625_v35, %v1125_v17 }
 0xa3c   :  { %1129 = vrot.lane.b32.xlu1 %v1127_v18, %s9205_s15 }
 0xa56   :  { %v1149_v21 = vpop.permute.xlu0 %1148 }
 0xa57   :  { %v1151_v24 = vmul.f32 %v8629_v42, %v1149_v21 }
 0xa59   :  { %1153 = vrot.lane.b32.xlu0 %v1151_v24, %s9205_s15 }
 0xaae   :  { %v1130_v28 = vpop.permute.xlu1 %1129 }
 0xaaf   :  { %v1132_v31 = vadd.f32 %v1130_v28, %v1122_v26 }
 0xab1   :  { %8630 = vtanh.f32 %v1132_v31 }
 0xabb   :  { %v8631_v34 = vpop.eup %8630 }
 0xabc   :  { %1135 = vrot.lane.b32.xlu1 %v8631_v34, %s9204_s4 }
 0xacb   :  { %v1154_v36 = vpop.permute.xlu0 %1153 }
 0xacc   :  { %v1156_v38 = vadd.f32 %v1154_v36, %v1146_v30 }
 0xace   :  { %8632 = vtanh.f32 %v1156_v38 }
 0xad8   :  { %v8633_v39 = vpop.eup %8632 }
 0xad9   :  { %1159 = vrot.lane.b32.xlu0 %v8633_v39, %s9204_s4 }
 0xb2e   :  { %v1136_v41 = vpop.permute.xlu1 %1135 }
 0xb2f   :  { %v1138_v47 = vmul.f32 %v8625_v35, %v1136_v41 }
 0xb31   :  { %1164 = vrot.lane.b32.xlu1 %v1138_v47, %s9205_s15 }
 0xb4b   :  { %v1160_v44 = vpop.permute.xlu0 %1159 }
 0xb4c   :  { %v9742_v46 = vmul.f32 %v8629_v42, %v1160_v44 }
 0xb4e   :  { %1248 = vrot.lane.b32.xlu0 %v9742_v46, %s9205_s15 }
 0xba3   :  { %v1165_v48 = vpop.permute.xlu1 %1164 }
 0xba4   :  { %1167 = vst.msk [vmem:[#allocation2 + $0x18] sm:$0xff] %vm343_vm1, %v1165_v48  ;;  %7528 = vmatmul.mubr.msk.f32.vlgmr.msra.gmra.mrb[14].mxu1 %vm343_vm1, %v1165_v48 }
 0xba5   :  { %8210 = vmatpush3.bf16.msra.mxu1 %v9490_v29  ;;  %7549 = vmatprep.mubr.msk.f32.mxu1 %vm9203_vm0, %v9202_v1 }
 0xba6   :  { %8211 = vmatprep.subr.bf16.mxu1 %v9201_v0 }
 0xba9   :  { %8213 = vmatpush3.bf16.msra.mxu1 %v9499_v33 }
 0xbaa   :  { %8220 = vmatprep.subr.bf16.mxu1 %v9201_v0 }
 0xbc0   :  { %v1249_v50 = vpop.permute.xlu0 %1248 }
 0xbc1   :  { %7539 = vmatmul.mubr.msk.f32.vlgmr.msra.gmra.mrb[18].mxu0 %vm343_vm1, %v1249_v50 }
 0xbc2   :  { %8216 = vmatpush3.bf16.msra.mxu0 %v9524_v43  ;;  %7560 = vmatprep.mubr.msk.f32.mxu0 %vm9203_vm0, %v9202_v1 }
 0xbc3   :  { %8217 = vmatprep.subr.bf16.mxu0 %v9201_v0 }
 0xbc6   :  { %8219 = vmatpush3.bf16.msra.mxu0 %v9544_v51 }
 0xbc7   :  { %8226 = vmatprep.subr.bf16.mxu0 %v9201_v0 }
 0xc77   :  { %v1242_v53 = vpop.f32.mrb[14].mxu1 }
 0xc78   :  { %v1246_v25 = vadd.f32 %v1242_v53, %v9638_v40  ;;  %v7529_v55 = vpop.f32.mrb[15].mxu1 }
 0xc7a   :  { %8634 = vtanh.f32 %v1246_v25  ;;  %v6996_v60 = vmul.f32 -1.442695, %v1246_v25 }
 0xc84   :  { %v8635_v56 = vpop.eup %8634 }
 0xc85   :  { %1332 = vrot.lane.b32.xlu1 %v8635_v56, %s9204_s4 }
 0xc94   :  { %v1318_v57 = vpop.f32.mrb[18].mxu0 }
 0xc95   :  { %v1322_v58 = vadd.f32 %v1318_v57, %v9635_v37  ;;  %v7540_v52 = vpop.f32.mrb[19].mxu0 }
 0xc97   :  { %8636 = vtanh.f32 %v1322_v58  ;;  %v6997_v2 = vmul.f32 -1.442695, %v1322_v58 }
 0xc98   :  { %8638 = vpow2.f32 %v6996_v60 }
 0xca1   :  { %v8637_v59 = vpop.eup %8636 }
 0xca2   :  { %1356 = vrot.lane.b32.xlu0 %v8637_v59, %s9204_s4  ;;  %v8639_v62 = vpop.eup %8638 }
 0xca3   :  { %v1326_v63 = vadd.f32 1.0, %v8639_v62 }
 0xca5   :  { %8640 = vrcp.f32 %v1326_v63 }
 0xca6   :  { %8642 = vpow2.f32 %v6997_v2 }
 0xcaf   :  { %v8641_v40 = vpop.eup %8640 }
 0xcb0   :  { %v8643_v5 = vpop.eup %8642  ;;  %v1330_v9 = vmul.f32 %v8641_v40, %v1132_v31 }
 0xcb1   :  { %v1350_v6 = vadd.f32 1.0, %v8643_v5 }
 0xcb3   :  { %8644 = vrcp.f32 %v1350_v6 }
 0xcbd   :  { %v8645_v37 = vpop.eup %8644 }
 0xcbe   :  { %v1354_v15 = vmul.f32 %v8645_v37, %v1156_v38 }
 0xcf7   :  { %v1333_v3 = vpop.permute.xlu1 %1332 }
 0xcf8   :  { %v1335_v4 = vmul.f32 %v8641_v40, %v1333_v3 }
 0xcfa   :  { %1337 = vrot.lane.b32.xlu1 %v1335_v4, %s9205_s15 }
 0xd14   :  { %v1357_v7 = vpop.permute.xlu0 %1356 }
 0xd15   :  { %v1359_v8 = vmul.f32 %v8645_v37, %v1357_v7 }
 0xd17   :  { %1361 = vrot.lane.b32.xlu0 %v1359_v8, %s9205_s15 }
 0xd6c   :  { %v1338_v11 = vpop.permute.xlu1 %1337 }
 0xd6d   :  { %v1340_v12 = vadd.f32 %v1338_v11, %v1330_v9 }
 0xd6f   :  { %8646 = vtanh.f32 %v1340_v12 }
 0xd79   :  { %v8647_v14 = vpop.eup %8646 }
 0xd7a   :  { %1343 = vrot.lane.b32.xlu1 %v8647_v14, %s9204_s4 }
 0xd89   :  { %v1362_v35 = vpop.permute.xlu0 %1361 }
 0xd8a   :  { %v1364_v17 = vadd.f32 %v1362_v35, %v1354_v15 }
 0xd8c   :  { %8648 = vtanh.f32 %v1364_v17 }
 0xd96   :  { %v8649_v18 = vpop.eup %8648 }
 0xd97   :  { %1367 = vrot.lane.b32.xlu0 %v8649_v18, %s9204_s4 }
 0xdec   :  { %v1344_v19 = vpop.permute.xlu1 %1343 }
 0xded   :  { %v1346_v20 = vmul.f32 %v8641_v40, %v1344_v19 }
 0xdef   :  { %1372 = vrot.lane.b32.xlu1 %v1346_v20, %s9205_s15 }
 0xe09   :  { %v1368_v42 = vpop.permute.xlu0 %1367 }
 0xe0a   :  { %v9770_v21 = vmul.f32 %v8645_v37, %v1368_v42 }
 0xe0c   :  { %1456 = vrot.lane.b32.xlu0 %v9770_v21, %s9205_s15 }
 0xe61   :  { %v9774_v24 = vpop.permute.xlu1 %1372 }
 0xe62   :  { %7550 = vmatmul.mubr.msk.f32.vlgmr.msra.gmra.mrb[16].mxu1 %vm343_vm1, %v9774_v24 }
 0xe63   :  { %8222 = vmatpush3.bf16.msra.mxu1 %v9490_v29  ;;  %7571 = vmatprep.mubr.msk.f32.mxu1 %vm9203_vm0, %v9202_v1 }
 0xe64   :  { %8223 = vmatprep.subr.bf16.mxu1 %v9201_v0 }
 0xe67   :  { %8225 = vmatpush3.bf16.msra.mxu1 %v9499_v33 }
 0xe68   :  { %8232 = vmatprep.subr.bf16.mxu1 %v9201_v0 }
 0xe7e   :  { %v1457_v26 = vpop.permute.xlu0 %1456 }
 0xe7f   :  { %7561 = vmatmul.mubr.msk.f32.vlgmr.msra.gmra.mrb[20].mxu0 %vm343_vm1, %v1457_v26 }
 0xe80   :  { %8228 = vmatpush3.bf16.msra.mxu0 %v9524_v43  ;;  %7582 = vmatprep.mubr.msk.f32.mxu0 %vm9203_vm0, %v9202_v1 }
 0xe81   :  { %8229 = vmatprep.subr.bf16.mxu0 %v9201_v0 }
 0xe84   :  { %8231 = vmatpush3.bf16.msra.mxu0 %v9544_v51 }
 0xe85   :  { %8238 = vmatprep.subr.bf16.mxu0 %v9201_v0 }
 0xf35   :  { %v1450_v28 = vpop.f32.mrb[16].mxu1 }
 0xf36   :  { %v1454_v31 = vadd.f32 %v1450_v28, %v9642_v45  ;;  %v7551_v34 = vpop.f32.mrb[17].mxu1 }
 0xf38   :  { %8650 = vtanh.f32 %v1454_v31  ;;  %v7000_v47 = vmul.f32 -1.442695, %v1454_v31 }
 0xf42   :  { %v8651_v30 = vpop.eup %8650 }
 0xf43   :  { %1540 = vrot.lane.b32.xlu1 %v8651_v30, %s9204_s4 }
 0xf52   :  { %v1526_v36 = vpop.f32.mrb[20].mxu0 }
 0xf53   :  { %v1530_v38 = vadd.f32 %v1526_v36, %v9631_v32  ;;  %v7562_v39 = vpop.f32.mrb[21].mxu0 }
 0xf55   :  { %8652 = vtanh.f32 %v1530_v38  ;;  %v7001_v50 = vmul.f32 -1.442695, %v1530_v38 }
 0xf56   :  { %8654 = vpow2.f32 %v7000_v47 }
 0xf5f   :  { %v8653_v41 = vpop.eup %8652 }
 0xf60   :  { %1564 = vrot.lane.b32.xlu0 %v8653_v41, %s9204_s4  ;;  %v8655_v44 = vpop.eup %8654 }
 0xf61   :  { %v1534_v48 = vadd.f32 1.0, %v8655_v44 }
 0xf63   :  { %8656 = vrcp.f32 %v1534_v48 }
 0xf64   :  { %8658 = vpow2.f32 %v7001_v50 }
 0xf6d   :  { %v8657_v45 = vpop.eup %8656 }
 0xf6e   :  { %v8659_v55 = vpop.eup %8658  ;;  %v1538_v52 = vmul.f32 %v8657_v45, %v1340_v12 }
 0xf6f   :  { %v1558_v56 = vadd.f32 1.0, %v8659_v55 }
 0xf71   :  { %8660 = vrcp.f32 %v1558_v56 }
 0xf7b   :  { %v8661_v32 = vpop.eup %8660 }
 0xf7c   :  { %v1562_v63 = vmul.f32 %v8661_v32, %v1364_v17 }
 0xfb5   :  { %v1541_v53 = vpop.permute.xlu1 %1540 }
 0xfb6   :  { %v1543_v25 = vmul.f32 %v8657_v45, %v1541_v53 }
 0xfb8   :  { %1545 = vrot.lane.b32.xlu1 %v1543_v25, %s9205_s15 }
 0xfd2   :  { %v1565_v57 = vpop.permute.xlu0 %1564 }
 0xfd3   :  { %v1567_v58 = vmul.f32 %v8661_v32, %v1565_v57 }
 0xfd5   :  { %1569 = vrot.lane.b32.xlu0 %v1567_v58, %s9205_s15 }
0x102a   :  { %v1546_v59 = vpop.permute.xlu1 %1545 }
0x102b   :  { %v1548_v60 = vadd.f32 %v1546_v59, %v1538_v52 }
0x102d   :  { %8662 = vtanh.f32 %v1548_v60 }
0x1037   :  { %v8663_v62 = vpop.eup %8662 }
0x1038   :  { %1551 = vrot.lane.b32.xlu1 %v8663_v62, %s9204_s4 }
0x1047   :  { %v1570_v2 = vpop.permute.xlu0 %1569 }
0x1048   :  { %v1572_v40 = vadd.f32 %v1570_v2, %v1562_v63 }
0x104a   :  { %8664 = vtanh.f32 %v1572_v40 }
0x1054   :  { %v8665_v3 = vpop.eup %8664 }
0x1055   :  { %1575 = vrot.lane.b32.xlu0 %v8665_v3, %s9204_s4 }
0x10aa   :  { %v1552_v4 = vpop.permute.xlu1 %1551 }
0x10ab   :  { %v1554_v5 = vmul.f32 %v8657_v45, %v1552_v4 }
0x10ad   :  { %1580 = vrot.lane.b32.xlu1 %v1554_v5, %s9205_s15 }
0x10c7   :  { %v1576_v6 = vpop.permute.xlu0 %1575 }
0x10c8   :  { %v9800_v37 = vmul.f32 %v8661_v32, %v1576_v6 }
0x10ca   :  { %1664 = vrot.lane.b32.xlu0 %v9800_v37, %s9205_s15 }
0x111f   :  { %v9804_v7 = vpop.permute.xlu1 %1580 }
0x1120   :  { %7572 = vmatmul.mubr.msk.f32.vlgmr.msra.gmra.mrb[18].mxu1 %vm343_vm1, %v9804_v7 }
0x1121   :  { %8234 = vmatpush3.bf16.msra.mxu1 %v9490_v29  ;;  %7593 = vmatprep.mubr.msk.f32.mxu1 %vm9203_vm0, %v9202_v1 }
0x1122   :  { %8235 = vmatprep.subr.bf16.mxu1 %v9201_v0 }
0x1125   :  { %8237 = vmatpush3.bf16.msra.mxu1 %v9499_v33 }
0x113c   :  { %v1665_v8 = vpop.permute.xlu0 %1664 }
0x113d   :  { %7583 = vmatmul.mubr.msk.f32.vlgmr.msra.gmra.mrb[22].mxu0 %vm343_vm1, %v1665_v8 }
0x113e   :  { %8240 = vmatpush3.bf16.msra.mxu0 %v9524_v43  ;;  %7604 = vmatprep.mubr.msk.f32.mxu0 %vm9203_vm0, %v9202_v1 }
0x113f   :  { %8241 = vmatprep.subr.bf16.mxu0 %v9201_v0 }
0x1142   :  { %8243 = vmatpush3.bf16.msra.mxu0 %v9544_v51 }
0x1143   :  { %8260 = vmatprep.subr.bf16.mxu0 %v9201_v0 }
0x11f3   :  { %v1658_v29 = vpop.f32.mrb[18].mxu1 }
0x11f4   :  { %v1662_v9 = vadd.f32 %v1658_v29, %v9646_v49  ;;  %v7573_v11 = vpop.f32.mrb[19].mxu1 }
0x11f6   :  { %8666 = vtanh.f32 %v1662_v9  ;;  %v7004_v35 = vmul.f32 -1.442695, %v1662_v9 }
0x1200   :  { %v8667_v33 = vpop.eup %8666 }
0x1201   :  { %1748 = vrot.lane.b32.xlu1 %v8667_v33, %s9204_s4 }
0x1210   :  { %v1734_v12 = vpop.f32.mrb[22].mxu0 }
0x1211   :  { %v1738_v43 = vadd.f32 %v1734_v12, %v9627_v27  ;;  %v7584_v14 = vpop.f32.mrb[23].mxu0 }
0x1213   :  { %8668 = vtanh.f32 %v1738_v43  ;;  %v7005_v18 = vmul.f32 -1.442695, %v1738_v43 }
0x1214   :  { %8670 = vpow2.f32 %v7004_v35 }
0x121d   :  { %v8669_v15 = vpop.eup %8668 }
0x121e   :  { %1772 = vrot.lane.b32.xlu0 %v8669_v15, %s9204_s4  ;;  %v8671_v51 = vpop.eup %8670 }
0x121f   :  { %v1742_v17 = vadd.f32 1.0, %v8671_v51 }
0x1221   :  { %8672 = vrcp.f32 %v1742_v17  ;;  %v2014_v17 = vld [vmem:[%s10861_s5 + $0x8] sm:$0xff] }
0x1222   :  { %8674 = vpow2.f32 %v7005_v18 }
0x122b   :  { %v8673_v49 = vpop.eup %8672 }
0x122c   :  { %v8675_v42 = vpop.eup %8674  ;;  %v1746_v34 = vmul.f32 %v8673_v49, %v1548_v60 }
0x122d   :  { %v1766_v26 = vadd.f32 1.0, %v8675_v42 }
0x122f   :  { %8676 = vrcp.f32 %v1766_v26  ;;  %v2017_v26 = vld [vmem:[%s10861_s5 + $0x20] sm:$0xff] }
0x1239   :  { %v8677_v27 = vpop.eup %8676 }
0x123a   :  { %v1770_v39 = vmul.f32 %v8677_v27, %v1572_v40 }
0x1273   :  { %v1749_v19 = vpop.permute.xlu1 %1748 }
0x1274   :  { %v1751_v20 = vmul.f32 %v8673_v49, %v1749_v19  ;;  %v2020_v19 = vld [vmem:[%s10861_s5 + $0x38] sm:$0xff] }
0x1276   :  { %1753 = vrot.lane.b32.xlu1 %v1751_v20, %s9205_s15 }
0x1290   :  { %v1773_v28 = vpop.permute.xlu0 %1772 }
0x1291   :  { %v1775_v31 = vmul.f32 %v8677_v27, %v1773_v28 }
0x1293   :  { %1777 = vrot.lane.b32.xlu0 %v1775_v31, %s9205_s15 }
0x12e8   :  { %v1754_v30 = vpop.permute.xlu1 %1753 }
0x12e9   :  { %v1756_v36 = vadd.f32 %v1754_v30, %v1746_v34 }
0x12eb   :  { %8678 = vtanh.f32 %v1756_v36 }
0x12f5   :  { %v8679_v38 = vpop.eup %8678 }
0x12f6   :  { %1759 = vrot.lane.b32.xlu1 %v8679_v38, %s9204_s4 }
0x1305   :  { %v1778_v41 = vpop.permute.xlu0 %1777 }
0x1306   :  { %v1780_v47 = vadd.f32 %v1778_v41, %v1770_v39  ;;  %v2022_v39 = vld [vmem:[%s10861_s5 + $0x48] sm:$0xff]  ;;  %v2024_v41 = vld [vmem:[%s10861_s5 + $0x58] sm:$0xff] }
0x1308   :  { %8680 = vtanh.f32 %v1780_v47 }
0x1312   :  { %v8681_v44 = vpop.eup %8680 }
0x1313   :  { %1783 = vrot.lane.b32.xlu0 %v8681_v44, %s9204_s4  ;;  %v2021_v44 = vld [vmem:[%s10861_s5 + $0x40] sm:$0xff] }
0x1368   :  { %v1760_v48 = vpop.permute.xlu1 %1759 }
0x1369   :  { %v1762_v50 = vmul.f32 %v8673_v49, %v1760_v48  ;;  %v2018_v49 = vld [vmem:[%s10861_s5 + $0x28] sm:$0xff] }
0x136a   :  { %v8248_v42 = vpack.c.bf16 %v2020_v19, %v2018_v49 }
0x136b   :  { %1788 = vrot.lane.b32.xlu1 %v1762_v50, %s9205_s15  ;;  %v2195_v50 = vld [vmem:[#allocation4] sm:$0xff] }
0x1385   :  { %v1784_v45 = vpop.permute.xlu0 %1783 }
0x1386   :  { %v1786_v53 = vmul.f32 %v8677_v27, %v1784_v45  ;;  %v2019_v27 = vld [vmem:[%s10861_s5 + $0x30] sm:$0xff]  ;;  %v2196_v45 = vld [vmem:[#allocation4 + $0x8] sm:$0xff] }
0x1387   :  { %v8250_v28 = vpack.c.bf16 %v2019_v27, %v2017_v26 }
0x1388   :  { %1872 = vrot.lane.b32.xlu0 %v1786_v53, %s9205_s15 }
0x13dd   :  { %v9830_v25 = vpop.permute.xlu1 %1788 }
0x13de   :  { %7594 = vmatmul.mubr.msk.f32.vlgmr.msra.gmra.mrb[20].mxu1 %vm343_vm1, %v9830_v25 }
0x13df   :  { %2130 = vmatprep.mubr.f32.mxu1 %v9202_v1 }
0x13fa   :  { %v1873_v55 = vpop.permute.xlu0 %1872 }
0x13fb   :  { %7605 = vmatmul.mubr.msk.f32.vlgmr.msra.gmra.mrb[24].mxu0 %vm343_vm1, %v1873_v55  ;;  %v2026_v55 = vld [vmem:[%s10861_s5 + $0x68] sm:$0xff] }
0x13fc   :  { %7615 = vmatprep.mubr.msk.f32.mxu0 %vm9203_vm0, %v9202_v1 }
0x14b1   :  { %v1866_v56 = vpop.f32.mrb[20].mxu1 }
0x14b2   :  { %v1870_v32 = vadd.f32 %v1866_v56, %v9650_v54  ;;  %v7595_v57 = vpop.f32.mrb[21].mxu1  ;;  %v2028_v56 = vld [vmem:[%s10861_s5 + $0x78] sm:$0xff] }
0x14b3   :  { %v2025_v57 = vld [vmem:[%s10861_s5 + $0x60] sm:$0xff] }
0x14b4   :  { %8682 = vtanh.f32 %v1870_v32  ;;  %v7008_v63 = vmul.f32 -1.442695, %v1870_v32  ;;  %v8256_v32 = vpack.c.bf16 %v2028_v56, %v2026_v55 }
0x14be   :  { %v8683_v58 = vpop.eup %8682 }
0x14bf   :  { %1956 = vrot.lane.b32.xlu1 %v8683_v58, %s9204_s4  ;;  %v2027_v58 = vld [vmem:[%s10861_s5 + $0x70] sm:$0xff] }
0x14ce   :  { %v1942_v52 = vpop.f32.mrb[24].mxu0 }
0x14cf   :  { %v1946_v59 = vadd.f32 %v1942_v52, %v9623_v22  ;;  %v7606_v60 = vpop.f32.mrb[25].mxu0  ;;  %v8258_v52 = vpack.c.bf16 %v2027_v58, %v2025_v57 }
0x14d0   :  { %v2198_v60 = vld [vmem:[#allocation4 + $0x18] sm:$0xff] }
0x14d1   :  { %8684 = vtanh.f32 %v1946_v59  ;;  %v7009_v3 = vmul.f32 -1.442695, %v1946_v59  ;;  %v2197_v59 = vld [vmem:[#allocation4 + $0x10] sm:$0xff] }
0x14d2   :  { %8686 = vpow2.f32 %v7008_v63 }
0x14db   :  { %v8685_v62 = vpop.eup %8684 }
0x14dc   :  { %1980 = vrot.lane.b32.xlu0 %v8685_v62, %s9204_s4  ;;  %v8687_v2 = vpop.eup %8686  ;;  %v9919_v62 = vpack.c.bf16 %v2198_v60, %v2197_v59 }
0x14dd   :  { %v1950_v40 = vadd.f32 1.0, %v8687_v2 }
0x14df   :  { %8688 = vrcp.f32 %v1950_v40 }
0x14e0   :  { %8690 = vpow2.f32 %v7009_v3  ;;  %v2199_v3 = vld [vmem:[#allocation6] sm:$0xff] }
0x14e9   :  { %v9842_v54 = vpop.eup %8688 }
0x14ea   :  { %v8691_v22 = vpop.eup %8690  ;;  %v1954_v11 = vmul.f32 %v9842_v54, %v1756_v36 }
0x14eb   :  { %v1974_v6 = vadd.f32 1.0, %v8691_v22  ;;  %v2201_v22 = vld [vmem:[#allocation6 + $0x10] sm:$0xff] }
0x14ed   :  { %8692 = vrcp.f32 %v1974_v6 }
0x14f7   :  { %v9846_v8 = vpop.eup %8692 }
0x14f8   :  { %v1978_v14 = vmul.f32 %v9846_v8, %v1780_v47  ;;  %v8252_v47 = vpack.c.bf16 %v2024_v41, %v2022_v39 }
0x1531   :  { %v1957_v4 = vpop.permute.xlu1 %1956 }
0x1532   :  { %v1959_v5 = vmul.f32 %v9842_v54, %v1957_v4  ;;  %v2200_v4 = vld [vmem:[#allocation6 + $0x8] sm:$0xff] }
0x1534   :  { %1961 = vrot.lane.b32.xlu1 %v1959_v5, %s9205_s15  ;;  %v9937_v5 = vpack.c.bf16 %v2200_v4, %v2199_v3 }
0x154e   :  { %v1981_v29 = vpop.permute.xlu0 %1980 }
0x154f   :  { %v1983_v9 = vmul.f32 %v9846_v8, %v1981_v29 }
0x1551   :  { %1985 = vrot.lane.b32.xlu0 %v1983_v9, %s9205_s15 }
0x15a6   :  { %v1962_v33 = vpop.permute.xlu1 %1961 }
0x15a7   :  { %v1964_v12 = vadd.f32 %v1962_v33, %v1954_v11 }
0x15a9   :  { %8694 = vtanh.f32 %v1964_v12 }
0x15b3   :  { %v8695_v43 = vpop.eup %8694 }
0x15b4   :  { %1967 = vrot.lane.b32.xlu1 %v8695_v43, %s9204_s4 }
0x15b8   :  { %1793 = vrot.lane.b32.xlu1 %v1786_v53, %s9204_s4  ;;  %v9903_v53 = vpack.c.bf16 %v2196_v45, %v2195_v50 }
0x15ba   :  { %8262 = vmatpush3.bf16.msra.mxu0 %v9903_v53 }
0x15bb   :  { %8263 = vmatprep.subr.bf16.mxu0 %v9201_v0 }
0x15bc   :  { %1377 = vrot.lane.b32.xlu1 %v9770_v21, %s9204_s4  ;;  %v2016_v21 = vld [vmem:[%s10861_s5 + $0x18] sm:$0xff] }
0x15bd   :  { %v8244_v18 = vpack.c.bf16 %v2016_v21, %v2014_v17  ;;  %v2029_v21 = vld [vmem:[#allocation8] sm:$0x3] }
0x15be   :  { %8265 = vmatpush3.bf16.msra.mxu0 %v9919_v62 }
0x15bf   :  { %8245 = vmatprep.subr.bf16.mxu1 %v8244_v18  ;;  %8266 = vmatprep.subr.bf16.mxu0 %v9201_v0  ;;  %v2038_v18 = vrot.slane %v2029_v21, %v9619_v16 }
0x15c0   :  { %961 = vrot.lane.b32.xlu1 %v9714_v61, %s9204_s4  ;;  %v2013_v61 = vld [vmem:[%s10861_s5] sm:$0xff] }
0x15c1   :  { %7616 = vmatmul.mubr.f32.vlgmr.msra.gmra.mrb[26].mxu0 %v9202_v1 }
0x15c2   :  { %7626 = vmatprep.mubr.msk.f32.mxu0 %vm9203_vm0, %v9202_v1  ;;  %8268 = vmatpush3.bf16.msra.mxu0 %v9937_v5 }
0x15c3   :  { %v1986_v15 = vpop.permute.xlu0 %1985  ;;  %8269 = vmatprep.subr.bf16.mxu0 %v9201_v0 }
0x15c4   :  { %v1988_v35 = vadd.f32 %v1986_v15, %v1978_v14  ;;  %544 = vrot.lane.b32.xlu1 %v9658_v23, %s9204_s4  ;;  %v2015_v23 = vld [vmem:[%s10861_s5 + $0x10] sm:$0xff] }
0x15c5   :  { %v8246_v20 = vpack.c.bf16 %v2015_v23, %v2013_v61  ;;  %v2034_v61 = vrot.slane %v2029_v21, %v9614_v13 }
0x15c6   :  { %8696 = vtanh.f32 %v1988_v35 }
0x15c7   :  { %8247 = vmatpush1.bf16.msra.mxu1 %v8246_v20 }
0x15c8   :  { %8249 = vmatprep.subr.bf16.mxu1 %v8248_v42 }
0x15cb   :  { %8251 = vmatpush1.bf16.msra.mxu1 %v8250_v28 }
0x15cc   :  { %8253 = vmatprep.subr.bf16.mxu1 %v8252_v47 }
0x15d0   :  { %v8697_v51 = vpop.eup %8696 }
0x15d1   :  { %1991 = vrot.lane.b32.xlu0 %v8697_v51, %s9204_s4 }
0x1626   :  { %v1968_v31 = vpop.permute.xlu1 %1967 }
0x1627   :  { %v1970_v40 = vmul.f32 %v9842_v54, %v1968_v31 }
0x162a   :  { %v1794_v34 = vpop.permute.xlu1 %1793 }
0x162b   :  { %1796 = vst.msk [vmem:[#allocation2 + $0x8] sm:$0xff] %vm547_vm2, %v1794_v34 }
0x162e   :  { %v1378_v30 = vpop.permute.xlu1 %1377 }
0x162f   :  { %1380 = vst.msk [vmem:[#allocation2 + $0x18] sm:$0xff] %vm547_vm2, %v1378_v30 }
0x1632   :  { %v962_v36 = vpop.permute.xlu1 %961  ;;  %v2006_v9 = vld [vmem:[#allocation2 + $0x8] sm:$0xff] }
0x1633   :  { %964 = vst.msk [vmem:[#allocation2 + $0x28] sm:$0xff] %vm547_vm2, %v962_v36 }
0x1634   :  { %1583 = vst.msk [vmem:[#allocation2 + $0x28] sm:$0xff] %vm343_vm1, %v9804_v7  ;;  %v2023_v7 = vld [vmem:[%s10861_s5 + $0x50] sm:$0xff] }
0x1635   :  { %v8254_v48 = vpack.c.bf16 %v2023_v7, %v2021_v44 }
0x1636   :  { %v545_v38 = vpop.permute.xlu1 %544  ;;  %v2008_v33 = vld [vmem:[#allocation2 + $0x18] sm:$0xff] }
0x1637   :  { %548 = vst.msk [vmem:[#allocation2 + $0x38] sm:$0xff] %vm547_vm2, %v545_v38  ;;  %8255 = vmatpush1.bf16.msra.mxu1 %v8254_v48 }
0x1638   :  { %8257 = vmatprep.subr.bf16.mxu1 %v8256_v32 }
0x163b   :  { %8259 = vmatpush1.bf16.msra.mxu1 %v8258_v52  ;;  %v2010_v12 = vld [vmem:[#allocation2 + $0x28] sm:$0xff] }
0x163c   :  { %8290 = vmatprep.subr.bf16.mxu1 %v9201_v0 }
0x1643   :  { %v1992_v63 = vpop.permute.xlu0 %1991 }
0x1644   :  { %v1994_v2 = vmul.f32 %v9846_v8, %v1992_v63 }
0x1646   :  { %2001 = vrot.lane.b32.xlu0 %v1994_v2, %s9204_s4 }
0x164a   :  { %1585 = vrot.lane.b32.xlu0 %v9800_v37, %s9204_s4  ;;  %v2202_v37 = vld [vmem:[#allocation6 + $0x18] sm:$0xff] }
0x164b   :  { %v9941_v6 = vpack.c.bf16 %v2202_v37, %v2201_v22 }
0x164d   :  { %8271 = vmatpush3.bf16.msra.mxu0 %v9941_v6 }
0x164e   :  { %1169 = vrot.lane.b32.xlu0 %v9742_v46, %s9204_s4  ;;  %8272 = vmatprep.subr.bf16.mxu0 %v9201_v0 }
0x1650   :  { %7627 = vmatmul.mubr.f32.vlgmr.msra.gmra.mrb[28].mxu0 %v9202_v1 }
0x1651   :  { %8274 = vmatpush3.bf16.msra.mxu0 %v9903_v53  ;;  %7637 = vmatprep.mubr.msk.f32.mxu0 %vm9203_vm0, %v9202_v1 }
0x1652   :  { %753 = vrot.lane.b32.xlu0 %v9686_v10, %s9204_s4  ;;  %8275 = vmatprep.subr.bf16.mxu0 %v9201_v0 }
0x1655   :  { %8277 = vmatpush3.bf16.msra.mxu0 %v9919_v62 }
0x1656   :  { %1996 = vrot.lane.b32.xlu0 %v1970_v40, %s9205_s15  ;;  %8278 = vmatprep.subr.bf16.mxu0 %v9201_v0 }
0x1694   :  { %v2270_v15 = vpop.f32.mrb[26].mxu0 }
0x1695   :  { %v7617_v35 = vpop.f32.mrb[27].mxu0 }
0x16b8   :  { %v2002_v10 = vpop.permute.xlu0 %2001 }
0x16b9   :  { %2004 = vst.msk [vmem:[#allocation2] sm:$0xff] %vm547_vm2, %v2002_v10 }
0x16bc   :  { %v1586_v46 = vpop.permute.xlu0 %1585 }
0x16bd   :  { %1588 = vst.msk [vmem:[#allocation2 + $0x10] sm:$0xff] %vm547_vm2, %v1586_v46 }
0x16c0   :  { %v1170_v54 = vpop.permute.xlu0 %1169  ;;  %v2005_v8 = vld [vmem:[#allocation2] sm:$0xff] }
0x16c1   :  { %1172 = vst.msk [vmem:[#allocation2 + $0x20] sm:$0xff] %vm547_vm2, %v1170_v54  ;;  %7010 = vmatmul.mubr.msk.f32.vlgmr.msra.gmra.mrb[22].mxu1 %vm2041_vm3, %v2005_v8 }
0x16c2   :  { %1375 = vst.msk [vmem:[#allocation2 + $0x20] sm:$0xff] %vm343_vm1, %v9774_v24  ;;  %2136 = vmatprep.mubr.f32.mxu1 %v9202_v1  ;;  %8292 = vmatpush3.bf16.msra.mxu1 %v9937_v5 }
0x16c3   :  { %8293 = vmatprep.subr.bf16.mxu1 %v9201_v0 }
0x16c4   :  { %v754_v29 = vpop.permute.xlu0 %753  ;;  %v2007_v11 = vld [vmem:[#allocation2 + $0x10] sm:$0xff] }
0x16c5   :  { %756 = vst.msk [vmem:[#allocation2 + $0x30] sm:$0xff] %vm547_vm2, %v754_v29  ;;  %7011 = vmatmul.mubr.msk.f32.gmra.mrb[24].mxu1 %vm2041_vm3, %v2006_v9 }
0x16c6   :  { %1791 = vst.msk [vmem:[#allocation2 + $0x30] sm:$0xff] %vm343_vm1, %v9830_v25  ;;  %2142 = vmatprep.mubr.f32.mxu1 %v9202_v1  ;;  %8295 = vmatpush3.bf16.msra.mxu1 %v9941_v6 }
0x16c7   :  { %8302 = vmatprep.subr.bf16.mxu1 %v9201_v0 }
0x16c8   :  { %v1997_v24 = vpop.permute.xlu0 %1996 }
0x16c9   :  { %1999 = vst.msk [vmem:[#allocation2 + $0x38] sm:$0xff] %vm343_vm1, %v1997_v24  ;;  %7012 = vmatmul.mubr.msk.f32.gmra.mrb[26].mxu1 %vm2041_vm3, %v2007_v11  ;;  %v2009_v25 = vld [vmem:[#allocation2 + $0x20] sm:$0xff] }
0x16ca   :  { %2148 = vmatprep.mubr.f32.mxu1 %v9202_v1 }
0x16cd   :  { %7013 = vmatmul.mubr.msk.f32.gmra.mrb[28].mxu1 %vm2041_vm3, %v2008_v33  ;;  %v2011_v43 = vld [vmem:[#allocation2 + $0x30] sm:$0xff] }
0x16ce   :  { %2154 = vmatprep.mubr.f32.mxu1 %v9202_v1 }
0x16d0   :  { %v2012_v14 = vld [vmem:[#allocation2 + $0x38] sm:$0xff] }
0x16d1   :  { %7014 = vmatmul.mubr.msk.f32.gmra.mrb[30].mxu1 %vm2041_vm3, %v2009_v25 }
0x16d2   :  { %2160 = vmatprep.mubr.f32.mxu1 %v9202_v1 }
0x16d5   :  { %7015 = vmatmul.mubr.msk.f32.gmra.mrb[32].mxu1 %vm2041_vm3, %v2010_v12 }
0x16d6   :  { %2166 = vmatprep.mubr.f32.mxu1 %v9202_v1 }
0x16d9   :  { %7016 = vmatmul.mubr.msk.f32.gmra.mrb[34].mxu1 %vm2041_vm3, %v2011_v43 }
0x16da   :  { %2172 = vmatprep.mubr.f32.mxu1 %v9202_v1 }
0x16dd   :  { %7017 = vmatmul.mubr.msk.f32.gmra.mrb[36].mxu1 %vm2041_vm3, %v2012_v14 }
0x16de   :  { %7670 = vmatprep.mubr.msk.f32.mxu1 %vm9203_vm0, %v9202_v1 }
0x1723   :  { %v2342_v51 = vpop.f32.mrb[28].mxu0 }
0x1724   :  { %v7628_v17 = vpop.f32.mrb[29].mxu0 }
0x1794   :  { %v2132_v23 = vpop.f32.mrb[22].mxu1 }
0x1795   :  { %v2133_v49 = vadd.f32 %v2132_v23, %v2034_v61  ;;  %v2134_v19 = vpop.f32.mrb[23].mxu1 }
0x1796   :  { %v9984_v20 = vadd.f32 %v2134_v19, %v2038_v18 }
0x1797   :  { %v2274_v42 = vadd.f32 %v2270_v15, %v2133_v49 }
0x1798   :  { %v2138_v26 = vpop.f32.mrb[24].mxu1 }
0x1799   :  { %8698 = vtanh.f32 %v2274_v42  ;;  %v9986_v27 = vadd.f32 %v2138_v26, %v2034_v61  ;;  %v2140_v28 = vpop.f32.mrb[25].mxu1  ;;  %v7018_v10 = vmul.f32 -1.442695, %v2274_v42 }
0x179a   :  { %v9988_v31 = vadd.f32 %v2140_v28, %v2038_v18 }
0x179c   :  { %v2144_v34 = vpop.f32.mrb[26].mxu1 }
0x179d   :  { %v9990_v30 = vadd.f32 %v2144_v34, %v2034_v61  ;;  %v2146_v36 = vpop.f32.mrb[27].mxu1 }
0x179e   :  { %v9992_v38 = vadd.f32 %v2146_v36, %v2038_v18 }
0x17a0   :  { %v2150_v39 = vpop.f32.mrb[28].mxu1 }
0x17a1   :  { %v9994_v41 = vadd.f32 %v2150_v39, %v2034_v61  ;;  %v2152_v47 = vpop.f32.mrb[29].mxu1 }
0x17a2   :  { %v9996_v44 = vadd.f32 %v2152_v47, %v2038_v18 }
0x17a3   :  { %v8699_v7 = vpop.eup %8698 }
0x17a4   :  { %v2156_v48 = vpop.f32.mrb[30].mxu1  ;;  %2356 = vrot.lane.b32.xlu1 %v8699_v7, %s9204_s4 }
0x17a5   :  { %v9999_v50 = vadd.f32 %v2156_v48, %v2034_v61  ;;  %v2158_v45 = vpop.f32.mrb[31].mxu1 }
0x17a6   :  { %v10001_v55 = vadd.f32 %v2158_v45, %v2038_v18 }
0x17a8   :  { %v2162_v56 = vpop.f32.mrb[32].mxu1 }
0x17a9   :  { %v10003_v32 = vadd.f32 %v2162_v56, %v2034_v61  ;;  %v2164_v57 = vpop.f32.mrb[33].mxu1 }
0x17aa   :  { %v10005_v58 = vadd.f32 %v2164_v57, %v2038_v18 }
0x17ac   :  { %v2168_v52 = vpop.f32.mrb[34].mxu1 }
0x17ad   :  { %v10007_v59 = vadd.f32 %v2168_v52, %v2034_v61  ;;  %v2170_v60 = vpop.f32.mrb[35].mxu1 }
0x17ae   :  { %v10009_v63 = vadd.f32 %v2170_v60, %v2038_v18 }
0x17b0   :  { %v2174_v2 = vpop.f32.mrb[36].mxu1 }
0x17b1   :  { %v10011_v40 = vadd.f32 %v2174_v2, %v2034_v61  ;;  %v2176_v3 = vpop.f32.mrb[37].mxu1 }
0x17b2   :  { %v2177_v4 = vadd.f32 %v2176_v3, %v2038_v18 }
0x17b4   :  { %v2346_v22 = vadd.f32 %v2342_v51, %v2177_v4 }
0x17b6   :  { %8700 = vtanh.f32 %v2346_v22  ;;  %v7019_v8 = vmul.f32 -1.442695, %v2346_v22 }
0x17b7   :  { %8702 = vpow2.f32 %v7018_v10 }
0x17c0   :  { %v8701_v37 = vpop.eup %8700 }
0x17c1   :  { %2380 = vrot.lane.b32.xlu0 %v8701_v37, %s9204_s4  ;;  %v8703_v46 = vpop.eup %8702 }
0x17c2   :  { %v2350_v54 = vadd.f32 1.0, %v8703_v46 }
0x17c4   :  { %8704 = vrcp.f32 %v2350_v54 }
0x17c5   :  { %8706 = vpow2.f32 %v7019_v8 }
0x17ce   :  { %v8705_v29 = vpop.eup %8704 }
0x17cf   :  { %v8707_v11 = vpop.eup %8706  ;;  %v2354_v14 = vmul.f32 0.0, %v8705_v29 }
0x17d0   :  { %v2374_v33 = vadd.f32 1.0, %v8707_v11 }
0x17d2   :  { %8708 = vrcp.f32 %v2374_v33 }
0x17dc   :  { %v8709_v25 = vpop.eup %8708 }
0x17dd   :  { %v2378_v17 = vmul.f32 0.0, %v8709_v25 }
0x1816   :  { %v2357_v9 = vpop.permute.xlu1 %2356 }
0x1817   :  { %v2359_v24 = vmul.f32 %v8705_v29, %v2357_v9 }
0x1819   :  { %2361 = vrot.lane.b32.xlu1 %v2359_v24, %s9205_s15 }
0x1833   :  { %v2381_v12 = vpop.permute.xlu0 %2380 }
0x1834   :  { %v2383_v43 = vmul.f32 %v8709_v25, %v2381_v12 }
0x1836   :  { %2385 = vrot.lane.b32.xlu0 %v2383_v43, %s9205_s15 }
0x188b   :  { %v2362_v15 = vpop.permute.xlu1 %2361 }
0x188c   :  { %v2364_v35 = vadd.f32 %v2362_v15, %v2354_v14 }
0x188e   :  { %8710 = vtanh.f32 %v2364_v35 }
0x1898   :  { %v8711_v51 = vpop.eup %8710 }
0x1899   :  { %2367 = vrot.lane.b32.xlu1 %v8711_v51, %s9204_s4 }
0x18a8   :  { %v2386_v21 = vpop.permute.xlu0 %2385 }
0x18a9   :  { %v2388_v61 = vadd.f32 %v2386_v21, %v2378_v17 }
0x18ab   :  { %8712 = vtanh.f32 %v2388_v61 }
0x18b5   :  { %v8713_v18 = vpop.eup %8712 }
0x18b6   :  { %2391 = vrot.lane.b32.xlu0 %v8713_v18, %s9204_s4 }
0x190b   :  { %v2368_v23 = vpop.permute.xlu1 %2367 }
0x190c   :  { %v2370_v49 = vmul.f32 %v8705_v29, %v2368_v23 }
0x190e   :  { %2396 = vrot.lane.b32.xlu1 %v2370_v49, %s9205_s15 }
0x1928   :  { %v2392_v19 = vpop.permute.xlu0 %2391 }
0x1929   :  { %v10019_v42 = vmul.f32 %v8709_v25, %v2392_v19 }
0x192b   :  { %2480 = vrot.lane.b32.xlu0 %v10019_v42, %s9205_s15 }
0x1980   :  { %v2397_v26 = vpop.permute.xlu1 %2396 }
0x1981   :  { %2399 = vst.msk [vmem:[#allocation2] sm:$0xff] %vm343_vm1, %v2397_v26  ;;  %7638 = vmatmul.mubr.msk.f32.vlgmr.msra.gmra.mrb[30].mxu0 %vm343_vm1, %v2397_v26 }
0x1982   :  { %8280 = vmatpush3.bf16.msra.mxu0 %v9937_v5  ;;  %7648 = vmatprep.mubr.msk.f32.mxu0 %vm9203_vm0, %v9202_v1 }
0x1983   :  { %8281 = vmatprep.subr.bf16.mxu0 %v9201_v0 }
0x1986   :  { %8283 = vmatpush3.bf16.msra.mxu0 %v9941_v6 }
0x1987   :  { %8284 = vmatprep.subr.bf16.mxu0 %v9201_v0 }
0x199d   :  { %v2481_v28 = vpop.permute.xlu0 %2480 }
0x199e   :  { %7649 = vmatmul.mubr.msk.f32.vlgmr.msra.gmra.mrb[32].mxu0 %vm343_vm1, %v2481_v28 }
0x199f   :  { %8286 = vmatpush3.bf16.msra.mxu0 %v9903_v53  ;;  %7659 = vmatprep.mubr.msk.f32.mxu0 %vm9203_vm0, %v9202_v1 }
0x19a0   :  { %8287 = vmatprep.subr.bf16.mxu0 %v9201_v0 }
0x19a3   :  { %8289 = vmatpush3.bf16.msra.mxu0 %v9919_v62 }
0x19a4   :  { %8296 = vmatprep.subr.bf16.mxu0 %v9201_v0 }
0x1a54   :  { %v2474_v34 = vpop.f32.mrb[30].mxu0 }
0x1a55   :  { %v2478_v36 = vadd.f32 %v2474_v34, %v9986_v27  ;;  %v7639_v39 = vpop.f32.mrb[31].mxu0 }
0x1a57   :  { %8714 = vtanh.f32 %v2478_v36  ;;  %v7022_v57 = vmul.f32 -1.442695, %v2478_v36 }
0x1a61   :  { %v8715_v47 = vpop.eup %8714 }
0x1a62   :  { %2564 = vrot.lane.b32.xlu0 %v8715_v47, %s9204_s4 }
0x1a71   :  { %v2550_v7 = vpop.f32.mrb[32].mxu0 }
0x1a72   :  { %v2554_v48 = vadd.f32 %v2550_v7, %v10009_v63  ;;  %v7650_v45 = vpop.f32.mrb[33].mxu0 }
0x1a74   :  { %8716 = vtanh.f32 %v2554_v48  ;;  %v7023_v2 = vmul.f32 -1.442695, %v2554_v48 }
0x1a75   :  { %8718 = vpow2.f32 %v7022_v57 }
0x1a7e   :  { %v8717_v56 = vpop.eup %8716 }
0x1a7f   :  { %2588 = vrot.lane.b32.xlu1 %v8717_v56, %s9204_s4  ;;  %v8719_v52 = vpop.eup %8718 }
0x1a80   :  { %v2558_v60 = vadd.f32 1.0, %v8719_v52 }
0x1a82   :  { %8720 = vrcp.f32 %v2558_v60 }
0x1a83   :  { %8722 = vpow2.f32 %v7023_v2 }
0x1a8c   :  { %v8721_v27 = vpop.eup %8720 }
0x1a8d   :  { %v8723_v22 = vpop.eup %8722  ;;  %v2562_v54 = vmul.f32 %v8721_v27, %v2364_v35 }
0x1a8e   :  { %v2582_v37 = vadd.f32 1.0, %v8723_v22 }
0x1a90   :  { %8724 = vrcp.f32 %v2582_v37 }
0x1a9a   :  { %v8725_v63 = vpop.eup %8724 }
0x1a9b   :  { %v2586_v24 = vmul.f32 %v8725_v63, %v2388_v61 }
0x1ad4   :  { %v2565_v3 = vpop.permute.xlu0 %2564 }
0x1ad5   :  { %v2567_v4 = vmul.f32 %v8721_v27, %v2565_v3 }
0x1ad7   :  { %2569 = vrot.lane.b32.xlu0 %v2567_v4, %s9205_s15 }
0x1af1   :  { %v2589_v10 = vpop.permute.xlu1 %2588 }
0x1af2   :  { %v2591_v46 = vmul.f32 %v8725_v63, %v2589_v10 }
0x1af4   :  { %2593 = vrot.lane.b32.xlu1 %v2591_v46, %s9205_s15 }
0x1b49   :  { %v2570_v8 = vpop.permute.xlu0 %2569 }
0x1b4a   :  { %v2572_v29 = vadd.f32 %v2570_v8, %v2562_v54 }
0x1b4c   :  { %8726 = vtanh.f32 %v2572_v29 }
0x1b56   :  { %v8727_v9 = vpop.eup %8726 }
0x1b57   :  { %2575 = vrot.lane.b32.xlu0 %v8727_v9, %s9204_s4 }
0x1b66   :  { %v2594_v11 = vpop.permute.xlu1 %2593 }
0x1b67   :  { %v2596_v33 = vadd.f32 %v2594_v11, %v2586_v24 }
0x1b69   :  { %8728 = vtanh.f32 %v2596_v33 }
0x1b73   :  { %v8729_v25 = vpop.eup %8728 }
0x1b74   :  { %2599 = vrot.lane.b32.xlu1 %v8729_v25, %s9204_s4 }
0x1bc9   :  { %v2576_v12 = vpop.permute.xlu0 %2575 }
0x1bca   :  { %v2578_v43 = vmul.f32 %v8721_v27, %v2576_v12 }
0x1bcc   :  { %2604 = vrot.lane.b32.xlu0 %v2578_v43, %s9205_s15 }
0x1be6   :  { %v2600_v14 = vpop.permute.xlu1 %2599 }
0x1be7   :  { %v10047_v15 = vmul.f32 %v8725_v63, %v2600_v14 }
0x1be9   :  { %2688 = vrot.lane.b32.xlu1 %v10047_v15, %s9205_s15 }
0x1c3e   :  { %v2605_v35 = vpop.permute.xlu0 %2604 }
0x1c3f   :  { %2607 = vst.msk [vmem:[#allocation2 + $0x8] sm:$0xff] %vm343_vm1, %v2605_v35  ;;  %7660 = vmatmul.mubr.msk.f32.vlgmr.msra.gmra.mrb[34].mxu0 %vm343_vm1, %v2605_v35 }
0x1c40   :  { %8298 = vmatpush3.bf16.msra.mxu0 %v9903_v53  ;;  %7681 = vmatprep.mubr.msk.f32.mxu0 %vm9203_vm0, %v9202_v1 }
0x1c41   :  { %8299 = vmatprep.subr.bf16.mxu0 %v9201_v0 }
0x1c44   :  { %8301 = vmatpush3.bf16.msra.mxu0 %v9919_v62 }
0x1c45   :  { %8308 = vmatprep.subr.bf16.mxu0 %v9201_v0 }
0x1c5b   :  { %v2689_v51 = vpop.permute.xlu1 %2688 }
0x1c5c   :  { %7671 = vmatmul.mubr.msk.f32.vlgmr.msra.gmra.mrb[38].mxu1 %vm343_vm1, %v2689_v51 }
0x1c5d   :  { %8304 = vmatpush3.bf16.msra.mxu1 %v9937_v5  ;;  %7692 = vmatprep.mubr.msk.f32.mxu1 %vm9203_vm0, %v9202_v1 }
0x1c5e   :  { %8305 = vmatprep.subr.bf16.mxu1 %v9201_v0 }
0x1c61   :  { %8307 = vmatpush3.bf16.msra.mxu1 %v9941_v6 }
0x1c62   :  { %8314 = vmatprep.subr.bf16.mxu1 %v9201_v0 }
0x1d12   :  { %v2682_v17 = vpop.f32.mrb[34].mxu0 }
0x1d13   :  { %v2686_v21 = vadd.f32 %v2682_v17, %v9990_v30  ;;  %v7661_v61 = vpop.f32.mrb[35].mxu0 }
0x1d15   :  { %8730 = vtanh.f32 %v2686_v21  ;;  %v7026_v28 = vmul.f32 -1.442695, %v2686_v21 }
0x1d1f   :  { %v8731_v18 = vpop.eup %8730 }
0x1d20   :  { %2772 = vrot.lane.b32.xlu0 %v8731_v18, %s9204_s4 }
0x1d2f   :  { %v2758_v23 = vpop.f32.mrb[38].mxu1 }
0x1d30   :  { %v2762_v49 = vadd.f32 %v2758_v23, %v10005_v58  ;;  %v7672_v19 = vpop.f32.mrb[39].mxu1 }
0x1d32   :  { %8732 = vtanh.f32 %v2762_v49  ;;  %v7027_v39 = vmul.f32 -1.442695, %v2762_v49 }
0x1d33   :  { %8734 = vpow2.f32 %v7026_v28 }
0x1d3c   :  { %v8733_v26 = vpop.eup %8732 }
0x1d3d   :  { %2796 = vrot.lane.b32.xlu1 %v8733_v26, %s9204_s4  ;;  %v8735_v34 = vpop.eup %8734 }
0x1d3e   :  { %v2766_v36 = vadd.f32 1.0, %v8735_v34 }
0x1d40   :  { %8736 = vrcp.f32 %v2766_v36 }
0x1d41   :  { %8738 = vpow2.f32 %v7027_v39 }
0x1d4a   :  { %v8737_v30 = vpop.eup %8736 }
0x1d4b   :  { %v8739_v48 = vpop.eup %8738  ;;  %v2770_v52 = vmul.f32 %v8737_v30, %v2572_v29 }
0x1d4c   :  { %v2790_v45 = vadd.f32 1.0, %v8739_v48 }
0x1d4e   :  { %8740 = vrcp.f32 %v2790_v45 }
0x1d58   :  { %v8741_v58 = vpop.eup %8740 }
0x1d59   :  { %v2794_v3 = vmul.f32 %v8741_v58, %v2596_v33 }
0x1d92   :  { %v2773_v47 = vpop.permute.xlu0 %2772 }
0x1d93   :  { %v2775_v7 = vmul.f32 %v8737_v30, %v2773_v47 }
0x1d95   :  { %2777 = vrot.lane.b32.xlu0 %v2775_v7, %s9205_s15 }
0x1daf   :  { %v2797_v56 = vpop.permute.xlu1 %2796 }
0x1db0   :  { %v2799_v57 = vmul.f32 %v8741_v58, %v2797_v56 }
0x1db2   :  { %2801 = vrot.lane.b32.xlu1 %v2799_v57, %s9205_s15 }
0x1e07   :  { %v2778_v60 = vpop.permute.xlu0 %2777 }
0x1e08   :  { %v2780_v2 = vadd.f32 %v2778_v60, %v2770_v52 }
0x1e0a   :  { %8742 = vtanh.f32 %v2780_v2 }
0x1e14   :  { %v8743_v27 = vpop.eup %8742 }
0x1e15   :  { %2783 = vrot.lane.b32.xlu0 %v8743_v27, %s9204_s4 }
0x1e24   :  { %v2802_v4 = vpop.permute.xlu1 %2801 }
0x1e25   :  { %v2804_v22 = vadd.f32 %v2802_v4, %v2794_v3 }
0x1e27   :  { %8744 = vtanh.f32 %v2804_v22 }
0x1e31   :  { %v8745_v37 = vpop.eup %8744 }
0x1e32   :  { %2807 = vrot.lane.b32.xlu1 %v8745_v37, %s9204_s4 }
0x1e87   :  { %v2784_v63 = vpop.permute.xlu0 %2783 }
0x1e88   :  { %v2786_v10 = vmul.f32 %v8737_v30, %v2784_v63 }
0x1e8a   :  { %2812 = vrot.lane.b32.xlu0 %v2786_v10, %s9205_s15 }
0x1ea4   :  { %v2808_v46 = vpop.permute.xlu1 %2807 }
0x1ea5   :  { %v10075_v54 = vmul.f32 %v8741_v58, %v2808_v46 }
0x1ea7   :  { %2896 = vrot.lane.b32.xlu1 %v10075_v54, %s9205_s15 }
0x1efc   :  { %v2813_v8 = vpop.permute.xlu0 %2812 }
0x1efd   :  { %2815 = vst.msk [vmem:[#allocation2 + $0x10] sm:$0xff] %vm343_vm1, %v2813_v8  ;;  %7682 = vmatmul.mubr.msk.f32.vlgmr.msra.gmra.mrb[36].mxu0 %vm343_vm1, %v2813_v8 }
0x1efe   :  { %8310 = vmatpush3.bf16.msra.mxu0 %v9903_v53  ;;  %7703 = vmatprep.mubr.msk.f32.mxu0 %vm9203_vm0, %v9202_v1 }
0x1eff   :  { %8311 = vmatprep.subr.bf16.mxu0 %v9201_v0 }
0x1f02   :  { %8313 = vmatpush3.bf16.msra.mxu0 %v9919_v62 }
0x1f03   :  { %8320 = vmatprep.subr.bf16.mxu0 %v9201_v0 }
0x1f19   :  { %v2897_v29 = vpop.permute.xlu1 %2896 }
0x1f1a   :  { %7693 = vmatmul.mubr.msk.f32.vlgmr.msra.gmra.mrb[40].mxu1 %vm343_vm1, %v2897_v29 }
0x1f1b   :  { %8316 = vmatpush3.bf16.msra.mxu1 %v9937_v5  ;;  %7714 = vmatprep.mubr.msk.f32.mxu1 %vm9203_vm0, %v9202_v1 }
0x1f1c   :  { %8317 = vmatprep.subr.bf16.mxu1 %v9201_v0 }
0x1f1f   :  { %8319 = vmatpush3.bf16.msra.mxu1 %v9941_v6 }
0x1f20   :  { %8326 = vmatprep.subr.bf16.mxu1 %v9201_v0 }
0x1fd0   :  { %v2890_v9 = vpop.f32.mrb[36].mxu0 }
0x1fd1   :  { %v2894_v24 = vadd.f32 %v2890_v9, %v9994_v41  ;;  %v7683_v11 = vpop.f32.mrb[37].mxu0 }
0x1fd3   :  { %8746 = vtanh.f32 %v2894_v24  ;;  %v7030_v35 = vmul.f32 -1.442695, %v2894_v24 }
0x1fdd   :  { %v8747_v33 = vpop.eup %8746 }
0x1fde   :  { %2980 = vrot.lane.b32.xlu0 %v8747_v33, %s9204_s4 }
0x1fed   :  { %v2966_v25 = vpop.f32.mrb[40].mxu1 }
0x1fee   :  { %v2970_v12 = vadd.f32 %v2966_v25, %v10001_v55  ;;  %v7694_v43 = vpop.f32.mrb[41].mxu1 }
0x1ff0   :  { %8748 = vtanh.f32 %v2970_v12  ;;  %v7031_v21 = vmul.f32 -1.442695, %v2970_v12 }
0x1ff1   :  { %8750 = vpow2.f32 %v7030_v35 }
0x1ffa   :  { %v8749_v14 = vpop.eup %8748 }
0x1ffb   :  { %3004 = vrot.lane.b32.xlu1 %v8749_v14, %s9204_s4  ;;  %v8751_v51 = vpop.eup %8750 }
0x1ffc   :  { %v2974_v17 = vadd.f32 1.0, %v8751_v51 }
0x1ffe   :  { %8752 = vrcp.f32 %v2974_v17 }
0x1fff   :  { %8754 = vpow2.f32 %v7031_v21 }
0x2008   :  { %v8753_v41 = vpop.eup %8752 }
0x2009   :  { %v8755_v23 = vpop.eup %8754  ;;  %v2978_v28 = vmul.f32 %v8753_v41, %v2780_v2 }
0x200a   :  { %v2998_v49 = vadd.f32 1.0, %v8755_v23 }
0x200c   :  { %8756 = vrcp.f32 %v2998_v49 }
0x2016   :  { %v8757_v55 = vpop.eup %8756 }
0x2017   :  { %v3002_v30 = vmul.f32 %v8757_v55, %v2804_v22 }
0x2050   :  { %v2981_v61 = vpop.permute.xlu0 %2980 }
0x2051   :  { %v2983_v18 = vmul.f32 %v8753_v41, %v2981_v61 }
0x2053   :  { %2985 = vrot.lane.b32.xlu0 %v2983_v18, %s9205_s15 }
0x206d   :  { %v3005_v19 = vpop.permute.xlu1 %3004 }
0x206e   :  { %v3007_v26 = vmul.f32 %v8757_v55, %v3005_v19 }
0x2070   :  { %3009 = vrot.lane.b32.xlu1 %v3007_v26, %s9205_s15 }
0x20c5   :  { %v2986_v34 = vpop.permute.xlu0 %2985 }
0x20c6   :  { %v2988_v36 = vadd.f32 %v2986_v34, %v2978_v28 }
0x20c8   :  { %8758 = vtanh.f32 %v2988_v36 }
0x20d2   :  { %v8759_v39 = vpop.eup %8758 }
0x20d3   :  { %2991 = vrot.lane.b32.xlu0 %v8759_v39, %s9204_s4 }
0x20e2   :  { %v3010_v47 = vpop.permute.xlu1 %3009 }
0x20e3   :  { %v3012_v7 = vadd.f32 %v3010_v47, %v3002_v30 }
0x20e5   :  { %8760 = vtanh.f32 %v3012_v7 }
0x20ef   :  { %v8761_v48 = vpop.eup %8760 }
0x20f0   :  { %3015 = vrot.lane.b32.xlu1 %v8761_v48, %s9204_s4 }
0x2145   :  { %v2992_v45 = vpop.permute.xlu0 %2991 }
0x2146   :  { %v2994_v58 = vmul.f32 %v8753_v41, %v2992_v45 }
0x2148   :  { %3020 = vrot.lane.b32.xlu0 %v2994_v58, %s9205_s15 }
0x2162   :  { %v3016_v56 = vpop.permute.xlu1 %3015 }
0x2163   :  { %v10103_v57 = vmul.f32 %v8757_v55, %v3016_v56 }
0x2165   :  { %3104 = vrot.lane.b32.xlu1 %v10103_v57, %s9205_s15 }
0x21ba   :  { %v3021_v52 = vpop.permute.xlu0 %3020 }
0x21bb   :  { %3023 = vst.msk [vmem:[#allocation2 + $0x18] sm:$0xff] %vm343_vm1, %v3021_v52  ;;  %7704 = vmatmul.mubr.msk.f32.vlgmr.msra.gmra.mrb[38].mxu0 %vm343_vm1, %v3021_v52 }
0x21bc   :  { %8322 = vmatpush3.bf16.msra.mxu0 %v9903_v53  ;;  %7725 = vmatprep.mubr.msk.f32.mxu0 %vm9203_vm0, %v9202_v1 }
0x21bd   :  { %8323 = vmatprep.subr.bf16.mxu0 %v9201_v0 }
0x21c0   :  { %8325 = vmatpush3.bf16.msra.mxu0 %v9919_v62 }
0x21c1   :  { %8332 = vmatprep.subr.bf16.mxu0 %v9201_v0 }
0x21d7   :  { %v3105_v60 = vpop.permute.xlu1 %3104 }
0x21d8   :  { %7715 = vmatmul.mubr.msk.f32.vlgmr.msra.gmra.mrb[42].mxu1 %vm343_vm1, %v3105_v60 }
0x21d9   :  { %8328 = vmatpush3.bf16.msra.mxu1 %v9937_v5  ;;  %7736 = vmatprep.mubr.msk.f32.mxu1 %vm9203_vm0, %v9202_v1 }
0x21da   :  { %8329 = vmatprep.subr.bf16.mxu1 %v9201_v0 }
0x21dd   :  { %8331 = vmatpush3.bf16.msra.mxu1 %v9941_v6 }
0x21de   :  { %8338 = vmatprep.subr.bf16.mxu1 %v9201_v0 }
0x228e   :  { %v3098_v2 = vpop.f32.mrb[38].mxu0 }
0x228f   :  { %v3102_v27 = vadd.f32 %v3098_v2, %v9999_v50  ;;  %v7705_v3 = vpop.f32.mrb[39].mxu0 }
0x2291   :  { %8762 = vtanh.f32 %v3102_v27  ;;  %v7034_v46 = vmul.f32 -1.442695, %v3102_v27 }
0x229b   :  { %v8763_v4 = vpop.eup %8762 }
0x229c   :  { %3188 = vrot.lane.b32.xlu0 %v8763_v4, %s9204_s4 }
0x22ab   :  { %v3174_v22 = vpop.f32.mrb[42].mxu1 }
0x22ac   :  { %v3178_v37 = vadd.f32 %v3174_v22, %v9996_v44  ;;  %v7716_v63 = vpop.f32.mrb[43].mxu1 }
0x22ae   :  { %8764 = vtanh.f32 %v3178_v37  ;;  %v7035_v9 = vmul.f32 -1.442695, %v3178_v37 }
0x22af   :  { %8766 = vpow2.f32 %v7034_v46 }
0x22b8   :  { %v8765_v10 = vpop.eup %8764 }
0x22b9   :  { %3212 = vrot.lane.b32.xlu1 %v8765_v10, %s9204_s4  ;;  %v8767_v8 = vpop.eup %8766 }
0x22ba   :  { %v3182_v29 = vadd.f32 1.0, %v8767_v8 }
0x22bc   :  { %8768 = vrcp.f32 %v3182_v29 }
0x22bd   :  { %8770 = vpow2.f32 %v7035_v9 }
0x22c6   :  { %v8769_v50 = vpop.eup %8768 }
0x22c7   :  { %v8771_v33 = vpop.eup %8770  ;;  %v3186_v14 = vmul.f32 %v8769_v50, %v2988_v36 }
0x22c8   :  { %v3206_v25 = vadd.f32 1.0, %v8771_v33 }
0x22ca   :  { %8772 = vrcp.f32 %v3206_v25 }
0x22d4   :  { %v8773_v44 = vpop.eup %8772 }
0x22d5   :  { %v3210_v21 = vmul.f32 %v8773_v44, %v3012_v7 }
0x230e   :  { %v3189_v24 = vpop.permute.xlu0 %3188 }
0x230f   :  { %v3191_v11 = vmul.f32 %v8769_v50, %v3189_v24 }
0x2311   :  { %3193 = vrot.lane.b32.xlu0 %v3191_v11, %s9205_s15 }
0x232b   :  { %v3213_v12 = vpop.permute.xlu1 %3212 }
0x232c   :  { %v3215_v43 = vmul.f32 %v8773_v44, %v3213_v12 }
0x232e   :  { %3217 = vrot.lane.b32.xlu1 %v3215_v43, %s9205_s15 }
0x2383   :  { %v3194_v35 = vpop.permute.xlu0 %3193 }
0x2384   :  { %v3196_v51 = vadd.f32 %v3194_v35, %v3186_v14 }
0x2386   :  { %8774 = vtanh.f32 %v3196_v51 }
0x2390   :  { %v8775_v17 = vpop.eup %8774 }
0x2391   :  { %3199 = vrot.lane.b32.xlu0 %v8775_v17, %s9204_s4 }
0x23a0   :  { %v3218_v41 = vpop.permute.xlu1 %3217 }
0x23a1   :  { %v3220_v61 = vadd.f32 %v3218_v41, %v3210_v21 }
0x23a3   :  { %8776 = vtanh.f32 %v3220_v61 }
0x23ad   :  { %v8777_v18 = vpop.eup %8776 }
0x23ae   :  { %3223 = vrot.lane.b32.xlu1 %v8777_v18, %s9204_s4 }
0x2403   :  { %v3200_v23 = vpop.permute.xlu0 %3199 }
0x2404   :  { %v3202_v49 = vmul.f32 %v8769_v50, %v3200_v23 }
0x2406   :  { %3228 = vrot.lane.b32.xlu0 %v3202_v49, %s9205_s15 }
0x2420   :  { %v3224_v55 = vpop.permute.xlu1 %3223 }
0x2421   :  { %v10131_v19 = vmul.f32 %v8773_v44, %v3224_v55 }
0x2423   :  { %3312 = vrot.lane.b32.xlu1 %v10131_v19, %s9205_s15 }
0x2478   :  { %v10135_v26 = vpop.permute.xlu0 %3228 }
0x2479   :  { %7726 = vmatmul.mubr.msk.f32.vlgmr.msra.gmra.mrb[40].mxu0 %vm343_vm1, %v10135_v26 }
0x247a   :  { %8334 = vmatpush3.bf16.msra.mxu0 %v9903_v53  ;;  %7747 = vmatprep.mubr.msk.f32.mxu0 %vm9203_vm0, %v9202_v1 }
0x247b   :  { %8335 = vmatprep.subr.bf16.mxu0 %v9201_v0 }
0x247e   :  { %8337 = vmatpush3.bf16.msra.mxu0 %v9919_v62 }
0x247f   :  { %8344 = vmatprep.subr.bf16.mxu0 %v9201_v0 }
0x2495   :  { %v3313_v28 = vpop.permute.xlu1 %3312 }
0x2496   :  { %7737 = vmatmul.mubr.msk.f32.vlgmr.msra.gmra.mrb[44].mxu1 %vm343_vm1, %v3313_v28 }
0x2497   :  { %8340 = vmatpush3.bf16.msra.mxu1 %v9937_v5  ;;  %7758 = vmatprep.mubr.msk.f32.mxu1 %vm9203_vm0, %v9202_v1 }
0x2498   :  { %8341 = vmatprep.subr.bf16.mxu1 %v9201_v0 }
0x249b   :  { %8343 = vmatpush3.bf16.msra.mxu1 %v9941_v6 }
0x249c   :  { %8350 = vmatprep.subr.bf16.mxu1 %v9201_v0 }
0x254c   :  { %v3306_v34 = vpop.f32.mrb[40].mxu0 }
0x254d   :  { %v3310_v36 = vadd.f32 %v3306_v34, %v10003_v32  ;;  %v7727_v39 = vpop.f32.mrb[41].mxu0 }
0x254f   :  { %8778 = vtanh.f32 %v3310_v36  ;;  %v7038_v58 = vmul.f32 -1.442695, %v3310_v36 }
0x2559   :  { %v8779_v30 = vpop.eup %8778 }
0x255a   :  { %3396 = vrot.lane.b32.xlu0 %v8779_v30, %s9204_s4 }
0x2569   :  { %v3382_v47 = vpop.f32.mrb[44].mxu1 }
0x256a   :  { %v3386_v7 = vadd.f32 %v3382_v47, %v9992_v38  ;;  %v7738_v48 = vpop.f32.mrb[45].mxu1 }
0x256c   :  { %8780 = vtanh.f32 %v3386_v7  ;;  %v7039_v60 = vmul.f32 -1.442695, %v3386_v7 }
0x256d   :  { %8782 = vpow2.f32 %v7038_v58 }
0x2576   :  { %v8781_v45 = vpop.eup %8780 }
0x2577   :  { %3420 = vrot.lane.b32.xlu1 %v8781_v45, %s9204_s4  ;;  %v8783_v56 = vpop.eup %8782 }
0x2578   :  { %v3390_v52 = vadd.f32 1.0, %v8783_v56 }
0x257a   :  { %8784 = vrcp.f32 %v3390_v52 }
0x257b   :  { %8786 = vpow2.f32 %v7039_v60 }
0x2584   :  { %v8785_v32 = vpop.eup %8784 }
0x2585   :  { %v8787_v3 = vpop.eup %8786  ;;  %v3394_v63 = vmul.f32 %v8785_v32, %v3196_v51 }
0x2586   :  { %v3414_v4 = vadd.f32 1.0, %v8787_v3 }
0x2588   :  { %8788 = vrcp.f32 %v3414_v4 }
0x2592   :  { %v8789_v38 = vpop.eup %8788 }
0x2593   :  { %v3418_v29 = vmul.f32 %v8789_v38, %v3220_v61 }
0x25cc   :  { %v3397_v2 = vpop.permute.xlu0 %3396 }
0x25cd   :  { %v3399_v27 = vmul.f32 %v8785_v32, %v3397_v2 }
0x25cf   :  { %3401 = vrot.lane.b32.xlu0 %v3399_v27, %s9205_s15 }
0x25e9   :  { %v3421_v22 = vpop.permute.xlu1 %3420 }
0x25ea   :  { %v3423_v37 = vmul.f32 %v8789_v38, %v3421_v22 }
0x25ec   :  { %3425 = vrot.lane.b32.xlu1 %v3423_v37, %s9205_s15 }
0x2641   :  { %v3402_v10 = vpop.permute.xlu0 %3401 }
0x2642   :  { %v3404_v46 = vadd.f32 %v3402_v10, %v3394_v63 }
0x2644   :  { %8790 = vtanh.f32 %v3404_v46 }
0x264e   :  { %v8791_v8 = vpop.eup %8790 }
0x264f   :  { %3407 = vrot.lane.b32.xlu0 %v8791_v8, %s9204_s4 }
0x265e   :  { %v3426_v9 = vpop.permute.xlu1 %3425 }
0x265f   :  { %v3428_v50 = vadd.f32 %v3426_v9, %v3418_v29 }
0x2661   :  { %8792 = vtanh.f32 %v3428_v50 }
0x266b   :  { %v8793_v24 = vpop.eup %8792 }
0x266c   :  { %3431 = vrot.lane.b32.xlu1 %v8793_v24, %s9204_s4 }
0x26c1   :  { %v3408_v11 = vpop.permute.xlu0 %3407 }
0x26c2   :  { %v3410_v33 = vmul.f32 %v8785_v32, %v3408_v11 }
0x26c4   :  { %3436 = vrot.lane.b32.xlu0 %v3410_v33, %s9205_s15 }
0x26de   :  { %v3432_v25 = vpop.permute.xlu1 %3431 }
0x26df   :  { %v10161_v44 = vmul.f32 %v8789_v38, %v3432_v25 }
0x26e1   :  { %3520 = vrot.lane.b32.xlu1 %v10161_v44, %s9205_s15 }
0x2736   :  { %v10165_v12 = vpop.permute.xlu0 %3436 }
0x2737   :  { %7748 = vmatmul.mubr.msk.f32.vlgmr.msra.gmra.mrb[42].mxu0 %vm343_vm1, %v10165_v12 }
0x2738   :  { %8346 = vmatpush3.bf16.msra.mxu0 %v9903_v53  ;;  %7769 = vmatprep.mubr.msk.f32.mxu0 %vm9203_vm0, %v9202_v1 }
0x2739   :  { %8347 = vmatprep.subr.bf16.mxu0 %v9201_v0 }
0x273c   :  { %8349 = vmatpush3.bf16.msra.mxu0 %v9919_v62 }
0x2753   :  { %v3521_v43 = vpop.permute.xlu1 %3520 }
0x2754   :  { %7759 = vmatmul.mubr.msk.f32.vlgmr.msra.gmra.mrb[46].mxu1 %vm343_vm1, %v3521_v43 }
0x2755   :  { %8352 = vmatpush3.bf16.msra.mxu1 %v9937_v5  ;;  %7780 = vmatprep.mubr.msk.f32.mxu1 %vm9203_vm0, %v9202_v1 }
0x2756   :  { %8353 = vmatprep.subr.bf16.mxu1 %v9201_v0 }
0x2759   :  { %8355 = vmatpush3.bf16.msra.mxu1 %v9941_v6 }
0x275a   :  { %8372 = vmatprep.subr.bf16.mxu1 %v9201_v0 }
0x280a   :  { %v3514_v53 = vpop.f32.mrb[42].mxu0 }
0x280b   :  { %v3518_v14 = vadd.f32 %v3514_v53, %v10007_v59  ;;  %v7749_v35 = vpop.f32.mrb[43].mxu0 }
0x280d   :  { %8794 = vtanh.f32 %v3518_v14  ;;  %v7042_v41 = vmul.f32 -1.442695, %v3518_v14 }
0x2817   :  { %v8795_v62 = vpop.eup %8794 }
0x2818   :  { %3604 = vrot.lane.b32.xlu0 %v8795_v62, %s9204_s4 }
0x2827   :  { %v3590_v51 = vpop.f32.mrb[46].mxu1 }
0x2828   :  { %v3594_v5 = vadd.f32 %v3590_v51, %v9988_v31  ;;  %v7760_v17 = vpop.f32.mrb[47].mxu1 }
0x282a   :  { %8796 = vtanh.f32 %v3594_v5  ;;  %v7043_v18 = vmul.f32 -1.442695, %v3594_v5 }
0x282b   :  { %8798 = vpow2.f32 %v7042_v41 }
0x2834   :  { %v8797_v21 = vpop.eup %8796 }
0x2835   :  { %3628 = vrot.lane.b32.xlu1 %v8797_v21, %s9204_s4  ;;  %v8799_v6 = vpop.eup %8798 }
0x2836   :  { %v3598_v61 = vadd.f32 1.0, %v8799_v6 }
0x2838   :  { %8800 = vrcp.f32 %v3598_v61  ;;  %v3870_v61 = vld [vmem:[%s10865_s9 + $0x8] sm:$0xff] }
0x2839   :  { %8802 = vpow2.f32 %v7043_v18 }
0x2842   :  { %v8801_v59 = vpop.eup %8800 }
0x2843   :  { %v8803_v55 = vpop.eup %8802  ;;  %v3602_v39 = vmul.f32 %v8801_v59, %v3404_v46 }
0x2844   :  { %v3622_v28 = vadd.f32 1.0, %v8803_v55 }
0x2846   :  { %8804 = vrcp.f32 %v3622_v28  ;;  %v3873_v28 = vld [vmem:[%s10865_s9 + $0x20] sm:$0xff] }
0x2850   :  { %v8805_v31 = vpop.eup %8804 }
0x2851   :  { %v3626_v48 = vmul.f32 %v8805_v31, %v3428_v50 }
0x288a   :  { %v3605_v23 = vpop.permute.xlu0 %3604 }
0x288b   :  { %v3607_v49 = vmul.f32 %v8801_v59, %v3605_v23  ;;  %v3876_v23 = vld [vmem:[%s10865_s9 + $0x38] sm:$0xff] }
0x288d   :  { %3609 = vrot.lane.b32.xlu0 %v3607_v49, %s9205_s15 }
0x28a7   :  { %v3629_v34 = vpop.permute.xlu1 %3628 }
0x28a8   :  { %v3631_v36 = vmul.f32 %v8805_v31, %v3629_v34 }
0x28aa   :  { %3633 = vrot.lane.b32.xlu1 %v3631_v36, %s9205_s15 }
0x28ff   :  { %v3610_v30 = vpop.permute.xlu0 %3609 }
0x2900   :  { %v3612_v47 = vadd.f32 %v3610_v30, %v3602_v39 }
0x2902   :  { %8806 = vtanh.f32 %v3612_v47 }
0x290c   :  { %v8807_v7 = vpop.eup %8806 }
0x290d   :  { %3615 = vrot.lane.b32.xlu0 %v8807_v7, %s9204_s4 }
0x291c   :  { %v3634_v45 = vpop.permute.xlu1 %3633 }
0x291d   :  { %v3636_v58 = vadd.f32 %v3634_v45, %v3626_v48  ;;  %v3878_v48 = vld [vmem:[%s10865_s9 + $0x48] sm:$0xff]  ;;  %v3880_v45 = vld [vmem:[%s10865_s9 + $0x58] sm:$0xff] }
0x291f   :  { %8808 = vtanh.f32 %v3636_v58 }
0x2929   :  { %v8809_v56 = vpop.eup %8808 }
0x292a   :  { %3639 = vrot.lane.b32.xlu1 %v8809_v56, %s9204_s4  ;;  %v3877_v56 = vld [vmem:[%s10865_s9 + $0x40] sm:$0xff] }
0x297f   :  { %v3616_v52 = vpop.permute.xlu0 %3615 }
0x2980   :  { %v3618_v60 = vmul.f32 %v8801_v59, %v3616_v52  ;;  %v3874_v59 = vld [vmem:[%s10865_s9 + $0x28] sm:$0xff] }
0x2981   :  { %v8360_v55 = vpack.c.bf16 %v3876_v23, %v3874_v59 }
0x2982   :  { %3644 = vrot.lane.b32.xlu0 %v3618_v60, %s9205_s15  ;;  %v4050_v60 = vld [vmem:[%s10866_s10] sm:$0xff] }
0x299c   :  { %v3640_v32 = vpop.permute.xlu1 %3639 }
0x299d   :  { %v3642_v2 = vmul.f32 %v8805_v31, %v3640_v32  ;;  %v3875_v31 = vld [vmem:[%s10865_s9 + $0x30] sm:$0xff]  ;;  %v4051_v32 = vld [vmem:[%s10866_s10 + $0x8] sm:$0xff] }
0x299e   :  { %v8362_v34 = vpack.c.bf16 %v3875_v31, %v3873_v28 }
0x299f   :  { %3728 = vrot.lane.b32.xlu1 %v3642_v2, %s9205_s15 }
0x29f4   :  { %v10191_v27 = vpop.permute.xlu0 %3644 }
0x29f5   :  { %7770 = vmatmul.mubr.msk.f32.vlgmr.msra.gmra.mrb[44].mxu0 %vm343_vm1, %v10191_v27 }
0x29f6   :  { %3985 = vmatprep.mubr.f32.mxu0 %v9202_v1 }
0x2a11   :  { %v3729_v3 = vpop.permute.xlu1 %3728 }
0x2a12   :  { %7781 = vmatmul.mubr.msk.f32.vlgmr.msra.gmra.mrb[48].mxu1 %vm343_vm1, %v3729_v3  ;;  %v3882_v3 = vld [vmem:[%s10865_s9 + $0x68] sm:$0xff] }
0x2a13   :  { %7791 = vmatprep.mubr.msk.f32.mxu1 %vm9203_vm0, %v9202_v1 }
0x2ac8   :  { %v3722_v4 = vpop.f32.mrb[44].mxu0 }
0x2ac9   :  { %v3726_v38 = vadd.f32 %v3722_v4, %v10011_v40  ;;  %v7771_v22 = vpop.f32.mrb[45].mxu0  ;;  %v3884_v4 = vld [vmem:[%s10865_s9 + $0x78] sm:$0xff] }
0x2aca   :  { %v3881_v22 = vld [vmem:[%s10865_s9 + $0x60] sm:$0xff] }
0x2acb   :  { %8810 = vtanh.f32 %v3726_v38  ;;  %v7046_v29 = vmul.f32 -1.442695, %v3726_v38  ;;  %v8368_v38 = vpack.c.bf16 %v3884_v4, %v3882_v3 }
0x2ad5   :  { %v8811_v37 = vpop.eup %8810 }
0x2ad6   :  { %3812 = vrot.lane.b32.xlu0 %v8811_v37, %s9204_s4  ;;  %v3883_v37 = vld [vmem:[%s10865_s9 + $0x70] sm:$0xff] }
0x2ae5   :  { %v3798_v63 = vpop.f32.mrb[48].mxu1 }
0x2ae6   :  { %v3802_v10 = vadd.f32 %v3798_v63, %v9984_v20  ;;  %v7782_v46 = vpop.f32.mrb[49].mxu1  ;;  %v8370_v63 = vpack.c.bf16 %v3883_v37, %v3881_v22 }
0x2ae7   :  { %v4053_v46 = vld [vmem:[%s10866_s10 + $0x18] sm:$0xff] }
0x2ae8   :  { %8812 = vtanh.f32 %v3802_v10  ;;  %v7047_v24 = vmul.f32 -1.442695, %v3802_v10  ;;  %v4052_v10 = vld [vmem:[%s10866_s10 + $0x10] sm:$0xff] }
0x2ae9   :  { %8814 = vpow2.f32 %v7046_v29 }
0x2af2   :  { %v8813_v8 = vpop.eup %8812 }
0x2af3   :  { %3836 = vrot.lane.b32.xlu1 %v8813_v8, %s9204_s4  ;;  %v8815_v9 = vpop.eup %8814  ;;  %v10292_v8 = vpack.c.bf16 %v4053_v46, %v4052_v10 }
0x2af4   :  { %v3806_v50 = vadd.f32 1.0, %v8815_v9 }
0x2af6   :  { %8816 = vrcp.f32 %v3806_v50 }
0x2af7   :  { %8818 = vpow2.f32 %v7047_v24  ;;  %v4054_v24 = vld [vmem:[#allocation9] sm:$0xff] }
0x2b00   :  { %v10203_v40 = vpop.eup %8816 }
0x2b01   :  { %v8819_v20 = vpop.eup %8818  ;;  %v3810_v35 = vmul.f32 %v10203_v40, %v3612_v47 }
0x2b02   :  { %v3830_v25 = vadd.f32 1.0, %v8819_v20  ;;  %v4056_v20 = vld [vmem:[#allocation9 + $0x10] sm:$0xff] }
0x2b04   :  { %8820 = vrcp.f32 %v3830_v25 }
0x2b0e   :  { %v10207_v43 = vpop.eup %8820 }
0x2b0f   :  { %v3834_v17 = vmul.f32 %v10207_v43, %v3636_v58  ;;  %v8364_v58 = vpack.c.bf16 %v3880_v45, %v3878_v48 }
0x2b48   :  { %v3813_v11 = vpop.permute.xlu0 %3812 }
0x2b49   :  { %v3815_v33 = vmul.f32 %v10203_v40, %v3813_v11  ;;  %v4055_v11 = vld [vmem:[#allocation9 + $0x8] sm:$0xff] }
0x2b4b   :  { %3817 = vrot.lane.b32.xlu0 %v3815_v33, %s9205_s15  ;;  %v10310_v33 = vpack.c.bf16 %v4055_v11, %v4054_v24 }
0x2b65   :  { %v3837_v53 = vpop.permute.xlu1 %3836 }
0x2b66   :  { %v3839_v14 = vmul.f32 %v10207_v43, %v3837_v53 }
0x2b68   :  { %3841 = vrot.lane.b32.xlu1 %v3839_v14, %s9205_s15 }
0x2bbd   :  { %v3818_v62 = vpop.permute.xlu0 %3817 }
0x2bbe   :  { %v3820_v51 = vadd.f32 %v3818_v62, %v3810_v35 }
0x2bc0   :  { %8822 = vtanh.f32 %v3820_v51 }
0x2bca   :  { %v8823_v5 = vpop.eup %8822 }
0x2bcb   :  { %3823 = vrot.lane.b32.xlu0 %v8823_v5, %s9204_s4 }
0x2bcf   :  { %3649 = vrot.lane.b32.xlu0 %v3642_v2, %s9204_s4  ;;  %v10270_v2 = vpack.c.bf16 %v4051_v32, %v4050_v60 }
0x2bd1   :  { %8374 = vmatpush3.bf16.msra.mxu1 %v10270_v2 }
0x2bd2   :  { %8375 = vmatprep.subr.bf16.mxu1 %v9201_v0 }
0x2bd3   :  { %3233 = vrot.lane.b32.xlu0 %v10131_v19, %s9204_s4  ;;  %v3872_v19 = vld [vmem:[%s10865_s9 + $0x18] sm:$0xff] }
0x2bd4   :  { %v8356_v18 = vpack.c.bf16 %v3872_v19, %v3870_v61  ;;  %v3885_v19 = vld [vmem:[%s10868_s12] sm:$0x3] }
0x2bd5   :  { %8377 = vmatpush3.bf16.msra.mxu1 %v10292_v8 }
0x2bd6   :  { %8357 = vmatprep.subr.bf16.mxu0 %v8356_v18  ;;  %8378 = vmatprep.subr.bf16.mxu1 %v9201_v0  ;;  %v3894_v18 = vrot.slane %v3885_v19, %v9619_v16 }
0x2bd7   :  { %2817 = vrot.lane.b32.xlu0 %v10075_v54, %s9204_s4  ;;  %v3869_v54 = vld [vmem:[%s10865_s9] sm:$0xff] }
0x2bd8   :  { %7792 = vmatmul.mubr.f32.vlgmr.msra.gmra.mrb[50].mxu1 %v9202_v1 }
0x2bd9   :  { %7802 = vmatprep.mubr.msk.f32.mxu1 %vm9203_vm0, %v9202_v1  ;;  %8380 = vmatpush3.bf16.msra.mxu1 %v10310_v33 }
0x2bda   :  { %v3842_v21 = vpop.permute.xlu1 %3841  ;;  %8381 = vmatprep.subr.bf16.mxu1 %v9201_v0 }
0x2bdb   :  { %v3844_v41 = vadd.f32 %v3842_v21, %v3834_v17  ;;  %2401 = vrot.lane.b32.xlu0 %v10019_v42, %s9204_s4  ;;  %v3871_v42 = vld [vmem:[%s10865_s9 + $0x10] sm:$0xff] }
0x2bdc   :  { %v8358_v49 = vpack.c.bf16 %v3871_v42, %v3869_v54  ;;  %v3890_v54 = vrot.slane %v3885_v19, %v9614_v13 }
0x2bdd   :  { %8824 = vtanh.f32 %v3844_v41 }
0x2bde   :  { %8359 = vmatpush1.bf16.msra.mxu0 %v8358_v49 }
0x2bdf   :  { %8361 = vmatprep.subr.bf16.mxu0 %v8360_v55 }
0x2be2   :  { %8363 = vmatpush1.bf16.msra.mxu0 %v8362_v34 }
0x2be3   :  { %8365 = vmatprep.subr.bf16.mxu0 %v8364_v58 }
0x2be7   :  { %v8825_v6 = vpop.eup %8824 }
0x2be8   :  { %3847 = vrot.lane.b32.xlu1 %v8825_v6, %s9204_s4 }
0x2c3d   :  { %v3824_v36 = vpop.permute.xlu0 %3823 }
0x2c3e   :  { %v3826_v50 = vmul.f32 %v10203_v40, %v3824_v36 }
0x2c41   :  { %v3650_v39 = vpop.permute.xlu0 %3649 }
0x2c42   :  { %3652 = vst.msk [vmem:[#allocation2 + $0x8] sm:$0xff] %vm547_vm2, %v3650_v39 }
0x2c45   :  { %v3234_v30 = vpop.permute.xlu0 %3233 }
0x2c46   :  { %3236 = vst.msk [vmem:[#allocation2 + $0x18] sm:$0xff] %vm547_vm2, %v3234_v30 }
0x2c49   :  { %v2818_v47 = vpop.permute.xlu0 %2817  ;;  %v3862_v14 = vld [vmem:[#allocation2 + $0x8] sm:$0xff] }
0x2c4a   :  { %2820 = vst.msk [vmem:[#allocation2 + $0x28] sm:$0xff] %vm547_vm2, %v2818_v47 }
0x2c4b   :  { %3439 = vst.msk [vmem:[#allocation2 + $0x28] sm:$0xff] %vm343_vm1, %v10165_v12  ;;  %v3879_v12 = vld [vmem:[%s10865_s9 + $0x50] sm:$0xff] }
0x2c4c   :  { %v8366_v52 = vpack.c.bf16 %v3879_v12, %v3877_v56 }
0x2c4d   :  { %v2402_v7 = vpop.permute.xlu0 %2401  ;;  %v3864_v62 = vld [vmem:[#allocation2 + $0x18] sm:$0xff] }
0x2c4e   :  { %2404 = vst.msk [vmem:[#allocation2 + $0x38] sm:$0xff] %vm547_vm2, %v2402_v7  ;;  %8367 = vmatpush1.bf16.msra.mxu0 %v8366_v52 }
0x2c4f   :  { %8369 = vmatprep.subr.bf16.mxu0 %v8368_v38 }
0x2c52   :  { %8371 = vmatpush1.bf16.msra.mxu0 %v8370_v63  ;;  %v3866_v51 = vld [vmem:[#allocation2 + $0x28] sm:$0xff] }
0x2c53   :  { %8402 = vmatprep.subr.bf16.mxu0 %v9201_v0 }
0x2c5a   :  { %v3848_v29 = vpop.permute.xlu1 %3847 }
0x2c5b   :  { %v3850_v9 = vmul.f32 %v10207_v43, %v3848_v29 }
0x2c5d   :  { %3857 = vrot.lane.b32.xlu1 %v3850_v9, %s9204_s4 }
0x2c61   :  { %3441 = vrot.lane.b32.xlu1 %v10161_v44, %s9204_s4  ;;  %v4057_v44 = vld [vmem:[#allocation9 + $0x18] sm:$0xff] }
0x2c62   :  { %v10314_v25 = vpack.c.bf16 %v4057_v44, %v4056_v20 }
0x2c64   :  { %8383 = vmatpush3.bf16.msra.mxu1 %v10314_v25 }
0x2c65   :  { %3025 = vrot.lane.b32.xlu1 %v10103_v57, %s9204_s4  ;;  %8384 = vmatprep.subr.bf16.mxu1 %v9201_v0 }
0x2c67   :  { %7803 = vmatmul.mubr.f32.vlgmr.msra.gmra.mrb[52].mxu1 %v9202_v1 }
0x2c68   :  { %8386 = vmatpush3.bf16.msra.mxu1 %v10270_v2  ;;  %7813 = vmatprep.mubr.msk.f32.mxu1 %vm9203_vm0, %v9202_v1 }
0x2c69   :  { %2609 = vrot.lane.b32.xlu1 %v10047_v15, %s9204_s4  ;;  %8387 = vmatprep.subr.bf16.mxu1 %v9201_v0 }
0x2c6c   :  { %8389 = vmatpush3.bf16.msra.mxu1 %v10292_v8 }
0x2c6d   :  { %3852 = vrot.lane.b32.xlu1 %v3826_v50, %s9205_s15  ;;  %8390 = vmatprep.subr.bf16.mxu1 %v9201_v0 }
0x2cab   :  { %v4125_v21 = vpop.f32.mrb[50].mxu1 }
0x2cac   :  { %v7793_v41 = vpop.f32.mrb[51].mxu1 }
0x2ccf   :  { %v3858_v15 = vpop.permute.xlu1 %3857 }
0x2cd0   :  { %3860 = vst.msk [vmem:[#allocation2] sm:$0xff] %vm547_vm2, %v3858_v15 }
0x2cd3   :  { %v3442_v57 = vpop.permute.xlu1 %3441 }
0x2cd4   :  { %3444 = vst.msk [vmem:[#allocation2 + $0x10] sm:$0xff] %vm547_vm2, %v3442_v57 }
0x2cd7   :  { %v3026_v40 = vpop.permute.xlu1 %3025  ;;  %v3861_v43 = vld [vmem:[#allocation2] sm:$0xff] }
0x2cd8   :  { %3028 = vst.msk [vmem:[#allocation2 + $0x20] sm:$0xff] %vm547_vm2, %v3026_v40  ;;  %7048 = vmatmul.mubr.msk.f32.vlgmr.msra.gmra.mrb[46].mxu0 %vm2041_vm3, %v3861_v43 }
0x2cd9   :  { %3231 = vst.msk [vmem:[#allocation2 + $0x20] sm:$0xff] %vm343_vm1, %v10135_v26  ;;  %3991 = vmatprep.mubr.f32.mxu0 %v9202_v1  ;;  %8404 = vmatpush3.bf16.msra.mxu0 %v10310_v33 }
0x2cda   :  { %8405 = vmatprep.subr.bf16.mxu0 %v9201_v0 }
0x2cdb   :  { %v2610_v53 = vpop.permute.xlu1 %2609  ;;  %v3863_v35 = vld [vmem:[#allocation2 + $0x10] sm:$0xff] }
0x2cdc   :  { %2612 = vst.msk [vmem:[#allocation2 + $0x30] sm:$0xff] %vm547_vm2, %v2610_v53  ;;  %7049 = vmatmul.mubr.msk.f32.gmra.mrb[48].mxu0 %vm2041_vm3, %v3862_v14 }
0x2cdd   :  { %3647 = vst.msk [vmem:[#allocation2 + $0x30] sm:$0xff] %vm343_vm1, %v10191_v27  ;;  %3997 = vmatprep.mubr.f32.mxu0 %v9202_v1  ;;  %8407 = vmatpush3.bf16.msra.mxu0 %v10314_v25 }
0x2cde   :  { %8414 = vmatprep.subr.bf16.mxu0 %v9201_v0 }
0x2cdf   :  { %v3853_v26 = vpop.permute.xlu1 %3852 }
0x2ce0   :  { %3855 = vst.msk [vmem:[#allocation2 + $0x38] sm:$0xff] %vm343_vm1, %v3853_v26  ;;  %7050 = vmatmul.mubr.msk.f32.gmra.mrb[50].mxu0 %vm2041_vm3, %v3863_v35  ;;  %v3865_v27 = vld [vmem:[#allocation2 + $0x20] sm:$0xff] }
0x2ce1   :  { %4003 = vmatprep.mubr.f32.mxu0 %v9202_v1 }
0x2ce4   :  { %7051 = vmatmul.mubr.msk.f32.gmra.mrb[52].mxu0 %vm2041_vm3, %v3864_v62  ;;  %v3867_v5 = vld [vmem:[#allocation2 + $0x30] sm:$0xff] }
0x2ce5   :  { %4009 = vmatprep.mubr.f32.mxu0 %v9202_v1 }
0x2ce7   :  { %v3868_v17 = vld [vmem:[#allocation2 + $0x38] sm:$0xff] }
0x2ce8   :  { %7052 = vmatmul.mubr.msk.f32.gmra.mrb[54].mxu0 %vm2041_vm3, %v3865_v27 }
0x2ce9   :  { %4015 = vmatprep.mubr.f32.mxu0 %v9202_v1 }
0x2cec   :  { %7053 = vmatmul.mubr.msk.f32.gmra.mrb[56].mxu0 %vm2041_vm3, %v3866_v51 }
0x2ced   :  { %4021 = vmatprep.mubr.f32.mxu0 %v9202_v1 }
0x2cf0   :  { %7054 = vmatmul.mubr.msk.f32.gmra.mrb[58].mxu0 %vm2041_vm3, %v3867_v5 }
0x2cf1   :  { %4027 = vmatprep.mubr.f32.mxu0 %v9202_v1 }
0x2cf4   :  { %7055 = vmatmul.mubr.msk.f32.gmra.mrb[60].mxu0 %vm2041_vm3, %v3868_v17 }
0x2cf5   :  { %7846 = vmatprep.mubr.msk.f32.mxu0 %vm9203_vm0, %v9202_v1 }
0x2d3a   :  { %v4197_v6 = vpop.f32.mrb[52].mxu1 }
0x2d3b   :  { %v7804_v61 = vpop.f32.mrb[53].mxu1 }
0x2dab   :  { %v3987_v42 = vpop.f32.mrb[46].mxu0 }
0x2dac   :  { %v3988_v59 = vadd.f32 %v3987_v42, %v3890_v54  ;;  %v3989_v23 = vpop.f32.mrb[47].mxu0 }
0x2dad   :  { %v10360_v49 = vadd.f32 %v3989_v23, %v3894_v18 }
0x2dae   :  { %v4129_v55 = vadd.f32 %v4125_v21, %v3988_v59 }
0x2daf   :  { %v3993_v28 = vpop.f32.mrb[48].mxu0 }
0x2db0   :  { %8826 = vtanh.f32 %v4129_v55  ;;  %v10362_v31 = vadd.f32 %v3993_v28, %v3890_v54  ;;  %v3995_v34 = vpop.f32.mrb[49].mxu0  ;;  %v7056_v20 = vmul.f32 -1.442695, %v4129_v55 }
0x2db1   :  { %v10364_v36 = vadd.f32 %v3995_v34, %v3894_v18 }
0x2db3   :  { %v3999_v39 = vpop.f32.mrb[50].mxu0 }
0x2db4   :  { %v10366_v30 = vadd.f32 %v3999_v39, %v3890_v54  ;;  %v4001_v47 = vpop.f32.mrb[51].mxu0 }
0x2db5   :  { %v10368_v13 = vadd.f32 %v4001_v47, %v3894_v18 }
0x2db7   :  { %v4005_v16 = vpop.f32.mrb[52].mxu0 }
0x2db8   :  { %v10370_v7 = vadd.f32 %v4005_v16, %v3890_v54  ;;  %v4007_v48 = vpop.f32.mrb[53].mxu0 }
0x2db9   :  { %v10372_v45 = vadd.f32 %v4007_v48, %v3894_v18 }
0x2dba   :  { %v8827_v58 = vpop.eup %8826 }
0x2dbb   :  { %v4011_v56 = vpop.f32.mrb[54].mxu0  ;;  %4211 = vrot.lane.b32.xlu0 %v8827_v58, %s9204_s4 }
0x2dbc   :  { %v10375_v12 = vadd.f32 %v4011_v56, %v3890_v54  ;;  %v4013_v52 = vpop.f32.mrb[55].mxu0 }
0x2dbd   :  { %v10377_v60 = vadd.f32 %v4013_v52, %v3894_v18 }
0x2dbf   :  { %v4017_v32 = vpop.f32.mrb[56].mxu0 }
0x2dc0   :  { %v10379_v3 = vadd.f32 %v4017_v32, %v3890_v54  ;;  %v4019_v4 = vpop.f32.mrb[57].mxu0 }
0x2dc1   :  { %v10381_v38 = vadd.f32 %v4019_v4, %v3894_v18 }
0x2dc3   :  { %v4023_v22 = vpop.f32.mrb[58].mxu0 }
0x2dc4   :  { %v10383_v37 = vadd.f32 %v4023_v22, %v3890_v54  ;;  %v4025_v63 = vpop.f32.mrb[59].mxu0 }
0x2dc5   :  { %v10385_v10 = vadd.f32 %v4025_v63, %v3894_v18 }
0x2dc7   :  { %v4029_v46 = vpop.f32.mrb[60].mxu0 }
0x2dc8   :  { %v10387_v29 = vadd.f32 %v4029_v46, %v3890_v54  ;;  %v4031_v9 = vpop.f32.mrb[61].mxu0 }
0x2dc9   :  { %v4032_v50 = vadd.f32 %v4031_v9, %v3894_v18 }
0x2dcb   :  { %v4201_v24 = vadd.f32 %v4197_v6, %v4032_v50 }
0x2dcd   :  { %8828 = vtanh.f32 %v4201_v24  ;;  %v7057_v57 = vmul.f32 -1.442695, %v4201_v24 }
0x2dce   :  { %8830 = vpow2.f32 %v7056_v20 }
0x2dd7   :  { %v8829_v11 = vpop.eup %8828 }
0x2dd8   :  { %4235 = vrot.lane.b32.xlu1 %v8829_v11, %s9204_s4  ;;  %v8831_v44 = vpop.eup %8830 }
0x2dd9   :  { %v4205_v15 = vadd.f32 1.0, %v8831_v44 }
0x2ddb   :  { %8832 = vrcp.f32 %v4205_v15 }
0x2ddc   :  { %8834 = vpow2.f32 %v7057_v57 }
0x2de5   :  { %v8833_v40 = vpop.eup %8832 }
0x2de6   :  { %v8835_v14 = vpop.eup %8834  ;;  %v4209_v51 = vmul.f32 0.0, %v8833_v40 }
0x2de7   :  { %v4229_v26 = vadd.f32 1.0, %v8835_v14 }
0x2de9   :  { %8836 = vrcp.f32 %v4229_v26 }
0x2df3   :  { %v8837_v35 = vpop.eup %8836 }
0x2df4   :  { %v4233_v41 = vmul.f32 0.0, %v8837_v35 }
0x2e2d   :  { %v4212_v43 = vpop.permute.xlu0 %4211 }
0x2e2e   :  { %v4214_v53 = vmul.f32 %v8833_v40, %v4212_v43 }
0x2e30   :  { %4216 = vrot.lane.b32.xlu0 %v4214_v53, %s9205_s15 }
0x2e4a   :  { %v4236_v62 = vpop.permute.xlu1 %4235 }
0x2e4b   :  { %v4238_v27 = vmul.f32 %v8837_v35, %v4236_v62 }
0x2e4d   :  { %4240 = vrot.lane.b32.xlu1 %v4238_v27, %s9205_s15 }
0x2ea2   :  { %v4217_v5 = vpop.permute.xlu0 %4216 }
0x2ea3   :  { %v10392_v17 = vadd.f32 %v4217_v5, %v4209_v51 }
0x2ea5   :  { %8838 = vtanh.f32 %v10392_v17 }
0x2eaf   :  { %v8839_v21 = vpop.eup %8838 }
0x2eb0   :  { %4222 = vrot.lane.b32.xlu0 %v8839_v21, %s9204_s4 }
0x2ebf   :  { %v4241_v6 = vpop.permute.xlu1 %4240 }
0x2ec0   :  { %v4243_v61 = vadd.f32 %v4241_v6, %v4233_v41 }
0x2ec2   :  { %8840 = vtanh.f32 %v4243_v61 }
0x2ecc   :  { %v8841_v19 = vpop.eup %8840 }
0x2ecd   :  { %4246 = vrot.lane.b32.xlu1 %v8841_v19, %s9204_s4 }
0x2f22   :  { %v4223_v54 = vpop.permute.xlu0 %4222 }
0x2f23   :  { %v4225_v18 = vmul.f32 %v8833_v40, %v4223_v54 }
0x2f25   :  { %4251 = vrot.lane.b32.xlu0 %v4225_v18, %s9205_s15 }
0x2f3f   :  { %v4247_v42 = vpop.permute.xlu1 %4246 }
0x2f40   :  { %v10398_v59 = vmul.f32 %v8837_v35, %v4247_v42 }
0x2f42   :  { %4335 = vrot.lane.b32.xlu1 %v10398_v59, %s9205_s15 }
0x2f97   :  { %v4252_v23 = vpop.permute.xlu0 %4251 }
0x2f98   :  { %4254 = vst.msk [vmem:[#allocation2] sm:$0xff] %vm343_vm1, %v4252_v23  ;;  %7814 = vmatmul.mubr.msk.f32.vlgmr.msra.gmra.mrb[54].mxu1 %vm343_vm1, %v4252_v23 }
0x2f99   :  { %8392 = vmatpush3.bf16.msra.mxu1 %v10310_v33  ;;  %7824 = vmatprep.mubr.msk.f32.mxu1 %vm9203_vm0, %v9202_v1 }
0x2f9a   :  { %8393 = vmatprep.subr.bf16.mxu1 %v9201_v0 }
0x2f9d   :  { %8395 = vmatpush3.bf16.msra.mxu1 %v10314_v25 }
0x2f9e   :  { %8396 = vmatprep.subr.bf16.mxu1 %v9201_v0 }
0x2fb4   :  { %v4336_v55 = vpop.permute.xlu1 %4335 }
0x2fb5   :  { %7825 = vmatmul.mubr.msk.f32.vlgmr.msra.gmra.mrb[56].mxu1 %vm343_vm1, %v4336_v55 }
0x2fb6   :  { %8398 = vmatpush3.bf16.msra.mxu1 %v10270_v2  ;;  %7835 = vmatprep.mubr.msk.f32.mxu1 %vm9203_vm0, %v9202_v1 }
0x2fb7   :  { %8399 = vmatprep.subr.bf16.mxu1 %v9201_v0 }
0x2fba   :  { %8401 = vmatpush3.bf16.msra.mxu1 %v10292_v8 }
0x2fbb   :  { %8408 = vmatprep.subr.bf16.mxu1 %v9201_v0 }
0x306b   :  { %v4329_v28 = vpop.f32.mrb[54].mxu1 }
0x306c   :  { %v4333_v34 = vadd.f32 %v4329_v28, %v10362_v31  ;;  %v7815_v39 = vpop.f32.mrb[55].mxu1 }
0x306e   :  { %v7060_v24 = vmul.f32 -1.442695, %v4333_v34 }
0x3088   :  { %v4405_v47 = vpop.f32.mrb[56].mxu1 }
0x3089   :  { %v4409_v16 = vadd.f32 %v4405_v47, %v10385_v10  ;;  %v7826_v48 = vpop.f32.mrb[57].mxu1 }
0x308b   :  { %8842 = vtanh.f32 %v4409_v16  ;;  %v7061_v56 = vmul.f32 -1.442695, %v4409_v16 }
0x308d   :  { %8844 = vpow2.f32 %v7061_v56 }
0x3095   :  { %v8843_v58 = vpop.eup %8842 }
0x3096   :  { %4443 = vrot.lane.b32.xlu0 %v8843_v58, %s9204_s4 }
0x3097   :  { %v8845_v52 = vpop.eup %8844 }
0x3098   :  { %v4437_v32 = vadd.f32 1.0, %v8845_v52 }
0x309a   :  { %8846 = vrcp.f32 %v4437_v32 }
0x30a4   :  { %v8847_v4 = vpop.eup %8846 }
0x30a5   :  { %v4441_v31 = vmul.f32 %v8847_v4, %v4243_v61 }
0x3108   :  { %v4444_v22 = vpop.permute.xlu0 %4443 }
0x3109   :  { %v4446_v63 = vmul.f32 %v8847_v4, %v4444_v22 }
0x310b   :  { %4448 = vrot.lane.b32.xlu1 %v4446_v63, %s9205_s15 }
0x317d   :  { %v4449_v46 = vpop.permute.xlu1 %4448 }
0x317e   :  { %v4451_v9 = vadd.f32 %v4449_v46, %v4441_v31 }
0x3180   :  { %8848 = vtanh.f32 %v4451_v9 }
0x3181   :  { %8850 = vtanh.f32 %v4333_v34 }
0x3182   :  { %8852 = vpow2.f32 %v7060_v24 }
0x318a   :  { %v8849_v10 = vpop.eup %8848 }
0x318b   :  { %4454 = vrot.lane.b32.xlu0 %v8849_v10, %s9204_s4  ;;  %v8851_v50 = vpop.eup %8850 }
0x318c   :  { %v8853_v11 = vpop.eup %8852 }
0x318d   :  { %v4413_v20 = vadd.f32 1.0, %v8853_v11 }
0x318f   :  { %4419 = vrot.lane.b32.xlu0 %v8851_v50, %s9204_s4  ;;  %8854 = vrcp.f32 %v4413_v20 }
0x3199   :  { %v8855_v57 = vpop.eup %8854 }
0x319a   :  { %v4417_v14 = vmul.f32 %v8855_v57, %v10392_v17 }
0x31fd   :  { %v4455_v44 = vpop.permute.xlu0 %4454 }
0x31fe   :  { %v10423_v15 = vmul.f32 %v8847_v4, %v4455_v44 }
0x3200   :  { %4543 = vrot.lane.b32.xlu1 %v10423_v15, %s9205_s15 }
0x3201   :  { %v4420_v40 = vpop.permute.xlu0 %4419 }
0x3202   :  { %v4422_v43 = vmul.f32 %v8855_v57, %v4420_v40 }
0x3204   :  { %4424 = vrot.lane.b32.xlu0 %v4422_v43, %s9205_s15 }
0x3272   :  { %v4544_v53 = vpop.permute.xlu1 %4543 }
0x3273   :  { %7847 = vmatmul.mubr.msk.f32.vlgmr.msra.gmra.mrb[62].mxu0 %vm343_vm1, %v4544_v53 }
0x3274   :  { %8416 = vmatpush3.bf16.msra.mxu0 %v10310_v33  ;;  %7868 = vmatprep.mubr.msk.f32.mxu0 %vm9203_vm0, %v9202_v1 }
0x3275   :  { %8417 = vmatprep.subr.bf16.mxu0 %v9201_v0 }
0x3276   :  { %v4425_v26 = vpop.permute.xlu0 %4424 }
0x3277   :  { %v4427_v35 = vadd.f32 %v4425_v26, %v4417_v14 }
0x3278   :  { %8419 = vmatpush3.bf16.msra.mxu0 %v10314_v25 }
0x3279   :  { %8856 = vtanh.f32 %v4427_v35  ;;  %8426 = vmatprep.subr.bf16.mxu0 %v9201_v0 }
0x3283   :  { %v8857_v62 = vpop.eup %8856 }
0x3284   :  { %4430 = vrot.lane.b32.xlu0 %v8857_v62, %s9204_s4 }
0x32f6   :  { %v4431_v27 = vpop.permute.xlu0 %4430 }
0x32f7   :  { %v4433_v51 = vmul.f32 %v8855_v57, %v4431_v27 }
0x32f9   :  { %4459 = vrot.lane.b32.xlu0 %v4433_v51, %s9205_s15 }
0x3346   :  { %v4613_v5 = vpop.f32.mrb[62].mxu0 }
0x3347   :  { %v4617_v21 = vadd.f32 %v4613_v5, %v10381_v38  ;;  %v7848_v17 = vpop.f32.mrb[63].mxu0 }
0x3349   :  { %8858 = vtanh.f32 %v4617_v21  ;;  %v7065_v38 = vmul.f32 -1.442695, %v4617_v21 }
0x334b   :  { %8860 = vpow2.f32 %v7065_v38 }
0x3353   :  { %v8859_v41 = vpop.eup %8858 }
0x3354   :  { %4651 = vrot.lane.b32.xlu1 %v8859_v41, %s9204_s4 }
0x3355   :  { %v8861_v61 = vpop.eup %8860 }
0x3356   :  { %v4645_v19 = vadd.f32 1.0, %v8861_v61 }
0x3358   :  { %8862 = vrcp.f32 %v4645_v19 }
0x3362   :  { %v8863_v54 = vpop.eup %8862 }
0x3363   :  { %v4649_v23 = vmul.f32 %v8863_v54, %v4451_v9 }
0x336b   :  { %v4460_v6 = vpop.permute.xlu0 %4459 }
0x336c   :  { %4462 = vst.msk [vmem:[#allocation2 + $0x8] sm:$0xff] %vm343_vm1, %v4460_v6  ;;  %7836 = vmatmul.mubr.msk.f32.vlgmr.msra.gmra.mrb[58].mxu1 %vm343_vm1, %v4460_v6 }
0x336d   :  { %8410 = vmatpush3.bf16.msra.mxu1 %v10270_v2  ;;  %7857 = vmatprep.mubr.msk.f32.mxu1 %vm9203_vm0, %v9202_v1 }
0x336e   :  { %8411 = vmatprep.subr.bf16.mxu1 %v9201_v0 }
0x3371   :  { %8413 = vmatpush3.bf16.msra.mxu1 %v10292_v8 }
0x3372   :  { %8420 = vmatprep.subr.bf16.mxu1 %v9201_v0 }
0x33c6   :  { %v4652_v18 = vpop.permute.xlu1 %4651 }
0x33c7   :  { %v4654_v42 = vmul.f32 %v8863_v54, %v4652_v18 }
0x33c9   :  { %4656 = vrot.lane.b32.xlu1 %v4654_v42, %s9205_s15 }
0x343b   :  { %v4657_v55 = vpop.permute.xlu1 %4656 }
0x343c   :  { %v4659_v28 = vadd.f32 %v4657_v55, %v4649_v23 }
0x343e   :  { %8864 = vtanh.f32 %v4659_v28 }
0x343f   :  { %v4537_v34 = vpop.f32.mrb[58].mxu1 }
0x3440   :  { %v4541_v39 = vadd.f32 %v4537_v34, %v10366_v30  ;;  %v7837_v47 = vpop.f32.mrb[59].mxu1 }
0x3442   :  { %8866 = vtanh.f32 %v4541_v39  ;;  %v7064_v58 = vmul.f32 -1.442695, %v4541_v39 }
0x3444   :  { %8868 = vpow2.f32 %v7064_v58 }
0x3448   :  { %v8865_v16 = vpop.eup %8864 }
0x3449   :  { %4662 = vrot.lane.b32.xlu1 %v8865_v16, %s9204_s4 }
0x344c   :  { %v8867_v48 = vpop.eup %8866 }
0x344d   :  { %4627 = vrot.lane.b32.xlu0 %v8867_v48, %s9204_s4 }
0x344e   :  { %v8869_v56 = vpop.eup %8868 }
0x344f   :  { %v4621_v52 = vadd.f32 1.0, %v8869_v56 }
0x3451   :  { %8870 = vrcp.f32 %v4621_v52 }
0x345b   :  { %v8871_v30 = vpop.eup %8870 }
0x345c   :  { %v4625_v46 = vmul.f32 %v8871_v30, %v4427_v35 }
0x34bb   :  { %v4663_v32 = vpop.permute.xlu1 %4662 }
0x34bc   :  { %v10452_v4 = vmul.f32 %v8863_v54, %v4663_v32 }
0x34be   :  { %4751 = vrot.lane.b32.xlu1 %v10452_v4, %s9205_s15 }
0x34bf   :  { %v4628_v22 = vpop.permute.xlu0 %4627 }
0x34c0   :  { %v4630_v63 = vmul.f32 %v8871_v30, %v4628_v22 }
0x34c2   :  { %4632 = vrot.lane.b32.xlu0 %v4630_v63, %s9205_s15 }
0x3530   :  { %v4752_v31 = vpop.permute.xlu1 %4751 }
0x3531   :  { %7869 = vmatmul.mubr.msk.f32.vlgmr.msra.gmra.mrb[64].mxu0 %vm343_vm1, %v4752_v31 }
0x3532   :  { %8428 = vmatpush3.bf16.msra.mxu0 %v10310_v33  ;;  %7890 = vmatprep.mubr.msk.f32.mxu0 %vm9203_vm0, %v9202_v1 }
0x3533   :  { %8429 = vmatprep.subr.bf16.mxu0 %v9201_v0 }
0x3534   :  { %v4633_v9 = vpop.permute.xlu0 %4632 }
0x3535   :  { %v4635_v10 = vadd.f32 %v4633_v9, %v4625_v46 }
0x3536   :  { %8431 = vmatpush3.bf16.msra.mxu0 %v10314_v25 }
0x3537   :  { %8872 = vtanh.f32 %v4635_v10  ;;  %8438 = vmatprep.subr.bf16.mxu0 %v9201_v0 }
0x3541   :  { %v8873_v50 = vpop.eup %8872 }
0x3542   :  { %4638 = vrot.lane.b32.xlu0 %v8873_v50, %s9204_s4 }
0x35b4   :  { %v4639_v24 = vpop.permute.xlu0 %4638 }
0x35b5   :  { %v4641_v11 = vmul.f32 %v8871_v30, %v4639_v24 }
0x35b7   :  { %4667 = vrot.lane.b32.xlu0 %v4641_v11, %s9205_s15 }
0x3604   :  { %v4821_v20 = vpop.f32.mrb[64].mxu0 }
0x3605   :  { %v4825_v44 = vadd.f32 %v4821_v20, %v10377_v60  ;;  %v7870_v57 = vpop.f32.mrb[65].mxu0 }
0x3607   :  { %8874 = vtanh.f32 %v4825_v44  ;;  %v7069_v60 = vmul.f32 -1.442695, %v4825_v44 }
0x3609   :  { %8876 = vpow2.f32 %v7069_v60 }
0x3611   :  { %v8875_v40 = vpop.eup %8874 }
0x3612   :  { %4859 = vrot.lane.b32.xlu1 %v8875_v40, %s9204_s4 }
0x3613   :  { %v8877_v53 = vpop.eup %8876 }
0x3614   :  { %v4853_v14 = vadd.f32 1.0, %v8877_v53 }
0x3616   :  { %8878 = vrcp.f32 %v4853_v14 }
0x3620   :  { %v8879_v26 = vpop.eup %8878 }
0x3621   :  { %v4857_v27 = vmul.f32 %v8879_v26, %v4659_v28 }
0x3629   :  { %v4668_v43 = vpop.permute.xlu0 %4667 }
0x362a   :  { %4670 = vst.msk [vmem:[#allocation2 + $0x10] sm:$0xff] %vm343_vm1, %v4668_v43  ;;  %7858 = vmatmul.mubr.msk.f32.vlgmr.msra.gmra.mrb[60].mxu1 %vm343_vm1, %v4668_v43 }
0x362b   :  { %8422 = vmatpush3.bf16.msra.mxu1 %v10270_v2  ;;  %7879 = vmatprep.mubr.msk.f32.mxu1 %vm9203_vm0, %v9202_v1 }
0x362c   :  { %8423 = vmatprep.subr.bf16.mxu1 %v9201_v0 }
0x362f   :  { %8425 = vmatpush3.bf16.msra.mxu1 %v10292_v8 }
0x3630   :  { %8432 = vmatprep.subr.bf16.mxu1 %v9201_v0 }
0x3684   :  { %v4860_v35 = vpop.permute.xlu1 %4859 }
0x3685   :  { %v4862_v62 = vmul.f32 %v8879_v26, %v4860_v35 }
0x3687   :  { %4864 = vrot.lane.b32.xlu1 %v4862_v62, %s9205_s15 }
0x36f9   :  { %v4865_v51 = vpop.permute.xlu1 %4864 }
0x36fa   :  { %v4867_v5 = vadd.f32 %v4865_v51, %v4857_v27 }
0x36fc   :  { %8880 = vtanh.f32 %v4867_v5 }
0x36fd   :  { %v4745_v21 = vpop.f32.mrb[60].mxu1 }
0x36fe   :  { %v4749_v17 = vadd.f32 %v4745_v21, %v10370_v7  ;;  %v7859_v41 = vpop.f32.mrb[61].mxu1 }
0x3700   :  { %8882 = vtanh.f32 %v4749_v17  ;;  %v7068_v61 = vmul.f32 -1.442695, %v4749_v17 }
0x3702   :  { %8884 = vpow2.f32 %v7068_v61 }
0x3706   :  { %v8881_v6 = vpop.eup %8880 }
0x3707   :  { %4870 = vrot.lane.b32.xlu1 %v8881_v6, %s9204_s4 }
0x370a   :  { %v8883_v38 = vpop.eup %8882 }
0x370b   :  { %4835 = vrot.lane.b32.xlu0 %v8883_v38, %s9204_s4 }
0x370c   :  { %v8885_v19 = vpop.eup %8884 }
0x370d   :  { %v4829_v54 = vadd.f32 1.0, %v8885_v19 }
0x370f   :  { %8886 = vrcp.f32 %v4829_v54 }
0x3719   :  { %v8887_v7 = vpop.eup %8886 }
0x371a   :  { %v4833_v34 = vmul.f32 %v8887_v7, %v4635_v10 }
0x3779   :  { %v4871_v18 = vpop.permute.xlu1 %4870 }
0x377a   :  { %v10480_v42 = vmul.f32 %v8879_v26, %v4871_v18 }
0x377c   :  { %4959 = vrot.lane.b32.xlu1 %v10480_v42, %s9205_s15 }
0x377d   :  { %v4836_v23 = vpop.permute.xlu0 %4835 }
0x377e   :  { %v4838_v55 = vmul.f32 %v8887_v7, %v4836_v23 }
0x3780   :  { %4840 = vrot.lane.b32.xlu0 %v4838_v55, %s9205_s15 }
0x37ee   :  { %v4960_v28 = vpop.permute.xlu1 %4959 }
0x37ef   :  { %7891 = vmatmul.mubr.msk.f32.vlgmr.msra.gmra.mrb[66].mxu0 %vm343_vm1, %v4960_v28 }
0x37f0   :  { %8440 = vmatpush3.bf16.msra.mxu0 %v10310_v33  ;;  %7912 = vmatprep.mubr.msk.f32.mxu0 %vm9203_vm0, %v9202_v1 }
0x37f1   :  { %8441 = vmatprep.subr.bf16.mxu0 %v9201_v0 }
0x37f2   :  { %v4841_v39 = vpop.permute.xlu0 %4840 }
0x37f3   :  { %v4843_v47 = vadd.f32 %v4841_v39, %v4833_v34 }
0x37f4   :  { %8443 = vmatpush3.bf16.msra.mxu0 %v10314_v25 }
0x37f5   :  { %8888 = vtanh.f32 %v4843_v47  ;;  %8450 = vmatprep.subr.bf16.mxu0 %v9201_v0 }
0x37ff   :  { %v8889_v16 = vpop.eup %8888 }
0x3800   :  { %4846 = vrot.lane.b32.xlu0 %v8889_v16, %s9204_s4 }
0x3872   :  { %v4847_v48 = vpop.permute.xlu0 %4846 }
0x3873   :  { %v4849_v58 = vmul.f32 %v8887_v7, %v4847_v48 }
0x3875   :  { %4875 = vrot.lane.b32.xlu0 %v4849_v58, %s9205_s15 }
0x38c2   :  { %v5029_v56 = vpop.f32.mrb[66].mxu0 }
0x38c3   :  { %v5033_v52 = vadd.f32 %v5029_v56, %v10372_v45  ;;  %v7892_v32 = vpop.f32.mrb[67].mxu0 }
0x38c5   :  { %8890 = vtanh.f32 %v5033_v52  ;;  %v7073_v45 = vmul.f32 -1.442695, %v5033_v52 }
0x38c7   :  { %8892 = vpow2.f32 %v7073_v45 }
0x38cf   :  { %v8891_v30 = vpop.eup %8890 }
0x38d0   :  { %5067 = vrot.lane.b32.xlu1 %v8891_v30, %s9204_s4 }
0x38d1   :  { %v8893_v63 = vpop.eup %8892 }
0x38d2   :  { %v5061_v31 = vadd.f32 1.0, %v8893_v63 }
0x38d4   :  { %8894 = vrcp.f32 %v5061_v31 }
0x38de   :  { %v8895_v46 = vpop.eup %8894 }
0x38df   :  { %v5065_v50 = vmul.f32 %v8895_v46, %v4867_v5 }
0x38e7   :  { %v4876_v22 = vpop.permute.xlu0 %4875 }
0x38e8   :  { %4878 = vst.msk [vmem:[#allocation2 + $0x18] sm:$0xff] %vm343_vm1, %v4876_v22  ;;  %7880 = vmatmul.mubr.msk.f32.vlgmr.msra.gmra.mrb[62].mxu1 %vm343_vm1, %v4876_v22 }
0x38e9   :  { %8434 = vmatpush3.bf16.msra.mxu1 %v10270_v2  ;;  %7901 = vmatprep.mubr.msk.f32.mxu1 %vm9203_vm0, %v9202_v1 }
0x38ea   :  { %8435 = vmatprep.subr.bf16.mxu1 %v9201_v0 }
0x38ed   :  { %8437 = vmatpush3.bf16.msra.mxu1 %v10292_v8 }
0x38ee   :  { %8444 = vmatprep.subr.bf16.mxu1 %v9201_v0 }
0x3942   :  { %v5068_v9 = vpop.permute.xlu1 %5067 }
0x3943   :  { %v5070_v10 = vmul.f32 %v8895_v46, %v5068_v9 }
0x3945   :  { %5072 = vrot.lane.b32.xlu1 %v5070_v10, %s9205_s15 }
0x39b7   :  { %v5073_v24 = vpop.permute.xlu1 %5072 }
0x39b8   :  { %v5075_v11 = vadd.f32 %v5073_v24, %v5065_v50 }
0x39ba   :  { %8896 = vtanh.f32 %v5075_v11 }
0x39bb   :  { %v4953_v20 = vpop.f32.mrb[62].mxu1 }
0x39bc   :  { %v4957_v44 = vadd.f32 %v4953_v20, %v10375_v12  ;;  %v7881_v57 = vpop.f32.mrb[63].mxu1 }
0x39be   :  { %8898 = vtanh.f32 %v4957_v44  ;;  %v7072_v60 = vmul.f32 -1.442695, %v4957_v44 }
0x39c0   :  { %8900 = vpow2.f32 %v7072_v60 }
0x39c4   :  { %v8897_v40 = vpop.eup %8896 }
0x39c5   :  { %5078 = vrot.lane.b32.xlu1 %v8897_v40, %s9204_s4 }
0x39c8   :  { %v8899_v43 = vpop.eup %8898 }
0x39c9   :  { %5043 = vrot.lane.b32.xlu0 %v8899_v43, %s9204_s4 }
0x39ca   :  { %v8901_v53 = vpop.eup %8900 }
0x39cb   :  { %v5037_v14 = vadd.f32 1.0, %v8901_v53 }
0x39cd   :  { %8902 = vrcp.f32 %v5037_v14 }
0x39d7   :  { %v8903_v12 = vpop.eup %8902 }
0x39d8   :  { %v5041_v5 = vmul.f32 %v8903_v12, %v4843_v47 }
0x3a37   :  { %v5079_v26 = vpop.permute.xlu1 %5078 }
0x3a38   :  { %v10508_v35 = vmul.f32 %v8895_v46, %v5079_v26 }
0x3a3a   :  { %5167 = vrot.lane.b32.xlu1 %v10508_v35, %s9205_s15 }
0x3a3b   :  { %v5044_v62 = vpop.permute.xlu0 %5043 }
0x3a3c   :  { %v5046_v27 = vmul.f32 %v8903_v12, %v5044_v62 }
0x3a3e   :  { %5048 = vrot.lane.b32.xlu0 %v5046_v27, %s9205_s15 }
0x3aac   :  { %v5168_v51 = vpop.permute.xlu1 %5167 }
0x3aad   :  { %7913 = vmatmul.mubr.msk.f32.vlgmr.msra.gmra.mrb[68].mxu0 %vm343_vm1, %v5168_v51 }
0x3aae   :  { %8452 = vmatpush3.bf16.msra.mxu0 %v10310_v33  ;;  %7934 = vmatprep.mubr.msk.f32.mxu0 %vm9203_vm0, %v9202_v1 }
0x3aaf   :  { %8453 = vmatprep.subr.bf16.mxu0 %v9201_v0 }
0x3ab0   :  { %v5049_v21 = vpop.permute.xlu0 %5048 }
0x3ab1   :  { %v5051_v17 = vadd.f32 %v5049_v21, %v5041_v5 }
0x3ab2   :  { %8455 = vmatpush3.bf16.msra.mxu0 %v10314_v25 }
0x3ab3   :  { %8904 = vtanh.f32 %v5051_v17  ;;  %8462 = vmatprep.subr.bf16.mxu0 %v9201_v0 }
0x3abd   :  { %v8905_v41 = vpop.eup %8904 }
0x3abe   :  { %5054 = vrot.lane.b32.xlu0 %v8905_v41, %s9204_s4 }
0x3b30   :  { %v5055_v6 = vpop.permute.xlu0 %5054 }
0x3b31   :  { %v5057_v38 = vmul.f32 %v8903_v12, %v5055_v6 }
0x3b33   :  { %5083 = vrot.lane.b32.xlu0 %v5057_v38, %s9205_s15 }
0x3b80   :  { %v5237_v61 = vpop.f32.mrb[68].mxu0 }
0x3b81   :  { %v5241_v19 = vadd.f32 %v5237_v61, %v10368_v13  ;;  %v7914_v54 = vpop.f32.mrb[69].mxu0 }
0x3b83   :  { %8906 = vtanh.f32 %v5241_v19  ;;  %v7077_v13 = vmul.f32 -1.442695, %v5241_v19 }
0x3b85   :  { %8908 = vpow2.f32 %v7077_v13 }
0x3b8d   :  { %v8907_v18 = vpop.eup %8906 }
0x3b8e   :  { %5275 = vrot.lane.b32.xlu1 %v8907_v18, %s9204_s4 }
0x3b8f   :  { %v8909_v23 = vpop.eup %8908 }
0x3b90   :  { %v5269_v55 = vadd.f32 1.0, %v8909_v23 }
0x3b92   :  { %8910 = vrcp.f32 %v5269_v55 }
0x3b9c   :  { %v8911_v28 = vpop.eup %8910 }
0x3b9d   :  { %v5273_v47 = vmul.f32 %v8911_v28, %v5075_v11 }
0x3ba5   :  { %v10524_v7 = vpop.permute.xlu0 %5083 }
0x3ba6   :  { %7902 = vmatmul.mubr.msk.f32.vlgmr.msra.gmra.mrb[64].mxu1 %vm343_vm1, %v10524_v7 }
0x3ba7   :  { %8446 = vmatpush3.bf16.msra.mxu1 %v10270_v2  ;;  %7923 = vmatprep.mubr.msk.f32.mxu1 %vm9203_vm0, %v9202_v1 }
0x3ba8   :  { %8447 = vmatprep.subr.bf16.mxu1 %v9201_v0 }
0x3bab   :  { %8449 = vmatpush3.bf16.msra.mxu1 %v10292_v8 }
0x3bac   :  { %8456 = vmatprep.subr.bf16.mxu1 %v9201_v0 }
0x3c00   :  { %v5276_v34 = vpop.permute.xlu1 %5275 }
0x3c01   :  { %v5278_v39 = vmul.f32 %v8911_v28, %v5276_v34 }
0x3c03   :  { %5280 = vrot.lane.b32.xlu1 %v5278_v39, %s9205_s15 }
0x3c75   :  { %v5281_v16 = vpop.permute.xlu1 %5280 }
0x3c76   :  { %v5283_v48 = vadd.f32 %v5281_v16, %v5273_v47 }
0x3c78   :  { %8912 = vtanh.f32 %v5283_v48 }
0x3c79   :  { %v5161_v58 = vpop.f32.mrb[64].mxu1 }
0x3c7a   :  { %v5165_v56 = vadd.f32 %v5161_v58, %v10379_v3  ;;  %v7903_v52 = vpop.f32.mrb[65].mxu1 }
0x3c7c   :  { %8914 = vtanh.f32 %v5165_v56  ;;  %v7076_v22 = vmul.f32 -1.442695, %v5165_v56 }
0x3c7e   :  { %8916 = vpow2.f32 %v7076_v22 }
0x3c82   :  { %v8913_v32 = vpop.eup %8912 }
0x3c83   :  { %5286 = vrot.lane.b32.xlu1 %v8913_v32, %s9204_s4 }
0x3c86   :  { %v8915_v30 = vpop.eup %8914 }
0x3c87   :  { %5251 = vrot.lane.b32.xlu0 %v8915_v30, %s9204_s4 }
0x3c88   :  { %v8917_v45 = vpop.eup %8916 }
0x3c89   :  { %v5245_v63 = vadd.f32 1.0, %v8917_v45 }
0x3c8b   :  { %8918 = vrcp.f32 %v5245_v63 }
0x3c95   :  { %v8919_v3 = vpop.eup %8918 }
0x3c96   :  { %v5249_v24 = vmul.f32 %v8919_v3, %v5051_v17 }
0x3cf5   :  { %v5287_v31 = vpop.permute.xlu1 %5286 }
0x3cf6   :  { %v10538_v46 = vmul.f32 %v8911_v28, %v5287_v31 }
0x3cf8   :  { %5375 = vrot.lane.b32.xlu1 %v10538_v46, %s9205_s15 }
0x3cf9   :  { %v5252_v9 = vpop.permute.xlu0 %5251 }
0x3cfa   :  { %v5254_v10 = vmul.f32 %v8919_v3, %v5252_v9 }
0x3cfc   :  { %5256 = vrot.lane.b32.xlu0 %v5254_v10, %s9205_s15 }
0x3d6a   :  { %v5376_v50 = vpop.permute.xlu1 %5375 }
0x3d6b   :  { %7935 = vmatmul.mubr.msk.f32.vlgmr.msra.gmra.mrb[70].mxu0 %vm343_vm1, %v5376_v50 }
0x3d6c   :  { %8464 = vmatpush3.bf16.msra.mxu0 %v10310_v33  ;;  %7956 = vmatprep.mubr.msk.f32.mxu0 %vm9203_vm0, %v9202_v1 }
0x3d6d   :  { %8465 = vmatprep.subr.bf16.mxu0 %v9201_v0 }
0x3d6e   :  { %v5257_v11 = vpop.permute.xlu0 %5256 }
0x3d6f   :  { %v5259_v20 = vadd.f32 %v5257_v11, %v5249_v24  ;;  %v5724_v11 = vld [vmem:[%s10869_s13] sm:$0xff] }
0x3d70   :  { %8467 = vmatpush3.bf16.msra.mxu0 %v10314_v25 }
0x3d71   :  { %8920 = vtanh.f32 %v5259_v20  ;;  %8484 = vmatprep.subr.bf16.mxu0 %v9201_v0 }
0x3d7b   :  { %v8921_v44 = vpop.eup %8920 }
0x3d7c   :  { %5262 = vrot.lane.b32.xlu0 %v8921_v44, %s9204_s4  ;;  %v5726_v44 = vld [vmem:[%s10869_s13 + $0x20] sm:$0xff] }
0x3dee   :  { %v5263_v57 = vpop.permute.xlu0 %5262 }
0x3def   :  { %v5265_v40 = vmul.f32 %v8919_v3, %v5263_v57 }
0x3df1   :  { %5291 = vrot.lane.b32.xlu0 %v5265_v40, %s9205_s15 }
0x3e3e   :  { %v5445_v33 = vpop.f32.mrb[70].mxu0 }
0x3e3f   :  { %v5449_v43 = vadd.f32 %v5445_v33, %v10364_v36  ;;  %v7936_v60 = vpop.f32.mrb[71].mxu0  ;;  %v5727_v33 = vld [vmem:[%s10869_s13 + $0x30] sm:$0xff] }
0x3e41   :  { %8922 = vtanh.f32 %v5449_v43  ;;  %v7081_v25 = vmul.f32 -1.442695, %v5449_v43 }
0x3e43   :  { %8924 = vpow2.f32 %v7081_v25 }
0x3e4b   :  { %v8923_v53 = vpop.eup %8922 }
0x3e4c   :  { %5483 = vrot.lane.b32.xlu1 %v8923_v53, %s9204_s4  ;;  %v8472_v53 = vpack.c.bf16 %v5727_v33, %v5726_v44 }
0x3e4d   :  { %v8925_v36 = vpop.eup %8924 }
0x3e4e   :  { %v5477_v26 = vadd.f32 1.0, %v8925_v36  ;;  %v5728_v36 = vld [vmem:[%s10869_s13 + $0x40] sm:$0xff] }
0x3e50   :  { %8926 = vrcp.f32 %v5477_v26  ;;  %v5729_v26 = vld [vmem:[%s10869_s13 + $0x50] sm:$0xff] }
0x3e5a   :  { %v8927_v12 = vpop.eup %8926 }
0x3e5b   :  { %v5481_v51 = vmul.f32 %v8927_v12, %v5283_v48 }
0x3e63   :  { %v10554_v14 = vpop.permute.xlu0 %5291 }
0x3e64   :  { %7924 = vmatmul.mubr.msk.f32.vlgmr.msra.gmra.mrb[66].mxu1 %vm343_vm1, %v10554_v14 }
0x3e65   :  { %8458 = vmatpush3.bf16.msra.mxu1 %v10270_v2  ;;  %7945 = vmatprep.mubr.msk.f32.mxu1 %vm9203_vm0, %v9202_v1 }
0x3e66   :  { %8459 = vmatprep.subr.bf16.mxu1 %v9201_v0 }
0x3e69   :  { %8461 = vmatpush3.bf16.msra.mxu1 %v10292_v8 }
0x3ebe   :  { %v5484_v62 = vpop.permute.xlu1 %5483 }
0x3ebf   :  { %v5486_v27 = vmul.f32 %v8927_v12, %v5484_v62  ;;  %v5877_v62 = vld [vmem:[#allocation11 + $0x8] sm:$0xff] }
0x3ec1   :  { %5488 = vrot.lane.b32.xlu1 %v5486_v27, %s9205_s15  ;;  %v5730_v27 = vld [vmem:[%s10869_s13 + $0x60] sm:$0xff] }
0x3f33   :  { %v5489_v5 = vpop.permute.xlu1 %5488 }
0x3f34   :  { %v5491_v2 = vadd.f32 %v5489_v5, %v5481_v51  ;;  %v5731_v5 = vld [vmem:[%s10869_s13 + $0x70] sm:$0xff] }
0x3f36   :  { %8928 = vtanh.f32 %v5491_v2 }
0x3f37   :  { %v5369_v21 = vpop.f32.mrb[66].mxu1 }
0x3f38   :  { %v5373_v17 = vadd.f32 %v5369_v21, %v10383_v37  ;;  %v7925_v41 = vpop.f32.mrb[67].mxu1  ;;  %v5878_v21 = vld [vmem:[#allocation11 + $0x10] sm:$0xff] }
0x3f3a   :  { %8930 = vtanh.f32 %v5373_v17  ;;  %v7080_v38 = vmul.f32 -1.442695, %v5373_v17  ;;  %v5879_v17 = vld [vmem:[#allocation11 + $0x18] sm:$0xff] }
0x3f3b   :  { %v10618_v41 = vpack.c.bf16 %v5879_v17, %v5878_v21 }
0x3f3c   :  { %8932 = vpow2.f32 %v7080_v38 }
0x3f40   :  { %v8929_v8 = vpop.eup %8928 }
0x3f41   :  { %5494 = vrot.lane.b32.xlu1 %v8929_v8, %s9204_s4 }
0x3f44   :  { %v8931_v6 = vpop.eup %8930 }
0x3f45   :  { %5459 = vrot.lane.b32.xlu0 %v8931_v6, %s9204_s4 }
0x3f46   :  { %v8933_v61 = vpop.eup %8932 }
0x3f47   :  { %v5453_v19 = vadd.f32 1.0, %v8933_v61 }
0x3f49   :  { %8934 = vrcp.f32 %v5453_v19 }
0x3f53   :  { %v8935_v13 = vpop.eup %8934 }
0x3f54   :  { %v5457_v28 = vmul.f32 %v8935_v13, %v5259_v20  ;;  %v5725_v20 = vld [vmem:[%s10869_s13 + $0x10] sm:$0xff] }
0x3f55   :  { %v8468_v40 = vpack.c.bf16 %v5725_v20, %v5724_v11 }
0x3f57   :  { %8469 = vmatprep.subr.bf16.mxu1 %v8468_v40 }
0x3fb3   :  { %v5495_v54 = vpop.permute.xlu1 %5494 }
0x3fb4   :  { %v5497_v18 = vmul.f32 %v8927_v12, %v5495_v54  ;;  %v8476_v12 = vpack.c.bf16 %v5729_v26, %v5728_v36 }
0x3fb6   :  { %5583 = vrot.lane.b32.xlu1 %v5497_v18, %s9205_s15 }
0x3fb7   :  { %v5460_v23 = vpop.permute.xlu0 %5459 }
0x3fb8   :  { %v5462_v37 = vmul.f32 %v8935_v13, %v5460_v23 }
0x3fba   :  { %5464 = vrot.lane.b32.xlu0 %v5462_v37, %s9205_s15 }
0x4028   :  { %v5584_v55 = vpop.permute.xlu1 %5583 }
0x4029   :  { %7957 = vmatmul.mubr.msk.f32.vlgmr.msra.gmra.mrb[72].mxu0 %vm343_vm1, %v5584_v55 }
0x402a   :  { %7995 = vmatprep.mubr.msk.f32.mxu0 %vm9203_vm0, %v9202_v1 }
0x402c   :  { %v5465_v34 = vpop.permute.xlu0 %5464 }
0x402d   :  { %v10572_v39 = vadd.f32 %v5465_v34, %v5457_v28 }
0x402f   :  { %8936 = vtanh.f32 %v10572_v39 }
0x4039   :  { %v8937_v47 = vpop.eup %8936 }
0x403a   :  { %5470 = vrot.lane.b32.xlu0 %v8937_v47, %s9204_s4 }
0x40ac   :  { %v5471_v16 = vpop.permute.xlu0 %5470 }
0x40ad   :  { %v5473_v48 = vmul.f32 %v8935_v13, %v5471_v16  ;;  %v10641_v13 = vld [vmem:[%s10872_s16] ss:$0 sm:$0xff] }
0x40af   :  { %5499 = vrot.lane.b32.xlu0 %v5473_v48, %s9205_s15 }
0x40b3   :  { %5504 = vrot.lane.b32.xlu0 %v5497_v18, %s9204_s4 }
0x40fc   :  { %v5653_v58 = vpop.f32.mrb[72].mxu0 }
0x40fd   :  { %v5657_v56 = vadd.f32 %v5653_v58, %v10360_v49  ;;  %v7958_v52 = vpop.f32.mrb[73].mxu0 }
0x40ff   :  { %8938 = vtanh.f32 %v5657_v56  ;;  %v7085_v45 = vmul.f32 -1.442695, %v5657_v56 }
0x4101   :  { %8940 = vpow2.f32 %v7085_v45 }
0x4109   :  { %v8939_v32 = vpop.eup %8938 }
0x410a   :  { %5691 = vrot.lane.b32.xlu1 %v8939_v32, %s9204_s4 }
0x410b   :  { %v8941_v63 = vpop.eup %8940 }
0x410c   :  { %v5685_v31 = vadd.f32 1.0, %v8941_v63 }
0x410e   :  { %8942 = vrcp.f32 %v5685_v31 }
0x4118   :  { %v8943_v3 = vpop.eup %8942 }
0x4119   :  { %v5689_v10 = vmul.f32 %v8943_v3, %v5491_v2  ;;  %v8480_v2 = vpack.c.bf16 %v5731_v5, %v5730_v27 }
0x4121   :  { %v10580_v30 = vpop.permute.xlu0 %5499 }
0x4122   :  { %7946 = vmatmul.mubr.msk.f32.vlgmr.msra.gmra.mrb[68].mxu1 %vm343_vm1, %v10580_v30 }
0x4123   :  { %8471 = vmatpush3.bf16.msra.mxu1 %v8468_v40 }
0x4124   :  { %8473 = vmatprep.subr.bf16.mxu1 %v8472_v53 }
0x4125   :  { %v5505_v22 = vpop.permute.xlu0 %5504 }
0x4126   :  { %5507 = vst.msk [vmem:[#allocation2 + $0x8] sm:$0xff] %vm547_vm2, %v5505_v22 }
0x4127   :  { %8475 = vmatpush3.bf16.msra.mxu1 %v8472_v53 }
0x4128   :  { %8477 = vmatprep.subr.bf16.mxu1 %v8476_v12 }
0x412b   :  { %8479 = vmatpush3.bf16.msra.mxu1 %v8476_v12 }
0x412c   :  { %8481 = vmatprep.subr.bf16.mxu1 %v8480_v2 }
0x412d   :  { %v5717_v19 = vld [vmem:[#allocation2 + $0x8] sm:$0xff] }
0x412f   :  { %8483 = vmatpush3.bf16.msra.mxu1 %v8480_v2 }
0x4130   :  { %8502 = vmatprep.subr.bf16.mxu1 %v9201_v0 }
0x417c   :  { %v5692_v49 = vpop.permute.xlu1 %5691 }
0x417d   :  { %v5694_v9 = vmul.f32 %v8943_v3, %v5692_v49 }
0x417f   :  { %5696 = vrot.lane.b32.xlu1 %v5694_v9, %s9205_s15 }
0x41f1   :  { %v5697_v50 = vpop.permute.xlu1 %5696 }
0x41f2   :  { %v5699_v24 = vadd.f32 %v5697_v50, %v5689_v10 }
0x41f4   :  { %8944 = vtanh.f32 %v5699_v24 }
0x41f5   :  { %v5577_v57 = vpop.f32.mrb[68].mxu1 }
0x41f6   :  { %v10599_v43 = vadd.f32 %v5577_v57, %v10387_v29  ;;  %v7947_v60 = vpop.f32.mrb[69].mxu1  ;;  %v5876_v29 = vld [vmem:[#allocation11] sm:$0xff] }
0x41f7   :  { %v10611_v51 = vpack.c.bf16 %v5877_v62, %v5876_v29 }
0x41f8   :  { %v7084_v62 = vmul.f32 -1.442695, %v10599_v43 }
0x41f9   :  { %8486 = vmatpush3.bf16.msra.mxu0 %v10611_v51 }
0x41fa   :  { %8487 = vmatprep.subr.bf16.mxu0 %v9201_v0 }
0x41fd   :  { %8489 = vmatpush3.bf16.msra.mxu0 %v10618_v41 }
0x41fe   :  { %v8945_v25 = vpop.eup %8944  ;;  %8490 = vmatprep.subr.bf16.mxu0 %v9201_v0 }
0x41ff   :  { %5702 = vrot.lane.b32.xlu1 %v8945_v25, %s9204_s4 }
0x4200   :  { %7996 = vmatmul.mubr.f32.vlgmr.msra.gmra.mrb[74].mxu0 %v9202_v1 }
0x4201   :  { %8492 = vmatpush3.bf16.msra.mxu0 %v10611_v51  ;;  %8006 = vmatprep.mubr.msk.f32.mxu0 %vm9203_vm0, %v9202_v1 }
0x4202   :  { %8493 = vmatprep.subr.bf16.mxu0 %v9201_v0 }
0x4205   :  { %8495 = vmatpush3.bf16.msra.mxu0 %v10618_v41 }
0x4206   :  { %8496 = vmatprep.subr.bf16.mxu0 %v9201_v0 }
0x4271   :  { %v5703_v8 = vpop.permute.xlu1 %5702 }
0x4272   :  { %v5705_v6 = vmul.f32 %v8943_v3, %v5703_v8 }
0x4274   :  { %5712 = vrot.lane.b32.xlu1 %v5705_v6, %s9204_s4 }
0x42d3   :  { %v5947_v54 = vpop.f32.mrb[74].mxu0 }
0x42d4   :  { %v7997_v18 = vpop.f32.mrb[75].mxu0 }
0x42e6   :  { %v5713_v38 = vpop.permute.xlu1 %5712 }
0x42e7   :  { %5715 = vst.msk [vmem:[#allocation2] sm:$0xff] %vm547_vm2, %v5713_v38 }
0x42ee   :  { %v5716_v61 = vld [vmem:[#allocation2] sm:$0xff] }
0x42ef   :  { %7975 = vmatprep.mubr.msk.f32.mxu1 %vm2041_vm3, %v5716_v61 }
0x42f0   :  { %7976 = vmatmul.mubr.msk.f32.vlgmr.msra.gmra.mrb[70].mxu1 %vm2041_vm3, %v5717_v19 }
0x42f1   :  { %8504 = vmatpush3.bf16.msra.mxu1 %v10611_v51 }
0x42f2   :  { %8505 = vmatprep.subr.bf16.mxu1 %v9201_v0 }
0x42f5   :  { %8507 = vmatpush3.bf16.msra.mxu1 %v10618_v41 }
0x42f6   :  { %8514 = vmatprep.subr.bf16.mxu1 %v9201_v0 }
0x43c3   :  { %v7977_v23 = vpop.f32.mrb[70].mxu1 }
0x43c4   :  { %v5829_v37 = vpop.f32.mrb[71].mxu1  ;;  %v5835_v9 = vadd.f32 %v7977_v23, %v10641_v13 }
0x43c5   :  { %v5830_v55 = vadd.f32 %v10641_v13, %v5829_v37 }
0x43c7   :  { %v5951_v28 = vadd.f32 %v5947_v54, %v5830_v55 }
0x43c9   :  { %8946 = vtanh.f32 %v5951_v28  ;;  %v7095_v47 = vmul.f32 -1.442695, %v5951_v28 }
0x43cb   :  { %8948 = vpow2.f32 %v7095_v47 }
0x43d3   :  { %v8947_v34 = vpop.eup %8946 }
0x43d4   :  { %5961 = vrot.lane.b32.xlu1 %v8947_v34, %s9204_s4 }
0x43d5   :  { %v8949_v16 = vpop.eup %8948 }
0x43d6   :  { %v5955_v48 = vadd.f32 1.0, %v8949_v16 }
0x43d8   :  { %8950 = vrcp.f32 %v5955_v48 }
0x43e2   :  { %v8951_v58 = vpop.eup %8950 }
0x43e3   :  { %v5959_v32 = vmul.f32 0.0, %v8951_v58 }
0x4446   :  { %v5962_v56 = vpop.permute.xlu1 %5961 }
0x4447   :  { %v5964_v52 = vmul.f32 %v8951_v58, %v5962_v56 }
0x4449   :  { %5966 = vrot.lane.b32.xlu0 %v5964_v52, %s9205_s15 }
0x44bb   :  { %v5967_v22 = vpop.permute.xlu0 %5966 }
0x44bc   :  { %v5969_v45 = vadd.f32 %v5967_v22, %v5959_v32 }
0x44be   :  { %8952 = vtanh.f32 %v5969_v45 }
0x44c8   :  { %v8953_v63 = vpop.eup %8952 }
0x44c9   :  { %5972 = vrot.lane.b32.xlu1 %v8953_v63, %s9204_s4 }
0x453b   :  { %v5973_v31 = vpop.permute.xlu1 %5972 }
0x453c   :  { %v5975_v3 = vmul.f32 %v8951_v58, %v5973_v31 }
0x453e   :  { %5978 = vrot.lane.b32.xlu0 %v5975_v3, %s9205_s15 }
0x45b0   :  { %v5979_v49 = vpop.permute.xlu0 %5978 }
0x45b1   :  { %8007 = vmatmul.mubr.msk.f32.vlgmr.msra.gmra.mrb[76].mxu0 %vm343_vm1, %v5979_v49 }
0x45b2   :  { %8498 = vmatpush3.bf16.msra.mxu0 %v10611_v51  ;;  %8017 = vmatprep.mubr.msk.f32.mxu0 %vm9203_vm0, %v9202_v1 }
0x45b3   :  { %8499 = vmatprep.subr.bf16.mxu0 %v9201_v0 }
0x45b6   :  { %8501 = vmatpush3.bf16.msra.mxu0 %v10618_v41 }
0x45b7   :  { %8508 = vmatprep.subr.bf16.mxu0 %v9201_v0 }
0x4684   :  { %v6048_v10 = vpop.f32.mrb[76].mxu0 }
0x4685   :  { %v6052_v50 = vadd.f32 %v6048_v10, %v5835_v9  ;;  %v8008_v24 = vpop.f32.mrb[77].mxu0 }
0x4687   :  { %8954 = vtanh.f32 %v6052_v50  ;;  %v7097_v20 = vmul.f32 -1.442695, %v6052_v50 }
0x4689   :  { %8956 = vpow2.f32 %v7097_v20 }
0x4691   :  { %v8955_v11 = vpop.eup %8954 }
0x4692   :  { %6062 = vrot.lane.b32.xlu1 %v8955_v11, %s9204_s4 }
0x4693   :  { %v8957_v44 = vpop.eup %8956 }
0x4694   :  { %v6056_v57 = vadd.f32 1.0, %v8957_v44 }
0x4696   :  { %8958 = vrcp.f32 %v6056_v57 }
0x46a0   :  { %v8959_v40 = vpop.eup %8958 }
0x46a1   :  { %v6060_v53 = vmul.f32 %v8959_v40, %v5969_v45 }
0x4704   :  { %v6063_v33 = vpop.permute.xlu1 %6062 }
0x4705   :  { %v6065_v60 = vmul.f32 %v8959_v40, %v6063_v33 }
0x4707   :  { %6067 = vrot.lane.b32.xlu0 %v6065_v60, %s9205_s15 }
0x470b   :  { %5296 = vrot.lane.b32.xlu0 %v10538_v46, %s9204_s4 }
0x4779   :  { %v6068_v25 = vpop.permute.xlu0 %6067 }
0x477a   :  { %v10660_v36 = vadd.f32 %v6068_v25, %v6060_v53 }
0x477c   :  { %8960 = vtanh.f32 %v10660_v36 }
0x477d   :  { %v5297_v26 = vpop.permute.xlu0 %5296  ;;  %8962 = vtanh.f32 %v10599_v43 }
0x477e   :  { %5299 = vst.msk [vmem:[#allocation2 + $0x10] sm:$0xff] %vm547_vm2, %v5297_v26  ;;  %8964 = vpow2.f32 %v7084_v62 }
0x4785   :  { %v5718_v12 = vld [vmem:[#allocation2 + $0x10] sm:$0xff] }
0x4786   :  { %v8961_v29 = vpop.eup %8960  ;;  %7978 = vmatprep.mubr.msk.f32.mxu1 %vm2041_vm3, %v5718_v12 }
0x4787   :  { %6073 = vrot.lane.b32.xlu1 %v8961_v29, %s9204_s4  ;;  %v8963_v46 = vpop.eup %8962 }
0x4788   :  { %v8965_v27 = vpop.eup %8964 }
0x4789   :  { %v5661_v5 = vadd.f32 1.0, %v8965_v27 }
0x478b   :  { %5088 = vrot.lane.b32.xlu1 %v10508_v35, %s9204_s4  ;;  %8966 = vrcp.f32 %v5661_v5 }
0x478f   :  { %5667 = vrot.lane.b32.xlu1 %v8963_v46, %s9204_s4 }
0x4795   :  { %v8967_v8 = vpop.eup %8966 }
0x4796   :  { %v5665_v61 = vmul.f32 %v8967_v8, %v10572_v39 }
0x47f9   :  { %v6074_v2 = vpop.permute.xlu1 %6073 }
0x47fa   :  { %v6076_v21 = vmul.f32 %v8959_v40, %v6074_v2 }
0x47fc   :  { %6079 = vrot.lane.b32.xlu0 %v6076_v21, %s9205_s15 }
0x47fd   :  { %v5089_v17 = vpop.permute.xlu1 %5088 }
0x47fe   :  { %5091 = vst.msk [vmem:[#allocation2 + $0x18] sm:$0xff] %vm547_vm2, %v5089_v17 }
0x4801   :  { %v5668_v6 = vpop.permute.xlu1 %5667 }
0x4802   :  { %v5670_v38 = vmul.f32 %v8967_v8, %v5668_v6 }
0x4804   :  { %5672 = vrot.lane.b32.xlu1 %v5670_v38, %s9205_s15 }
0x4805   :  { %v5719_v35 = vld [vmem:[#allocation2 + $0x18] sm:$0xff] }
0x4806   :  { %7979 = vmatmul.mubr.msk.f32.gmra.mrb[72].mxu1 %vm2041_vm3, %v5719_v35 }
0x486e   :  { %v6080_v43 = vpop.permute.xlu0 %6079 }
0x486f   :  { %8018 = vmatmul.mubr.msk.f32.vlgmr.msra.gmra.mrb[78].mxu0 %vm343_vm1, %v6080_v43 }
0x4870   :  { %8510 = vmatpush3.bf16.msra.mxu0 %v10611_v51  ;;  %8039 = vmatprep.mubr.msk.f32.mxu0 %vm9203_vm0, %v9202_v1 }
0x4871   :  { %8511 = vmatprep.subr.bf16.mxu0 %v9201_v0 }
0x4874   :  { %8513 = vmatpush3.bf16.msra.mxu0 %v10618_v41 }
0x4875   :  { %8520 = vmatprep.subr.bf16.mxu0 %v9201_v0 }
0x4876   :  { %v5673_v19 = vpop.permute.xlu1 %5672 }
0x4877   :  { %v5675_v54 = vadd.f32 %v5673_v19, %v5665_v61 }
0x4879   :  { %8968 = vtanh.f32 %v5675_v54 }
0x4883   :  { %v8969_v18 = vpop.eup %8968 }
0x4884   :  { %5678 = vrot.lane.b32.xlu1 %v8969_v18, %s9204_s4 }
0x4888   :  { %4880 = vrot.lane.b32.xlu1 %v10480_v42, %s9204_s4 }
0x488c   :  { %4464 = vrot.lane.b32.xlu1 %v10423_v15, %s9204_s4 }
0x48d9   :  { %v10688_v23 = vpop.f32.mrb[72].mxu1 }
0x48da   :  { %v5839_v37 = vpop.f32.mrb[73].mxu1  ;;  %v5845_v33 = vadd.f32 %v10688_v23, %v10641_v13 }
0x48db   :  { %v5840_v42 = vadd.f32 %v10641_v13, %v5839_v37 }
0x48f6   :  { %v5679_v55 = vpop.permute.xlu1 %5678 }
0x48f7   :  { %v5681_v28 = vmul.f32 %v8967_v8, %v5679_v55 }
0x48f9   :  { %5707 = vrot.lane.b32.xlu1 %v5681_v28, %s9205_s15 }
0x48fa   :  { %v4881_v39 = vpop.permute.xlu1 %4880 }
0x48fb   :  { %4883 = vst.msk [vmem:[#allocation2 + $0x20] sm:$0xff] %vm547_vm2, %v4881_v39 }
0x48fc   :  { %5086 = vst.msk [vmem:[#allocation2 + $0x20] sm:$0xff] %vm343_vm1, %v10524_v7 }
0x48fe   :  { %v4465_v34 = vpop.permute.xlu1 %4464 }
0x48ff   :  { %4467 = vst.msk [vmem:[#allocation2 + $0x30] sm:$0xff] %vm547_vm2, %v4465_v34 }
0x4900   :  { %5502 = vst.msk [vmem:[#allocation2 + $0x30] sm:$0xff] %vm343_vm1, %v10580_v30 }
0x4903   :  { %v5720_v15 = vld [vmem:[#allocation2 + $0x20] sm:$0xff] }
0x4904   :  { %7981 = vmatprep.mubr.msk.f32.mxu1 %vm2041_vm3, %v5720_v15 }
0x4942   :  { %v6149_v47 = vpop.f32.mrb[78].mxu0 }
0x4943   :  { %v6153_v16 = vadd.f32 %v6149_v47, %v5840_v42  ;;  %v8019_v48 = vpop.f32.mrb[79].mxu0 }
0x4945   :  { %8970 = vtanh.f32 %v6153_v16  ;;  %v7099_v56 = vmul.f32 -1.442695, %v6153_v16 }
0x4947   :  { %8972 = vpow2.f32 %v7099_v56 }
0x494f   :  { %v8971_v58 = vpop.eup %8970 }
0x4950   :  { %6163 = vrot.lane.b32.xlu0 %v8971_v58, %s9204_s4 }
0x4951   :  { %v8973_v7 = vpop.eup %8972 }
0x4952   :  { %v6157_v52 = vadd.f32 1.0, %v8973_v7 }
0x4954   :  { %8974 = vrcp.f32 %v6157_v52 }
0x495e   :  { %v8975_v32 = vpop.eup %8974 }
0x495f   :  { %v6161_v45 = vmul.f32 %v8975_v32, %v10660_v36 }
0x496b   :  { %v5708_v24 = vpop.permute.xlu1 %5707 }
0x49c2   :  { %v6164_v22 = vpop.permute.xlu0 %6163 }
0x49c3   :  { %v6166_v30 = vmul.f32 %v8975_v32, %v6164_v22 }
0x49c5   :  { %6168 = vrot.lane.b32.xlu0 %v6166_v30, %s9205_s15 }
0x4a37   :  { %v6169_v63 = vpop.permute.xlu0 %6168 }
0x4a38   :  { %v6171_v31 = vadd.f32 %v6169_v63, %v6161_v45 }
0x4a3a   :  { %8976 = vtanh.f32 %v6171_v31 }
0x4a44   :  { %v8977_v3 = vpop.eup %8976 }
0x4a45   :  { %6174 = vrot.lane.b32.xlu0 %v8977_v3, %s9204_s4 }
0x4a49   :  { %4672 = vrot.lane.b32.xlu0 %v10452_v4, %s9204_s4 }
0x4a4d   :  { %4256 = vrot.lane.b32.xlu0 %v10398_v59, %s9204_s4  ;;  %v5722_v59 = vld [vmem:[#allocation2 + $0x30] sm:$0xff] }
0x4ab7   :  { %v6175_v49 = vpop.permute.xlu0 %6174 }
0x4ab8   :  { %v6177_v9 = vmul.f32 %v8975_v32, %v6175_v49 }
0x4aba   :  { %6180 = vrot.lane.b32.xlu0 %v6177_v9, %s9205_s15 }
0x4abb   :  { %v4673_v10 = vpop.permute.xlu0 %4672 }
0x4abc   :  { %4675 = vst.msk [vmem:[#allocation2 + $0x28] sm:$0xff] %vm547_vm2, %v4673_v10 }
0x4abd   :  { %5294 = vst.msk [vmem:[#allocation2 + $0x28] sm:$0xff] %vm343_vm1, %v10554_v14 }
0x4abf   :  { %v4257_v50 = vpop.permute.xlu0 %4256 }
0x4ac0   :  { %4259 = vst.msk [vmem:[#allocation2 + $0x38] sm:$0xff] %vm547_vm2, %v4257_v50 }
0x4ac1   :  { %5710 = vst.msk [vmem:[#allocation2 + $0x38] sm:$0xff] %vm343_vm1, %v5708_v24 }
0x4ac4   :  { %v5721_v4 = vld [vmem:[#allocation2 + $0x28] sm:$0xff] }
0x4ac5   :  { %7982 = vmatmul.mubr.msk.f32.gmra.mrb[74].mxu1 %vm2041_vm3, %v5721_v4  ;;  %v6683_v4 = vld [vmem:[%s10869_s13 + $0x8] sm:$0xff] }
0x4ac6   :  { %7984 = vmatprep.mubr.msk.f32.mxu1 %vm2041_vm3, %v5722_v59  ;;  %v6684_v59 = vld [vmem:[%s10869_s13 + $0x18] sm:$0xff] }
0x4ac8   :  { %v10715_v11 = vld [vmem:[#allocation2 + $0x38] sm:$0xff] }
0x4ac9   :  { %7985 = vmatmul.mubr.msk.f32.gmra.mrb[76].mxu1 %vm2041_vm3, %v10715_v11 }
0x4aca   :  { %8028 = vmatprep.mubr.msk.f32.mxu1 %vm9203_vm0, %v9202_v1 }
0x4b2c   :  { %v6181_v14 = vpop.permute.xlu0 %6180 }
0x4b2d   :  { %8029 = vmatmul.mubr.msk.f32.vlgmr.msra.gmra.mrb[78].mxu1 %vm343_vm1, %v6181_v14  ;;  %v8533_v14 = vpack.c.bf16 %v6684_v59, %v6683_v4 }
0x4b2e   :  { %8516 = vmatpush3.bf16.msra.mxu1 %v10611_v51  ;;  %8050 = vmatprep.mubr.msk.f32.mxu1 %vm9203_vm0, %v9202_v1 }
0x4b2f   :  { %8517 = vmatprep.subr.bf16.mxu1 %v9201_v0 }
0x4b32   :  { %8519 = vmatpush3.bf16.msra.mxu1 %v10618_v41 }
0x4b33   :  { %8526 = vmatprep.subr.bf16.mxu1 %v9201_v0 }
0x4b98   :  { %v10728_v20 = vpop.f32.mrb[74].mxu1 }
0x4b99   :  { %v5849_v44 = vpop.f32.mrb[75].mxu1  ;;  %v5855_v56 = vadd.f32 %v10728_v20, %v10641_v13  ;;  %v6685_v20 = vld [vmem:[%s10869_s13 + $0x28] sm:$0xff] }
0x4b9a   :  { %v5850_v35 = vadd.f32 %v10641_v13, %v5849_v44  ;;  %v6686_v44 = vld [vmem:[%s10869_s13 + $0x38] sm:$0xff] }
0x4b9c   :  { %v10730_v57 = vpop.f32.mrb[76].mxu1 }
0x4b9d   :  { %v10732_v40 = vpop.f32.mrb[77].mxu1 }
0x4c00   :  { %v6250_v60 = vpop.f32.mrb[78].mxu1 }
0x4c01   :  { %v6254_v53 = vadd.f32 %v6250_v60, %v5845_v33  ;;  %v8030_v25 = vpop.f32.mrb[79].mxu1  ;;  %v8536_v60 = vpack.c.bf16 %v6686_v44, %v6685_v20 }
0x4c02   :  { %v6688_v25 = vld [vmem:[%s10869_s13 + $0x58] sm:$0xff] }
0x4c03   :  { %8978 = vtanh.f32 %v6254_v53  ;;  %v7101_v26 = vmul.f32 -1.442695, %v6254_v53  ;;  %v6687_v53 = vld [vmem:[%s10869_s13 + $0x48] sm:$0xff] }
0x4c05   :  { %8980 = vpow2.f32 %v7101_v26  ;;  %v6689_v26 = vld [vmem:[%s10869_s13 + $0x68] sm:$0xff] }
0x4c0d   :  { %v8979_v36 = vpop.eup %8978 }
0x4c0e   :  { %6264 = vrot.lane.b32.xlu1 %v8979_v36, %s9204_s4  ;;  %v8539_v36 = vpack.c.bf16 %v6688_v25, %v6687_v53  ;;  %v6792_v53 = vld [vmem:[%s10873_s17] sm:$0xff]  ;;  %v6794_v25 = vld [vmem:[%s10873_s17 + $0x10] sm:$0xff] }
0x4c0f   :  { %v8981_v12 = vpop.eup %8980 }
0x4c10   :  { %v6258_v29 = vadd.f32 1.0, %v8981_v12  ;;  %v6690_v12 = vld [vmem:[%s10869_s13 + $0x78] sm:$0xff] }
0x4c12   :  { %8982 = vrcp.f32 %v6258_v29  ;;  %v8542_v29 = vpack.c.bf16 %v6690_v12, %v6689_v26  ;;  %v6795_v12 = vld [vmem:[%s10873_s17 + $0x18] sm:$0xff] }
0x4c1c   :  { %v8983_v46 = vpop.eup %8982 }
0x4c1d   :  { %v6262_v5 = vmul.f32 %v8983_v46, %v6171_v31 }
0x4c80   :  { %v6265_v62 = vpop.permute.xlu1 %6264 }
0x4c81   :  { %v6267_v27 = vmul.f32 %v8983_v46, %v6265_v62 }
0x4c83   :  { %6269 = vrot.lane.b32.xlu0 %v6267_v27, %s9205_s15 }
0x4cf5   :  { %v6270_v2 = vpop.permute.xlu0 %6269 }
0x4cf6   :  { %v6272_v21 = vadd.f32 %v6270_v2, %v6262_v5 }
0x4cf8   :  { %8984 = vtanh.f32 %v6272_v21 }
0x4d02   :  { %v8985_v17 = vpop.eup %8984 }
0x4d03   :  { %6275 = vrot.lane.b32.xlu1 %v8985_v17, %s9204_s4 }
0x4d75   :  { %v6276_v8 = vpop.permute.xlu1 %6275 }
0x4d76   :  { %v6278_v6 = vmul.f32 %v8983_v46, %v6276_v8  ;;  %v5860_v46 = vadd.f32 %v10641_v13, %v10732_v40 }
0x4d78   :  { %6281 = vrot.lane.b32.xlu0 %v6278_v6, %s9205_s15 }
0x4dea   :  { %v6282_v38 = vpop.permute.xlu0 %6281 }
0x4deb   :  { %8040 = vmatmul.mubr.msk.f32.vlgmr.msra.gmra.mrb[80].mxu0 %vm343_vm1, %v6282_v38 }
0x4dec   :  { %8522 = vmatpush3.bf16.msra.mxu0 %v10611_v51  ;;  %8061 = vmatprep.mubr.msk.f32.mxu0 %vm9203_vm0, %v9202_v1 }
0x4ded   :  { %8523 = vmatprep.subr.bf16.mxu0 %v9201_v0 }
0x4df0   :  { %8525 = vmatpush3.bf16.msra.mxu0 %v10618_v41 }
0x4df1   :  { %8532 = vmatprep.subr.bf16.mxu0 %v9201_v0 }
0x4ebe   :  { %v6351_v43 = vpop.f32.mrb[80].mxu0 }
0x4ebf   :  { %v6355_v61 = vadd.f32 %v6351_v43, %v5850_v35  ;;  %v8041_v19 = vpop.f32.mrb[81].mxu0 }
0x4ec1   :  { %8986 = vtanh.f32 %v6355_v61  ;;  %v7103_v18 = vmul.f32 -1.442695, %v6355_v61  ;;  %v7110_v61 = vld [vmem:[%s10872_s16 + $0x1] ss:$0 sm:$0xff] }
0x4ec3   :  { %8988 = vpow2.f32 %v7103_v18 }
0x4ecb   :  { %v8987_v54 = vpop.eup %8986 }
0x4ecc   :  { %6365 = vrot.lane.b32.xlu1 %v8987_v54, %s9204_s4 }
0x4ecd   :  { %v8989_v23 = vpop.eup %8988 }
0x4ece   :  { %v6359_v37 = vadd.f32 1.0, %v8989_v23 }
0x4ed0   :  { %8990 = vrcp.f32 %v6359_v37 }
0x4eda   :  { %v8991_v55 = vpop.eup %8990 }
0x4edb   :  { %v6363_v34 = vmul.f32 %v8991_v55, %v6272_v21 }
0x4f3e   :  { %v6366_v28 = vpop.permute.xlu1 %6365 }
0x4f3f   :  { %v6368_v39 = vmul.f32 %v8991_v55, %v6366_v28 }
0x4f41   :  { %6370 = vrot.lane.b32.xlu0 %v6368_v39, %s9205_s15 }
0x4fb3   :  { %v6371_v15 = vpop.permute.xlu0 %6370 }
0x4fb4   :  { %v6373_v42 = vadd.f32 %v6371_v15, %v6363_v34 }
0x4fb6   :  { %8992 = vtanh.f32 %v6373_v42 }
0x4fc0   :  { %v8993_v47 = vpop.eup %8992 }
0x4fc1   :  { %6376 = vrot.lane.b32.xlu1 %v8993_v47, %s9204_s4 }
0x5033   :  { %v6377_v16 = vpop.permute.xlu1 %6376 }
0x5034   :  { %v6379_v48 = vmul.f32 %v8991_v55, %v6377_v16 }
0x5036   :  { %6382 = vrot.lane.b32.xlu0 %v6379_v48, %s9205_s15 }
0x50a8   :  { %v6383_v58 = vpop.permute.xlu0 %6382 }
0x50a9   :  { %8051 = vmatmul.mubr.msk.f32.vlgmr.msra.gmra.mrb[80].mxu1 %vm343_vm1, %v6383_v58 }
0x50aa   :  { %8528 = vmatpush3.bf16.msra.mxu1 %v10611_v51  ;;  %8072 = vmatprep.mubr.msk.f32.mxu1 %vm9203_vm0, %v9202_v1 }
0x50ab   :  { %8529 = vmatprep.subr.bf16.mxu1 %v9201_v0 }
0x50ae   :  { %8531 = vmatpush3.bf16.msra.mxu1 %v10618_v41 }
0x50af   :  { %8544 = vmatprep.subr.bf16.mxu1 %v9201_v0 }
0x517c   :  { %v6452_v7 = vpop.f32.mrb[80].mxu1 }
0x517d   :  { %v6456_v52 = vadd.f32 %v6452_v7, %v5855_v56  ;;  %v8052_v32 = vpop.f32.mrb[81].mxu1 }
0x517e   :  { %v6796_v32 = vld [vmem:[%s10873_s17 + $0x20] sm:$0xff] }
0x517f   :  { %8994 = vtanh.f32 %v6456_v52  ;;  %v7105_v51 = vmul.f32 -1.442695, %v6456_v52 }
0x5181   :  { %8996 = vpow2.f32 %v7105_v51  ;;  %v6798_v51 = vld [vmem:[%s10873_s17 + $0x30] sm:$0xff] }
0x5189   :  { %v8995_v22 = vpop.eup %8994 }
0x518a   :  { %6466 = vrot.lane.b32.xlu1 %v8995_v22, %s9204_s4  ;;  %v6797_v22 = vld [vmem:[%s10873_s17 + $0x28] sm:$0xff] }
0x518b   :  { %v8997_v30 = vpop.eup %8996 }
0x518c   :  { %v6460_v45 = vadd.f32 1.0, %v8997_v30  ;;  %v8545_v30 = vpack.c.bf16 %v6797_v22, %v6796_v32 }
0x518e   :  { %8998 = vrcp.f32 %v6460_v45  ;;  %v6799_v45 = vld [vmem:[%s10873_s17 + $0x38] sm:$0xff] }
0x5198   :  { %v8999_v63 = vpop.eup %8998 }
0x5199   :  { %v6464_v3 = vmul.f32 %v8999_v63, %v6373_v42 }
0x51fc   :  { %v6467_v31 = vpop.permute.xlu1 %6466 }
0x51fd   :  { %v6469_v41 = vmul.f32 %v8999_v63, %v6467_v31 }
0x51ff   :  { %6471 = vrot.lane.b32.xlu0 %v6469_v41, %s9205_s15 }
0x5271   :  { %v6472_v49 = vpop.permute.xlu0 %6471 }
0x5272   :  { %v6474_v9 = vadd.f32 %v6472_v49, %v6464_v3  ;;  %v5865_v3 = vadd.f32 %v10730_v57, %v10641_v13 }
0x5274   :  { %9000 = vtanh.f32 %v6474_v9 }
0x527e   :  { %v9001_v10 = vpop.eup %9000 }
0x527f   :  { %6477 = vrot.lane.b32.xlu1 %v9001_v10, %s9204_s4 }
0x52f1   :  { %v6478_v50 = vpop.permute.xlu1 %6477 }
0x52f2   :  { %v6480_v24 = vmul.f32 %v8999_v63, %v6478_v50  ;;  %v8548_v63 = vpack.c.bf16 %v6799_v45, %v6798_v51 }
0x52f4   :  { %6483 = vrot.lane.b32.xlu0 %v6480_v24, %s9205_s15 }
0x5366   :  { %v6484_v33 = vpop.permute.xlu0 %6483 }
0x5367   :  { %8062 = vmatmul.mubr.msk.f32.vlgmr.msra.gmra.mrb[82].mxu0 %vm343_vm1, %v6484_v33 }
0x5368   :  { %8534 = vmatpush3.bf16.msra.mxu0 %v8533_v14  ;;  %8091 = vmatprep.mubr.msk.f32.mxu0 %vm9203_vm0, %v9202_v1 }
0x5369   :  { %8535 = vmatprep.subr.bf16.mxu0 %v9201_v0 }
0x536c   :  { %8537 = vmatpush3.bf16.msra.mxu0 %v8536_v60 }
0x536d   :  { %8538 = vmatprep.subr.bf16.mxu0 %v9201_v0 }
0x5370   :  { %8540 = vmatpush3.bf16.msra.mxu0 %v8539_v36 }
0x5371   :  { %8541 = vmatprep.subr.bf16.mxu0 %v9201_v0 }
0x5374   :  { %8543 = vmatpush3.bf16.msra.mxu0 %v8542_v29 }
0x5377   :  { %8092 = vmatmul.mubr.msk.f32.vlgmr.msra.gmra.mrb[84].mxu0 %vm2041_vm3, %v10715_v11 }
0x543a   :  { %v6553_v62 = vpop.f32.mrb[82].mxu0 }
0x543b   :  { %v6557_v27 = vadd.f32 %v6553_v62, %v5860_v46  ;;  %v8063_v5 = vpop.f32.mrb[83].mxu0  ;;  %v8554_v46 = vpack.c.bf16 %v6795_v12, %v6794_v25 }
0x543d   :  { %9002 = vtanh.f32 %v6557_v27  ;;  %v7107_v8 = vmul.f32 -1.442695, %v6557_v27 }
0x543f   :  { %9004 = vpow2.f32 %v7107_v8 }
0x5447   :  { %v9003_v2 = vpop.eup %9002 }
0x5448   :  { %6567 = vrot.lane.b32.xlu1 %v9003_v2, %s9204_s4 }
0x5449   :  { %v9005_v6 = vpop.eup %9004 }
0x544a   :  { %v6764_v21 = vpop.f32.mrb[84].mxu0  ;;  %v6561_v38 = vadd.f32 1.0, %v9005_v6 }
0x544b   :  { %v8093_v17 = vpop.f32.mrb[85].mxu0  ;;  %v6765_v18 = vadd.f32 %v7110_v61, %v6764_v21 }
0x544c   :  { %9006 = vrcp.f32 %v6561_v38  ;;  %v7115_v17 = vld [vmem:[#allocation14] ss:$0 sm:$0xff] }
0x544d   :  { %v7112_v55 = vmul.f32 -1.442695, %v6765_v18 }
0x5456   :  { %v9007_v35 = vpop.eup %9006 }
0x5457   :  { %v6565_v40 = vmul.f32 %v9007_v35, %v6474_v9 }
0x54ba   :  { %v6568_v43 = vpop.permute.xlu1 %6567 }
0x54bb   :  { %v6570_v11 = vmul.f32 %v9007_v35, %v6568_v43 }
0x54bd   :  { %6572 = vrot.lane.b32.xlu0 %v6570_v11, %s9205_s15 }
0x552f   :  { %v6573_v19 = vpop.permute.xlu0 %6572 }
0x5530   :  { %v6575_v54 = vadd.f32 %v6573_v19, %v6565_v40 }
0x5532   :  { %9008 = vtanh.f32 %v6575_v54 }
0x5533   :  { %9010 = vtanh.f32 %v6765_v18 }
0x5534   :  { %9012 = vpow2.f32 %v7112_v55 }
0x553c   :  { %v9009_v23 = vpop.eup %9008 }
0x553d   :  { %6578 = vrot.lane.b32.xlu1 %v9009_v23, %s9204_s4  ;;  %v9011_v37 = vpop.eup %9010 }
0x553e   :  { %v9013_v28 = vpop.eup %9012 }
0x553f   :  { %v6771_v39 = vadd.f32 1.0, %v9013_v28 }
0x5541   :  { %6777 = vrot.lane.b32.xlu1 %v9011_v37, %s9204_s4  ;;  %9014 = vrcp.f32 %v6771_v39 }
0x554b   :  { %v9015_v42 = vpop.eup %9014 }
0x554c   :  { %v6775_v58 = vmul.f32 0.0, %v9015_v42 }
0x55af   :  { %v6579_v34 = vpop.permute.xlu1 %6578 }
0x55b0   :  { %v6581_v15 = vmul.f32 %v9007_v35, %v6579_v34 }
0x55b2   :  { %6584 = vrot.lane.b32.xlu0 %v6581_v15, %s9205_s15 }
0x55b3   :  { %v6778_v47 = vpop.permute.xlu1 %6777 }
0x55b4   :  { %v6780_v16 = vmul.f32 %v9015_v42, %v6778_v47 }
0x55b6   :  { %6782 = vrot.lane.b32.xlu1 %v6780_v16, %s9205_s15 }
0x5624   :  { %v6585_v48 = vpop.permute.xlu0 %6584 }
0x5625   :  { %8073 = vmatmul.mubr.msk.f32.vlgmr.msra.gmra.mrb[82].mxu1 %vm343_vm1, %v6585_v48 }
0x5626   :  { %8102 = vmatprep.mubr.msk.f32.mxu1 %vm9203_vm0, %v9202_v1  ;;  %8546 = vmatpush3.bf16.msra.mxu1 %v8545_v30 }
0x5627   :  { %8547 = vmatprep.subr.bf16.mxu1 %v9201_v0 }
0x5628   :  { %v6783_v56 = vpop.permute.xlu1 %6782 }
0x5629   :  { %v6785_v7 = vadd.f32 %v6783_v56, %v6775_v58 }
0x562a   :  { %8549 = vmatpush3.bf16.msra.mxu1 %v8548_v63 }
0x562b   :  { %9016 = vtanh.f32 %v6785_v7  ;;  %8550 = vmatprep.subr.bf16.mxu1 %v9201_v0 }
0x5635   :  { %v9017_v52 = vpop.eup %9016 }
0x5636   :  { %6788 = vrot.lane.b32.xlu1 %v9017_v52, %s9204_s4 }
0x56a8   :  { %v6789_v31 = vpop.permute.xlu1 %6788 }
0x56a9   :  { %v6791_v41 = vmul.f32 %v9015_v42, %v6789_v31 }
0x56ab   :  { %6801 = vrot.lane.b32.xlu1 %v6791_v41, %s9205_s15 }
0x56f8   :  { %v6654_v49 = vpop.f32.mrb[82].mxu1 }
0x56f9   :  { %v6658_v9 = vadd.f32 %v6654_v49, %v5865_v3  ;;  %v8074_v10 = vpop.f32.mrb[83].mxu1 }
0x56fb   :  { %9018 = vtanh.f32 %v6658_v9  ;;  %v7109_v4 = vmul.f32 -1.442695, %v6658_v9 }
0x56fd   :  { %9020 = vpow2.f32 %v7109_v4 }
0x5705   :  { %v9019_v50 = vpop.eup %9018 }
0x5706   :  { %6668 = vrot.lane.b32.xlu0 %v9019_v50, %s9204_s4 }
0x5707   :  { %v9021_v59 = vpop.eup %9020 }
0x5708   :  { %v6662_v14 = vadd.f32 1.0, %v9021_v59 }
0x570a   :  { %9022 = vrcp.f32 %v6662_v14 }
0x5714   :  { %v9023_v20 = vpop.eup %9022 }
0x5715   :  { %v6666_v44 = vmul.f32 %v9023_v20, %v6575_v54 }
0x571d   :  { %v6802_v24 = vpop.permute.xlu1 %6801 }
0x571e   :  { %8103 = vmatmul.mubr.msk.f32.vlgmr.msra.gmra.mrb[84].mxu1 %vm343_vm1, %v6802_v24 }
0x571f   :  { %8113 = vmatprep.mubr.msk.f32.mxu1 %vm9203_vm0, %v9202_v1  ;;  %v6793_v1 = vld [vmem:[%s10873_s17 + $0x8] sm:$0xff] }
0x5720   :  { %v8551_v26 = vpack.c.bf16 %v6793_v1, %v6792_v53 }
0x5722   :  { %8552 = vmatpush3.bf16.msra.mxu1 %v8551_v26 }
0x5723   :  { %8553 = vmatprep.subr.bf16.mxu1 %v9201_v0 }
0x5726   :  { %8555 = vmatpush3.bf16.msra.mxu1 %v8554_v46 }
0x5778   :  { %v6669_v13 = vpop.permute.xlu0 %6668 }
0x5779   :  { %v6671_v57 = vmul.f32 %v9023_v20, %v6669_v13 }
0x577b   :  { %6673 = vrot.lane.b32.xlu0 %v6671_v57, %s9205_s15 }
0x57ed   :  { %v6674_v33 = vpop.permute.xlu0 %6673 }
0x57ee   :  { %v6676_v60 = vadd.f32 %v6674_v33, %v6666_v44 }
0x57f0   :  { %9024 = vtanh.f32 %v6676_v60 }
0x57f1   :  { %v6871_v36 = vpop.f32.mrb[84].mxu1 }
0x57f2   :  { %v8104_v29 = vpop.f32.mrb[85].mxu1 }
0x57fa   :  { %v9025_v62 = vpop.eup %9024 }
0x57fb   :  { %6679 = vrot.lane.b32.xlu0 %v9025_v62, %s9204_s4 }
0x586d   :  { %v6680_v27 = vpop.permute.xlu0 %6679 }
0x586e   :  { %v6682_v5 = vmul.f32 %v9023_v20, %v6680_v27 }
0x5870   :  { %6876 = vrot.lane.b32.xlu0 %v6682_v5, %s9205_s15 }
0x58e2   :  { %v6877_v2 = vpop.permute.xlu0 %6876 }
0x58e3   :  { %8114 = vmatmul.mubr.msk.f32.vlgmr.msra.gmra.mrb[86].mxu1 %vm343_vm1, %v6877_v2 }
0x59b6   :  { %v6946_v21 = vpop.f32.mrb[86].mxu1 }
0x59b7   :  { %v6947_v8 = vadd.f32 %v6946_v21, %v6871_v36  ;;  %v8115_v6 = vpop.f32.mrb[87].mxu1 }
0x59b9   :  { %v6957_v38 = vadd.f32 %v7115_v17, %v6947_v8 }
0x59bb   :  { %v6959_v35 = vsel %vm6958_vm4, %v6957_v38, -inf }
0x59bc   :  { %6960 = vmax.xlane.f32.xlu1 %v6959_v35 }
0x5a49   :  { %v6961_v0 = vpop.xlane.xlu1 %6960 }
0x5a4a   :  { %v6962_v43 = vsub.f32 %v6957_v38, %v6961_v0 }
0x5a4c   :  { %v6963_v11 = vmul.f32 1.442695, %v6962_v43 }
0x5a4e   :  { %9026 = vpow2.f32 %v6963_v11 }
0x5a58   :  { %v9027_v40 = vpop.eup %9026 }
0x5a59   :  { %v6965_v61 = vsel %vm6958_vm4, %v9027_v40, 0.0 }
0x5a5a   :  { %6966 = vadd.xlane.f32.xlu0 %v6965_v61 }
0x5ae7   :  { %v6967_v19 = vpop.xlane.xlu0 %6966 }
0x5ae8   :  { %9028 = vlog2.f32 %v6967_v19 }
0x5af2   :  { %v9029_v54 = vpop.eup %9028 }
0x5af3   :  { %v6969_v18 = vmul.f32 0.6931472, %v9029_v54 }
0x5af5   :  { %v6970_v23 = vsub.f32 %v6962_v43, %v6969_v18 }
0x5af7   :  { %6971 = vst.msk [vmem:[%s10875_s19] sm:$0xff] %vm6958_vm4, %v6970_v23 }
0x5af8   :  { %6976 = vsyncpa [#allocation5], 1 }
0x5af9   :  { %6977 = vsyncpa [#allocation7], 1 }
0x5afa   :  { %6978 = vsyncpa [#allocation10], 1 }
0x5afb   :  { %6979 = vsyncpa [#allocation13], 1 }

</bundles_post_ra>
